<compile_context>
chip_gen: v6e
topology: v6e:2x2x1
jax: 0.10.0
libtpu: 0.0.40
codegen_flags: <defaults>
</compile_context>

<pallas_src>
import functools

import jax
import jax.numpy as jnp
from jax.experimental import pallas as pl
from jax.experimental.pallas import tpu as pltpu


# ---------------------------------------------------------------------------
# Shape helpers / one-time (init) conv -> matmul lowering.
# ---------------------------------------------------------------------------
def conv_out_size(size, kernel_size, stride):
    return (size - (kernel_size - 1) - 1) // stride + 1


def _dense_conv_matrix(w, in_h, in_w, stride):
    """Lower conv weights (OC, IC, KH, KW), acting on an input flattened in
    (h, w, c) order, into a dense matrix of shape (in_h*in_w*IC, oh*ow*OC)
    whose output is flattened in (oh, ow, oc) order.  Zero outside each
    kernel window.  Runs once at init."""
    oc_n, ic_n, kh, kw = w.shape
    oh = conv_out_size(in_h, kh, stride)
    ow = conv_out_size(in_w, kw, stride)
    wt = jnp.transpose(w.astype(jnp.float32), (2, 3, 1, 0))      # (KH, KW, IC, OC)
    m = jnp.zeros((in_h, in_w, ic_n, oh, ow, oc_n), jnp.float32)
    for r in range(oh):
        for c in range(ow):
            m = m.at[r * stride:r * stride + kh,
                     c * stride:c * stride + kw, :, r, c, :].set(wt)
    return m.reshape(in_h * in_w * ic_n, oh * ow * oc_n)


def prepare_dqn_params(params, input_shape, num_actions):
    """All per-forward layout work done once: conv->matmul lowering, /255
    folding, bf16 casts, fc2 lane padding."""
    c, h, w = input_shape
    assert h % 4 == 0, "conv1 slab lowering assumes H divisible by stride 4"
    h1, w1 = conv_out_size(h, 8, 4), conv_out_size(w, 8, 4)
    h2, w2 = conv_out_size(h1, 4, 2), conv_out_size(w1, 4, 2)
    h3, w3 = conv_out_size(h2, 3, 1), conv_out_size(w2, 3, 1)
    assert h1 + 1 == h // 4
    assert h3 == 1 and w3 == 1, "dense conv3/fc1 lowering assumes 1x1 conv3 output"

    bf16 = jnp.bfloat16
    f32 = jnp.float32

    # conv1: fold x/255 into the weights; kernel rows 0-3 act on input slab r,
    # kernel rows 4-7 on slab r+1 (k == 2*s).
    w1s = params["conv1_w"].astype(f32) / 255.0
    w1a = _dense_conv_matrix(w1s[:, :, 0:4, :], 4, w, 4).astype(bf16)   # (4*W*C, w1*32)
    w1b = _dense_conv_matrix(w1s[:, :, 4:8, :], 4, w, 4).astype(bf16)
    b1 = jnp.tile(params["conv1_b"].astype(f32), w1)[None, :]           # (1, w1*32)

    # conv2: dense matmul over the flattened (h1, w1, 32) conv1 activation.
    w2d = _dense_conv_matrix(params["conv2_w"].astype(f32), h1, w1, 2).astype(bf16)
    b2 = jnp.tile(params["conv2_b"].astype(f32), h2 * w2)[None, :]      # (1, h2*w2*64)

    # conv3: 3x3 valid on a 3x3 map -> single dense (h2*w2*64, 64) matrix.
    w3d = _dense_conv_matrix(params["conv3_w"].astype(f32), h2, w2, 1).astype(bf16)
    b3 = params["conv3_b"].astype(f32)[None, :]                          # (1, 64)

    # fc1 (torch (out, in)): h3 = w3 = 1 so flatten order is just channels.
    w4 = params["fc1_w"].astype(f32).T.astype(bf16)                      # (64, 512)
    b4 = params["fc1_b"].astype(f32)[None, :]

    # fc2: pre-transpose and pad output columns to a multiple of 128 lanes.
    n_lanes = ((num_actions + 127) // 128) * 128
    w5 = jnp.zeros((512, n_lanes), f32).at[:, :num_actions].set(
        params["fc2_w"].astype(f32).T).astype(bf16)
    b5 = jnp.zeros((1, n_lanes), f32).at[:, :num_actions].set(
        params["fc2_b"].astype(f32)[None, :])

    weights = dict(w1a=w1a, w1b=w1b, b1=b1, w2=w2d, b2=b2, w3=w3d, b3=b3,
                   w4=w4, b4=b4, w5=w5, b5=b5)
    dims = dict(h1=h1, w1=w1, h2=h2, w2=w2, h3=h3, w3=w3,
                slab_k=4 * w * c, n_lanes=n_lanes)
    return weights, dims


# ---------------------------------------------------------------------------
# Fused forward kernel.  One grid step = one batch tile of B samples.
# Every matmul has M = B; all operands bf16, f32 accumulation + epilogues.
# ---------------------------------------------------------------------------
def _dqn_fused_kernel(x_ref, w1a_ref, w1b_ref, b1_ref, w2_ref, b2_ref,
                      w3_ref, b3_ref, w4_ref, b4_ref, w5_ref, b5_ref,
                      out_ref, *, h1):
    f32 = jnp.float32
    bf16 = jnp.bfloat16

    w1a = w1a_ref[...]
    w1b = w1b_ref[...]
    b1 = b1_ref[...]

    # conv1 (k=8, s=4) + bias + ReLU.  Output spatial row j reads the two
    # consecutive 4-row input slabs j and j+1 (simple first-axis ref index,
    # no gathers); each dot has M = batch tile.
    rows = []
    for j in range(h1):
        acc = jnp.dot(x_ref[j], w1a, preferred_element_type=f32)
        acc = acc + jnp.dot(x_ref[j + 1], w1b, preferred_element_type=f32)
        rows.append(jnp.maximum(acc + b1, 0.0).astype(bf16))
    # Per-sample flatten in (h, w, c) order == lane-concat of the row tiles.
    a1 = jnp.concatenate(rows, axis=-1)                       # (B, h1*w1*32) bf16

    # conv2 as one dense matmul on the flattened conv1 activation.
    a2 = jnp.dot(a1, w2_ref[...], preferred_element_type=f32)
    a2 = jnp.maximum(a2 + b2_ref[...], 0.0).astype(bf16)      # (B, h2*w2*64)

    # conv3 (-> 1x1 spatial) as a dense matmul.
    a3 = jnp.dot(a2, w3_ref[...], preferred_element_type=f32)
    a3 = jnp.maximum(a3 + b3_ref[...], 0.0).astype(bf16)      # (B, 64)

    # fc1 + ReLU.
    h4 = jnp.dot(a3, w4_ref[...], preferred_element_type=f32)
    h4 = jnp.maximum(h4 + b4_ref[...], 0.0).astype(bf16)      # (B, 512)

    # fc2 (no ReLU); output lanes pre-padded to a multiple of 128.
    out_ref[...] = (jnp.dot(h4, w5_ref[...], preferred_element_type=f32)
                    + b5_ref[...])


# ---------------------------------------------------------------------------
# Forward: one pallas_call, grid over batch tiles.
# NOTE: the kernel assumes raw 0..255 pixel inputs (the /255 is folded into
# the conv1 weights at init).
# ---------------------------------------------------------------------------
def dqn_forward(weights, x, *, dims, num_actions, b_tile=128):
    n, c, h, w = x.shape
    h1 = dims["h1"]
    slab_k = dims["slab_k"]
    n_lanes = dims["n_lanes"]

    b_tile = int(min(b_tile, n))
    n_padded = ((n + b_tile - 1) // b_tile) * b_tile

    # Input layout work in bf16 (exact for 0..255 pixels):
    #   NCHW -> NHWC -> (N, H/4, 4*W*C) non-overlapping 4-row slabs
    #        -> (H/4, N, 4*W*C) so the kernel indexes whole batch-slabs.
    x_bf = jnp.transpose(x.astype(jnp.bfloat16), (0, 2, 3, 1))
    x_slab = x_bf.reshape(n, h // 4, slab_k).transpose(1, 0, 2)
    if n_padded != n:
        x_slab = jnp.pad(x_slab, ((0, 0), (0, n_padded - n), (0, 0)))

    kernel = functools.partial(_dqn_fused_kernel, h1=h1)

    def _full(arr):
        nd = arr.ndim
        return pl.BlockSpec(arr.shape, lambda i: (0,) * nd)

    # Weight specs are grid-invariant (constant index_map), so they are
    # fetched once and stay VMEM-resident across grid steps.
    out = pl.pallas_call(
        kernel,
        grid=(n_padded // b_tile,),
        in_specs=[
            pl.BlockSpec((h // 4, b_tile, slab_k), lambda i: (0, i, 0)),
            _full(weights["w1a"]), _full(weights["w1b"]), _full(weights["b1"]),
            _full(weights["w2"]), _full(weights["b2"]),
            _full(weights["w3"]), _full(weights["b3"]),
            _full(weights["w4"]), _full(weights["b4"]),
            _full(weights["w5"]), _full(weights["b5"]),
        ],
        out_specs=pl.BlockSpec((b_tile, n_lanes), lambda i: (i, 0)),
        out_shape=jax.ShapeDtypeStruct((n_padded, n_lanes), jnp.float32),
        compiler_params=pltpu.CompilerParams(
            dimension_semantics=("parallel",)),
    )(x_slab,
      weights["w1a"], weights["w1b"], weights["b1"],
      weights["w2"], weights["b2"],
      weights["w3"], weights["b3"],
      weights["w4"], weights["b4"],
      weights["w5"], weights["b5"])

    return out[:n, :num_actions]


# ---------------------------------------------------------------------------
# Parameter init (torch-layout params) and a pure-XLA f32 reference.
# ---------------------------------------------------------------------------
def init_dqn_params(key, input_shape, num_actions):
    c, h, w = input_shape
    h1, w1 = conv_out_size(h, 8, 4), conv_out_size(w, 8, 4)
    h2, w2 = conv_out_size(h1, 4, 2), conv_out_size(w1, 4, 2)
    h3, w3 = conv_out_size(h2, 3, 1), conv_out_size(w2, 3, 1)
    flattened = 64 * h3 * w3

    ks = jax.random.split(key, 10)

    def winit(k, shape, fan_in):
        return jax.random.normal(k, shape, jnp.float32) * (1.0 / jnp.sqrt(fan_in))

    return {
        "conv1_w": winit(ks[0], (32, c, 8, 8), c * 8 * 8),
        "conv1_b": winit(ks[1], (32,), c * 8 * 8),
        "conv2_w": winit(ks[2], (64, 32, 4, 4), 32 * 4 * 4),
        "conv2_b": winit(ks[3], (64,), 32 * 4 * 4),
        "conv3_w": winit(ks[4], (64, 64, 3, 3), 64 * 3 * 3),
        "conv3_b": winit(ks[5], (64,), 64 * 3 * 3),
        "fc1_w": winit(ks[6], (512, flattened), flattened),   # (out, in) torch
        "fc1_b": winit(ks[7], (512,), flattened),
        "fc2_w": winit(ks[8], (num_actions, 512), 512),
        "fc2_b": winit(ks[9], (num_actions,), 512),
    }


def dqn_reference(params, x):
    """Pure-XLA f32 reference with identical semantics to the PyTorch module."""
    x = x.astype(jnp.float32) / 255.0

    def conv(y, wk, bk, stride):
        y = jax.lax.conv_general_dilated(
            y, wk, window_strides=(stride, stride), padding="VALID",
            dimension_numbers=("NCHW", "OIHW", "NCHW"),
            precision=jax.lax.Precision.HIGHEST)
        return jax.nn.relu(y + bk[None, :, None, None])

    y = conv(x, params["conv1_w"], params["conv1_b"], 4)
    y = conv(y, params["conv2_w"], params["conv2_b"], 2)
    y = conv(y, params["conv3_w"], params["conv3_b"], 1)
    y = y.reshape(y.shape[0], -1)
    y = jax.nn.relu(jnp.dot(y, params["fc1_w"].T,
                            precision=jax.lax.Precision.HIGHEST)
                    + params["fc1_b"])
    return jnp.dot(y, params["fc2_w"].T,
                   precision=jax.lax.Precision.HIGHEST) + params["fc2_b"]


if __name__ == "__main__":
    input_shape = (4, 36, 36)      # (C, H, W): conv stack -> 1x1x64 -> fc
    num_actions = 6
    batch = 64
    b_tile = 32                    # grid = 2 steps (keeps both v7x TCs busy)

    key = jax.random.PRNGKey(0)
    pkey, xkey = jax.random.split(key)
    params = init_dqn_params(pkey, input_shape, num_actions)
    weights, dims = prepare_dqn_params(params, input_shape, num_actions)

    # Raw 0..255 pixel values (the module divides by 255 internally).
    x = jax.random.randint(
        xkey, (batch,) + input_shape, 0, 256, dtype=jnp.int32
    ).astype(jnp.float32)

    fwd = jax.jit(functools.partial(dqn_forward, dims=dims,
                                    num_actions=num_actions, b_tile=b_tile))
    out = jax.block_until_ready(fwd(weights, x))
    assert out.shape == (batch, num_actions), out.shape

    # Numerical parity against the f32 reference (kernel matmuls run in bf16
    # with f32 accumulation, so the tolerance is loosened accordingly).
    ref = jax.block_until_ready(dqn_reference(params, x))
    max_err = float(jnp.max(jnp.abs(out - ref)))
    assert jnp.allclose(out, ref, atol=5e-2, rtol=5e-2), f"max abs err={max_err}"

    print("KERNEL_OK")
</pallas_src>

<mosaic_0001>
module attributes {stable_mosaic.version = 11 : i64} {
  func.func @_dqn_fused_kernel(%arg0: i32, %arg1: memref<9x32x576xbf16, #tpu.memory_space<vmem>>, %arg2: memref<576x256xbf16, #tpu.memory_space<vmem>>, %arg3: memref<576x256xbf16, #tpu.memory_space<vmem>>, %arg4: memref<1x256xf32, #tpu.memory_space<vmem>>, %arg5: memref<2048x576xbf16, #tpu.memory_space<vmem>>, %arg6: memref<1x576xf32, #tpu.memory_space<vmem>>, %arg7: memref<576x64xbf16, #tpu.memory_space<vmem>>, %arg8: memref<1x64xf32, #tpu.memory_space<vmem>>, %arg9: memref<64x512xbf16, #tpu.memory_space<vmem>>, %arg10: memref<1x512xf32, #tpu.memory_space<vmem>>, %arg11: memref<512x128xbf16, #tpu.memory_space<vmem>>, %arg12: memref<1x128xf32, #tpu.memory_space<vmem>>, %arg13: memref<32x128xf32, #tpu.memory_space<vmem>>) attributes {dimension_semantics = [#tpu.dimension_semantics<parallel>], iteration_bounds = array<i64: 2>, scalar_prefetch = 0 : i64, scratch_operands = 0 : i64, tpu.core_type = #tpu.core_type<tc>, window_params = [{transform_indices = @transform_0, window_bounds = array<i64: 9, 32, 576>}, {pipeline_mode = #tpu.pipeline_mode<synchronous>, transform_indices = @transform_1, window_bounds = array<i64: 576, 256>}, {pipeline_mode = #tpu.pipeline_mode<synchronous>, transform_indices = @transform_2, window_bounds = array<i64: 576, 256>}, {pipeline_mode = #tpu.pipeline_mode<synchronous>, transform_indices = @transform_3, window_bounds = array<i64: 1, 256>}, {pipeline_mode = #tpu.pipeline_mode<synchronous>, transform_indices = @transform_4, window_bounds = array<i64: 2048, 576>}, {pipeline_mode = #tpu.pipeline_mode<synchronous>, transform_indices = @transform_5, window_bounds = array<i64: 1, 576>}, {pipeline_mode = #tpu.pipeline_mode<synchronous>, transform_indices = @transform_6, window_bounds = array<i64: 576, 64>}, {pipeline_mode = #tpu.pipeline_mode<synchronous>, transform_indices = @transform_7, window_bounds = array<i64: 1, 64>}, {pipeline_mode = #tpu.pipeline_mode<synchronous>, transform_indices = @transform_8, window_bounds = array<i64: 64, 512>}, {pipeline_mode = #tpu.pipeline_mode<synchronous>, transform_indices = @transform_9, window_bounds = array<i64: 1, 512>}, {pipeline_mode = #tpu.pipeline_mode<synchronous>, transform_indices = @transform_10, window_bounds = array<i64: 512, 128>}, {pipeline_mode = #tpu.pipeline_mode<synchronous>, transform_indices = @transform_11, window_bounds = array<i64: 1, 128>}, {transform_indices = @transform_12, window_bounds = array<i64: 32, 128>}]} {
    %c0 = arith.constant 0 : index
    %c0_0 = arith.constant 0 : index
    %0 = vector.load %arg2[%c0, %c0_0] : memref<576x256xbf16, #tpu.memory_space<vmem>>, vector<576x256xbf16>
    %c0_1 = arith.constant 0 : index
    %c0_2 = arith.constant 0 : index
    %1 = vector.load %arg3[%c0_1, %c0_2] : memref<576x256xbf16, #tpu.memory_space<vmem>>, vector<576x256xbf16>
    %c0_3 = arith.constant 0 : index
    %c0_4 = arith.constant 0 : index
    %2 = vector.load %arg4[%c0_3, %c0_4] : memref<1x256xf32, #tpu.memory_space<vmem>>, vector<1x256xf32>
    %c0_5 = arith.constant 0 : index
    %c0_6 = arith.constant 0 : index
    %c0_7 = arith.constant 0 : index
    %3 = vector.load %arg1[%c0_5, %c0_6, %c0_7] : memref<9x32x576xbf16, #tpu.memory_space<vmem>>, vector<1x32x576xbf16>
    %4 = vector.shape_cast %3 : vector<1x32x576xbf16> to vector<32x576xbf16>
    %cst = arith.constant dense<0.000000e+00> : vector<32x256xf32>
    %5 = tpu.matmul %4, %0, %cst {dimension_numbers = #tpu.dot_dimension_numbers<[1], [0], [0], [1], [0, 0, 1, 1], [], []>} : vector<32x576xbf16>, vector<576x256xbf16>, vector<32x256xf32> -> vector<32x256xf32>
    %c1 = arith.constant 1 : index
    %c0_8 = arith.constant 0 : index
    %c0_9 = arith.constant 0 : index
    %6 = vector.load %arg1[%c1, %c0_8, %c0_9] : memref<9x32x576xbf16, #tpu.memory_space<vmem>>, vector<1x32x576xbf16>
    %7 = vector.shape_cast %6 : vector<1x32x576xbf16> to vector<32x576xbf16>
    %cst_10 = arith.constant dense<0.000000e+00> : vector<32x256xf32>
    %8 = tpu.matmul %7, %1, %cst_10 {dimension_numbers = #tpu.dot_dimension_numbers<[1], [0], [0], [1], [0, 0, 1, 1], [], []>} : vector<32x576xbf16>, vector<576x256xbf16>, vector<32x256xf32> -> vector<32x256xf32>
    %9 = arith.addf %5, %8 : vector<32x256xf32>
    %10 = vector.broadcast %2 : vector<1x256xf32> to vector<32x256xf32>
    %11 = arith.addf %9, %10 : vector<32x256xf32>
    %cst_11 = arith.constant 0.000000e+00 : f32
    %12 = vector.broadcast %cst_11 : f32 to vector<32x256xf32>
    %13 = arith.maximumf %11, %12 : vector<32x256xf32>
    %14 = arith.truncf %13 : vector<32x256xf32> to vector<32x256xbf16>
    %c1_12 = arith.constant 1 : index
    %c0_13 = arith.constant 0 : index
    %c0_14 = arith.constant 0 : index
    %15 = vector.load %arg1[%c1_12, %c0_13, %c0_14] : memref<9x32x576xbf16, #tpu.memory_space<vmem>>, vector<1x32x576xbf16>
    %16 = vector.shape_cast %15 : vector<1x32x576xbf16> to vector<32x576xbf16>
    %cst_15 = arith.constant dense<0.000000e+00> : vector<32x256xf32>
    %17 = tpu.matmul %16, %0, %cst_15 {dimension_numbers = #tpu.dot_dimension_numbers<[1], [0], [0], [1], [0, 0, 1, 1], [], []>} : vector<32x576xbf16>, vector<576x256xbf16>, vector<32x256xf32> -> vector<32x256xf32>
    %c2 = arith.constant 2 : index
    %c0_16 = arith.constant 0 : index
    %c0_17 = arith.constant 0 : index
    %18 = vector.load %arg1[%c2, %c0_16, %c0_17] : memref<9x32x576xbf16, #tpu.memory_space<vmem>>, vector<1x32x576xbf16>
    %19 = vector.shape_cast %18 : vector<1x32x576xbf16> to vector<32x576xbf16>
    %cst_18 = arith.constant dense<0.000000e+00> : vector<32x256xf32>
    %20 = tpu.matmul %19, %1, %cst_18 {dimension_numbers = #tpu.dot_dimension_numbers<[1], [0], [0], [1], [0, 0, 1, 1], [], []>} : vector<32x576xbf16>, vector<576x256xbf16>, vector<32x256xf32> -> vector<32x256xf32>
    %21 = arith.addf %17, %20 : vector<32x256xf32>
    %22 = vector.broadcast %2 : vector<1x256xf32> to vector<32x256xf32>
    %23 = arith.addf %21, %22 : vector<32x256xf32>
    %cst_19 = arith.constant 0.000000e+00 : f32
    %24 = vector.broadcast %cst_19 : f32 to vector<32x256xf32>
    %25 = arith.maximumf %23, %24 : vector<32x256xf32>
    %26 = arith.truncf %25 : vector<32x256xf32> to vector<32x256xbf16>
    %c2_20 = arith.constant 2 : index
    %c0_21 = arith.constant 0 : index
    %c0_22 = arith.constant 0 : index
    %27 = vector.load %arg1[%c2_20, %c0_21, %c0_22] : memref<9x32x576xbf16, #tpu.memory_space<vmem>>, vector<1x32x576xbf16>
    %28 = vector.shape_cast %27 : vector<1x32x576xbf16> to vector<32x576xbf16>
    %cst_23 = arith.constant dense<0.000000e+00> : vector<32x256xf32>
    %29 = tpu.matmul %28, %0, %cst_23 {dimension_numbers = #tpu.dot_dimension_numbers<[1], [0], [0], [1], [0, 0, 1, 1], [], []>} : vector<32x576xbf16>, vector<576x256xbf16>, vector<32x256xf32> -> vector<32x256xf32>
    %c3 = arith.constant 3 : index
    %c0_24 = arith.constant 0 : index
    %c0_25 = arith.constant 0 : index
    %30 = vector.load %arg1[%c3, %c0_24, %c0_25] : memref<9x32x576xbf16, #tpu.memory_space<vmem>>, vector<1x32x576xbf16>
    %31 = vector.shape_cast %30 : vector<1x32x576xbf16> to vector<32x576xbf16>
    %cst_26 = arith.constant dense<0.000000e+00> : vector<32x256xf32>
    %32 = tpu.matmul %31, %1, %cst_26 {dimension_numbers = #tpu.dot_dimension_numbers<[1], [0], [0], [1], [0, 0, 1, 1], [], []>} : vector<32x576xbf16>, vector<576x256xbf16>, vector<32x256xf32> -> vector<32x256xf32>
    %33 = arith.addf %29, %32 : vector<32x256xf32>
    %34 = vector.broadcast %2 : vector<1x256xf32> to vector<32x256xf32>
    %35 = arith.addf %33, %34 : vector<32x256xf32>
    %cst_27 = arith.constant 0.000000e+00 : f32
    %36 = vector.broadcast %cst_27 : f32 to vector<32x256xf32>
    %37 = arith.maximumf %35, %36 : vector<32x256xf32>
    %38 = arith.truncf %37 : vector<32x256xf32> to vector<32x256xbf16>
    %c3_28 = arith.constant 3 : index
    %c0_29 = arith.constant 0 : index
    %c0_30 = arith.constant 0 : index
    %39 = vector.load %arg1[%c3_28, %c0_29, %c0_30] : memref<9x32x576xbf16, #tpu.memory_space<vmem>>, vector<1x32x576xbf16>
    %40 = vector.shape_cast %39 : vector<1x32x576xbf16> to vector<32x576xbf16>
    %cst_31 = arith.constant dense<0.000000e+00> : vector<32x256xf32>
    %41 = tpu.matmul %40, %0, %cst_31 {dimension_numbers = #tpu.dot_dimension_numbers<[1], [0], [0], [1], [0, 0, 1, 1], [], []>} : vector<32x576xbf16>, vector<576x256xbf16>, vector<32x256xf32> -> vector<32x256xf32>
    %c4 = arith.constant 4 : index
    %c0_32 = arith.constant 0 : index
    %c0_33 = arith.constant 0 : index
    %42 = vector.load %arg1[%c4, %c0_32, %c0_33] : memref<9x32x576xbf16, #tpu.memory_space<vmem>>, vector<1x32x576xbf16>
    %43 = vector.shape_cast %42 : vector<1x32x576xbf16> to vector<32x576xbf16>
    %cst_34 = arith.constant dense<0.000000e+00> : vector<32x256xf32>
    %44 = tpu.matmul %43, %1, %cst_34 {dimension_numbers = #tpu.dot_dimension_numbers<[1], [0], [0], [1], [0, 0, 1, 1], [], []>} : vector<32x576xbf16>, vector<576x256xbf16>, vector<32x256xf32> -> vector<32x256xf32>
    %45 = arith.addf %41, %44 : vector<32x256xf32>
    %46 = vector.broadcast %2 : vector<1x256xf32> to vector<32x256xf32>
    %47 = arith.addf %45, %46 : vector<32x256xf32>
    %cst_35 = arith.constant 0.000000e+00 : f32
    %48 = vector.broadcast %cst_35 : f32 to vector<32x256xf32>
    %49 = arith.maximumf %47, %48 : vector<32x256xf32>
    %50 = arith.truncf %49 : vector<32x256xf32> to vector<32x256xbf16>
    %c4_36 = arith.constant 4 : index
    %c0_37 = arith.constant 0 : index
    %c0_38 = arith.constant 0 : index
    %51 = vector.load %arg1[%c4_36, %c0_37, %c0_38] : memref<9x32x576xbf16, #tpu.memory_space<vmem>>, vector<1x32x576xbf16>
    %52 = vector.shape_cast %51 : vector<1x32x576xbf16> to vector<32x576xbf16>
    %cst_39 = arith.constant dense<0.000000e+00> : vector<32x256xf32>
    %53 = tpu.matmul %52, %0, %cst_39 {dimension_numbers = #tpu.dot_dimension_numbers<[1], [0], [0], [1], [0, 0, 1, 1], [], []>} : vector<32x576xbf16>, vector<576x256xbf16>, vector<32x256xf32> -> vector<32x256xf32>
    %c5 = arith.constant 5 : index
    %c0_40 = arith.constant 0 : index
    %c0_41 = arith.constant 0 : index
    %54 = vector.load %arg1[%c5, %c0_40, %c0_41] : memref<9x32x576xbf16, #tpu.memory_space<vmem>>, vector<1x32x576xbf16>
    %55 = vector.shape_cast %54 : vector<1x32x576xbf16> to vector<32x576xbf16>
    %cst_42 = arith.constant dense<0.000000e+00> : vector<32x256xf32>
    %56 = tpu.matmul %55, %1, %cst_42 {dimension_numbers = #tpu.dot_dimension_numbers<[1], [0], [0], [1], [0, 0, 1, 1], [], []>} : vector<32x576xbf16>, vector<576x256xbf16>, vector<32x256xf32> -> vector<32x256xf32>
    %57 = arith.addf %53, %56 : vector<32x256xf32>
    %58 = vector.broadcast %2 : vector<1x256xf32> to vector<32x256xf32>
    %59 = arith.addf %57, %58 : vector<32x256xf32>
    %cst_43 = arith.constant 0.000000e+00 : f32
    %60 = vector.broadcast %cst_43 : f32 to vector<32x256xf32>
    %61 = arith.maximumf %59, %60 : vector<32x256xf32>
    %62 = arith.truncf %61 : vector<32x256xf32> to vector<32x256xbf16>
    %c5_44 = arith.constant 5 : index
    %c0_45 = arith.constant 0 : index
    %c0_46 = arith.constant 0 : index
    %63 = vector.load %arg1[%c5_44, %c0_45, %c0_46] : memref<9x32x576xbf16, #tpu.memory_space<vmem>>, vector<1x32x576xbf16>
    %64 = vector.shape_cast %63 : vector<1x32x576xbf16> to vector<32x576xbf16>
    %cst_47 = arith.constant dense<0.000000e+00> : vector<32x256xf32>
    %65 = tpu.matmul %64, %0, %cst_47 {dimension_numbers = #tpu.dot_dimension_numbers<[1], [0], [0], [1], [0, 0, 1, 1], [], []>} : vector<32x576xbf16>, vector<576x256xbf16>, vector<32x256xf32> -> vector<32x256xf32>
    %c6 = arith.constant 6 : index
    %c0_48 = arith.constant 0 : index
    %c0_49 = arith.constant 0 : index
    %66 = vector.load %arg1[%c6, %c0_48, %c0_49] : memref<9x32x576xbf16, #tpu.memory_space<vmem>>, vector<1x32x576xbf16>
    %67 = vector.shape_cast %66 : vector<1x32x576xbf16> to vector<32x576xbf16>
    %cst_50 = arith.constant dense<0.000000e+00> : vector<32x256xf32>
    %68 = tpu.matmul %67, %1, %cst_50 {dimension_numbers = #tpu.dot_dimension_numbers<[1], [0], [0], [1], [0, 0, 1, 1], [], []>} : vector<32x576xbf16>, vector<576x256xbf16>, vector<32x256xf32> -> vector<32x256xf32>
    %69 = arith.addf %65, %68 : vector<32x256xf32>
    %70 = vector.broadcast %2 : vector<1x256xf32> to vector<32x256xf32>
    %71 = arith.addf %69, %70 : vector<32x256xf32>
    %cst_51 = arith.constant 0.000000e+00 : f32
    %72 = vector.broadcast %cst_51 : f32 to vector<32x256xf32>
    %73 = arith.maximumf %71, %72 : vector<32x256xf32>
    %74 = arith.truncf %73 : vector<32x256xf32> to vector<32x256xbf16>
    %c6_52 = arith.constant 6 : index
    %c0_53 = arith.constant 0 : index
    %c0_54 = arith.constant 0 : index
    %75 = vector.load %arg1[%c6_52, %c0_53, %c0_54] : memref<9x32x576xbf16, #tpu.memory_space<vmem>>, vector<1x32x576xbf16>
    %76 = vector.shape_cast %75 : vector<1x32x576xbf16> to vector<32x576xbf16>
    %cst_55 = arith.constant dense<0.000000e+00> : vector<32x256xf32>
    %77 = tpu.matmul %76, %0, %cst_55 {dimension_numbers = #tpu.dot_dimension_numbers<[1], [0], [0], [1], [0, 0, 1, 1], [], []>} : vector<32x576xbf16>, vector<576x256xbf16>, vector<32x256xf32> -> vector<32x256xf32>
    %c7 = arith.constant 7 : index
    %c0_56 = arith.constant 0 : index
    %c0_57 = arith.constant 0 : index
    %78 = vector.load %arg1[%c7, %c0_56, %c0_57] : memref<9x32x576xbf16, #tpu.memory_space<vmem>>, vector<1x32x576xbf16>
    %79 = vector.shape_cast %78 : vector<1x32x576xbf16> to vector<32x576xbf16>
    %cst_58 = arith.constant dense<0.000000e+00> : vector<32x256xf32>
    %80 = tpu.matmul %79, %1, %cst_58 {dimension_numbers = #tpu.dot_dimension_numbers<[1], [0], [0], [1], [0, 0, 1, 1], [], []>} : vector<32x576xbf16>, vector<576x256xbf16>, vector<32x256xf32> -> vector<32x256xf32>
    %81 = arith.addf %77, %80 : vector<32x256xf32>
    %82 = vector.broadcast %2 : vector<1x256xf32> to vector<32x256xf32>
    %83 = arith.addf %81, %82 : vector<32x256xf32>
    %cst_59 = arith.constant 0.000000e+00 : f32
    %84 = vector.broadcast %cst_59 : f32 to vector<32x256xf32>
    %85 = arith.maximumf %83, %84 : vector<32x256xf32>
    %86 = arith.truncf %85 : vector<32x256xf32> to vector<32x256xbf16>
    %c7_60 = arith.constant 7 : index
    %c0_61 = arith.constant 0 : index
    %c0_62 = arith.constant 0 : index
    %87 = vector.load %arg1[%c7_60, %c0_61, %c0_62] : memref<9x32x576xbf16, #tpu.memory_space<vmem>>, vector<1x32x576xbf16>
    %88 = vector.shape_cast %87 : vector<1x32x576xbf16> to vector<32x576xbf16>
    %cst_63 = arith.constant dense<0.000000e+00> : vector<32x256xf32>
    %89 = tpu.matmul %88, %0, %cst_63 {dimension_numbers = #tpu.dot_dimension_numbers<[1], [0], [0], [1], [0, 0, 1, 1], [], []>} : vector<32x576xbf16>, vector<576x256xbf16>, vector<32x256xf32> -> vector<32x256xf32>
    %c8 = arith.constant 8 : index
    %c0_64 = arith.constant 0 : index
    %c0_65 = arith.constant 0 : index
    %90 = vector.load %arg1[%c8, %c0_64, %c0_65] : memref<9x32x576xbf16, #tpu.memory_space<vmem>>, vector<1x32x576xbf16>
    %91 = vector.shape_cast %90 : vector<1x32x576xbf16> to vector<32x576xbf16>
    %cst_66 = arith.constant dense<0.000000e+00> : vector<32x256xf32>
    %92 = tpu.matmul %91, %1, %cst_66 {dimension_numbers = #tpu.dot_dimension_numbers<[1], [0], [0], [1], [0, 0, 1, 1], [], []>} : vector<32x576xbf16>, vector<576x256xbf16>, vector<32x256xf32> -> vector<32x256xf32>
    %93 = arith.addf %89, %92 : vector<32x256xf32>
    %94 = vector.broadcast %2 : vector<1x256xf32> to vector<32x256xf32>
    %95 = arith.addf %93, %94 : vector<32x256xf32>
    %cst_67 = arith.constant 0.000000e+00 : f32
    %96 = vector.broadcast %cst_67 : f32 to vector<32x256xf32>
    %97 = arith.maximumf %95, %96 : vector<32x256xf32>
    %98 = arith.truncf %97 : vector<32x256xf32> to vector<32x256xbf16>
    %99 = tpu.concatenate %14, %26, %38, %50, %62, %74, %86, %98 in 1 : vector<32x256xbf16>, vector<32x256xbf16>, vector<32x256xbf16>, vector<32x256xbf16>, vector<32x256xbf16>, vector<32x256xbf16>, vector<32x256xbf16>, vector<32x256xbf16> -> vector<32x2048xbf16>
    %c0_68 = arith.constant 0 : index
    %c0_69 = arith.constant 0 : index
    %100 = vector.load %arg5[%c0_68, %c0_69] : memref<2048x576xbf16, #tpu.memory_space<vmem>>, vector<2048x576xbf16>
    %cst_70 = arith.constant dense<0.000000e+00> : vector<32x576xf32>
    %101 = tpu.matmul %99, %100, %cst_70 {dimension_numbers = #tpu.dot_dimension_numbers<[1], [0], [0], [1], [0, 0, 1, 1], [], []>} : vector<32x2048xbf16>, vector<2048x576xbf16>, vector<32x576xf32> -> vector<32x576xf32>
    %c0_71 = arith.constant 0 : index
    %c0_72 = arith.constant 0 : index
    %102 = vector.load %arg6[%c0_71, %c0_72] : memref<1x576xf32, #tpu.memory_space<vmem>>, vector<1x576xf32>
    %103 = vector.broadcast %102 : vector<1x576xf32> to vector<32x576xf32>
    %104 = arith.addf %101, %103 : vector<32x576xf32>
    %cst_73 = arith.constant 0.000000e+00 : f32
    %105 = vector.broadcast %cst_73 : f32 to vector<32x576xf32>
    %106 = arith.maximumf %104, %105 : vector<32x576xf32>
    %107 = arith.truncf %106 : vector<32x576xf32> to vector<32x576xbf16>
    %c0_74 = arith.constant 0 : index
    %c0_75 = arith.constant 0 : index
    %108 = vector.load %arg7[%c0_74, %c0_75] : memref<576x64xbf16, #tpu.memory_space<vmem>>, vector<576x64xbf16>
    %cst_76 = arith.constant dense<0.000000e+00> : vector<32x64xf32>
    %109 = tpu.matmul %107, %108, %cst_76 {dimension_numbers = #tpu.dot_dimension_numbers<[1], [0], [0], [1], [0, 0, 1, 1], [], []>} : vector<32x576xbf16>, vector<576x64xbf16>, vector<32x64xf32> -> vector<32x64xf32>
    %c0_77 = arith.constant 0 : index
    %c0_78 = arith.constant 0 : index
    %110 = vector.load %arg8[%c0_77, %c0_78] : memref<1x64xf32, #tpu.memory_space<vmem>>, vector<1x64xf32>
    %111 = vector.broadcast %110 : vector<1x64xf32> to vector<32x64xf32>
    %112 = arith.addf %109, %111 : vector<32x64xf32>
    %cst_79 = arith.constant 0.000000e+00 : f32
    %113 = vector.broadcast %cst_79 : f32 to vector<32x64xf32>
    %114 = arith.maximumf %112, %113 : vector<32x64xf32>
    %115 = arith.truncf %114 : vector<32x64xf32> to vector<32x64xbf16>
    %c0_80 = arith.constant 0 : index
    %c0_81 = arith.constant 0 : index
    %116 = vector.load %arg9[%c0_80, %c0_81] : memref<64x512xbf16, #tpu.memory_space<vmem>>, vector<64x512xbf16>
    %cst_82 = arith.constant dense<0.000000e+00> : vector<32x512xf32>
    %117 = tpu.matmul %115, %116, %cst_82 {dimension_numbers = #tpu.dot_dimension_numbers<[1], [0], [0], [1], [0, 0, 1, 1], [], []>} : vector<32x64xbf16>, vector<64x512xbf16>, vector<32x512xf32> -> vector<32x512xf32>
    %c0_83 = arith.constant 0 : index
    %c0_84 = arith.constant 0 : index
    %118 = vector.load %arg10[%c0_83, %c0_84] : memref<1x512xf32, #tpu.memory_space<vmem>>, vector<1x512xf32>
    %119 = vector.broadcast %118 : vector<1x512xf32> to vector<32x512xf32>
    %120 = arith.addf %117, %119 : vector<32x512xf32>
    %cst_85 = arith.constant 0.000000e+00 : f32
    %121 = vector.broadcast %cst_85 : f32 to vector<32x512xf32>
    %122 = arith.maximumf %120, %121 : vector<32x512xf32>
    %123 = arith.truncf %122 : vector<32x512xf32> to vector<32x512xbf16>
    %c0_86 = arith.constant 0 : index
    %c0_87 = arith.constant 0 : index
    %124 = vector.load %arg11[%c0_86, %c0_87] : memref<512x128xbf16, #tpu.memory_space<vmem>>, vector<512x128xbf16>
    %cst_88 = arith.constant dense<0.000000e+00> : vector<32x128xf32>
    %125 = tpu.matmul %123, %124, %cst_88 {dimension_numbers = #tpu.dot_dimension_numbers<[1], [0], [0], [1], [0, 0, 1, 1], [], []>} : vector<32x512xbf16>, vector<512x128xbf16>, vector<32x128xf32> -> vector<32x128xf32>
    %c0_89 = arith.constant 0 : index
    %c0_90 = arith.constant 0 : index
    %126 = vector.load %arg12[%c0_89, %c0_90] : memref<1x128xf32, #tpu.memory_space<vmem>>, vector<1x128xf32>
    %127 = vector.broadcast %126 : vector<1x128xf32> to vector<32x128xf32>
    %128 = arith.addf %125, %127 : vector<32x128xf32>
    %c0_91 = arith.constant 0 : index
    %c0_92 = arith.constant 0 : index
    %129 = vector.load %arg13[%c0_91, %c0_92] : memref<32x128xf32, #tpu.memory_space<vmem>>, vector<32x128xf32>
    tpu.vector_store %arg13[%c0_91, %c0_92], %128 {strides = array<i32>} : memref<32x128xf32, #tpu.memory_space<vmem>>, vector<32x128xf32>,
    return
  }
  func.func @transform_0(%arg0: i32) -> (i32, i32, i32) {
    %c0_i32 = arith.constant 0 : i32
    %c0_i32_0 = arith.constant 0 : i32
    %c0_i32_1 = arith.constant 0 : i32
    return %c0_i32, %arg0, %c0_i32_0 : i32, i32, i32
  }
  func.func @transform_1(%arg0: i32) -> (i32, i32) {
    %c0_i32 = arith.constant 0 : i32
    %c0_i32_0 = arith.constant 0 : i32
    %c0_i32_1 = arith.constant 0 : i32
    return %c0_i32, %c0_i32_0 : i32, i32
  }
  func.func @transform_2(%arg0: i32) -> (i32, i32) {
    %c0_i32 = arith.constant 0 : i32
    %c0_i32_0 = arith.constant 0 : i32
    %c0_i32_1 = arith.constant 0 : i32
    return %c0_i32, %c0_i32_0 : i32, i32
  }
  func.func @transform_3(%arg0: i32) -> (i32, i32) {
    %c0_i32 = arith.constant 0 : i32
    %c0_i32_0 = arith.constant 0 : i32
    %c0_i32_1 = arith.constant 0 : i32
    return %c0_i32, %c0_i32_0 : i32, i32
  }
  func.func @transform_4(%arg0: i32) -> (i32, i32) {
    %c0_i32 = arith.constant 0 : i32
    %c0_i32_0 = arith.constant 0 : i32
    %c0_i32_1 = arith.constant 0 : i32
    return %c0_i32, %c0_i32_0 : i32, i32
  }
  func.func @transform_5(%arg0: i32) -> (i32, i32) {
    %c0_i32 = arith.constant 0 : i32
    %c0_i32_0 = arith.constant 0 : i32
    %c0_i32_1 = arith.constant 0 : i32
    return %c0_i32, %c0_i32_0 : i32, i32
  }
  func.func @transform_6(%arg0: i32) -> (i32, i32) {
    %c0_i32 = arith.constant 0 : i32
    %c0_i32_0 = arith.constant 0 : i32
    %c0_i32_1 = arith.constant 0 : i32
    return %c0_i32, %c0_i32_0 : i32, i32
  }
  func.func @transform_7(%arg0: i32) -> (i32, i32) {
    %c0_i32 = arith.constant 0 : i32
    %c0_i32_0 = arith.constant 0 : i32
    %c0_i32_1 = arith.constant 0 : i32
    return %c0_i32, %c0_i32_0 : i32, i32
  }
  func.func @transform_8(%arg0: i32) -> (i32, i32) {
    %c0_i32 = arith.constant 0 : i32
    %c0_i32_0 = arith.constant 0 : i32
    %c0_i32_1 = arith.constant 0 : i32
    return %c0_i32, %c0_i32_0 : i32, i32
  }
  func.func @transform_9(%arg0: i32) -> (i32, i32) {
    %c0_i32 = arith.constant 0 : i32
    %c0_i32_0 = arith.constant 0 : i32
    %c0_i32_1 = arith.constant 0 : i32
    return %c0_i32, %c0_i32_0 : i32, i32
  }
  func.func @transform_10(%arg0: i32) -> (i32, i32) {
    %c0_i32 = arith.constant 0 : i32
    %c0_i32_0 = arith.constant 0 : i32
    %c0_i32_1 = arith.constant 0 : i32
    return %c0_i32, %c0_i32_0 : i32, i32
  }
  func.func @transform_11(%arg0: i32) -> (i32, i32) {
    %c0_i32 = arith.constant 0 : i32
    %c0_i32_0 = arith.constant 0 : i32
    %c0_i32_1 = arith.constant 0 : i32
    return %c0_i32, %c0_i32_0 : i32, i32
  }
  func.func @transform_12(%arg0: i32) -> (i32, i32) {
    %c0_i32 = arith.constant 0 : i32
    %c0_i32_0 = arith.constant 0 : i32
    return %arg0, %c0_i32 : i32, i32
  }
}

</mosaic_0001>

<bundles_post_ra>
// kernel: dqn_forward.1
= control target key start
LH: loop header
LB: loop body
LE: loop exit
PB: predicated region body
PF: predicated region fallthrough
CT: control target
= control target key end

     0   :  { %s15065_s21 = smov 0   ;;  %s15067_s22 = smov 0   ;;  %s22830_s0 = inlined_call_operand.vmem [shape: bf16[9,64,576], index: 0, kind: input, shape index: {}]   ;;  %s22831_s1 = inlined_call_operand.vmem [shape: bf16[576,256], index: 1, kind: input, shape index: {}]   ;;  %s22832_s2 = inlined_call_operand.vmem [shape: bf16[576,256], index: 2, kind: input, shape index: {}]   ;;  %s22833_s3 = inlined_call_operand.vmem [shape: f32[1,256], index: 3, kind: input, shape index: {}]   ;;  %s22834_s4 = inlined_call_operand.vmem [shape: bf16[2048,576], index: 4, kind: input, shape index: {}]   ;;  %s22835_s5 = inlined_call_operand.vmem [shape: f32[1,576], index: 5, kind: input, shape index: {}]   ;;  %s22836_s6 = inlined_call_operand.vmem [shape: bf16[576,64], index: 6, kind: input, shape index: {}]   ;;  %s22837_s7 = inlined_call_operand.vmem [shape: f32[1,64], index: 7, kind: input, shape index: {}]   ;;  %s22838_s8 = inlined_call_operand.vmem [shape: bf16[64,512], index: 8, kind: input, shape index: {}]   ;;  %s22839_s9 = inlined_call_operand.vmem [shape: f32[1,512], index: 9, kind: input, shape index: {}]   ;;  %s22840_s10 = inlined_call_operand.vmem [shape: bf16[512,128], index: 10, kind: input, shape index: {}]   ;;  %s22841_s11 = inlined_call_operand.vmem [shape: f32[1,128], index: 11, kind: input, shape index: {}]   ;;  %s22842_s12 = inlined_call_operand.vmem [shape: f32[64,128], index: 12, kind: output, shape index: {}]  }
   0x1   :  { %s15069_s23 = smov 0  }
   0x2 LB: > { %s11395_s24 = sadd.s32 4294967295, %s14997_s23   ;;  %s15082_s25 = sadd.s32 1, %s14997_s23   ;;  %s14997_s23 = sphi %s15069_s23, %s23822_s23   ;;  %s14993_s22 = sphi %s15067_s22, %s23821_s22   ;;  %s14989_s21 = sphi %s15065_s21, %s23820_s21  }
   0x3   : > { %s26_s26 = ssub.s32 %s14997_s23, %s15082_s25  ;;  %s29_s27 = sadd.s32 1, %s14993_s22 }
   0x4   : > { %p27_p0 = scmp.eq.s32.totalorder %s26_s26, 0  ;;  %p36_p1 = scmp.ne.s32.totalorder %s14993_s22, %s14989_s21 }
   0x5   : > { %p37_p2 = scmp.eq.s32.totalorder %s14997_s23, 0  ;;  %p11398_p4 = scmp.ge.s32.totalorder %s14997_s23, 2 }
   0x6   : > { %s15091_s28 = scalar_select %p27_p0, %s14993_s22, %s29_s27  }
   0x7   : > { %p38_p3 = por %p37_p2, %p36_p1  ;;  %352 = sbr.rel (%p11398_p4) target bundleno = 77 (0x4d), region = 60 }
   0xc   : > { %355 = sbr.rel (!%p38_p3) target bundleno = 77 (0x4d), region = 64  ;;  %s357_s29 = sand.u32 (%p38_p3), 1, %s14993_s22  }
   0xd   : > { %s12928_s30 = smul.u32 (%p38_p3), 80, %s14997_s23 }
   0xe   : > { %s12927_s13 = smul.u32 (%p38_p3), 720, %s357_s29 }
   0xf   : > { %s15099_s16 = scalar_lea.vmem (%p38_p3), %s22830_s0, %s12928_s30 }
  0x10   : > { %v378_v0 = vld [vmem:[%s15099_s16] sm:$0xff] (%p38_p3)  ;;  %v380_v1 = vld [vmem:[%s15099_s16 + $0x8] sm:$0xff] (%p38_p3)  ;;  %v382_v2 = vld [vmem:[%s15099_s16 + $0x14] sm:$0xff] (%p38_p3)  ;;  %s15104_s17 = scalar_lea.vmem (%p38_p3), [#allocation2], %s12927_s13 }
  0x11   : > { %379 = vst [vmem:[%s15104_s17] sm:$0xff] %v378_v0  ;;  %381 = vst [vmem:[%s15104_s17 + $0x8] sm:$0xff] %v380_v1  ;;  %v384_v3 = vld [vmem:[%s15099_s16 + $0x1c] sm:$0xff]  ;;  %v386_v4 = vld [vmem:[%s15099_s16 + $0x28] sm:$0xff] }
  0x12   : > { %383 = vst [vmem:[%s15104_s17 + $0x14] sm:$0xff] %v382_v2  ;;  %v388_v5 = vld [vmem:[%s15099_s16 + $0x30] sm:$0xff]  ;;  %385 = vst [vmem:[%s15104_s17 + $0x1c] sm:$0xff] %v384_v3  ;;  %v390_v6 = vld [vmem:[%s15099_s16 + $0x3c] sm:$0xff] }
  0x13   : > { %387 = vst [vmem:[%s15104_s17 + $0x28] sm:$0xff] %v386_v4  ;;  %389 = vst [vmem:[%s15104_s17 + $0x30] sm:$0xff] %v388_v5  ;;  %v392_v7 = vld [vmem:[%s15099_s16 + $0x44] sm:$0xff]  ;;  %v398_v10 = vld [vmem:[%s15099_s16 + $0xb4] sm:$0xff] }
  0x14   : > { %v394_v8 = vld [vmem:[%s15099_s16 + $0xa0] sm:$0xff]  ;;  %391 = vst [vmem:[%s15104_s17 + $0x3c] sm:$0xff] %v390_v6  ;;  %393 = vst [vmem:[%s15104_s17 + $0x44] sm:$0xff] %v392_v7  ;;  %v396_v9 = vld [vmem:[%s15099_s16 + $0xa8] sm:$0xff] }
  0x15   : > { %395 = vst [vmem:[%s15104_s17 + $0x50] sm:$0xff] %v394_v8  ;;  %v400_v11 = vld [vmem:[%s15099_s16 + $0xbc] sm:$0xff]  ;;  %397 = vst [vmem:[%s15104_s17 + $0x58] sm:$0xff] %v396_v9  ;;  %v402_v12 = vld [vmem:[%s15099_s16 + $0xc8] sm:$0xff] }
  0x16   : > { %399 = vst [vmem:[%s15104_s17 + $0x64] sm:$0xff] %v398_v10  ;;  %401 = vst [vmem:[%s15104_s17 + $0x6c] sm:$0xff] %v400_v11  ;;  %v404_v13 = vld [vmem:[%s15099_s16 + $0xd0] sm:$0xff]  ;;  %v406_v14 = vld [vmem:[%s15099_s16 + $0xdc] sm:$0xff] }
  0x17   : > { %403 = vst [vmem:[%s15104_s17 + $0x78] sm:$0xff] %v402_v12  ;;  %405 = vst [vmem:[%s15104_s17 + $0x80] sm:$0xff] %v404_v13  ;;  %v408_v15 = vld [vmem:[%s15099_s16 + $0xe4] sm:$0xff]  ;;  %v414_v18 = vld [vmem:[%s15099_s16 + $0x154] sm:$0xff] }
  0x18   : > { %407 = vst [vmem:[%s15104_s17 + $0x8c] sm:$0xff] %v406_v14  ;;  %v410_v16 = vld [vmem:[%s15099_s16 + $0x140] sm:$0xff]  ;;  %v412_v17 = vld [vmem:[%s15099_s16 + $0x148] sm:$0xff]  ;;  %409 = vst [vmem:[%s15104_s17 + $0x94] sm:$0xff] %v408_v15 }
  0x19   : > { %411 = vst [vmem:[%s15104_s17 + $0xa0] sm:$0xff] %v410_v16  ;;  %413 = vst [vmem:[%s15104_s17 + $0xa8] sm:$0xff] %v412_v17  ;;  %v416_v19 = vld [vmem:[%s15099_s16 + $0x15c] sm:$0xff]  ;;  %v418_v20 = vld [vmem:[%s15099_s16 + $0x168] sm:$0xff] }
  0x1a   : > { %415 = vst [vmem:[%s15104_s17 + $0xb4] sm:$0xff] %v414_v18  ;;  %417 = vst [vmem:[%s15104_s17 + $0xbc] sm:$0xff] %v416_v19  ;;  %v420_v21 = vld [vmem:[%s15099_s16 + $0x170] sm:$0xff]  ;;  %v422_v22 = vld [vmem:[%s15099_s16 + $0x17c] sm:$0xff] }
  0x1b   : > { %419 = vst [vmem:[%s15104_s17 + $0xc8] sm:$0xff] %v418_v20  ;;  %v424_v23 = vld [vmem:[%s15099_s16 + $0x184] sm:$0xff]  ;;  %421 = vst [vmem:[%s15104_s17 + $0xd0] sm:$0xff] %v420_v21  ;;  %v430_v26 = vld [vmem:[%s15099_s16 + $0x1f4] sm:$0xff] }
  0x1c   : > { %423 = vst [vmem:[%s15104_s17 + $0xdc] sm:$0xff] %v422_v22  ;;  %425 = vst [vmem:[%s15104_s17 + $0xe4] sm:$0xff] %v424_v23  ;;  %v426_v24 = vld [vmem:[%s15099_s16 + $0x1e0] sm:$0xff]  ;;  %v428_v25 = vld [vmem:[%s15099_s16 + $0x1e8] sm:$0xff] }
  0x1d   : > { %427 = vst [vmem:[%s15104_s17 + $0xf0] sm:$0xff] %v426_v24  ;;  %429 = vst [vmem:[%s15104_s17 + $0xf8] sm:$0xff] %v428_v25  ;;  %v432_v27 = vld [vmem:[%s15099_s16 + $0x1fc] sm:$0xff]  ;;  %v434_v28 = vld [vmem:[%s15099_s16 + $0x208] sm:$0xff] }
  0x1e   : > { %431 = vst [vmem:[%s15104_s17 + $0x104] sm:$0xff] %v430_v26  ;;  %v436_v29 = vld [vmem:[%s15099_s16 + $0x210] sm:$0xff]  ;;  %433 = vst [vmem:[%s15104_s17 + $0x10c] sm:$0xff] %v432_v27  ;;  %v438_v30 = vld [vmem:[%s15099_s16 + $0x21c] sm:$0xff] }
  0x1f   : > { %435 = vst [vmem:[%s15104_s17 + $0x118] sm:$0xff] %v434_v28  ;;  %437 = vst [vmem:[%s15104_s17 + $0x120] sm:$0xff] %v436_v29  ;;  %v440_v31 = vld [vmem:[%s15099_s16 + $0x224] sm:$0xff]  ;;  %v446_v34 = vld [vmem:[%s15099_s16 + $0x294] sm:$0xff] }
  0x20   : > { %v442_v32 = vld [vmem:[%s15099_s16 + $0x280] sm:$0xff]  ;;  %439 = vst [vmem:[%s15104_s17 + $0x12c] sm:$0xff] %v438_v30  ;;  %441 = vst [vmem:[%s15104_s17 + $0x134] sm:$0xff] %v440_v31  ;;  %v444_v33 = vld [vmem:[%s15099_s16 + $0x288] sm:$0xff] }
  0x21   : > { %443 = vst [vmem:[%s15104_s17 + $0x140] sm:$0xff] %v442_v32  ;;  %v448_v35 = vld [vmem:[%s15099_s16 + $0x29c] sm:$0xff]  ;;  %445 = vst [vmem:[%s15104_s17 + $0x148] sm:$0xff] %v444_v33  ;;  %v450_v36 = vld [vmem:[%s15099_s16 + $0x2a8] sm:$0xff] }
  0x22   : > { %447 = vst [vmem:[%s15104_s17 + $0x154] sm:$0xff] %v446_v34  ;;  %449 = vst [vmem:[%s15104_s17 + $0x15c] sm:$0xff] %v448_v35  ;;  %v452_v37 = vld [vmem:[%s15099_s16 + $0x2b0] sm:$0xff]  ;;  %v454_v38 = vld [vmem:[%s15099_s16 + $0x2bc] sm:$0xff] }
  0x23   : > { %451 = vst [vmem:[%s15104_s17 + $0x168] sm:$0xff] %v450_v36  ;;  %453 = vst [vmem:[%s15104_s17 + $0x170] sm:$0xff] %v452_v37  ;;  %v456_v39 = vld [vmem:[%s15099_s16 + $0x2c4] sm:$0xff]  ;;  %v462_v42 = vld [vmem:[%s15099_s16 + $0x334] sm:$0xff] }
  0x24   : > { %455 = vst [vmem:[%s15104_s17 + $0x17c] sm:$0xff] %v454_v38  ;;  %v458_v40 = vld [vmem:[%s15099_s16 + $0x320] sm:$0xff]  ;;  %v460_v41 = vld [vmem:[%s15099_s16 + $0x328] sm:$0xff]  ;;  %457 = vst [vmem:[%s15104_s17 + $0x184] sm:$0xff] %v456_v39 }
  0x25   : > { %459 = vst [vmem:[%s15104_s17 + $0x190] sm:$0xff] %v458_v40  ;;  %461 = vst [vmem:[%s15104_s17 + $0x198] sm:$0xff] %v460_v41  ;;  %v464_v43 = vld [vmem:[%s15099_s16 + $0x33c] sm:$0xff]  ;;  %v466_v44 = vld [vmem:[%s15099_s16 + $0x348] sm:$0xff] }
  0x26   : > { %463 = vst [vmem:[%s15104_s17 + $0x1a4] sm:$0xff] %v462_v42  ;;  %465 = vst [vmem:[%s15104_s17 + $0x1ac] sm:$0xff] %v464_v43  ;;  %v468_v45 = vld [vmem:[%s15099_s16 + $0x350] sm:$0xff]  ;;  %v470_v46 = vld [vmem:[%s15099_s16 + $0x35c] sm:$0xff] }
  0x27   : > { %467 = vst [vmem:[%s15104_s17 + $0x1b8] sm:$0xff] %v466_v44  ;;  %v472_v47 = vld [vmem:[%s15099_s16 + $0x364] sm:$0xff]  ;;  %469 = vst [vmem:[%s15104_s17 + $0x1c0] sm:$0xff] %v468_v45  ;;  %v478_v50 = vld [vmem:[%s15099_s16 + $0x3d4] sm:$0xff] }
  0x28   : > { %471 = vst [vmem:[%s15104_s17 + $0x1cc] sm:$0xff] %v470_v46  ;;  %473 = vst [vmem:[%s15104_s17 + $0x1d4] sm:$0xff] %v472_v47  ;;  %v474_v48 = vld [vmem:[%s15099_s16 + $0x3c0] sm:$0xff]  ;;  %v476_v49 = vld [vmem:[%s15099_s16 + $0x3c8] sm:$0xff] }
  0x29   : > { %475 = vst [vmem:[%s15104_s17 + $0x1e0] sm:$0xff] %v474_v48  ;;  %477 = vst [vmem:[%s15104_s17 + $0x1e8] sm:$0xff] %v476_v49  ;;  %v480_v51 = vld [vmem:[%s15099_s16 + $0x3dc] sm:$0xff]  ;;  %v482_v52 = vld [vmem:[%s15099_s16 + $0x3e8] sm:$0xff] }
  0x2a   : > { %479 = vst [vmem:[%s15104_s17 + $0x1f4] sm:$0xff] %v478_v50  ;;  %v484_v53 = vld [vmem:[%s15099_s16 + $0x3f0] sm:$0xff]  ;;  %481 = vst [vmem:[%s15104_s17 + $0x1fc] sm:$0xff] %v480_v51  ;;  %v486_v54 = vld [vmem:[%s15099_s16 + $0x3fc] sm:$0xff] }
  0x2b   : > { %483 = vst [vmem:[%s15104_s17 + $0x208] sm:$0xff] %v482_v52  ;;  %485 = vst [vmem:[%s15104_s17 + $0x210] sm:$0xff] %v484_v53  ;;  %v488_v55 = vld [vmem:[%s15099_s16 + $0x404] sm:$0xff]  ;;  %v494_v58 = vld [vmem:[%s15099_s16 + $0x474] sm:$0xff] }
  0x2c   : > { %v490_v56 = vld [vmem:[%s15099_s16 + $0x460] sm:$0xff]  ;;  %487 = vst [vmem:[%s15104_s17 + $0x21c] sm:$0xff] %v486_v54  ;;  %489 = vst [vmem:[%s15104_s17 + $0x224] sm:$0xff] %v488_v55  ;;  %v492_v57 = vld [vmem:[%s15099_s16 + $0x468] sm:$0xff] }
  0x2d   : > { %491 = vst [vmem:[%s15104_s17 + $0x230] sm:$0xff] %v490_v56  ;;  %v496_v59 = vld [vmem:[%s15099_s16 + $0x47c] sm:$0xff]  ;;  %493 = vst [vmem:[%s15104_s17 + $0x238] sm:$0xff] %v492_v57  ;;  %v498_v60 = vld [vmem:[%s15099_s16 + $0x488] sm:$0xff] }
  0x2e   : > { %495 = vst [vmem:[%s15104_s17 + $0x244] sm:$0xff] %v494_v58  ;;  %497 = vst [vmem:[%s15104_s17 + $0x24c] sm:$0xff] %v496_v59  ;;  %v500_v61 = vld [vmem:[%s15099_s16 + $0x490] sm:$0xff]  ;;  %v502_v62 = vld [vmem:[%s15099_s16 + $0x49c] sm:$0xff] }
  0x2f   : > { %499 = vst [vmem:[%s15104_s17 + $0x258] sm:$0xff] %v498_v60  ;;  %501 = vst [vmem:[%s15104_s17 + $0x260] sm:$0xff] %v500_v61  ;;  %v504_v63 = vld [vmem:[%s15099_s16 + $0x4a4] sm:$0xff]  ;;  %v510_v2 = vld [vmem:[%s15099_s16 + $0x514] sm:$0xff] }
  0x30   : > { %503 = vst [vmem:[%s15104_s17 + $0x26c] sm:$0xff] %v502_v62  ;;  %v506_v0 = vld [vmem:[%s15099_s16 + $0x500] sm:$0xff]  ;;  %v508_v1 = vld [vmem:[%s15099_s16 + $0x508] sm:$0xff]  ;;  %505 = vst [vmem:[%s15104_s17 + $0x274] sm:$0xff] %v504_v63 }
  0x31   : > { %507 = vst [vmem:[%s15104_s17 + $0x280] sm:$0xff] %v506_v0  ;;  %509 = vst [vmem:[%s15104_s17 + $0x288] sm:$0xff] %v508_v1  ;;  %v512_v3 = vld [vmem:[%s15099_s16 + $0x51c] sm:$0xff]  ;;  %v514_v4 = vld [vmem:[%s15099_s16 + $0x528] sm:$0xff] }
  0x32   : > { %511 = vst [vmem:[%s15104_s17 + $0x294] sm:$0xff] %v510_v2  ;;  %513 = vst [vmem:[%s15104_s17 + $0x29c] sm:$0xff] %v512_v3  ;;  %v516_v5 = vld [vmem:[%s15099_s16 + $0x530] sm:$0xff]  ;;  %v518_v6 = vld [vmem:[%s15099_s16 + $0x53c] sm:$0xff] }
  0x33   : > { %515 = vst [vmem:[%s15104_s17 + $0x2a8] sm:$0xff] %v514_v4  ;;  %v520_v7 = vld [vmem:[%s15099_s16 + $0x544] sm:$0xff]  ;;  %517 = vst [vmem:[%s15104_s17 + $0x2b0] sm:$0xff] %v516_v5  ;;  %v11402_v8 = vld [vmem:[%s15099_s16 + $0x10] sm:$0xf] }
  0x34   : > { %519 = vst [vmem:[%s15104_s17 + $0x2bc] sm:$0xff] %v518_v6  ;;  %521 = vst [vmem:[%s15104_s17 + $0x2c4] sm:$0xff] %v520_v7  ;;  %v11404_v9 = vld [vmem:[%s15099_s16 + $0x24] sm:$0xf]  ;;  %v11406_v10 = vld [vmem:[%s15099_s16 + $0x38] sm:$0xf] }
  0x35   : > { %11403 = vst [vmem:[%s15104_s17 + $0x10] sm:$0xf] %v11402_v8  ;;  %11405 = vst [vmem:[%s15104_s17 + $0x24] sm:$0xf] %v11404_v9  ;;  %v11408_v11 = vld [vmem:[%s15099_s16 + $0x4c] sm:$0xf] }
  0x36   : > { %11407 = vst [vmem:[%s15104_s17 + $0x38] sm:$0xf] %v11406_v10  ;;  %v11410_v12 = vld [vmem:[%s15099_s16 + $0xb0] sm:$0xf]  ;;  %v11412_v13 = vld [vmem:[%s15099_s16 + $0xc4] sm:$0xf] }
  0x37   : > { %11409 = vst [vmem:[%s15104_s17 + $0x4c] sm:$0xf] %v11408_v11  ;;  %11411 = vst [vmem:[%s15104_s17 + $0x60] sm:$0xf] %v11410_v12  ;;  %v11414_v14 = vld [vmem:[%s15099_s16 + $0xd8] sm:$0xf] }
  0x38   : > { %11413 = vst [vmem:[%s15104_s17 + $0x74] sm:$0xf] %v11412_v13  ;;  %v11416_v15 = vld [vmem:[%s15099_s16 + $0xec] sm:$0xf]  ;;  %v11418_v16 = vld [vmem:[%s15099_s16 + $0x150] sm:$0xf] }
  0x39   : > { %11415 = vst [vmem:[%s15104_s17 + $0x88] sm:$0xf] %v11414_v14  ;;  %11417 = vst [vmem:[%s15104_s17 + $0x9c] sm:$0xf] %v11416_v15  ;;  %v11420_v17 = vld [vmem:[%s15099_s16 + $0x164] sm:$0xf] }
  0x3a   : > { %11419 = vst [vmem:[%s15104_s17 + $0xb0] sm:$0xf] %v11418_v16  ;;  %v11422_v18 = vld [vmem:[%s15099_s16 + $0x178] sm:$0xf]  ;;  %v11424_v19 = vld [vmem:[%s15099_s16 + $0x18c] sm:$0xf] }
  0x3b   : > { %11421 = vst [vmem:[%s15104_s17 + $0xc4] sm:$0xf] %v11420_v17  ;;  %11423 = vst [vmem:[%s15104_s17 + $0xd8] sm:$0xf] %v11422_v18  ;;  %v11426_v20 = vld [vmem:[%s15099_s16 + $0x1f0] sm:$0xf] }
  0x3c   : > { %11425 = vst [vmem:[%s15104_s17 + $0xec] sm:$0xf] %v11424_v19  ;;  %v11428_v21 = vld [vmem:[%s15099_s16 + $0x204] sm:$0xf]  ;;  %v11430_v22 = vld [vmem:[%s15099_s16 + $0x218] sm:$0xf] }
  0x3d   : > { %11427 = vst [vmem:[%s15104_s17 + $0x100] sm:$0xf] %v11426_v20  ;;  %11429 = vst [vmem:[%s15104_s17 + $0x114] sm:$0xf] %v11428_v21  ;;  %v11432_v23 = vld [vmem:[%s15099_s16 + $0x22c] sm:$0xf] }
  0x3e   : > { %11431 = vst [vmem:[%s15104_s17 + $0x128] sm:$0xf] %v11430_v22  ;;  %v11434_v24 = vld [vmem:[%s15099_s16 + $0x290] sm:$0xf]  ;;  %v11436_v25 = vld [vmem:[%s15099_s16 + $0x2a4] sm:$0xf] }
  0x3f   : > { %11433 = vst [vmem:[%s15104_s17 + $0x13c] sm:$0xf] %v11432_v23  ;;  %11435 = vst [vmem:[%s15104_s17 + $0x150] sm:$0xf] %v11434_v24  ;;  %v11438_v26 = vld [vmem:[%s15099_s16 + $0x2b8] sm:$0xf] }
  0x40   : > { %11437 = vst [vmem:[%s15104_s17 + $0x164] sm:$0xf] %v11436_v25  ;;  %v11440_v27 = vld [vmem:[%s15099_s16 + $0x2cc] sm:$0xf]  ;;  %v11442_v28 = vld [vmem:[%s15099_s16 + $0x330] sm:$0xf] }
  0x41   : > { %11439 = vst [vmem:[%s15104_s17 + $0x178] sm:$0xf] %v11438_v26  ;;  %11441 = vst [vmem:[%s15104_s17 + $0x18c] sm:$0xf] %v11440_v27  ;;  %v11444_v29 = vld [vmem:[%s15099_s16 + $0x344] sm:$0xf] }
  0x42   : > { %11443 = vst [vmem:[%s15104_s17 + $0x1a0] sm:$0xf] %v11442_v28  ;;  %v11446_v30 = vld [vmem:[%s15099_s16 + $0x358] sm:$0xf]  ;;  %v11448_v31 = vld [vmem:[%s15099_s16 + $0x36c] sm:$0xf] }
  0x43   : > { %11445 = vst [vmem:[%s15104_s17 + $0x1b4] sm:$0xf] %v11444_v29  ;;  %11447 = vst [vmem:[%s15104_s17 + $0x1c8] sm:$0xf] %v11446_v30  ;;  %v11450_v32 = vld [vmem:[%s15099_s16 + $0x3d0] sm:$0xf] }
  0x44   : > { %11449 = vst [vmem:[%s15104_s17 + $0x1dc] sm:$0xf] %v11448_v31  ;;  %v11452_v33 = vld [vmem:[%s15099_s16 + $0x3e4] sm:$0xf]  ;;  %v11454_v34 = vld [vmem:[%s15099_s16 + $0x3f8] sm:$0xf] }
  0x45   : > { %11451 = vst [vmem:[%s15104_s17 + $0x1f0] sm:$0xf] %v11450_v32  ;;  %11453 = vst [vmem:[%s15104_s17 + $0x204] sm:$0xf] %v11452_v33  ;;  %v11456_v35 = vld [vmem:[%s15099_s16 + $0x40c] sm:$0xf] }
  0x46   : > { %11455 = vst [vmem:[%s15104_s17 + $0x218] sm:$0xf] %v11454_v34  ;;  %v11458_v36 = vld [vmem:[%s15099_s16 + $0x470] sm:$0xf]  ;;  %v11460_v37 = vld [vmem:[%s15099_s16 + $0x484] sm:$0xf] }
  0x47   : > { %11457 = vst [vmem:[%s15104_s17 + $0x22c] sm:$0xf] %v11456_v35  ;;  %11459 = vst [vmem:[%s15104_s17 + $0x240] sm:$0xf] %v11458_v36  ;;  %v11462_v38 = vld [vmem:[%s15099_s16 + $0x498] sm:$0xf] }
  0x48   : > { %11461 = vst [vmem:[%s15104_s17 + $0x254] sm:$0xf] %v11460_v37  ;;  %v11464_v39 = vld [vmem:[%s15099_s16 + $0x4ac] sm:$0xf]  ;;  %v11466_v40 = vld [vmem:[%s15099_s16 + $0x510] sm:$0xf] }
  0x49   : > { %11463 = vst [vmem:[%s15104_s17 + $0x268] sm:$0xf] %v11462_v38  ;;  %11465 = vst [vmem:[%s15104_s17 + $0x27c] sm:$0xf] %v11464_v39  ;;  %v11468_v41 = vld [vmem:[%s15099_s16 + $0x524] sm:$0xf] }
  0x4a   : > { %11467 = vst [vmem:[%s15104_s17 + $0x290] sm:$0xf] %v11466_v40  ;;  %v11470_v42 = vld [vmem:[%s15099_s16 + $0x538] sm:$0xf]  ;;  %v11472_v43 = vld [vmem:[%s15099_s16 + $0x54c] sm:$0xf] }
  0x4b   : > { %11469 = vst [vmem:[%s15104_s17 + $0x2a4] sm:$0xf] %v11468_v41  ;;  %11471 = vst [vmem:[%s15104_s17 + $0x2b8] sm:$0xf] %v11470_v42 }
  0x4c   : > { %11473 = vst [vmem:[%s15104_s17 + $0x2cc] sm:$0xf] %v11472_v43 }
  0x4d PF: > { %p11474_p5 = scmp.ge.s32.totalorder %s14997_s23, 1  ;;  %p606_p6 = scmp.lt.s32.totalorder %s14997_s23, 3 }
  0x4f   : > { %p607_p7 = pnand %p11474_p5, %p606_p6 }
  0x51   : > { %610 = sbr.rel (%p607_p7) target bundleno = 2732 (0xaac), region = 90 }
  0x56   : > { %v12955_v44 = vld [vmem:[%s22832_s2 + $0x74] ss:$8 sps:$4 sm:$0xff]   ;;  %v12959_v46 = vld [vmem:[%s22832_s2 + $0x70] ss:$8 sps:$4 sm:$0xff]   ;;  %v12961_v48 = vld [vmem:[%s22832_s2 + $0x64] ss:$8 sps:$4 sm:$0xff]  }
  0x57   : > { %v12957_v45 = vld [vmem:[%s22832_s2 + $0x174] ss:$8 sps:$4 sm:$0xff]   ;;  %1249 = vmatprep.subr.bf16.mxu0 %v12955_v44  ;;  %v12960_v47 = vld [vmem:[%s22832_s2 + $0x170] ss:$8 sps:$4 sm:$0xff]   ;;  %v12963_v49 = vld [vmem:[%s22832_s2 + $0x164] ss:$8 sps:$4 sm:$0xff]  }
  0x58   : > { %1302 = vmatprep.subr.bf16.mxu1 %v12957_v45  ;;  %1250 = vmatpush1.bf16.msra.mxu0 %v12959_v46  ;;  %v12965_v50 = vld [vmem:[%s22832_s2 + $0x60] ss:$8 sps:$4 sm:$0xff]   ;;  %v12967_v52 = vld [vmem:[%s22832_s2 + $0x54] ss:$8 sps:$4 sm:$0xff]   ;;  %v12971_v54 = vld [vmem:[%s22832_s2 + $0x50] ss:$8 sps:$4 sm:$0xff]  }
  0x59   : > { %1303 = vmatpush1.bf16.msra.mxu1 %v12960_v47  ;;  %1251 = vmatprep.subr.bf16.mxu0 %v12961_v48  ;;  %v12966_v51 = vld [vmem:[%s22832_s2 + $0x160] ss:$8 sps:$4 sm:$0xff]   ;;  %v12969_v53 = vld [vmem:[%s22832_s2 + $0x154] ss:$8 sps:$4 sm:$0xff]   ;;  %v12972_v55 = vld [vmem:[%s22832_s2 + $0x150] ss:$8 sps:$4 sm:$0xff]  }
  0x5a   : > { %1304 = vmatprep.subr.bf16.mxu1 %v12963_v49  ;;  %v12973_v56 = vld [vmem:[%s22832_s2 + $0x44] ss:$8 sps:$4 sm:$0xff]   ;;  %v12977_v58 = vld [vmem:[%s22832_s2 + $0x40] ss:$8 sps:$4 sm:$0xff]   ;;  %v12979_v60 = vld [vmem:[%s22832_s2 + $0x34] ss:$8 sps:$4 sm:$0xff]  }
  0x5b   : > { %v12975_v57 = vld [vmem:[%s22832_s2 + $0x144] ss:$8 sps:$4 sm:$0xff]   ;;  %v12978_v59 = vld [vmem:[%s22832_s2 + $0x140] ss:$8 sps:$4 sm:$0xff]   ;;  %v12981_v61 = vld [vmem:[%s22832_s2 + $0x134] ss:$8 sps:$4 sm:$0xff]  }
  0x5c   : > { %1252 = vmatpush1.bf16.msra.mxu0 %v12965_v50  ;;  %v12983_v62 = vld [vmem:[%s22832_s2 + $0x30] ss:$8 sps:$4 sm:$0xff]   ;;  %v12985_v0 = vld [vmem:[%s22832_s2 + $0x24] ss:$8 sps:$4 sm:$0xff]   ;;  %v12989_v2 = vld [vmem:[%s22832_s2 + $0x20] ss:$8 sps:$4 sm:$0xff]  }
  0x5d   : > { %1305 = vmatpush1.bf16.msra.mxu1 %v12966_v51  ;;  %1253 = vmatprep.subr.bf16.mxu0 %v12967_v52  ;;  %v12984_v63 = vld [vmem:[%s22832_s2 + $0x130] ss:$8 sps:$4 sm:$0xff]   ;;  %v12987_v1 = vld [vmem:[%s22832_s2 + $0x124] ss:$8 sps:$4 sm:$0xff]   ;;  %v12990_v3 = vld [vmem:[%s22832_s2 + $0x120] ss:$8 sps:$4 sm:$0xff]  }
  0x5e   : > { %1306 = vmatprep.subr.bf16.mxu1 %v12969_v53  ;;  %v12991_v4 = vld [vmem:[%s22832_s2 + $0x14] ss:$8 sps:$4 sm:$0xff]   ;;  %v12995_v6 = vld [vmem:[%s22832_s2 + $0x10] ss:$8 sps:$4 sm:$0xff]   ;;  %v12997_v8 = vld [vmem:[%s22832_s2 + $0x4] ss:$8 sps:$4 sm:$0xff]  }
  0x5f   : > { %v12993_v5 = vld [vmem:[%s22832_s2 + $0x114] ss:$8 sps:$4 sm:$0xff]   ;;  %v12996_v7 = vld [vmem:[%s22832_s2 + $0x110] ss:$8 sps:$4 sm:$0xff]   ;;  %v12999_v9 = vld [vmem:[%s22832_s2 + $0x104] ss:$8 sps:$4 sm:$0xff]  }
  0x60   : > { %1254 = vmatpush1.bf16.msra.mxu0 %v12971_v54  ;;  %v13001_v10 = vld [vmem:[%s22832_s2] ss:$8 sps:$4 sm:$0xff]   ;;  %v13003_v12 = vld [vmem:[%s22832_s2 + $0xf4] ss:$8 sps:$4 sm:$0xff]   ;;  %v13007_v14 = vld [vmem:[%s22832_s2 + $0xf0] ss:$8 sps:$4 sm:$0xff]  }
  0x61   : > { %1307 = vmatpush1.bf16.msra.mxu1 %v12972_v55  ;;  %1255 = vmatprep.subr.bf16.mxu0 %v12973_v56  ;;  %v13002_v11 = vld [vmem:[%s22832_s2 + $0x100] ss:$8 sps:$4 sm:$0xff]   ;;  %v13005_v13 = vld [vmem:[%s22832_s2 + $0x1f4] ss:$8 sps:$4 sm:$0xff]   ;;  %v13008_v15 = vld [vmem:[%s22832_s2 + $0x1f0] ss:$8 sps:$4 sm:$0xff]  }
  0x62   : > { %1308 = vmatprep.subr.bf16.mxu1 %v12975_v57  ;;  %v13009_v16 = vld [vmem:[%s22832_s2 + $0xe4] ss:$8 sps:$4 sm:$0xff]   ;;  %s613_s27 = sand.u32 1, %s14989_s21   ;;  %v13013_v18 = vld [vmem:[%s22832_s2 + $0xe0] ss:$8 sps:$4 sm:$0xff]   ;;  %vm1242_vm0 = vcmask 523264  }
  0x63   : > { %v13011_v17 = vld [vmem:[%s22832_s2 + $0x1e4] ss:$8 sps:$4 sm:$0xff]   ;;  %v13014_v19 = vld [vmem:[%s22832_s2 + $0x1e0] ss:$8 sps:$4 sm:$0xff]   ;;  %v13015_v20 = vld [vmem:[%s22832_s2 + $0xd4] ss:$8 sps:$4 sm:$0xff]  }
  0x64   : > { %1256 = vmatpush1.bf16.msra.mxu0 %v12977_v58  ;;  %s12929_s17 = smul.u32 720, %s613_s27  ;;  %v13017_v21 = vld [vmem:[%s22832_s2 + $0x1d4] ss:$8 sps:$4 sm:$0xff]   ;;  %v13019_v22 = vld [vmem:[%s22832_s2 + $0xd0] ss:$8 sps:$4 sm:$0xff]   ;;  %s11475_s19 = sshll.u32 %s11395_s24, 2 }
  0x65   : > { %1309 = vmatpush1.bf16.msra.mxu1 %v12978_v59  ;;  %1257 = vmatprep.subr.bf16.mxu0 %v12979_v60  ;;  %v13020_v23 = vld [vmem:[%s22832_s2 + $0x1d0] ss:$8 sps:$4 sm:$0xff]   ;;  %v13021_v24 = vld [vmem:[%s22832_s2 + $0xc4] ss:$8 sps:$4 sm:$0xff]   ;;  %v13025_v26 = vld [vmem:[%s22832_s2 + $0xc0] ss:$8 sps:$4 sm:$0xff]  }
  0x66   : > { %1310 = vmatprep.subr.bf16.mxu1 %v12981_v61  ;;  %v13023_v25 = vld [vmem:[%s22832_s2 + $0x1c4] ss:$8 sps:$4 sm:$0xff]   ;;  %v13026_v27 = vld [vmem:[%s22832_s2 + $0x1c0] ss:$8 sps:$4 sm:$0xff]   ;;  %s15466_s21 = scalar_lea.vmem [#allocation2], %s12929_s17  ;;  %p656_p8 = scmp.lt.s32.totalorder %s11475_s19, 7 }
  0x67   : > { %v13027_v28 = vld [vmem:[%s22832_s2 + $0xb4] ss:$8 sps:$4 sm:$0xff]   ;;  %v13031_v32 = vld [vmem:[%s22832_s2 + $0xb0] ss:$8 sps:$4 sm:$0xff]   ;;  %v13033_v34 = vld [vmem:[%s22832_s2 + $0xa4] ss:$8 sps:$4 sm:$0xff]  }
  0x68   : > { %1258 = vmatpush1.bf16.msra.mxu0 %v12983_v62  ;;  %v13053_v29 = vld [vmem:[%s15466_s21 + $0x54] ss:$20 sps:$4 sm:$0xff]   ;;  %v13056_v31 = vld [vmem:[%s15466_s21 + $0x5c] ss:$20 sps:$4 sm:$0xff]   ;;  %v13054_v49 = vld [vmem:[%s15466_s21 + $0x58] ss:$20 sps:$4 sm:$0xff]  }
  0x69   : > { %1311 = vmatpush1.bf16.msra.mxu1 %v12984_v63  ;;  %1259 = vmatprep.subr.bf16.mxu0 %v12985_v0  ;;  %v13029_v30 = vld [vmem:[%s22832_s2 + $0x1b4] ss:$8 sps:$4 sm:$0xff]   ;;  %v13032_v33 = vld [vmem:[%s22832_s2 + $0x1b0] ss:$8 sps:$4 sm:$0xff]   ;;  %v13035_v35 = vld [vmem:[%s22832_s2 + $0x1a4] ss:$8 sps:$4 sm:$0xff]  }
  0x6a   : > { %1312 = vmatprep.subr.bf16.mxu1 %v12987_v1  ;;  %1281 = vmatprep.mubr.bf16.mxu0 %v13053_v29  ;;  %v13037_v36 = vld [vmem:[%s22832_s2 + $0xa0] ss:$8 sps:$4 sm:$0xff]   ;;  %v13039_v38 = vld [vmem:[%s22832_s2 + $0x94] ss:$8 sps:$4 sm:$0xff]   ;;  %v13043_v40 = vld [vmem:[%s22832_s2 + $0x90] ss:$8 sps:$4 sm:$0xff]  }
  0x6b   : > { %1334 = vmatprep.mubr.bf16.mxu1 %v13056_v31  ;;  %v13038_v37 = vld [vmem:[%s22832_s2 + $0x1a0] ss:$8 sps:$4 sm:$0xff]   ;;  %v13041_v39 = vld [vmem:[%s22832_s2 + $0x194] ss:$8 sps:$4 sm:$0xff]   ;;  %v13044_v41 = vld [vmem:[%s22832_s2 + $0x190] ss:$8 sps:$4 sm:$0xff]  }
  0x6c   : > { %1260 = vmatpush1.bf16.msra.mxu0 %v12989_v2  ;;  %v13045_v42 = vld [vmem:[%s22832_s2 + $0x84] ss:$8 sps:$4 sm:$0xff]   ;;  %v13049_v44 = vld [vmem:[%s22832_s2 + $0x80] ss:$8 sps:$4 sm:$0xff]   ;;  %v13057_v47 = vld [vmem:[%s22832_s2 + $0x234] ss:$8 sps:$4 sm:$0xff]  }
  0x6d   : > { %1313 = vmatpush1.bf16.msra.mxu1 %v12990_v3  ;;  %1261 = vmatprep.subr.bf16.mxu0 %v12991_v4  ;;  %v13047_v43 = vld [vmem:[%s22832_s2 + $0x184] ss:$8 sps:$4 sm:$0xff]   ;;  %v13050_v45 = vld [vmem:[%s22832_s2 + $0x180] ss:$8 sps:$4 sm:$0xff]   ;;  %v13059_v48 = vld [vmem:[%s22831_s1 + $0x74] ss:$8 sps:$4 sm:$0xff]  }
  0x6e   : > { %1314 = vmatprep.subr.bf16.mxu1 %v12993_v5  ;;  %v13051_v46 = vld [vmem:[%s15466_s21 + $0x50] ss:$20 sps:$4 sm:$0xff]   ;;  %v13073_v60 = vld [vmem:[%s15466_s21 + $0x78] ss:$20 sps:$4 sm:$0xff]   ;;  %v13074_v61 = vld [vmem:[%s15466_s21 + $0x80] ss:$20 sps:$4 sm:$0xff]  }
  0x6f   : > { %v13061_v50 = vld [vmem:[%s22832_s2 + $0x230] ss:$8 sps:$4 sm:$0xff]   ;;  %v13063_v52 = vld [vmem:[%s22832_s2 + $0x224] ss:$8 sps:$4 sm:$0xff]   ;;  %v13067_v56 = vld [vmem:[%s22832_s2 + $0x220] ss:$8 sps:$4 sm:$0xff]  }
  0x70   : > { %1262 = vmatpush1.bf16.msra.mxu0 %v12995_v6  ;;  %v13062_v51 = vld [vmem:[%s22831_s1 + $0x70] ss:$8 sps:$4 sm:$0xff]   ;;  %v13065_v53 = vld [vmem:[%s22831_s1 + $0x64] ss:$8 sps:$4 sm:$0xff]   ;;  %v13068_v57 = vld [vmem:[%s22831_s1 + $0x60] ss:$8 sps:$4 sm:$0xff]  }
  0x71   : > { %1315 = vmatpush1.bf16.msra.mxu1 %v12996_v7  ;;  %1263 = vmatprep.subr.bf16.mxu0 %v12997_v8  ;;  %v13069_v54 = vld [vmem:[%s15466_s21 + $0x7c] ss:$20 sps:$4 sm:$0xff]   ;;  %v13071_v55 = vld [vmem:[%s15466_s21 + $0x84] ss:$20 sps:$4 sm:$0xff]   ;;  %v22843_v6 = vmov 0   ;;  %s23824_s19 = smov (!%p656_p8, %s11475_s19), 7 }
  0x72   : > { %1316 = vmatprep.subr.bf16.mxu1 %v12999_v9  ;;  %v13075_v58 = vld [vmem:[%s22832_s2 + $0x214] ss:$8 sps:$4 sm:$0xff]   ;;  %v13079_v62 = vld [vmem:[%s22832_s2 + $0x210] ss:$8 sps:$4 sm:$0xff]   ;;  %v13081_v0 = vld [vmem:[%s22832_s2 + $0x204] ss:$8 sps:$4 sm:$0xff]  }
  0x73   : > { %v13077_v59 = vld [vmem:[%s22831_s1 + $0x54] ss:$8 sps:$4 sm:$0xff]   ;;  %v13080_v63 = vld [vmem:[%s22831_s1 + $0x50] ss:$8 sps:$4 sm:$0xff]   ;;  %v13083_v1 = vld [vmem:[%s22831_s1 + $0x44] ss:$8 sps:$4 sm:$0xff]  }
  0x74   : > { %1264 = vmatpush1.bf16.msra.mxu0 %v13001_v10  ;;  %v13085_v2 = vld [vmem:[%s22832_s2 + $0x200] ss:$8 sps:$4 sm:$0xff]   ;;  %v13088_v4 = vld [vmem:[%s22831_s1 + $0x34] ss:$8 sps:$4 sm:$0xff]   ;;  %v13092_v8 = vld [vmem:[%s22831_s1 + $0x30] ss:$8 sps:$4 sm:$0xff]  }
  0x75   : > { %1317 = vmatpush1.bf16.msra.mxu1 %v13002_v11  ;;  %1265 = vmatprep.subr.bf16.mxu0 %v13003_v12  ;;  %v13086_v3 = vld [vmem:[%s22831_s1 + $0x40] ss:$8 sps:$4 sm:$0xff]   ;;  %v13090_v5 = vld [vmem:[%s22831_s1 + $0x174] ss:$8 sps:$4 sm:$0xff]   ;;  %v13093_v9 = vld [vmem:[%s22831_s1 + $0x170] ss:$8 sps:$4 sm:$0xff]  }
  0x76   : > { %1318 = vmatprep.subr.bf16.mxu1 %v13005_v13  ;;  %v13087_v7 = vld [vmem:[%s15466_s21 + $0x60] ss:$20 sps:$4 sm:$0xff]   ;;  %s11476_s29 = sshll.u32 %s23824_s19, 3 }
  0x77   : > { %v13094_v10 = vld [vmem:[%s22831_s1 + $0x24] ss:$8 sps:$4 sm:$0xff]   ;;  %v13098_v12 = vld [vmem:[%s22831_s1 + $0x20] ss:$8 sps:$4 sm:$0xff]   ;;  %s659_s23 = scalar_lea.vmem %s22842_s12, %s11476_s29 }
  0x78   : > { %1266 = vmatpush2.bf16.msra.mxu0 %v13007_v14  ;;  %v13096_v11 = vld [vmem:[%s22831_s1 + $0x164] ss:$8 sps:$4 sm:$0xff]   ;;  %v13099_v13 = vld [vmem:[%s22831_s1 + $0x160] ss:$8 sps:$4 sm:$0xff]   ;;  %v13101_v14 = vld [vmem:[%s22831_s1 + $0x14] ss:$8 sps:$4 sm:$0xff]  }
  0x79   : > { %1319 = vmatpush2.bf16.msra.mxu1 %v13008_v15  ;;  %1267 = vmatprep.subr.bf16.mxu0 %v13009_v16  ;;  %v13103_v15 = vld [vmem:[%s22831_s1 + $0x154] ss:$8 sps:$4 sm:$0xff]   ;;  %v13121_v29 = vld [vmem:[%s22831_s1 + $0x124] ss:$8 sps:$4 sm:$0xff]   ;;  %v13124_v31 = vld [vmem:[%s22831_s1 + $0x120] ss:$8 sps:$4 sm:$0xff]  }
  0x7a   : > { %1320 = vmatprep.subr.bf16.mxu1 %v13011_v17  ;;  %v13100_v16 = vld [vmem:[%s15466_s21 + $0x88] ss:$20 sps:$4 sm:$0xff]  }
  0x7b   : > { %v13105_v17 = vld [vmem:[%s22831_s1 + $0x10] ss:$8 sps:$4 sm:$0xff]  }
  0x7c   : > { %1268 = vmatpush2.bf16.msra.mxu0 %v13013_v18  ;;  %v13106_v18 = vld [vmem:[%s22831_s1 + $0x150] ss:$8 sps:$4 sm:$0xff]  }
  0x7d   : > { %1321 = vmatpush2.bf16.msra.mxu1 %v13014_v19  ;;  %1269 = vmatprep.subr.bf16.mxu0 %v13015_v20  ;;  %v13107_v19 = vld [vmem:[%s22831_s1 + $0x4] ss:$8 sps:$4 sm:$0xff]  }
  0x7e   : > { %1322 = vmatprep.subr.bf16.mxu1 %v13017_v21  ;;  %v13109_v20 = vld [vmem:[%s22831_s1 + $0x144] ss:$8 sps:$4 sm:$0xff]   ;;  %v13111_v21 = vld [vmem:[%s22831_s1] ss:$8 sps:$4 sm:$0xff]  }
  0x80   : > { %1270 = vmatpush2.bf16.msra.mxu0 %v13019_v22  ;;  %v13112_v22 = vld [vmem:[%s22831_s1 + $0x140] ss:$8 sps:$4 sm:$0xff]  }
  0x81   : > { %1323 = vmatpush2.bf16.msra.mxu1 %v13020_v23  ;;  %1271 = vmatprep.subr.bf16.mxu0 %v13021_v24  ;;  %v13113_v23 = vld [vmem:[%s22831_s1 + $0xf4] ss:$8 sps:$4 sm:$0xff]  }
  0x82   : > { %1324 = vmatprep.subr.bf16.mxu1 %v13023_v25  ;;  %v13115_v24 = vld [vmem:[%s22831_s1 + $0x134] ss:$8 sps:$4 sm:$0xff]  }
  0x83   : > { %v13163_v25 = vld [vmem:[%s15466_s21 + $0x4] ss:$20 sps:$4 sm:$0xff]  }
  0x84   : > { %1272 = vmatpush2.bf16.msra.mxu0 %v13025_v26  ;;  %v13117_v26 = vld [vmem:[%s22831_s1 + $0xf0] ss:$8 sps:$4 sm:$0xff]  }
  0x85   : > { %1325 = vmatpush2.bf16.msra.mxu1 %v13026_v27  ;;  %1273 = vmatprep.subr.bf16.mxu0 %v13027_v28  ;;  %v13118_v27 = vld [vmem:[%s22831_s1 + $0x130] ss:$8 sps:$4 sm:$0xff]   ;;  %v13119_v28 = vld [vmem:[%s22831_s1 + $0xe4] ss:$8 sps:$4 sm:$0xff]  }
  0x86   : > { %1326 = vmatprep.subr.bf16.mxu1 %v13029_v30  ;;  %v13123_v30 = vld [vmem:[%s22831_s1 + $0xe0] ss:$8 sps:$4 sm:$0xff]  }
  0x88   : > { %1274 = vmatpush2.bf16.msra.mxu0 %v13031_v32  ;;  %v13125_v32 = vld [vmem:[%s22831_s1 + $0xd4] ss:$8 sps:$4 sm:$0xff]  }
  0x89   : > { %1327 = vmatpush2.bf16.msra.mxu1 %v13032_v33  ;;  %1275 = vmatprep.subr.bf16.mxu0 %v13033_v34  ;;  %v13127_v33 = vld [vmem:[%s22831_s1 + $0x114] ss:$8 sps:$4 sm:$0xff]   ;;  %v13129_v34 = vld [vmem:[%s22831_s1 + $0xd0] ss:$8 sps:$4 sm:$0xff]  }
  0x8a   : > { %1328 = vmatprep.subr.bf16.mxu1 %v13035_v35  ;;  %v13130_v35 = vld [vmem:[%s22831_s1 + $0x110] ss:$8 sps:$4 sm:$0xff]  }
  0x8c   : > { %1276 = vmatpush2.bf16.msra.mxu0 %v13037_v36  ;;  %v13131_v36 = vld [vmem:[%s22831_s1 + $0xc4] ss:$8 sps:$4 sm:$0xff]  }
  0x8d   : > { %1329 = vmatpush2.bf16.msra.mxu1 %v13038_v37  ;;  %1277 = vmatprep.subr.bf16.mxu0 %v13039_v38  ;;  %v13133_v37 = vld [vmem:[%s22831_s1 + $0x104] ss:$8 sps:$4 sm:$0xff]   ;;  %v13135_v38 = vld [vmem:[%s22831_s1 + $0xc0] ss:$8 sps:$4 sm:$0xff]  }
  0x8e   : > { %1330 = vmatprep.subr.bf16.mxu1 %v13041_v39  ;;  %v13193_v39 = vld [vmem:[%s15466_s21 + $0xc] ss:$20 sps:$4 sm:$0xff]  }
  0x90   : > { %1278 = vmatpush2.bf16.msra.mxu0 %v13043_v40  ;;  %v13136_v40 = vld [vmem:[%s22831_s1 + $0x100] ss:$8 sps:$4 sm:$0xff]  }
  0x91   : > { %1331 = vmatpush2.bf16.msra.mxu1 %v13044_v41  ;;  %1279 = vmatprep.subr.bf16.mxu0 %v13045_v42  ;;  %v13137_v41 = vld [vmem:[%s22831_s1 + $0xb4] ss:$8 sps:$4 sm:$0xff]  }
  0x92   : > { %1332 = vmatprep.subr.bf16.mxu1 %v13047_v43  ;;  %v13139_v42 = vld [vmem:[%s22831_s1 + $0x1f4] ss:$8 sps:$4 sm:$0xff]   ;;  %v13141_v43 = vld [vmem:[%s22831_s1 + $0xb0] ss:$8 sps:$4 sm:$0xff]  }
  0x94   : > { %1280 = vmatpush2.bf16.msra.mxu0 %v13049_v44  ;;  %v13142_v44 = vld [vmem:[%s22831_s1 + $0x1f0] ss:$8 sps:$4 sm:$0xff]  }
  0x95   : > { %1333 = vmatpush2.bf16.msra.mxu1 %v13050_v45  ;;  %1363 = vmatprep.subr.bf16.mxu0 %v13057_v47  ;;  %v13143_v45 = vld [vmem:[%s22831_s1 + $0xa4] ss:$8 sps:$4 sm:$0xff]   ;;  %v13147_v47 = vld [vmem:[%s22831_s1 + $0xa0] ss:$8 sps:$4 sm:$0xff]  }
  0x96   : > { %1824 = vmatprep.subr.bf16.mxu1 %v13059_v48  ;;  %v13148_v48 = vld [vmem:[%s22831_s1 + $0x1e0] ss:$8 sps:$4 sm:$0xff]  }
  0x97   : > { %1282 = vmatmul.mubr.bf16.vlgmr.msra.gmra.mxu0 %v13051_v46  ;;  %v13145_v46 = vld [vmem:[%s22831_s1 + $0x1e4] ss:$8 sps:$4 sm:$0xff]  }
  0x98   : > { %1335 = vmatmul.mubr.bf16.vlgmr.msra.gmra.mxu1 %v13054_v49  ;;  %1364 = vmatpush1.bf16.msra.mxu0 %v13061_v50  ;;  %v13149_v49 = vld [vmem:[%s22831_s1 + $0x94] ss:$8 sps:$4 sm:$0xff]  }
  0x99   : > { %1825 = vmatpush1.bf16.msra.mxu1 %v13062_v51  ;;  %1365 = vmatprep.subr.bf16.mxu0 %v13063_v52  ;;  %v13151_v50 = vld [vmem:[%s22831_s1 + $0x1d4] ss:$8 sps:$4 sm:$0xff]   ;;  %v13153_v51 = vld [vmem:[%s22831_s1 + $0x90] ss:$8 sps:$4 sm:$0xff]  }
  0x9a   : > { %1826 = vmatprep.subr.bf16.mxu1 %v13065_v53  ;;  %1291 = vmatprep.mubr.bf16.mxu0 %v13069_v54  ;;  %v13154_v52 = vld [vmem:[%s22831_s1 + $0x1d0] ss:$8 sps:$4 sm:$0xff]   ;;  %v13155_v53 = vld [vmem:[%s22831_s1 + $0x84] ss:$8 sps:$4 sm:$0xff]  }
  0x9b   : > { %1344 = vmatprep.mubr.bf16.mxu1 %v13071_v55  ;;  %v13157_v54 = vld [vmem:[%s22831_s1 + $0x1c4] ss:$8 sps:$4 sm:$0xff]   ;;  %v13159_v55 = vld [vmem:[%s22831_s1 + $0x80] ss:$8 sps:$4 sm:$0xff]  }
  0x9c   : > { %1366 = vmatpush1.bf16.msra.mxu0 %v13067_v56  ;;  %v13160_v56 = vld [vmem:[%s22831_s1 + $0x1c0] ss:$8 sps:$4 sm:$0xff]  }
  0x9d   : > { %1827 = vmatpush1.bf16.msra.mxu1 %v13068_v57  ;;  %1367 = vmatprep.subr.bf16.mxu0 %v13075_v58  ;;  %v13164_v57 = vld [vmem:[%s22831_s1 + $0x1b4] ss:$8 sps:$4 sm:$0xff]  }
  0x9e   : > { %1828 = vmatprep.subr.bf16.mxu1 %v13077_v59  ;;  %v13166_v58 = vld [vmem:[%s22831_s1 + $0x234] ss:$8 sps:$4 sm:$0xff]  }
  0x9f   : > { %1292 = vmatmul.mubr.bf16.gmra.mxu0 %v13073_v60  ;;  %v13161_v59 = vld [vmem:[%s15466_s21] ss:$20 sps:$4 sm:$0xff]  }
  0xa0   : > { %1345 = vmatmul.mubr.bf16.gmra.mxu1 %v13074_v61  ;;  %1368 = vmatpush1.bf16.msra.mxu0 %v13079_v62  ;;  %v13168_v60 = vld [vmem:[%s22831_s1 + $0x1b0] ss:$8 sps:$4 sm:$0xff]   ;;  %v13170_v62 = vld [vmem:[%s22831_s1 + $0x1a4] ss:$8 sps:$4 sm:$0xff]  }
  0xa1   : > { %1829 = vmatpush1.bf16.msra.mxu1 %v13080_v63  ;;  %1369 = vmatprep.subr.bf16.mxu0 %v13081_v0  ;;  %v13169_v61 = vld [vmem:[%s22831_s1 + $0x230] ss:$8 sps:$4 sm:$0xff]   ;;  %v13172_v63 = vld [vmem:[%s22831_s1 + $0x224] ss:$8 sps:$4 sm:$0xff]  }
  0xa2   : > { %1830 = vmatprep.subr.bf16.mxu1 %v13083_v1  ;;  %1387 = vmatprep.mubr.bf16.mxu0 %v22843_v6  ;;  %v13176_v0 = vld [vmem:[%s15466_s21 + $0x2c] ss:$20 sps:$4 sm:$0xff]  }
  0xa3   : > { %1856 = vmatprep.mubr.bf16.mxu1 %v13163_v25  ;;  %v13174_v1 = vld [vmem:[%s22831_s1 + $0x1a0] ss:$8 sps:$4 sm:$0xff]  }
  0xa4   : > { %1370 = vmatpush1.bf16.msra.mxu0 %v13085_v2  ;;  %v13175_v2 = vld [vmem:[%s22831_s1 + $0x220] ss:$8 sps:$4 sm:$0xff]  }
  0xa5   : > { %1831 = vmatpush1.bf16.msra.mxu1 %v13086_v3  ;;  %1877 = vmatprep.subr.bf16.mxu0 %v13090_v5  ;;  %v13179_v3 = vld [vmem:[%s22831_s1 + $0x194] ss:$8 sps:$4 sm:$0xff]   ;;  %v14292_v25 = vld [vmem:[%s22832_s2 + $0x160] ss:$8 sps:$4 sm:$0xff]  }
  0xa6   : > { %1832 = vmatprep.subr.bf16.mxu1 %v13088_v4  ;;  %v13181_v4 = vld [vmem:[%s22831_s1 + $0x214] ss:$8 sps:$4 sm:$0xff]  }
  0xa7   : > { %11571 = vmatmul.mubr.msk.bf16.vlgmr.msra.gmra.mxu0 %vm1242_vm0, %v13087_v7  ;;  %v13178_v5 = vld [vmem:[%s15466_s21 + $0x28] ss:$20 sps:$4 sm:$0xff]  }
  0xa8   : > { %1878 = vmatpush1.bf16.msra.mxu0 %v13093_v9  ;;  %1397 = vmatprep.mubr.bf16.mxu0 %v22843_v6  ;;  %v13183_v7 = vld [vmem:[%s22831_s1 + $0x190] ss:$8 sps:$4 sm:$0xff]   ;;  %v13185_v9 = vld [vmem:[%s22831_s1 + $0x184] ss:$8 sps:$4 sm:$0xff]  }
  0xa9   : > { %1833 = vmatpush1.bf16.msra.mxu1 %v13092_v8  ;;  %1879 = vmatprep.subr.bf16.mxu0 %v13096_v11  ;;  %v13184_v8 = vld [vmem:[%s22831_s1 + $0x210] ss:$8 sps:$4 sm:$0xff]   ;;  %v13189_v11 = vld [vmem:[%s22831_s1 + $0x180] ss:$8 sps:$4 sm:$0xff]  }
  0xaa   : > { %1834 = vmatprep.subr.bf16.mxu1 %v13094_v10  ;;  %v13187_v10 = vld [vmem:[%s22831_s1 + $0x204] ss:$8 sps:$4 sm:$0xff]  }
  0xac   : > { %1880 = vmatpush1.bf16.msra.mxu0 %v13099_v13  ;;  %v13191_v13 = vld [vmem:[%s15466_s21 + $0x8] ss:$20 sps:$4 sm:$0xff]  }
  0xad   : > { %1835 = vmatpush1.bf16.msra.mxu1 %v13098_v12  ;;  %1881 = vmatprep.subr.bf16.mxu0 %v13103_v15  ;;  %v13190_v12 = vld [vmem:[%s22831_s1 + $0x200] ss:$8 sps:$4 sm:$0xff]  }
  0xae   : > { %1836 = vmatprep.subr.bf16.mxu1 %v13101_v14  ;;  %v13194_v14 = vld [vmem:[%s15466_s21 + $0x10] ss:$20 sps:$4 sm:$0xff]   ;;  %v13195_v15 = vld [vmem:[%s15466_s21 + $0x34] ss:$20 sps:$4 sm:$0xff]  }
  0xaf   : > { %11572 = vmatmul.mubr.msk.bf16.gmra.mxu0 %vm1242_vm0, %v13100_v16  ;;  %v14285_v16 = vld [vmem:[%s22832_s2 + $0x74] ss:$8 sps:$4 sm:$0xff]  }
  0xb0   : > { %1882 = vmatpush1.bf16.msra.mxu0 %v13106_v18  ;;  %1909 = vmatprep.mubr.bf16.mxu0 %v13193_v39  ;;  %v14287_v18 = vld [vmem:[%s22832_s2 + $0x70] ss:$8 sps:$4 sm:$0xff]  }
  0xb1   : > { %1837 = vmatpush1.bf16.msra.mxu1 %v13105_v17  ;;  %1883 = vmatprep.subr.bf16.mxu0 %v13109_v20  ;;  %v14286_v17 = vld [vmem:[%s22832_s2 + $0x174] ss:$8 sps:$4 sm:$0xff]   ;;  %v14289_v20 = vld [vmem:[%s22832_s2 + $0x64] ss:$8 sps:$4 sm:$0xff]   ;;  %v14304_v39 = vld [vmem:[%s22832_s2 + $0x130] ss:$8 sps:$4 sm:$0xff]  }
  0xb2   : > { %1838 = vmatprep.subr.bf16.mxu1 %v13107_v19  ;;  %v14288_v19 = vld [vmem:[%s22832_s2 + $0x170] ss:$8 sps:$4 sm:$0xff]  }
  0xb4   : > { %1884 = vmatpush1.bf16.msra.mxu0 %v13112_v22  ;;  %v13197_v22 = vld [vmem:[%s15466_s21 + $0x30] ss:$20 sps:$4 sm:$0xff]  }
  0xb5   : > { %1839 = vmatpush1.bf16.msra.mxu1 %v13111_v21  ;;  %1885 = vmatprep.subr.bf16.mxu0 %v13115_v24  ;;  %v14290_v21 = vld [vmem:[%s22832_s2 + $0x164] ss:$8 sps:$4 sm:$0xff]   ;;  %v14291_v24 = vld [vmem:[%s22832_s2 + $0x60] ss:$8 sps:$4 sm:$0xff]  }
  0xb6   : > { %1840 = vmatprep.subr.bf16.mxu1 %v13113_v23  ;;  %v13198_v23 = vld [vmem:[%s15466_s21 + $0x38] ss:$20 sps:$4 sm:$0xff]  }
  0xb8   : > { %1886 = vmatpush1.bf16.msra.mxu0 %v13118_v27  ;;  %v13204_v27 = vld [vmem:[%s15466_s21 + $0xac] ss:$20 sps:$4 sm:$0xff]  }
  0xb9   : > { %1841 = vmatpush2.bf16.msra.mxu1 %v13117_v26  ;;  %1887 = vmatprep.subr.bf16.mxu0 %v13121_v29  ;;  %v13201_v26 = vld [vmem:[%s15466_s21 + $0xa4] ss:$20 sps:$4 sm:$0xff]  }
  0xba   : > { %1842 = vmatprep.subr.bf16.mxu1 %v13119_v28  ;;  %v14293_v28 = vld [vmem:[%s22832_s2 + $0x54] ss:$8 sps:$4 sm:$0xff]  }
  0xbb   : > { %v14294_v29 = vld [vmem:[%s22832_s2 + $0x154] ss:$8 sps:$4 sm:$0xff]  }
  0xbc   : > { %1888 = vmatpush1.bf16.msra.mxu0 %v13124_v31  ;;  %v14296_v31 = vld [vmem:[%s22832_s2 + $0x150] ss:$8 sps:$4 sm:$0xff]  }
  0xbd   : > { %1843 = vmatpush2.bf16.msra.mxu1 %v13123_v30  ;;  %1889 = vmatprep.subr.bf16.mxu0 %v13127_v33  ;;  %v14295_v30 = vld [vmem:[%s22832_s2 + $0x50] ss:$8 sps:$4 sm:$0xff]   ;;  %v14298_v33 = vld [vmem:[%s22832_s2 + $0x144] ss:$8 sps:$4 sm:$0xff]  }
  0xbe   : > { %1844 = vmatprep.subr.bf16.mxu1 %v13125_v32  ;;  %v14297_v32 = vld [vmem:[%s22832_s2 + $0x44] ss:$8 sps:$4 sm:$0xff]  }
  0xc0   : > { %1890 = vmatpush1.bf16.msra.mxu0 %v13130_v35  ;;  %v14300_v35 = vld [vmem:[%s22832_s2 + $0x140] ss:$8 sps:$4 sm:$0xff]  }
  0xc1   : > { %1845 = vmatpush2.bf16.msra.mxu1 %v13129_v34  ;;  %1891 = vmatprep.subr.bf16.mxu0 %v13133_v37  ;;  %v14299_v34 = vld [vmem:[%s22832_s2 + $0x40] ss:$8 sps:$4 sm:$0xff]   ;;  %v14302_v37 = vld [vmem:[%s22832_s2 + $0x134] ss:$8 sps:$4 sm:$0xff]  }
  0xc2   : > { %1846 = vmatprep.subr.bf16.mxu1 %v13131_v36  ;;  %v14301_v36 = vld [vmem:[%s22832_s2 + $0x34] ss:$8 sps:$4 sm:$0xff]  }
  0xc4   : > { %1892 = vmatpush1.bf16.msra.mxu0 %v13136_v40  ;;  %v14305_v40 = vld [vmem:[%s22832_s2 + $0x24] ss:$8 sps:$4 sm:$0xff]  }
  0xc5   : > { %1847 = vmatpush2.bf16.msra.mxu1 %v13135_v38  ;;  %1893 = vmatprep.subr.bf16.mxu0 %v13139_v42  ;;  %v14303_v38 = vld [vmem:[%s22832_s2 + $0x30] ss:$8 sps:$4 sm:$0xff]   ;;  %v14307_v42 = vld [vmem:[%s22832_s2 + $0x20] ss:$8 sps:$4 sm:$0xff]  }
  0xc6   : > { %1848 = vmatprep.subr.bf16.mxu1 %v13137_v41  ;;  %v14306_v41 = vld [vmem:[%s22832_s2 + $0x124] ss:$8 sps:$4 sm:$0xff]  }
  0xc8   : > { %1894 = vmatpush2.bf16.msra.mxu0 %v13142_v44  ;;  %v14309_v44 = vld [vmem:[%s22832_s2 + $0x14] ss:$8 sps:$4 sm:$0xff]  }
  0xc9   : > { %1849 = vmatpush2.bf16.msra.mxu1 %v13141_v43  ;;  %1895 = vmatprep.subr.bf16.mxu0 %v13145_v46  ;;  %v14308_v43 = vld [vmem:[%s22832_s2 + $0x120] ss:$8 sps:$4 sm:$0xff]   ;;  %v14311_v46 = vld [vmem:[%s22832_s2 + $0x10] ss:$8 sps:$4 sm:$0xff]  }
  0xca   : > { %1850 = vmatprep.subr.bf16.mxu1 %v13143_v45  ;;  %v14310_v45 = vld [vmem:[%s22832_s2 + $0x114] ss:$8 sps:$4 sm:$0xff]  }
  0xcc   : > { %1896 = vmatpush2.bf16.msra.mxu0 %v13148_v48  ;;  %v14313_v48 = vld [vmem:[%s22832_s2 + $0x4] ss:$8 sps:$4 sm:$0xff]  }
  0xcd   : > { %1851 = vmatpush2.bf16.msra.mxu1 %v13147_v47  ;;  %1897 = vmatprep.subr.bf16.mxu0 %v13151_v50  ;;  %v14312_v47 = vld [vmem:[%s22832_s2 + $0x110] ss:$8 sps:$4 sm:$0xff]   ;;  %v14315_v50 = vld [vmem:[%s22832_s2] ss:$8 sps:$4 sm:$0xff]  }
  0xce   : > { %1852 = vmatprep.subr.bf16.mxu1 %v13149_v49  ;;  %v14314_v49 = vld [vmem:[%s22832_s2 + $0x104] ss:$8 sps:$4 sm:$0xff]  }
  0xd0   : > { %1898 = vmatpush2.bf16.msra.mxu0 %v13154_v52  ;;  %v14317_v52 = vld [vmem:[%s22832_s2 + $0xf4] ss:$8 sps:$4 sm:$0xff]  }
  0xd1   : > { %1853 = vmatpush2.bf16.msra.mxu1 %v13153_v51  ;;  %1899 = vmatprep.subr.bf16.mxu0 %v13157_v54  ;;  %v14316_v51 = vld [vmem:[%s22832_s2 + $0x100] ss:$8 sps:$4 sm:$0xff]   ;;  %v14319_v54 = vld [vmem:[%s22832_s2 + $0xf0] ss:$8 sps:$4 sm:$0xff]  }
  0xd2   : > { %1854 = vmatprep.subr.bf16.mxu1 %v13155_v53  ;;  %v14318_v53 = vld [vmem:[%s22832_s2 + $0x1f4] ss:$8 sps:$4 sm:$0xff]  }
  0xd4   : > { %1900 = vmatpush2.bf16.msra.mxu0 %v13160_v56  ;;  %v14321_v56 = vld [vmem:[%s22832_s2 + $0xe4] ss:$8 sps:$4 sm:$0xff]  }
  0xd5   : > { %1855 = vmatpush2.bf16.msra.mxu1 %v13159_v55  ;;  %1901 = vmatprep.subr.bf16.mxu0 %v13164_v57  ;;  %v14320_v55 = vld [vmem:[%s22832_s2 + $0x1f0] ss:$8 sps:$4 sm:$0xff]   ;;  %v14322_v57 = vld [vmem:[%s22832_s2 + $0x1e4] ss:$8 sps:$4 sm:$0xff]  }
  0xd6   : > { %1938 = vmatprep.subr.bf16.mxu1 %v13166_v58  ;;  %v14323_v58 = vld [vmem:[%s22832_s2 + $0xe0] ss:$8 sps:$4 sm:$0xff]  }
  0xd8   : > { %1857 = vmatmul.mubr.bf16.vlgmr.msra.gmra.mxu1 %v13161_v59  ;;  %1902 = vmatpush2.bf16.msra.mxu0 %v13168_v60  ;;  %v14324_v59 = vld [vmem:[%s22832_s2 + $0x1e0] ss:$8 sps:$4 sm:$0xff]   ;;  %v14325_v60 = vld [vmem:[%s22832_s2 + $0xd4] ss:$8 sps:$4 sm:$0xff]  }
  0xd9   : > { %1939 = vmatpush1.bf16.msra.mxu1 %v13169_v61  ;;  %1903 = vmatprep.subr.bf16.mxu0 %v13170_v62  ;;  %v14326_v61 = vld [vmem:[%s22832_s2 + $0x1d4] ss:$8 sps:$4 sm:$0xff]   ;;  %v14327_v62 = vld [vmem:[%s22832_s2 + $0xd0] ss:$8 sps:$4 sm:$0xff]  }
  0xda   : > { %1940 = vmatprep.subr.bf16.mxu1 %v13172_v63  ;;  %1866 = vmatprep.mubr.bf16.mxu1 %v13176_v0  ;;  %v14328_v63 = vld [vmem:[%s22832_s2 + $0x1d0] ss:$8 sps:$4 sm:$0xff]   ;;  %v14329_v0 = vld [vmem:[%s22832_s2 + $0xc4] ss:$8 sps:$4 sm:$0xff]  }
  0xdc   : > { %1904 = vmatpush2.bf16.msra.mxu0 %v13174_v1  ;;  %v14330_v1 = vld [vmem:[%s22832_s2 + $0x1c4] ss:$8 sps:$4 sm:$0xff]  }
  0xdd   : > { %1941 = vmatpush1.bf16.msra.mxu1 %v13175_v2  ;;  %1905 = vmatprep.subr.bf16.mxu0 %v13179_v3  ;;  %v14331_v2 = vld [vmem:[%s22832_s2 + $0xc0] ss:$8 sps:$4 sm:$0xff]  }
  0xde   : > { %1942 = vmatprep.subr.bf16.mxu1 %v13181_v4  ;;  %v14332_v3 = vld [vmem:[%s22832_s2 + $0x1c0] ss:$8 sps:$4 sm:$0xff]   ;;  %v14333_v4 = vld [vmem:[%s22832_s2 + $0xb4] ss:$8 sps:$4 sm:$0xff]  }
  0xe0   : > { %1867 = vmatmul.mubr.bf16.gmra.mxu1 %v13178_v5  ;;  %1906 = vmatpush2.bf16.msra.mxu0 %v13183_v7  ;;  %v14334_v5 = vld [vmem:[%s22832_s2 + $0x1b4] ss:$8 sps:$4 sm:$0xff]   ;;  %v14335_v7 = vld [vmem:[%s22832_s2 + $0xb0] ss:$8 sps:$4 sm:$0xff]  }
  0xe1   : > { %1943 = vmatpush1.bf16.msra.mxu1 %v13184_v8  ;;  %1907 = vmatprep.subr.bf16.mxu0 %v13185_v9  ;;  %v14336_v8 = vld [vmem:[%s22832_s2 + $0x1b0] ss:$8 sps:$4 sm:$0xff]   ;;  %v14337_v9 = vld [vmem:[%s22832_s2 + $0xa4] ss:$8 sps:$4 sm:$0xff]  }
  0xe2   : > { %1944 = vmatprep.subr.bf16.mxu1 %v13187_v10  ;;  %1962 = vmatprep.mubr.bf16.mxu1 %v22843_v6  ;;  %v14338_v10 = vld [vmem:[%s22832_s2 + $0x1a4] ss:$8 sps:$4 sm:$0xff]  }
  0xe4   : > { %1908 = vmatpush2.bf16.msra.mxu0 %v13189_v11  ;;  %v14339_v11 = vld [vmem:[%s22832_s2 + $0xa0] ss:$8 sps:$4 sm:$0xff]  }
  0xe5   : > { %1945 = vmatpush1.bf16.msra.mxu1 %v13190_v12  ;;  %2083 = vmatprep.subr.bf16.mxu0 %v14285_v16  ;;  %v14340_v12 = vld [vmem:[%s22832_s2 + $0x1a0] ss:$8 sps:$4 sm:$0xff]   ;;  %v14344_v16 = vld [vmem:[%s22832_s2 + $0x190] ss:$8 sps:$4 sm:$0xff]  }
  0xe6   : > { %2136 = vmatprep.subr.bf16.mxu1 %v14286_v17  ;;  %v14345_v17 = vld [vmem:[%s22832_s2 + $0x84] ss:$8 sps:$4 sm:$0xff]  }
  0xe7   : > { %1910 = vmatmul.mubr.bf16.vlgmr.msra.gmra.mxu0 %v13191_v13  ;;  %v14341_v13 = vld [vmem:[%s22832_s2 + $0x94] ss:$8 sps:$4 sm:$0xff]  }
  0xe8   : > { %11655 = vmatmul.mubr.msk.bf16.vlgmr.msra.gmra.mxu1 %vm1242_vm0, %v13194_v14  ;;  %2084 = vmatpush1.bf16.msra.mxu0 %v14287_v18  ;;  %v14342_v14 = vld [vmem:[%s22832_s2 + $0x194] ss:$8 sps:$4 sm:$0xff]   ;;  %v14346_v18 = vld [vmem:[%s22832_s2 + $0x184] ss:$8 sps:$4 sm:$0xff]  }
  0xe9   : > { %2137 = vmatpush1.bf16.msra.mxu1 %v14288_v19  ;;  %2085 = vmatprep.subr.bf16.mxu0 %v14289_v20  ;;  %v13199_v19 = vld [vmem:[%s15466_s21 + $0xa0] ss:$20 sps:$4 sm:$0xff]   ;;  %v13202_v20 = vld [vmem:[%s15466_s21 + $0xa8] ss:$20 sps:$4 sm:$0xff]  }
  0xea   : > { %2138 = vmatprep.subr.bf16.mxu1 %v14290_v21  ;;  %1919 = vmatprep.mubr.bf16.mxu0 %v13195_v15  ;;  %v14343_v15 = vld [vmem:[%s22832_s2 + $0x90] ss:$8 sps:$4 sm:$0xff]   ;;  %v14347_v21 = vld [vmem:[%s22832_s2 + $0x80] ss:$8 sps:$4 sm:$0xff]  }
  0xeb   : > { %1972 = vmatprep.mubr.bf16.mxu1 %v22843_v6 }
  0xec   : > { %2086 = vmatpush1.bf16.msra.mxu0 %v14291_v24  ;;  %v13207_v24 = vld [vmem:[%s15466_s21 + $0xd4] ss:$20 sps:$4 sm:$0xff]  }
  0xed   : > { %2139 = vmatpush1.bf16.msra.mxu1 %v14292_v25  ;;  %2087 = vmatprep.subr.bf16.mxu0 %v14293_v28  ;;  %v14349_v25 = vld [vmem:[%s22832_s2 + $0x234] ss:$8 sps:$4 sm:$0xff]   ;;  %v14352_v28 = vld [vmem:[%s22831_s1 + $0x70] ss:$8 sps:$4 sm:$0xff]  }
  0xee   : > { %2140 = vmatprep.subr.bf16.mxu1 %v14294_v29  ;;  %v14353_v29 = vld [vmem:[%s22832_s2 + $0x224] ss:$8 sps:$4 sm:$0xff]  }
  0xef   : > { %1920 = vmatmul.mubr.bf16.gmra.mxu0 %v13197_v22  ;;  %v14348_v22 = vld [vmem:[%s22832_s2 + $0x180] ss:$8 sps:$4 sm:$0xff]  }
  0xf0   : > { %11656 = vmatmul.mubr.msk.bf16.gmra.mxu1 %vm1242_vm0, %v13198_v23  ;;  %2088 = vmatpush1.bf16.msra.mxu0 %v14295_v30  ;;  %v13205_v23 = vld [vmem:[%s15466_s21 + $0xcc] ss:$20 sps:$4 sm:$0xff]  }
  0xf1   : > { %2141 = vmatpush1.bf16.msra.mxu1 %v14296_v31  ;;  %2089 = vmatprep.subr.bf16.mxu0 %v14297_v32  ;;  %v14354_v30 = vld [vmem:[%s22831_s1 + $0x64] ss:$8 sps:$4 sm:$0xff]  }
  0xf2   : > { %2142 = vmatprep.subr.bf16.mxu1 %v14298_v33  ;;  %2115 = vmatprep.mubr.bf16.mxu0 %v13201_v26  ;;  %v14350_v26 = vld [vmem:[%s22831_s1 + $0x74] ss:$8 sps:$4 sm:$0xff]   ;;  %v14355_v33 = vld [vmem:[%s22832_s2 + $0x220] ss:$8 sps:$4 sm:$0xff]  }
  0xf3   : > { %2168 = vmatprep.mubr.bf16.mxu1 %v13204_v27  ;;  %v14351_v27 = vld [vmem:[%s22832_s2 + $0x230] ss:$8 sps:$4 sm:$0xff]  }
  0xf4   : > { %2090 = vmatpush1.bf16.msra.mxu0 %v14299_v34  ;;  %v13209_v31 = vld [vmem:[%s15466_s21 + $0xc8] ss:$20 sps:$4 sm:$0xff]   ;;  %v13210_v32 = vld [vmem:[%s15466_s21 + $0xd0] ss:$20 sps:$4 sm:$0xff]  }
  0xf5   : > { %2143 = vmatpush1.bf16.msra.mxu1 %v14300_v35  ;;  %2091 = vmatprep.subr.bf16.mxu0 %v14301_v36  ;;  %v14356_v34 = vld [vmem:[%s22831_s1 + $0x60] ss:$8 sps:$4 sm:$0xff]   ;;  %v14357_v35 = vld [vmem:[%s22832_s2 + $0x214] ss:$8 sps:$4 sm:$0xff]  }
  0xf6   : > { %2144 = vmatprep.subr.bf16.mxu1 %v14302_v37  ;;  %v14358_v36 = vld [vmem:[%s22831_s1 + $0x54] ss:$8 sps:$4 sm:$0xff]   ;;  %v14359_v37 = vld [vmem:[%s22832_s2 + $0x210] ss:$8 sps:$4 sm:$0xff]  }
  0xf8   : > { %2092 = vmatpush1.bf16.msra.mxu0 %v14303_v38  ;;  %v14360_v38 = vld [vmem:[%s22831_s1 + $0x50] ss:$8 sps:$4 sm:$0xff]  }
  0xf9   : > { %2145 = vmatpush1.bf16.msra.mxu1 %v14304_v39  ;;  %2093 = vmatprep.subr.bf16.mxu0 %v14305_v40  ;;  %v14361_v39 = vld [vmem:[%s22832_s2 + $0x204] ss:$8 sps:$4 sm:$0xff]  }
  0xfa   : > { %2146 = vmatprep.subr.bf16.mxu1 %v14306_v41  ;;  %v14362_v40 = vld [vmem:[%s22831_s1 + $0x44] ss:$8 sps:$4 sm:$0xff]  }
  0xfb   : > { %v13211_v41 = vld [vmem:[%s15466_s21 + $0xb0] ss:$20 sps:$4 sm:$0xff]  }
  0xfc   : > { %2094 = vmatpush1.bf16.msra.mxu0 %v14307_v42  ;;  %v14363_v42 = vld [vmem:[%s15466_s21 + $0x54] ss:$20 sps:$4 sm:$0xff]  }
  0xfd   : > { %2147 = vmatpush1.bf16.msra.mxu1 %v14308_v43  ;;  %2095 = vmatprep.subr.bf16.mxu0 %v14309_v44  ;;  %v14364_v43 = vld [vmem:[%s22832_s2 + $0x200] ss:$8 sps:$4 sm:$0xff]  }
  0xfe   : > { %2148 = vmatprep.subr.bf16.mxu1 %v14310_v45  ;;  %v14365_v44 = vld [vmem:[%s22831_s1 + $0x40] ss:$8 sps:$4 sm:$0xff]   ;;  %v14366_v45 = vld [vmem:[%s22831_s1 + $0x34] ss:$8 sps:$4 sm:$0xff]  }
 0x100   : > { %2096 = vmatpush1.bf16.msra.mxu0 %v14311_v46  ;;  %v14367_v46 = vld [vmem:[%s22831_s1 + $0x174] ss:$8 sps:$4 sm:$0xff]  }
 0x101   : > { %2149 = vmatpush1.bf16.msra.mxu1 %v14312_v47  ;;  %2097 = vmatprep.subr.bf16.mxu0 %v14313_v48  ;;  %v14368_v47 = vld [vmem:[%s22831_s1 + $0x30] ss:$8 sps:$4 sm:$0xff]  }
 0x102   : > { %2150 = vmatprep.subr.bf16.mxu1 %v14314_v49  ;;  %v14369_v48 = vld [vmem:[%s22831_s1 + $0x170] ss:$8 sps:$4 sm:$0xff]   ;;  %v14370_v49 = vld [vmem:[%s22831_s1 + $0x24] ss:$8 sps:$4 sm:$0xff]  }
 0x104   : > { %2098 = vmatpush1.bf16.msra.mxu0 %v14315_v50  ;;  %v14371_v50 = vld [vmem:[%s22831_s1 + $0x164] ss:$8 sps:$4 sm:$0xff]  }
 0x105   : > { %2151 = vmatpush1.bf16.msra.mxu1 %v14316_v51  ;;  %2099 = vmatprep.subr.bf16.mxu0 %v14317_v52  ;;  %v13212_v51 = vld [vmem:[%s15466_s21 + $0xd8] ss:$20 sps:$4 sm:$0xff]  }
 0x106   : > { %2152 = vmatprep.subr.bf16.mxu1 %v14318_v53  ;;  %v14372_v52 = vld [vmem:[%s22831_s1 + $0x20] ss:$8 sps:$4 sm:$0xff]  }
 0x107   : > { %v14373_v53 = vld [vmem:[%s22831_s1 + $0x160] ss:$8 sps:$4 sm:$0xff]  }
 0x108   : > { %2100 = vmatpush2.bf16.msra.mxu0 %v14319_v54  ;;  %v14374_v54 = vld [vmem:[%s22831_s1 + $0x14] ss:$8 sps:$4 sm:$0xff]  }
 0x109   : > { %2153 = vmatpush2.bf16.msra.mxu1 %v14320_v55  ;;  %2101 = vmatprep.subr.bf16.mxu0 %v14321_v56  ;;  %v14375_v55 = vld [vmem:[%s22831_s1 + $0x154] ss:$8 sps:$4 sm:$0xff]   ;;  %v14376_v56 = vld [vmem:[%s22831_s1 + $0x10] ss:$8 sps:$4 sm:$0xff]  }
 0x10a   : > { %2154 = vmatprep.subr.bf16.mxu1 %v14322_v57  ;;  %v14377_v57 = vld [vmem:[%s22831_s1 + $0x150] ss:$8 sps:$4 sm:$0xff]  }
 0x10c   : > { %2102 = vmatpush2.bf16.msra.mxu0 %v14323_v58  ;;  %v14378_v58 = vld [vmem:[%s22831_s1 + $0x4] ss:$8 sps:$4 sm:$0xff]  }
 0x10d   : > { %2155 = vmatpush2.bf16.msra.mxu1 %v14324_v59  ;;  %2103 = vmatprep.subr.bf16.mxu0 %v14325_v60  ;;  %v14379_v59 = vld [vmem:[%s22831_s1 + $0x144] ss:$8 sps:$4 sm:$0xff]  }
 0x10e   : > { %2156 = vmatprep.subr.bf16.mxu1 %v14326_v61  ;;  %v14380_v60 = vld [vmem:[%s15466_s21 + $0x5c] ss:$20 sps:$4 sm:$0xff]  }
 0x10f   : > { %v14381_v61 = vld [vmem:[%s22831_s1] ss:$8 sps:$4 sm:$0xff]  }
 0x110   : > { %2104 = vmatpush2.bf16.msra.mxu0 %v14327_v62  ;;  %v14382_v62 = vld [vmem:[%s22831_s1 + $0x140] ss:$8 sps:$4 sm:$0xff]  }
 0x111   : > { %2157 = vmatpush2.bf16.msra.mxu1 %v14328_v63  ;;  %2105 = vmatprep.subr.bf16.mxu0 %v14329_v0  ;;  %v14383_v63 = vld [vmem:[%s22831_s1 + $0xf4] ss:$8 sps:$4 sm:$0xff]  }
 0x112   : > { %2158 = vmatprep.subr.bf16.mxu1 %v14330_v1  ;;  %v14384_v0 = vld [vmem:[%s22831_s1 + $0x134] ss:$8 sps:$4 sm:$0xff]   ;;  %v14385_v1 = vld [vmem:[%s22831_s1 + $0xf0] ss:$8 sps:$4 sm:$0xff]  }
 0x114   : > { %2106 = vmatpush2.bf16.msra.mxu0 %v14331_v2  ;;  %v14386_v2 = vld [vmem:[%s22831_s1 + $0x130] ss:$8 sps:$4 sm:$0xff]  }
 0x115   : > { %2159 = vmatpush2.bf16.msra.mxu1 %v14332_v3  ;;  %2107 = vmatprep.subr.bf16.mxu0 %v14333_v4  ;;  %v14387_v3 = vld [vmem:[%s22831_s1 + $0xe4] ss:$8 sps:$4 sm:$0xff]  }
 0x116   : > { %2160 = vmatprep.subr.bf16.mxu1 %v14334_v5  ;;  %v14388_v4 = vld [vmem:[%s22831_s1 + $0x124] ss:$8 sps:$4 sm:$0xff]   ;;  %v14389_v5 = vld [vmem:[%s22831_s1 + $0xe0] ss:$8 sps:$4 sm:$0xff]  }
 0x118   : > { %2108 = vmatpush2.bf16.msra.mxu0 %v14335_v7  ;;  %v14390_v7 = vld [vmem:[%s22831_s1 + $0x120] ss:$8 sps:$4 sm:$0xff]  }
 0x119   : > { %2161 = vmatpush2.bf16.msra.mxu1 %v14336_v8  ;;  %2109 = vmatprep.subr.bf16.mxu0 %v14337_v9  ;;  %v14391_v8 = vld [vmem:[%s22831_s1 + $0xd4] ss:$8 sps:$4 sm:$0xff]  }
 0x11a   : > { %2162 = vmatprep.subr.bf16.mxu1 %v14338_v10  ;;  %v14392_v9 = vld [vmem:[%s22831_s1 + $0x114] ss:$8 sps:$4 sm:$0xff]   ;;  %v14393_v10 = vld [vmem:[%s22831_s1 + $0xd0] ss:$8 sps:$4 sm:$0xff]  }
 0x11c   : > { %2110 = vmatpush2.bf16.msra.mxu0 %v14339_v11  ;;  %v14394_v11 = vld [vmem:[%s22831_s1 + $0x110] ss:$8 sps:$4 sm:$0xff]  }
 0x11d   : > { %2163 = vmatpush2.bf16.msra.mxu1 %v14340_v12  ;;  %2111 = vmatprep.subr.bf16.mxu0 %v14341_v13  ;;  %v14395_v12 = vld [vmem:[%s22831_s1 + $0xc4] ss:$8 sps:$4 sm:$0xff]  }
 0x11e   : > { %2164 = vmatprep.subr.bf16.mxu1 %v14342_v14  ;;  %v14396_v13 = vld [vmem:[%s22831_s1 + $0x104] ss:$8 sps:$4 sm:$0xff]   ;;  %v14397_v14 = vld [vmem:[%s22831_s1 + $0xc0] ss:$8 sps:$4 sm:$0xff]  }
 0x120   : > { %2112 = vmatpush2.bf16.msra.mxu0 %v14343_v15  ;;  %v14398_v15 = vld [vmem:[%s22831_s1 + $0x100] ss:$8 sps:$4 sm:$0xff]  }
 0x121   : > { %2165 = vmatpush2.bf16.msra.mxu1 %v14344_v16  ;;  %2113 = vmatprep.subr.bf16.mxu0 %v14345_v17  ;;  %v14399_v16 = vld [vmem:[%s22831_s1 + $0xb4] ss:$8 sps:$4 sm:$0xff]  }
 0x122   : > { %2166 = vmatprep.subr.bf16.mxu1 %v14346_v18  ;;  %v14400_v17 = vld [vmem:[%s22831_s1 + $0x1f4] ss:$8 sps:$4 sm:$0xff]  }
 0x124   : > { %2114 = vmatpush2.bf16.msra.mxu0 %v14347_v21  ;;  %v14401_v21 = vld [vmem:[%s22831_s1 + $0xb0] ss:$8 sps:$4 sm:$0xff]  }
 0x125   : > { %2167 = vmatpush2.bf16.msra.mxu1 %v14348_v22  ;;  %2197 = vmatprep.subr.bf16.mxu0 %v14349_v25  ;;  %v14402_v22 = vld [vmem:[%s22831_s1 + $0x1f0] ss:$8 sps:$4 sm:$0xff]   ;;  %v14403_v25 = vld [vmem:[%s22831_s1 + $0xa4] ss:$8 sps:$4 sm:$0xff]  }
 0x126   : > { %2242 = vmatprep.subr.bf16.mxu1 %v14350_v26  ;;  %v14404_v26 = vld [vmem:[%s22831_s1 + $0x1e4] ss:$8 sps:$4 sm:$0xff]  }
 0x127   : > { %2116 = vmatmul.mubr.bf16.vlgmr.msra.gmra.mxu0 %v13199_v19 }
 0x128   : > { %2169 = vmatmul.mubr.bf16.vlgmr.msra.gmra.mxu1 %v13202_v20  ;;  %2198 = vmatpush1.bf16.msra.mxu0 %v14351_v27 }
 0x129   : > { %2243 = vmatpush1.bf16.msra.mxu1 %v14352_v28  ;;  %2199 = vmatprep.subr.bf16.mxu0 %v14353_v29 }
 0x12a   : > { %2244 = vmatprep.subr.bf16.mxu1 %v14354_v30  ;;  %2125 = vmatprep.mubr.bf16.mxu0 %v13205_v23 }
 0x12b   : > { %2178 = vmatprep.mubr.bf16.mxu1 %v13207_v24 }
 0x12c   : > { %2200 = vmatpush1.bf16.msra.mxu0 %v14355_v33 }
 0x12d   : > { %2245 = vmatpush1.bf16.msra.mxu1 %v14356_v34  ;;  %2201 = vmatprep.subr.bf16.mxu0 %v14357_v35  ;;  %v14407_v35 = vld [vmem:[%s22831_s1 + $0x94] ss:$8 sps:$4 sm:$0xff]  }
 0x12e   : > { %2246 = vmatprep.subr.bf16.mxu1 %v14358_v36  ;;  %v14408_v36 = vld [vmem:[%s22831_s1 + $0x1d4] ss:$8 sps:$4 sm:$0xff]  }
 0x12f   : > { %2126 = vmatmul.mubr.bf16.gmra.mxu0 %v13209_v31  ;;  %v14405_v31 = vld [vmem:[%s22831_s1 + $0xa0] ss:$8 sps:$4 sm:$0xff]  }
 0x130   : > { %2179 = vmatmul.mubr.bf16.gmra.mxu1 %v13210_v32  ;;  %2202 = vmatpush1.bf16.msra.mxu0 %v14359_v37  ;;  %v14406_v32 = vld [vmem:[%s22831_s1 + $0x1e0] ss:$8 sps:$4 sm:$0xff]  }
 0x131   : > { %2247 = vmatpush1.bf16.msra.mxu1 %v14360_v38  ;;  %2203 = vmatprep.subr.bf16.mxu0 %v14361_v39 }
 0x132   : > { %2248 = vmatprep.subr.bf16.mxu1 %v14362_v40  ;;  %2221 = vmatprep.mubr.bf16.mxu0 %v22843_v6  ;;  %v14409_v40 = vld [vmem:[%s22831_s1 + $0x90] ss:$8 sps:$4 sm:$0xff]  }
 0x133   : > { %2274 = vmatprep.mubr.bf16.mxu1 %v14363_v42 }
 0x134   : > { %2204 = vmatpush1.bf16.msra.mxu0 %v14364_v43 }
 0x135   : > { %2249 = vmatpush1.bf16.msra.mxu1 %v14365_v44  ;;  %2295 = vmatprep.subr.bf16.mxu0 %v14367_v46  ;;  %v14411_v44 = vld [vmem:[%s22831_s1 + $0x84] ss:$8 sps:$4 sm:$0xff]  }
 0x136   : > { %2250 = vmatprep.subr.bf16.mxu1 %v14366_v45  ;;  %v14412_v45 = vld [vmem:[%s22831_s1 + $0x1c4] ss:$8 sps:$4 sm:$0xff]  }
 0x137   : > { %11679 = vmatmul.mubr.msk.bf16.vlgmr.msra.gmra.mxu0 %vm1242_vm0, %v13211_v41  ;;  %v14410_v41 = vld [vmem:[%s22831_s1 + $0x1d0] ss:$8 sps:$4 sm:$0xff]  }
 0x138   : > { %2296 = vmatpush1.bf16.msra.mxu0 %v14369_v48  ;;  %2231 = vmatprep.mubr.bf16.mxu0 %v22843_v6 }
 0x139   : > { %2251 = vmatpush1.bf16.msra.mxu1 %v14368_v47  ;;  %2297 = vmatprep.subr.bf16.mxu0 %v14371_v50  ;;  %v14413_v50 = vld [vmem:[%s22831_s1 + $0x80] ss:$8 sps:$4 sm:$0xff]  }
 0x13a   : > { %2252 = vmatprep.subr.bf16.mxu1 %v14370_v49 }
 0x13c   : > { %2298 = vmatpush1.bf16.msra.mxu0 %v14373_v53  ;;  %v14415_v53 = vld [vmem:[%s22831_s1 + $0x1b4] ss:$8 sps:$4 sm:$0xff]  }
 0x13d   : > { %2253 = vmatpush1.bf16.msra.mxu1 %v14372_v52  ;;  %2299 = vmatprep.subr.bf16.mxu0 %v14375_v55 }
 0x13e   : > { %2254 = vmatprep.subr.bf16.mxu1 %v14374_v54  ;;  %v14416_v54 = vld [vmem:[%s22831_s1 + $0x234] ss:$8 sps:$4 sm:$0xff]  }
 0x13f   : > { %11680 = vmatmul.mubr.msk.bf16.gmra.mxu0 %vm1242_vm0, %v13212_v51  ;;  %v14414_v51 = vld [vmem:[%s22831_s1 + $0x1c0] ss:$8 sps:$4 sm:$0xff]  }
 0x140   : > { %2300 = vmatpush1.bf16.msra.mxu0 %v14377_v57  ;;  %2327 = vmatprep.mubr.bf16.mxu0 %v14380_v60 }
 0x141   : > { %2255 = vmatpush1.bf16.msra.mxu1 %v14376_v56  ;;  %2301 = vmatprep.subr.bf16.mxu0 %v14379_v59  ;;  %v14417_v56 = vld [vmem:[%s15466_s21 + $0x50] ss:$20 sps:$4 sm:$0xff]  }
 0x142   : > { %2256 = vmatprep.subr.bf16.mxu1 %v14378_v58  ;;  %v14418_v58 = vld [vmem:[%s22831_s1 + $0x1b0] ss:$8 sps:$4 sm:$0xff]  }
 0x143   : > { %v14419_v59 = vld [vmem:[%s22831_s1 + $0x230] ss:$8 sps:$4 sm:$0xff]  }
 0x144   : > { %2302 = vmatpush1.bf16.msra.mxu0 %v14382_v62  ;;  %v14421_v62 = vld [vmem:[%s22831_s1 + $0x224] ss:$8 sps:$4 sm:$0xff]  }
 0x145   : > { %2257 = vmatpush1.bf16.msra.mxu1 %v14381_v61  ;;  %2303 = vmatprep.subr.bf16.mxu0 %v14384_v0  ;;  %v14420_v61 = vld [vmem:[%s22831_s1 + $0x1a4] ss:$8 sps:$4 sm:$0xff]  }
 0x146   : > { %2258 = vmatprep.subr.bf16.mxu1 %v14383_v63  ;;  %v14422_v0 = vld [vmem:[%s15466_s21 + $0x7c] ss:$20 sps:$4 sm:$0xff]  }
 0x148   : > { %2304 = vmatpush1.bf16.msra.mxu0 %v14386_v2 }
 0x149   : > { %2259 = vmatpush2.bf16.msra.mxu1 %v14385_v1  ;;  %2305 = vmatprep.subr.bf16.mxu0 %v14388_v4  ;;  %v14424_v4 = vld [vmem:[%s22831_s1 + $0x220] ss:$8 sps:$4 sm:$0xff]  }
 0x14a   : > { %2260 = vmatprep.subr.bf16.mxu1 %v14387_v3  ;;  %v14423_v3 = vld [vmem:[%s22831_s1 + $0x1a0] ss:$8 sps:$4 sm:$0xff]  }
 0x14c   : > { %2306 = vmatpush1.bf16.msra.mxu0 %v14390_v7  ;;  %v14425_v7 = vld [vmem:[%s22831_s1 + $0x194] ss:$8 sps:$4 sm:$0xff]  }
 0x14d   : > { %2261 = vmatpush2.bf16.msra.mxu1 %v14389_v5  ;;  %2307 = vmatprep.subr.bf16.mxu0 %v14392_v9 }
 0x14e   : > { %2262 = vmatprep.subr.bf16.mxu1 %v14391_v8  ;;  %v14426_v8 = vld [vmem:[%s22831_s1 + $0x214] ss:$8 sps:$4 sm:$0xff]  }
 0x150   : > { %2308 = vmatpush1.bf16.msra.mxu0 %v14394_v11 }
 0x151   : > { %2263 = vmatpush2.bf16.msra.mxu1 %v14393_v10  ;;  %2309 = vmatprep.subr.bf16.mxu0 %v14396_v13  ;;  %v14427_v10 = vld [vmem:[%s15466_s21 + $0x78] ss:$20 sps:$4 sm:$0xff]  }
 0x152   : > { %2264 = vmatprep.subr.bf16.mxu1 %v14395_v12  ;;  %v14428_v12 = vld [vmem:[%s22831_s1 + $0x190] ss:$8 sps:$4 sm:$0xff]  }
 0x153   : > { %v14429_v13 = vld [vmem:[%s22831_s1 + $0x210] ss:$8 sps:$4 sm:$0xff]  }
 0x154   : > { %2310 = vmatpush1.bf16.msra.mxu0 %v14398_v15  ;;  %v14430_v15 = vld [vmem:[%s22831_s1 + $0x184] ss:$8 sps:$4 sm:$0xff]  }
 0x155   : > { %2265 = vmatpush2.bf16.msra.mxu1 %v14397_v14  ;;  %2311 = vmatprep.subr.bf16.mxu0 %v14400_v17 }
 0x156   : > { %2266 = vmatprep.subr.bf16.mxu1 %v14399_v16  ;;  %v14431_v16 = vld [vmem:[%s22831_s1 + $0x204] ss:$8 sps:$4 sm:$0xff]  }
 0x157   : > { %v1283_v18 = vpop.f32.mrf.mxu0 }
 0x158   : > { %v1336_v19 = vpop.f32.mrf.mxu1  ;;  %2312 = vmatpush2.bf16.msra.mxu0 %v14402_v22  ;;  %v14434_v22 = vld [vmem:[%s22832_s2 + $0x74] ss:$8 sps:$4 sm:$0xff]  }
 0x159   : > { %v1337_v20 = vadd.f32 %v1336_v19, %v1283_v18  ;;  %2267 = vmatpush2.bf16.msra.mxu1 %v14401_v21  ;;  %v1285_v23 = vpop.f32.mrf.mxu0  ;;  %2313 = vmatprep.subr.bf16.mxu0 %v14404_v26  ;;  %v14433_v21 = vld [vmem:[%s22831_s1 + $0x200] ss:$8 sps:$4 sm:$0xff]   ;;  %v14438_v26 = vld [vmem:[%s22832_s2 + $0x70] ss:$8 sps:$4 sm:$0xff]  }
 0x15a   : > { %v1338_v24 = vpop.f32.mrf.mxu1  ;;  %2268 = vmatprep.subr.bf16.mxu1 %v14403_v25  ;;  %v14437_v25 = vld [vmem:[%s15466_s21 + $0x60] ss:$20 sps:$4 sm:$0xff]  }
 0x15b   : > { %v1339_v27 = vadd.f32 %v1338_v24, %v1285_v23  ;;  %v1287_v28 = vpop.f32.mrf.mxu0  ;;  %v14435_v23 = vld [vmem:[%s22832_s2 + $0x174] ss:$8 sps:$4 sm:$0xff]  }
 0x15c   : > { %v1340_v29 = vpop.f32.mrf.mxu1  ;;  %2314 = vmatpush2.bf16.msra.mxu0 %v14406_v32  ;;  %v14436_v24 = vld [vmem:[%s15466_s21 + $0x58] ss:$20 sps:$4 sm:$0xff]  }
 0x15d   : > { %v1341_v30 = vadd.f32 %v1340_v29, %v1287_v28  ;;  %2269 = vmatpush2.bf16.msra.mxu1 %v14405_v31  ;;  %v16160_v33 = vpop.f32.mrf.mxu0  ;;  %2315 = vmatprep.subr.bf16.mxu0 %v14408_v36  ;;  %v14440_v28 = vld [vmem:[%s22832_s2 + $0x64] ss:$8 sps:$4 sm:$0xff]   ;;  %v14443_v31 = vld [vmem:[%s22832_s2 + $0x60] ss:$8 sps:$4 sm:$0xff]  }
 0x15e   : > { %23100 = vst [vmem:[#allocation3_spill] sm:$0xff] %v16160_v33  ;;  %v16162_v34 = vpop.f32.mrf.mxu1  ;;  %2270 = vmatprep.subr.bf16.mxu1 %v14407_v35  ;;  %v14441_v29 = vld [vmem:[%s22832_s2 + $0x164] ss:$8 sps:$4 sm:$0xff]   ;;  %v14444_v32 = vld [vmem:[%s22832_s2 + $0x160] ss:$8 sps:$4 sm:$0xff]  }
 0x15f   : > { %23101 = vst [vmem:[#allocation4_spill] sm:$0xff] %v16162_v34  ;;  %v1293_v37 = vpop.f32.mrf.mxu0  ;;  %v13215_v35 = vld [vmem:[%s15466_s21 + $0xf4] ss:$20 sps:$4 sm:$0xff]   ;;  %v13218_v36 = vld [vmem:[%s15466_s21 + $0xfc] ss:$20 sps:$4 sm:$0xff]  }
 0x160   : > { %v1346_v38 = vpop.f32.mrf.mxu1  ;;  %2316 = vmatpush2.bf16.msra.mxu0 %v14410_v41  ;;  %v14449_v41 = vld [vmem:[%s22832_s2 + $0x50] ss:$8 sps:$4 sm:$0xff]  }
 0x161   : > { %v1347_v39 = vadd.f32 %v1346_v38, %v1293_v37  ;;  %2271 = vmatpush2.bf16.msra.mxu1 %v14409_v40  ;;  %v1295_v42 = vpop.f32.mrf.mxu0  ;;  %2317 = vmatprep.subr.bf16.mxu0 %v14412_v45  ;;  %v14445_v37 = vld [vmem:[%s22832_s2 + $0x54] ss:$8 sps:$4 sm:$0xff]   ;;  %v14453_v45 = vld [vmem:[%s22832_s2 + $0x40] ss:$8 sps:$4 sm:$0xff]  }
 0x162   : > { %v1348_v43 = vpop.f32.mrf.mxu1  ;;  %2272 = vmatprep.subr.bf16.mxu1 %v14411_v44  ;;  %v14446_v38 = vld [vmem:[%s22832_s2 + $0x154] ss:$8 sps:$4 sm:$0xff]   ;;  %v14452_v44 = vld [vmem:[%s22832_s2 + $0x144] ss:$8 sps:$4 sm:$0xff]  }
 0x163   : > { %v1349_v46 = vadd.f32 %v1348_v43, %v1295_v42  ;;  %v1297_v47 = vpop.f32.mrf.mxu0  ;;  %v14448_v40 = vld [vmem:[%s15466_s21 + $0x88] ss:$20 sps:$4 sm:$0xff]  }
 0x164   : > { %v1350_v48 = vpop.f32.mrf.mxu1  ;;  %2318 = vmatpush2.bf16.msra.mxu0 %v14414_v51  ;;  %v14450_v42 = vld [vmem:[%s22832_s2 + $0x150] ss:$8 sps:$4 sm:$0xff]   ;;  %v14451_v43 = vld [vmem:[%s22832_s2 + $0x44] ss:$8 sps:$4 sm:$0xff]   ;;  %v1984_v51 = vlaneseq }
 0x165   : > { %v1351_v49 = vadd.f32 %v1350_v48, %v1297_v47  ;;  %2273 = vmatpush2.bf16.msra.mxu1 %v14413_v50  ;;  %v16188_v52 = vpop.f32.mrf.mxu0  ;;  %2319 = vmatprep.subr.bf16.mxu0 %v14415_v53  ;;  %v14455_v47 = vld [vmem:[%s22832_s2 + $0x34] ss:$8 sps:$4 sm:$0xff]   ;;  %v14458_v50 = vld [vmem:[%s22832_s2 + $0x130] ss:$8 sps:$4 sm:$0xff]   ;;  %v14459_v53 = vld [vmem:[%s22832_s2 + $0x24] ss:$8 sps:$4 sm:$0xff]  }
 0x166   : > { %23102 = vst [vmem:[#allocation5_spill] sm:$0xff] %v16188_v52  ;;  %2356 = vmatprep.subr.bf16.mxu1 %v14416_v54  ;;  %v14456_v48 = vld [vmem:[%s22832_s2 + $0x134] ss:$8 sps:$4 sm:$0xff]   ;;  %v14460_v54 = vld [vmem:[%s22832_s2 + $0x124] ss:$8 sps:$4 sm:$0xff]  }
 0x167   : > { %v1389_v55 = vpop.f32.mrf.mxu0 }
 0x168   : > { %2275 = vmatmul.mubr.bf16.vlgmr.msra.gmra.mxu1 %v14417_v56  ;;  %v16197_v57 = vadd.f32 %v1389_v55, %v1337_v20  ;;  %2320 = vmatpush2.bf16.msra.mxu0 %v14418_v58  ;;  %v14432_v20 = vld [vmem:[%s22831_s1 + $0x180] ss:$8 sps:$4 sm:$0xff]   ;;  %v16338_v58 = vshrl.u32 %v1984_v51, 7  ;;  %v14492_v51 = vld [vmem:[%s22832_s2 + $0x1a4] ss:$8 sps:$4 sm:$0xff]  }
 0x169   : > { %2357 = vmatpush1.bf16.msra.mxu1 %v14419_v59  ;;  %v1391_v60 = vpop.f32.mrf.mxu0  ;;  %2321 = vmatprep.subr.bf16.mxu0 %v14420_v61  ;;  %v14461_v55 = vld [vmem:[%s22832_s2 + $0x20] ss:$8 sps:$4 sm:$0xff]   ;;  %v14463_v59 = vld [vmem:[%s22832_s2 + $0x14] ss:$8 sps:$4 sm:$0xff]   ;;  %v14465_v61 = vld [vmem:[%s22832_s2 + $0x10] ss:$8 sps:$4 sm:$0xff]  }
 0x16a   : > { %2358 = vmatprep.subr.bf16.mxu1 %v14421_v62  ;;  %v16211_v63 = vadd.f32 %v1391_v60, %v1339_v27  ;;  %2284 = vmatprep.mubr.bf16.mxu1 %v14422_v0  ;;  %v14439_v27 = vld [vmem:[%s22832_s2 + $0x170] ss:$8 sps:$4 sm:$0xff]   ;;  %v14462_v56 = vld [vmem:[%s22832_s2 + $0x120] ss:$8 sps:$4 sm:$0xff]   ;;  %23104 = vst [vmem:[#allocation7_spill] sm:$0xff] %v16338_v58  ;;  %v16353_v0 = vsub.s32 0, %v16338_v58 }
 0x16b   : > { %v1393_v1 = vpop.f32.mrf.mxu0  ;;  %v14464_v60 = vld [vmem:[%s22832_s2 + $0x114] ss:$8 sps:$4 sm:$0xff]   ;;  %v14466_v62 = vld [vmem:[%s22832_s2 + $0x110] ss:$8 sps:$4 sm:$0xff]   ;;  %v16854_v58 = vld [vmem:[%s22831_s1 + $0x1c0] ss:$8 sps:$4 sm:$0xff]  }
 0x16c   : > { %v16214_v2 = vadd.f32 %v1393_v1, %v1341_v30  ;;  %2322 = vmatpush2.bf16.msra.mxu0 %v14423_v3  ;;  %v14442_v30 = vld [vmem:[%s15466_s21 + $0x84] ss:$20 sps:$4 sm:$0xff]   ;;  %23105 = vst [vmem:[#allocation8_spill] sm:$0xff] %v16353_v0  ;;  %23122 = vst [vmem:[#allocation25_spill] sm:$0xff] %v16854_v58 }
 0x16d   : > { %2359 = vmatpush1.bf16.msra.mxu1 %v14424_v4  ;;  %v16222_v5 = vpop.f32.mrf.mxu0  ;;  %2323 = vmatprep.subr.bf16.mxu0 %v14425_v7  ;;  %v14467_v1 = vld [vmem:[%s22832_s2 + $0x4] ss:$8 sps:$4 sm:$0xff]   ;;  %v14469_v4 = vld [vmem:[%s22832_s2] ss:$8 sps:$4 sm:$0xff]  }
 0x16e   : > { %23103 = vst [vmem:[#allocation6_spill] sm:$0xff] %v16222_v5  ;;  %2360 = vmatprep.subr.bf16.mxu1 %v14426_v8  ;;  %v14468_v3 = vld [vmem:[%s22832_s2 + $0x104] ss:$8 sps:$4 sm:$0xff]   ;;  %v14470_v7 = vld [vmem:[%s22832_s2 + $0x100] ss:$8 sps:$4 sm:$0xff]   ;;  %v16367_v8 = vpop.f32.mrf.mxu1 }
 0x16f   : > { %v1399_v9 = vpop.f32.mrf.mxu0  ;;  %23106 = vst [vmem:[#allocation9_spill] sm:$0xff] %v16367_v8  ;;  %v16883_v5 = vld [vmem:[%s22831_s1 + $0x230] ss:$8 sps:$4 sm:$0xff]  }
 0x170   : > { %2285 = vmatmul.mubr.bf16.gmra.mxu1 %v14427_v10  ;;  %v16231_v11 = vadd.f32 %v1399_v9, %v1347_v39  ;;  %2324 = vmatpush2.bf16.msra.mxu0 %v14428_v12  ;;  %v14447_v39 = vld [vmem:[%s15466_s21 + $0x80] ss:$20 sps:$4 sm:$0xff]   ;;  %23127 = vst [vmem:[#allocation30_spill] sm:$0xff] %v16883_v5 }
 0x171   : > { %2361 = vmatpush1.bf16.msra.mxu1 %v14429_v13  ;;  %v1401_v14 = vpop.f32.mrf.mxu0  ;;  %2325 = vmatprep.subr.bf16.mxu0 %v14430_v15  ;;  %v14471_v9 = vld [vmem:[%s22832_s2 + $0xf4] ss:$8 sps:$4 sm:$0xff]   ;;  %v14474_v15 = vld [vmem:[%s22832_s2 + $0x1f0] ss:$8 sps:$4 sm:$0xff]  }
 0x172   : > { %2362 = vmatprep.subr.bf16.mxu1 %v14431_v16  ;;  %v16245_v17 = vadd.f32 %v1401_v14, %v1349_v46  ;;  %2380 = vmatprep.mubr.bf16.mxu1 %v22843_v6  ;;  %v14454_v46 = vld [vmem:[%s22832_s2 + $0x140] ss:$8 sps:$4 sm:$0xff]   ;;  %v14472_v10 = vld [vmem:[%s22832_s2 + $0x1f4] ss:$8 sps:$4 sm:$0xff]   ;;  %v14473_v14 = vld [vmem:[%s22832_s2 + $0xf0] ss:$8 sps:$4 sm:$0xff]  }
 0x173   : > { %v1403_v18 = vpop.f32.mrf.mxu0 }
 0x174   : > { %v16248_v19 = vadd.f32 %v1403_v18, %v1351_v49  ;;  %2326 = vmatpush2.bf16.msra.mxu0 %v14432_v20  ;;  %v14457_v49 = vld [vmem:[%s22832_s2 + $0x30] ss:$8 sps:$4 sm:$0xff]   ;;  %v14475_v18 = vld [vmem:[%s22832_s2 + $0xe4] ss:$8 sps:$4 sm:$0xff]  }
 0x175   : > { %2363 = vmatpush1.bf16.msra.mxu1 %v14433_v21  ;;  %2490 = vmatprep.subr.bf16.mxu0 %v14434_v22 }
 0x176   : > { %2543 = vmatprep.subr.bf16.mxu1 %v14435_v23  ;;  %v14477_v23 = vld [vmem:[%s22832_s2 + $0xe0] ss:$8 sps:$4 sm:$0xff]  }
 0x177   : > { %2328 = vmatmul.mubr.bf16.vlgmr.msra.gmra.mxu0 %v14436_v24  ;;  %v14478_v24 = vld [vmem:[%s22832_s2 + $0x1e0] ss:$8 sps:$4 sm:$0xff]  }
 0x178   : > { %11681 = vmatmul.mubr.msk.bf16.vlgmr.msra.gmra.mxu1 %vm1242_vm0, %v14437_v25  ;;  %2491 = vmatpush1.bf16.msra.mxu0 %v14438_v26  ;;  %v14479_v26 = vld [vmem:[%s22832_s2 + $0xd4] ss:$8 sps:$4 sm:$0xff]  }
 0x179   : > { %2544 = vmatpush1.bf16.msra.mxu1 %v14439_v27  ;;  %2492 = vmatprep.subr.bf16.mxu0 %v14440_v28  ;;  %v14481_v28 = vld [vmem:[%s22832_s2 + $0xd0] ss:$8 sps:$4 sm:$0xff]  }
 0x17a   : > { %2545 = vmatprep.subr.bf16.mxu1 %v14441_v29  ;;  %2337 = vmatprep.mubr.bf16.mxu0 %v14442_v30  ;;  %v14482_v29 = vld [vmem:[%s22832_s2 + $0x1d0] ss:$8 sps:$4 sm:$0xff]  }
 0x17b   : > { %2390 = vmatprep.mubr.bf16.mxu1 %v22843_v6 }
 0x17c   : > { %2493 = vmatpush1.bf16.msra.mxu0 %v14443_v31  ;;  %v14483_v31 = vld [vmem:[%s22832_s2 + $0xc4] ss:$8 sps:$4 sm:$0xff]  }
 0x17d   : > { %2546 = vmatpush1.bf16.msra.mxu1 %v14444_v32  ;;  %2494 = vmatprep.subr.bf16.mxu0 %v14445_v37 }
 0x17e   : > { %2547 = vmatprep.subr.bf16.mxu1 %v14446_v38  ;;  %v14485_v38 = vld [vmem:[%s22832_s2 + $0xc0] ss:$8 sps:$4 sm:$0xff]  }
 0x17f   : > { %2338 = vmatmul.mubr.bf16.gmra.mxu0 %v14447_v39  ;;  %v14486_v39 = vld [vmem:[%s22832_s2 + $0x1c0] ss:$8 sps:$4 sm:$0xff]  }
 0x180   : > { %11682 = vmatmul.mubr.msk.bf16.gmra.mxu1 %vm1242_vm0, %v14448_v40  ;;  %2495 = vmatpush1.bf16.msra.mxu0 %v14449_v41  ;;  %v14487_v41 = vld [vmem:[%s22832_s2 + $0xb4] ss:$8 sps:$4 sm:$0xff]  }
 0x181   : > { %2548 = vmatpush1.bf16.msra.mxu1 %v14450_v42  ;;  %2496 = vmatprep.subr.bf16.mxu0 %v14451_v43 }
 0x182   : > { %2549 = vmatprep.subr.bf16.mxu1 %v14452_v44  ;;  %2522 = vmatprep.mubr.bf16.mxu0 %v13215_v35 }
 0x183   : > { %2575 = vmatprep.mubr.bf16.mxu1 %v13218_v36  ;;  %v806_v36 = vld [vmem:[%s22833_s3] sm:$0x3] }
 0x184   : > { %2497 = vmatpush1.bf16.msra.mxu0 %v14453_v45  ;;  %v16443_v45 = vrot.slane %v806_v36, %v16353_v0  ;;  %v13219_v36 = vld [vmem:[%s15466_s21 + $0x11c] ss:$20 sps:$4 sm:$0xff]  }
 0x185   : > { %2550 = vmatpush1.bf16.msra.mxu1 %v14454_v46  ;;  %2498 = vmatprep.subr.bf16.mxu0 %v14455_v47  ;;  %v14489_v46 = vld [vmem:[%s22832_s2 + $0xb0] ss:$8 sps:$4 sm:$0xff]  }
 0x186   : > { %2551 = vmatprep.subr.bf16.mxu1 %v14456_v48  ;;  %v14490_v47 = vld [vmem:[%s22832_s2 + $0x1b0] ss:$8 sps:$4 sm:$0xff]  }
 0x188   : > { %2499 = vmatpush1.bf16.msra.mxu0 %v14457_v49 }
 0x189   : > { %2552 = vmatpush1.bf16.msra.mxu1 %v14458_v50  ;;  %2500 = vmatprep.subr.bf16.mxu0 %v14459_v53  ;;  %v14491_v50 = vld [vmem:[%s22832_s2 + $0xa4] ss:$8 sps:$4 sm:$0xff]  }
 0x18a   : > { %2553 = vmatprep.subr.bf16.mxu1 %v14460_v54 }
 0x18c   : > { %2501 = vmatpush1.bf16.msra.mxu0 %v14461_v55 }
 0x18d   : > { %2554 = vmatpush1.bf16.msra.mxu1 %v14462_v56  ;;  %2502 = vmatprep.subr.bf16.mxu0 %v14463_v59 }
 0x18e   : > { %2555 = vmatprep.subr.bf16.mxu1 %v14464_v60 }
 0x190   : > { %2503 = vmatpush1.bf16.msra.mxu0 %v14465_v61 }
 0x191   : > { %2556 = vmatpush1.bf16.msra.mxu1 %v14466_v62  ;;  %2504 = vmatprep.subr.bf16.mxu0 %v14467_v1  ;;  %v14493_v62 = vld [vmem:[%s22832_s2 + $0xa0] ss:$8 sps:$4 sm:$0xff]  }
 0x192   : > { %2557 = vmatprep.subr.bf16.mxu1 %v14468_v3  ;;  %v14494_v1 = vld [vmem:[%s22832_s2 + $0x1a0] ss:$8 sps:$4 sm:$0xff]  }
 0x194   : > { %2505 = vmatpush1.bf16.msra.mxu0 %v14469_v4 }
 0x195   : > { %2558 = vmatpush1.bf16.msra.mxu1 %v14470_v7  ;;  %2506 = vmatprep.subr.bf16.mxu0 %v14471_v9  ;;  %v14495_v7 = vld [vmem:[%s22832_s2 + $0x94] ss:$8 sps:$4 sm:$0xff]  }
 0x196   : > { %2559 = vmatprep.subr.bf16.mxu1 %v14472_v10  ;;  %v14496_v9 = vld [vmem:[%s22832_s2 + $0x194] ss:$8 sps:$4 sm:$0xff]  }
 0x198   : > { %v1858_v12 = vpop.f32.mrf.mxu1  ;;  %2507 = vmatpush2.bf16.msra.mxu0 %v14473_v14 }
 0x199   : > { %v1859_v13 = vadd.f32 %v1858_v12, %v16197_v57  ;;  %2560 = vmatpush2.bf16.msra.mxu1 %v14474_v15  ;;  %2508 = vmatprep.subr.bf16.mxu0 %v14475_v18  ;;  %v14476_v57 = vld [vmem:[%s22832_s2 + $0x1e4] ss:$8 sps:$4 sm:$0xff]   ;;  %v14497_v18 = vld [vmem:[%s22832_s2 + $0x90] ss:$8 sps:$4 sm:$0xff]  }
 0x19a   : > { %v1860_v16 = vpop.f32.mrf.mxu1  ;;  %2561 = vmatprep.subr.bf16.mxu1 %v14476_v57  ;;  %v14498_v57 = vld [vmem:[%s22832_s2 + $0x190] ss:$8 sps:$4 sm:$0xff]  }
 0x19b   : > { %v1861_v20 = vadd.f32 %v1860_v16, %v16211_v63  ;;  %v14480_v63 = vld [vmem:[%s22832_s2 + $0x1d4] ss:$8 sps:$4 sm:$0xff]  }
 0x19c   : > { %v1862_v21 = vpop.f32.mrf.mxu1  ;;  %2509 = vmatpush2.bf16.msra.mxu0 %v14477_v23  ;;  %v14500_v23 = vld [vmem:[%s22832_s2 + $0x184] ss:$8 sps:$4 sm:$0xff]  }
 0x19d   : > { %v1863_v22 = vadd.f32 %v1862_v21, %v16214_v2  ;;  %2562 = vmatpush2.bf16.msra.mxu1 %v14478_v24  ;;  %2510 = vmatprep.subr.bf16.mxu0 %v14479_v26  ;;  %v13213_v24 = vld [vmem:[%s15466_s21 + $0xf0] ss:$20 sps:$4 sm:$0xff]   ;;  %v13216_v26 = vld [vmem:[%s15466_s21 + $0xf8] ss:$20 sps:$4 sm:$0xff]  }
 0x19e   : > { %v16396_v25 = vpop.f32.mrf.mxu1  ;;  %2563 = vmatprep.subr.bf16.mxu1 %v14480_v63 }
 0x19f   : > { %23107 = vst [vmem:[#allocation10_spill] sm:$0xff] %v16396_v25 }
 0x1a0   : > { %v1868_v2 = vpop.f32.mrf.mxu1  ;;  %2511 = vmatpush2.bf16.msra.mxu0 %v14481_v28 }
 0x1a1   : > { %v1869_v27 = vadd.f32 %v1868_v2, %v16231_v11  ;;  %2564 = vmatpush2.bf16.msra.mxu1 %v14482_v29  ;;  %2512 = vmatprep.subr.bf16.mxu0 %v14483_v31  ;;  %v14484_v11 = vld [vmem:[%s22832_s2 + $0x1c4] ss:$8 sps:$4 sm:$0xff]  }
 0x1a2   : > { %v1870_v30 = vpop.f32.mrf.mxu1  ;;  %2565 = vmatprep.subr.bf16.mxu1 %v14484_v11  ;;  %v14501_v11 = vld [vmem:[%s22832_s2 + $0x80] ss:$8 sps:$4 sm:$0xff]  }
 0x1a3   : > { %v16418_v32 = vadd.f32 %v1870_v30, %v16245_v17  ;;  %v16432_v17 = vpop.f32.mrf.mxu0 }
 0x1a4   : > { %v1872_v35 = vpop.f32.mrf.mxu1  ;;  %2513 = vmatpush2.bf16.msra.mxu0 %v14485_v38  ;;  %23108 = vst [vmem:[#allocation11_spill] sm:$0xff] %v16432_v17  ;;  %v13221_v38 = vld [vmem:[%s15466_s21 + $0x124] ss:$20 sps:$4 sm:$0xff]  }
 0x1a5   : > { %v16424_v37 = vadd.f32 %v1872_v35, %v16248_v19  ;;  %2566 = vmatpush2.bf16.msra.mxu1 %v14486_v39  ;;  %2514 = vmatprep.subr.bf16.mxu0 %v14487_v41  ;;  %v14488_v19 = vld [vmem:[%s22832_s2 + $0x1b4] ss:$8 sps:$4 sm:$0xff]   ;;  %v14502_v35 = vld [vmem:[%s22832_s2 + $0x180] ss:$8 sps:$4 sm:$0xff]  }
 0x1a6   : > { %v16434_v40 = vpop.f32.mrf.mxu1  ;;  %2567 = vmatprep.subr.bf16.mxu1 %v14488_v19  ;;  %v14504_v41 = vld [vmem:[%s22831_s1 + $0x74] ss:$8 sps:$4 sm:$0xff]  }
 0x1a7   : > { %23109 = vst [vmem:[#allocation12_spill] sm:$0xff] %v16434_v40  ;;  %v1911_v42 = vpop.f32.mrf.mxu0 }
 0x1a8   : > { %v1964_v43 = vpop.f32.mrf.mxu1  ;;  %v1912_v44 = vadd.f32 %v1911_v42, %v1859_v13  ;;  %2515 = vmatpush2.bf16.msra.mxu0 %v14489_v46 }
 0x1a9   : > { %2568 = vmatpush2.bf16.msra.mxu1 %v14490_v47  ;;  %v1913_v48 = vpop.f32.mrf.mxu0  ;;  %2516 = vmatprep.subr.bf16.mxu0 %v14491_v50  ;;  %v14507_v47 = vld [vmem:[%s22832_s2 + $0x224] ss:$8 sps:$4 sm:$0xff]  }
 0x1aa   : > { %v1966_v49 = vpop.f32.mrf.mxu1  ;;  %2569 = vmatprep.subr.bf16.mxu1 %v14492_v51  ;;  %v1965_v53 = vadd.f32 %v1964_v43, %v1912_v44  ;;  %v1914_v54 = vadd.f32 %v1913_v48, %v1861_v20  ;;  %v14505_v43 = vld [vmem:[%s22832_s2 + $0x230] ss:$8 sps:$4 sm:$0xff]   ;;  %v14508_v48 = vld [vmem:[%s22831_s1 + $0x64] ss:$8 sps:$4 sm:$0xff]  }
 0x1ab   : > { %v1915_v55 = vpop.f32.mrf.mxu0  ;;  %v14506_v44 = vld [vmem:[%s22831_s1 + $0x70] ss:$8 sps:$4 sm:$0xff]  }
 0x1ac   : > { %v1968_v56 = vpop.f32.mrf.mxu1  ;;  %v1994_v59 = vadd.f32 %v16443_v45, %v1965_v53  ;;  %v16458_v60 = vadd.f32 %v1966_v49, %v1914_v54  ;;  %v1916_v61 = vadd.f32 %v1915_v55, %v1863_v22  ;;  %2517 = vmatpush2.bf16.msra.mxu0 %v14493_v62  ;;  %v14499_v22 = vld [vmem:[%s22832_s2 + $0x84] ss:$8 sps:$4 sm:$0xff]   ;;  %v14509_v54 = vld [vmem:[%s22832_s2 + $0x220] ss:$8 sps:$4 sm:$0xff]   ;;  %v14514_v62 = vld [vmem:[%s22831_s1 + $0x50] ss:$8 sps:$4 sm:$0xff]  }
 0x1ad   : > { %2570 = vmatpush2.bf16.msra.mxu1 %v14494_v1  ;;  %v16466_v3 = vpop.f32.mrf.mxu0  ;;  %2518 = vmatprep.subr.bf16.mxu0 %v14495_v7  ;;  %v13223_v49 = vld [vmem:[%s15466_s21 + $0x118] ss:$20 sps:$4 sm:$0xff]   ;;  %v13224_v50 = vld [vmem:[%s15466_s21 + $0x120] ss:$20 sps:$4 sm:$0xff]  }
 0x1ae   : > { %23110 = vst [vmem:[#allocation13_spill] sm:$0xff] %v16458_v60  ;;  %23111 = vst [vmem:[#allocation14_spill] sm:$0xff] %v16466_v3  ;;  %v16468_v4 = vpop.f32.mrf.mxu1  ;;  %2571 = vmatprep.subr.bf16.mxu1 %v14496_v9  ;;  %v1969_v10 = vadd.f32 %v1968_v56, %v1916_v61  ;;  %v2002_v14 = vmax.f32 %v1994_v59, 0.0  ;;  %v14510_v55 = vld [vmem:[%s22831_s1 + $0x60] ss:$8 sps:$4 sm:$0xff]  }
 0x1af   : > { %23112 = vst [vmem:[#allocation15_spill] sm:$0xff] %v16468_v4  ;;  %v1921_v12 = vpop.f32.mrf.mxu0  ;;  %v14511_v56 = vld [vmem:[%s22832_s2 + $0x214] ss:$8 sps:$4 sm:$0xff]   ;;  %v14513_v61 = vld [vmem:[%s22832_s2 + $0x210] ss:$8 sps:$4 sm:$0xff]  }
 0x1b0   : > { %v1974_v13 = vpop.f32.mrf.mxu1  ;;  %v1996_v15 = vadd.f32 %v16443_v45, %v1969_v10  ;;  %v1922_v16 = vadd.f32 %v1921_v12, %v1869_v27  ;;  %2519 = vmatpush2.bf16.msra.mxu0 %v14497_v18  ;;  %v14512_v59 = vld [vmem:[%s22831_s1 + $0x54] ss:$8 sps:$4 sm:$0xff]   ;;  %v14515_v1 = vld [vmem:[%s22832_s2 + $0x204] ss:$8 sps:$4 sm:$0xff]   ;;  %v14518_v12 = vld [vmem:[%s22832_s2 + $0x200] ss:$8 sps:$4 sm:$0xff]  }
 0x1b1   : > { %2572 = vmatpush2.bf16.msra.mxu1 %v14498_v57  ;;  %v1923_v20 = vpop.f32.mrf.mxu0  ;;  %2520 = vmatprep.subr.bf16.mxu0 %v14499_v22  ;;  %v14516_v7 = vld [vmem:[%s22831_s1 + $0x44] ss:$8 sps:$4 sm:$0xff]   ;;  %v16578_v18 = vld [vmem:[%s22831_s1 + $0x170] ss:$8 sps:$4 sm:$0xff]   ;;  %v16598_v22 = vld [vmem:[%s22831_s1 + $0x20] ss:$8 sps:$4 sm:$0xff]  }
 0x1b2   : > { %v1976_v21 = vpop.f32.mrf.mxu1  ;;  %2573 = vmatprep.subr.bf16.mxu1 %v14500_v23  ;;  %v2004_v63 = vmax.f32 %v1996_v15, 0.0  ;;  %v1924_v2 = vadd.f32 %v1923_v20, %v16418_v32  ;;  %v1975_v27 = vadd.f32 %v1974_v13, %v1922_v16  ;;  %v13225_v9 = vld [vmem:[%s15466_s21 + $0x100] ss:$20 sps:$4 sm:$0xff]   ;;  %v14517_v10 = vld [vmem:[%s15466_s21 + $0xa4] ss:$20 sps:$4 sm:$0xff]  }
 0x1b3   : > { %v1925_v28 = vpop.f32.mrf.mxu0  ;;  %v14519_v13 = vld [vmem:[%s22831_s1 + $0x40] ss:$8 sps:$4 sm:$0xff]   ;;  %v14521_v15 = vld [vmem:[%s22831_s1 + $0x174] ss:$8 sps:$4 sm:$0xff]   ;;  %v16572_v16 = vld [vmem:[%s22831_s1 + $0x30] ss:$8 sps:$4 sm:$0xff]  }
 0x1b4   : > { %v1978_v29 = vpop.f32.mrf.mxu1  ;;  %v16492_v30 = vpack.c.bf16 %v2004_v63, %v2002_v14  ;;  %v1926_v31 = vadd.f32 %v1925_v28, %v16424_v37  ;;  %2521 = vmatpush2.bf16.msra.mxu0 %v14501_v11  ;;  %v1998_v32 = vadd.f32 %v16443_v45, %v1975_v27  ;;  %v16504_v39 = vadd.f32 %v1976_v21, %v1924_v2  ;;  %v14503_v37 = vld [vmem:[%s22832_s2 + $0x234] ss:$8 sps:$4 sm:$0xff]   ;;  %v16584_v57 = vld [vmem:[%s22831_s1 + $0x24] ss:$8 sps:$4 sm:$0xff]   ;;  %v16604_v23 = vld [vmem:[%s22831_s1 + $0x160] ss:$8 sps:$4 sm:$0xff]  }
 0x1b5   : > { %2574 = vmatpush2.bf16.msra.mxu1 %v14502_v35  ;;  %2604 = vmatprep.subr.bf16.mxu0 %v14503_v37  ;;  %v14520_v14 = vld [vmem:[%s22831_s1 + $0x34] ss:$8 sps:$4 sm:$0xff]   ;;  %v16590_v20 = vld [vmem:[%s22831_s1 + $0x164] ss:$8 sps:$4 sm:$0xff]   ;;  %v16623_v63 = vld [vmem:[%s22831_s1 + $0x10] ss:$8 sps:$4 sm:$0xff]  }
 0x1b6   : > { %23113 = vst [vmem:[#allocation16_spill] sm:$0xff] %v16492_v30  ;;  %23114 = vst [vmem:[#allocation17_spill] sm:$0xff] %v16504_v39  ;;  %2649 = vmatprep.subr.bf16.mxu1 %v14504_v41  ;;  %v1979_v19 = vadd.f32 %v1978_v29, %v1926_v31  ;;  %v2006_v46 = vmax.f32 %v1998_v32, 0.0  ;;  %v13226_v21 = vld [vmem:[%s15466_s21 + $0x128] ss:$20 sps:$4 sm:$0xff]  }
 0x1b7   : > { %2523 = vmatmul.mubr.bf16.vlgmr.msra.gmra.mxu0 %v13213_v24  ;;  %v16610_v24 = vld [vmem:[%s22831_s1 + $0x14] ss:$8 sps:$4 sm:$0xff]   ;;  %v16629_v2 = vld [vmem:[%s22831_s1 + $0x150] ss:$8 sps:$4 sm:$0xff]   ;;  %v16635_v27 = vld [vmem:[%s22831_s1 + $0x4] ss:$8 sps:$4 sm:$0xff]  }
 0x1b8   : > { %2576 = vmatmul.mubr.bf16.vlgmr.msra.gmra.mxu1 %v13216_v26  ;;  %v2000_v42 = vadd.f32 %v16443_v45, %v1979_v19  ;;  %2605 = vmatpush1.bf16.msra.mxu0 %v14505_v43  ;;  %v16616_v26 = vld [vmem:[%s22831_s1 + $0x154] ss:$8 sps:$4 sm:$0xff]   ;;  %v16641_v28 = vld [vmem:[%s22831_s1 + $0x144] ss:$8 sps:$4 sm:$0xff]   ;;  %v16648_v31 = vld [vmem:[%s22831_s1] ss:$8 sps:$4 sm:$0xff]  }
 0x1b9   : > { %2650 = vmatpush1.bf16.msra.mxu1 %v14506_v44  ;;  %2606 = vmatprep.subr.bf16.mxu0 %v14507_v47  ;;  %v14534_v29 = vld [vmem:[%s15466_s21 + $0xac] ss:$20 sps:$4 sm:$0xff]  }
 0x1ba   : > { %2651 = vmatprep.subr.bf16.mxu1 %v14508_v48  ;;  %v2008_v51 = vmax.f32 %v2000_v42, 0.0  ;;  %2532 = vmatprep.mubr.bf16.mxu0 %v13219_v36  ;;  %v16654_v11 = vld [vmem:[%s22831_s1 + $0x140] ss:$8 sps:$4 sm:$0xff]   ;;  %v16660_v35 = vld [vmem:[%s22831_s1 + $0xf4] ss:$8 sps:$4 sm:$0xff]  }
 0x1bb   : > { %2585 = vmatprep.mubr.bf16.mxu1 %v13221_v38  ;;  %v16666_v36 = vld [vmem:[%s22831_s1 + $0x134] ss:$8 sps:$4 sm:$0xff]   ;;  %v16672_v38 = vld [vmem:[%s22831_s1 + $0xf0] ss:$8 sps:$4 sm:$0xff]   ;;  %v16684_v37 = vld [vmem:[%s22831_s1 + $0xe4] ss:$8 sps:$4 sm:$0xff]  }
 0x1bc   : > { %v16527_v53 = vpack.c.bf16 %v2008_v51, %v2006_v46  ;;  %2607 = vmatpush1.bf16.msra.mxu0 %v14509_v54  ;;  %v16678_v32 = vld [vmem:[%s22831_s1 + $0x130] ss:$8 sps:$4 sm:$0xff]   ;;  %v16690_v41 = vld [vmem:[%s22831_s1 + $0x124] ss:$8 sps:$4 sm:$0xff]   ;;  %v16696_v19 = vld [vmem:[%s22831_s1 + $0xe0] ss:$8 sps:$4 sm:$0xff]   ;;  %v16753_v54 = vpop.f32.mrf.mxu0 }
 0x1bd   : > { %2652 = vmatpush1.bf16.msra.mxu1 %v14510_v55  ;;  %2608 = vmatprep.subr.bf16.mxu0 %v14511_v56  ;;  %v16702_v42 = vld [vmem:[%s22831_s1 + $0x120] ss:$8 sps:$4 sm:$0xff]   ;;  %v16708_v43 = vld [vmem:[%s22831_s1 + $0xd4] ss:$8 sps:$4 sm:$0xff]   ;;  %v16720_v46 = vld [vmem:[%s22831_s1 + $0xd0] ss:$8 sps:$4 sm:$0xff]   ;;  %v16755_v55 = vpop.f32.mrf.mxu1 }
 0x1be   : > { %23115 = vst [vmem:[#allocation18_spill] sm:$0xff] %v16527_v53  ;;  %2653 = vmatprep.subr.bf16.mxu1 %v14512_v59  ;;  %v16714_v44 = vld [vmem:[%s22831_s1 + $0x114] ss:$8 sps:$4 sm:$0xff]   ;;  %v16726_v47 = vld [vmem:[%s22831_s1 + $0x110] ss:$8 sps:$4 sm:$0xff]   ;;  %23116 = vst [vmem:[#allocation19_spill] sm:$0xff] %v16753_v54 }
 0x1bf   : > { %2533 = vmatmul.mubr.bf16.gmra.mxu0 %v13223_v49  ;;  %v16732_v48 = vld [vmem:[%s22831_s1 + $0xc4] ss:$8 sps:$4 sm:$0xff]   ;;  %v16750_v51 = vld [vmem:[%s22831_s1 + $0x100] ss:$8 sps:$4 sm:$0xff]   ;;  %23117 = vst [vmem:[#allocation20_spill] sm:$0xff] %v16755_v55 }
 0x1c0   : > { %2586 = vmatmul.mubr.bf16.gmra.mxu1 %v13224_v50  ;;  %2609 = vmatpush1.bf16.msra.mxu0 %v14513_v61  ;;  %v16738_v49 = vld [vmem:[%s22831_s1 + $0x104] ss:$8 sps:$4 sm:$0xff]   ;;  %v16744_v50 = vld [vmem:[%s22831_s1 + $0xc0] ss:$8 sps:$4 sm:$0xff]   ;;  %v16760_v56 = vld [vmem:[%s22831_s1 + $0xb4] ss:$8 sps:$4 sm:$0xff]  }
 0x1c1   : > { %2654 = vmatpush1.bf16.msra.mxu1 %v14514_v62  ;;  %2610 = vmatprep.subr.bf16.mxu0 %v14515_v1  ;;  %v16766_v59 = vld [vmem:[%s22831_s1 + $0x1f4] ss:$8 sps:$4 sm:$0xff]   ;;  %v16824_v39 = vld [vmem:[%s22831_s1 + $0x90] ss:$8 sps:$4 sm:$0xff]   ;;  %v16848_v4 = vld [vmem:[%s22831_s1 + $0x80] ss:$8 sps:$4 sm:$0xff]  }
 0x1c2   : > { %2655 = vmatprep.subr.bf16.mxu1 %v14516_v7  ;;  %2628 = vmatprep.mubr.bf16.mxu0 %v22843_v6  ;;  %v16772_v7 = vld [vmem:[%s22831_s1 + $0xb0] ss:$8 sps:$4 sm:$0xff]   ;;  %23121 = vst [vmem:[#allocation24_spill] sm:$0xff] %v16848_v4 }
 0x1c3   : > { %2681 = vmatprep.mubr.bf16.mxu1 %v14517_v10  ;;  %v16830_v55 = vld [vmem:[%s22831_s1 + $0x1d0] ss:$8 sps:$4 sm:$0xff]  }
 0x1c4   : > { %2611 = vmatpush1.bf16.msra.mxu0 %v14518_v12 }
 0x1c5   : > { %2656 = vmatpush1.bf16.msra.mxu1 %v14519_v13  ;;  %2702 = vmatprep.subr.bf16.mxu0 %v14521_v15  ;;  %v16784_v13 = vld [vmem:[%s22831_s1 + $0xa4] ss:$8 sps:$4 sm:$0xff]  }
 0x1c6   : > { %2657 = vmatprep.subr.bf16.mxu1 %v14520_v14  ;;  %v16790_v14 = vld [vmem:[%s22831_s1 + $0x1e4] ss:$8 sps:$4 sm:$0xff]  }
 0x1c7   : > { %11705 = vmatmul.mubr.msk.bf16.vlgmr.msra.gmra.mxu0 %vm1242_vm0, %v13225_v9  ;;  %v16778_v9 = vld [vmem:[%s22831_s1 + $0x1f0] ss:$8 sps:$4 sm:$0xff]  }
 0x1c8   : > { %2703 = vmatpush1.bf16.msra.mxu0 %v16578_v18  ;;  %2638 = vmatprep.mubr.bf16.mxu0 %v22843_v6  ;;  %v16802_v6 = vld [vmem:[%s22831_s1 + $0x1e0] ss:$8 sps:$4 sm:$0xff]  }
 0x1c9   : > { %2658 = vmatpush1.bf16.msra.mxu1 %v16572_v16  ;;  %2704 = vmatprep.subr.bf16.mxu0 %v16590_v20 }
 0x1ca   : > { %2659 = vmatprep.subr.bf16.mxu1 %v16584_v57 }
 0x1cc   : > { %2705 = vmatpush1.bf16.msra.mxu0 %v16604_v23 }
 0x1cd   : > { %2660 = vmatpush1.bf16.msra.mxu1 %v16598_v22  ;;  %2706 = vmatprep.subr.bf16.mxu0 %v16616_v26 }
 0x1ce   : > { %2661 = vmatprep.subr.bf16.mxu1 %v16610_v24 }
 0x1cf   : > { %11706 = vmatmul.mubr.msk.bf16.gmra.mxu0 %vm1242_vm0, %v13226_v21 }
 0x1d0   : > { %2707 = vmatpush1.bf16.msra.mxu0 %v16629_v2  ;;  %2734 = vmatprep.mubr.bf16.mxu0 %v14534_v29 }
 0x1d1   : > { %2662 = vmatpush1.bf16.msra.mxu1 %v16623_v63  ;;  %2708 = vmatprep.subr.bf16.mxu0 %v16641_v28 }
 0x1d2   : > { %2663 = vmatprep.subr.bf16.mxu1 %v16635_v27 }
 0x1d4   : > { %2709 = vmatpush1.bf16.msra.mxu0 %v16654_v11 }
 0x1d5   : > { %2664 = vmatpush1.bf16.msra.mxu1 %v16648_v31  ;;  %2710 = vmatprep.subr.bf16.mxu0 %v16666_v36 }
 0x1d6   : > { %2665 = vmatprep.subr.bf16.mxu1 %v16660_v35 }
 0x1d8   : > { %2711 = vmatpush1.bf16.msra.mxu0 %v16678_v32 }
 0x1d9   : > { %2666 = vmatpush2.bf16.msra.mxu1 %v16672_v38  ;;  %2712 = vmatprep.subr.bf16.mxu0 %v16690_v41 }
 0x1da   : > { %2667 = vmatprep.subr.bf16.mxu1 %v16684_v37 }
 0x1dc   : > { %2713 = vmatpush1.bf16.msra.mxu0 %v16702_v42 }
 0x1dd   : > { %2668 = vmatpush2.bf16.msra.mxu1 %v16696_v19  ;;  %2714 = vmatprep.subr.bf16.mxu0 %v16714_v44 }
 0x1de   : > { %2669 = vmatprep.subr.bf16.mxu1 %v16708_v43 }
 0x1e0   : > { %2715 = vmatpush1.bf16.msra.mxu0 %v16726_v47 }
 0x1e1   : > { %2670 = vmatpush2.bf16.msra.mxu1 %v16720_v46  ;;  %2716 = vmatprep.subr.bf16.mxu0 %v16738_v49 }
 0x1e2   : > { %2671 = vmatprep.subr.bf16.mxu1 %v16732_v48 }
 0x1e4   : > { %2717 = vmatpush1.bf16.msra.mxu0 %v16750_v51 }
 0x1e5   : > { %2672 = vmatpush2.bf16.msra.mxu1 %v16744_v50  ;;  %2718 = vmatprep.subr.bf16.mxu0 %v16766_v59 }
 0x1e6   : > { %2673 = vmatprep.subr.bf16.mxu1 %v16760_v56 }
 0x1e7   : > { %v2117_v61 = vpop.f32.mrf.mxu0 }
 0x1e8   : > { %v2170_v62 = vpop.f32.mrf.mxu1  ;;  %2719 = vmatpush2.bf16.msra.mxu0 %v16778_v9 }
 0x1e9   : > { %v2171_v1 = vadd.f32 %v2170_v62, %v2117_v61  ;;  %2674 = vmatpush2.bf16.msra.mxu1 %v16772_v7  ;;  %v2119_v10 = vpop.f32.mrf.mxu0  ;;  %2720 = vmatprep.subr.bf16.mxu0 %v16790_v14  ;;  %v16796_v62 = vld [vmem:[%s22831_s1 + $0xa0] ss:$8 sps:$4 sm:$0xff]  }
 0x1ea   : > { %v2172_v12 = vpop.f32.mrf.mxu1  ;;  %2675 = vmatprep.subr.bf16.mxu1 %v16784_v13 }
 0x1eb   : > { %v2173_v15 = vadd.f32 %v2172_v12, %v2119_v10  ;;  %v2121_v21 = vpop.f32.mrf.mxu0  ;;  %v16812_v12 = vld [vmem:[%s22831_s1 + $0x94] ss:$8 sps:$4 sm:$0xff]  }
 0x1ec   : > { %v2174_v29 = vpop.f32.mrf.mxu1  ;;  %2721 = vmatpush2.bf16.msra.mxu0 %v16802_v6 }
 0x1ed   : > { %v2175_v61 = vadd.f32 %v2174_v29, %v2121_v21  ;;  %2676 = vmatpush2.bf16.msra.mxu1 %v16796_v62  ;;  %v16805_v0 = vpop.f32.mrf.mxu0  ;;  %v16818_v21 = vld [vmem:[%s22831_s1 + $0x1d4] ss:$8 sps:$4 sm:$0xff]  }
 0x1ee   : > { %23118 = vst [vmem:[#allocation21_spill] sm:$0xff] %v16805_v0  ;;  %v16807_v10 = vpop.f32.mrf.mxu1  ;;  %2677 = vmatprep.subr.bf16.mxu1 %v16812_v12  ;;  %2722 = vmatprep.subr.bf16.mxu0 %v16818_v21  ;;  %v14576_v0 = vld [vmem:[%s15466_s21 + $0xcc] ss:$20 sps:$4 sm:$0xff]  }
 0x1ef   : > { %23119 = vst [vmem:[#allocation22_spill] sm:$0xff] %v16807_v10  ;;  %v2127_v29 = vpop.f32.mrf.mxu0 }
 0x1f0   : > { %v2180_v53 = vpop.f32.mrf.mxu1  ;;  %2723 = vmatpush2.bf16.msra.mxu0 %v16830_v55 }
 0x1f1   : > { %v2181_v30 = vadd.f32 %v2180_v53, %v2127_v29  ;;  %2678 = vmatpush2.bf16.msra.mxu1 %v16824_v39  ;;  %v2129_v54 = vpop.f32.mrf.mxu0  ;;  %v16836_v53 = vld [vmem:[%s22831_s1 + $0x84] ss:$8 sps:$4 sm:$0xff]  }
 0x1f2   : > { %v2182_v40 = vpop.f32.mrf.mxu1  ;;  %2679 = vmatprep.subr.bf16.mxu1 %v16836_v53  ;;  %v16842_v29 = vld [vmem:[%s22831_s1 + $0x1c4] ss:$8 sps:$4 sm:$0xff]  }
 0x1f3   : > { %23120 = vst [vmem:[#allocation23_spill] sm:$0xff] %v16842_v29  ;;  %2724 = vmatprep.subr.bf16.mxu0 %v16842_v29  ;;  %v2183_v17 = vadd.f32 %v2182_v40, %v2129_v54  ;;  %v2131_v8 = vpop.f32.mrf.mxu0  ;;  %v14571_v54 = vld [vmem:[%s15466_s21 + $0xa0] ss:$20 sps:$4 sm:$0xff]  }
 0x1f4   : > { %v2184_v52 = vpop.f32.mrf.mxu1  ;;  %2725 = vmatpush2.bf16.msra.mxu0 %v16854_v58 }
 0x1f5   : > { %v2185_v60 = vadd.f32 %v2184_v52, %v2131_v8  ;;  %2680 = vmatpush2.bf16.msra.mxu1 %v16848_v4  ;;  %v16857_v3 = vpop.f32.mrf.mxu0  ;;  %v16862_v52 = vld [vmem:[%s22831_s1 + $0x1b4] ss:$8 sps:$4 sm:$0xff]   ;;  %v17334_v4 = vld [vmem:[%s22832_s2 + $0xa0] ss:$8 sps:$4 sm:$0xff]  }
 0x1f6   : > { %23123 = vst [vmem:[#allocation26_spill] sm:$0xff] %v16857_v3  ;;  %23124 = vst [vmem:[#allocation27_spill] sm:$0xff] %v16862_v52  ;;  %2726 = vmatprep.subr.bf16.mxu0 %v16862_v52  ;;  %v16868_v8 = vld [vmem:[%s22831_s1 + $0x234] ss:$8 sps:$4 sm:$0xff]   ;;  %v16877_v3 = vld [vmem:[%s22831_s1 + $0x1b0] ss:$8 sps:$4 sm:$0xff]  }
 0x1f7   : > { %23125 = vst [vmem:[#allocation28_spill] sm:$0xff] %v16868_v8  ;;  %2763 = vmatprep.subr.bf16.mxu1 %v16868_v8  ;;  %v2223_v40 = vpop.f32.mrf.mxu0  ;;  %23126 = vst [vmem:[#allocation29_spill] sm:$0xff] %v16877_v3 }
 0x1f8   : > { %2682 = vmatmul.mubr.bf16.vlgmr.msra.gmra.mxu1 %v14571_v54  ;;  %v16872_v25 = vadd.f32 %v2223_v40, %v2171_v1  ;;  %2727 = vmatpush2.bf16.msra.mxu0 %v16877_v3  ;;  %v16889_v1 = vld [vmem:[%s22831_s1 + $0x1a4] ss:$8 sps:$4 sm:$0xff]   ;;  %23203 = vst [vmem:[#allocation105_spill] sm:$0xff] %v17334_v4 }
 0x1f9   : > { %2764 = vmatpush1.bf16.msra.mxu1 %v16883_v5  ;;  %v2225_v10 = vpop.f32.mrf.mxu0  ;;  %23128 = vst [vmem:[#allocation31_spill] sm:$0xff] %v16889_v1  ;;  %2728 = vmatprep.subr.bf16.mxu0 %v16889_v1  ;;  %v16895_v40 = vld [vmem:[%s22831_s1 + $0x224] ss:$8 sps:$4 sm:$0xff]   ;;  %v16906_v5 = vld [vmem:[%s22831_s1 + $0x1a0] ss:$8 sps:$4 sm:$0xff]  }
 0x1fa   : > { %23129 = vst [vmem:[#allocation32_spill] sm:$0xff] %v16895_v40  ;;  %2765 = vmatprep.subr.bf16.mxu1 %v16895_v40  ;;  %v16898_v54 = vadd.f32 %v2225_v10, %v2173_v15  ;;  %2691 = vmatprep.mubr.bf16.mxu1 %v14576_v0  ;;  %23130 = vst [vmem:[#allocation33_spill] sm:$0xff] %v16906_v5  ;;  %v16912_v1 = vld [vmem:[%s22831_s1 + $0x220] ss:$8 sps:$4 sm:$0xff]   ;;  %v16926_v0 = vld [vmem:[%s22831_s1 + $0x214] ss:$8 sps:$4 sm:$0xff]  }
 0x1fb   : > { %v2227_v34 = vpop.f32.mrf.mxu0  ;;  %23131 = vst [vmem:[#allocation34_spill] sm:$0xff] %v16912_v1  ;;  %23134 = vst [vmem:[#allocation37_spill] sm:$0xff] %v16926_v0  ;;  %v14581_v10 = vld [vmem:[%s15466_s21 + $0xc8] ss:$20 sps:$4 sm:$0xff]  }
 0x1fc   : > { %v16901_v33 = vadd.f32 %v2227_v34, %v2175_v61  ;;  %2729 = vmatpush2.bf16.msra.mxu0 %v16906_v5  ;;  %v16920_v34 = vld [vmem:[%s22831_s1 + $0x194] ss:$8 sps:$4 sm:$0xff]   ;;  %v16964_v40 = vld [vmem:[%s22831_s1 + $0x180] ss:$8 sps:$4 sm:$0xff]  }
 0x1fd   : > { %2766 = vmatpush1.bf16.msra.mxu1 %v16912_v1  ;;  %v16915_v15 = vpop.f32.mrf.mxu0  ;;  %23133 = vst [vmem:[#allocation36_spill] sm:$0xff] %v16920_v34  ;;  %2730 = vmatprep.subr.bf16.mxu0 %v16920_v34  ;;  %v16941_v34 = vld [vmem:[%s22831_s1 + $0x210] ss:$8 sps:$4 sm:$0xff]   ;;  %23140 = vst [vmem:[#allocation42_spill] sm:$0xff] %v16964_v40 }
 0x1fe   : > { %23132 = vst [vmem:[#allocation35_spill] sm:$0xff] %v16915_v15  ;;  %2767 = vmatprep.subr.bf16.mxu1 %v16926_v0  ;;  %v16935_v15 = vld [vmem:[%s22831_s1 + $0x190] ss:$8 sps:$4 sm:$0xff]   ;;  %23136 = vst [vmem:[#allocation39_spill] sm:$0xff] %v16941_v34 }
 0x1ff   : > { %v2233_v61 = vpop.f32.mrf.mxu0  ;;  %23135 = vst [vmem:[#allocation38_spill] sm:$0xff] %v16935_v15 }
 0x200   : > { %2692 = vmatmul.mubr.bf16.gmra.mxu1 %v14581_v10  ;;  %v16930_v1 = vadd.f32 %v2233_v61, %v2181_v30  ;;  %2731 = vmatpush2.bf16.msra.mxu0 %v16935_v15  ;;  %v16947_v30 = vld [vmem:[%s22831_s1 + $0x184] ss:$8 sps:$4 sm:$0xff]  }
 0x201   : > { %2768 = vmatpush1.bf16.msra.mxu1 %v16941_v34  ;;  %v2235_v0 = vpop.f32.mrf.mxu0  ;;  %23137 = vst [vmem:[#allocation40_spill] sm:$0xff] %v16947_v30  ;;  %2732 = vmatprep.subr.bf16.mxu0 %v16947_v30  ;;  %v16953_v61 = vld [vmem:[%s22831_s1 + $0x204] ss:$8 sps:$4 sm:$0xff]   ;;  %v23139_v34 = vmov 0   ;;  %v16970_v30 = vld [vmem:[%s22831_s1 + $0x200] ss:$8 sps:$4 sm:$0xff]  }
 0x202   : > { %23138 = vst [vmem:[#allocation41_spill] sm:$0xff] %v16953_v61  ;;  %2769 = vmatprep.subr.bf16.mxu1 %v16953_v61  ;;  %v16956_v10 = vadd.f32 %v2235_v0, %v2183_v17  ;;  %2787 = vmatprep.mubr.bf16.mxu1 %v23139_v34  ;;  %23141 = vst [vmem:[#allocation43_spill] sm:$0xff] %v16970_v30  ;;  %v16976_v17 = vld [vmem:[%s22832_s2 + $0x74] ss:$8 sps:$4 sm:$0xff]   ;;  %v17050_v61 = vld [vmem:[%s22832_s2 + $0x50] ss:$8 sps:$4 sm:$0xff]  }
 0x203   : > { %v2237_v15 = vpop.f32.mrf.mxu0  ;;  %23142 = vst [vmem:[#allocation44_spill] sm:$0xff] %v16976_v17  ;;  %v14591_v0 = vld [vmem:[%s15466_s21 + $0xb0] ss:$20 sps:$4 sm:$0xff]   ;;  %23154 = vst [vmem:[#allocation56_spill] sm:$0xff] %v17050_v61 }
 0x204   : > { %v16959_v5 = vadd.f32 %v2237_v15, %v2185_v60  ;;  %2733 = vmatpush2.bf16.msra.mxu0 %v16964_v40  ;;  %v16982_v60 = vld [vmem:[%s22832_s2 + $0x174] ss:$8 sps:$4 sm:$0xff]  }
 0x205   : > { %2770 = vmatpush1.bf16.msra.mxu1 %v16970_v30  ;;  %2897 = vmatprep.subr.bf16.mxu0 %v16976_v17  ;;  %23143 = vst [vmem:[#allocation45_spill] sm:$0xff] %v16982_v60  ;;  %v14590_v15 = vld [vmem:[%s15466_s21 + $0xa8] ss:$20 sps:$4 sm:$0xff]   ;;  %v14601_v40 = vld [vmem:[%s15466_s21 + $0xd0] ss:$20 sps:$4 sm:$0xff]  }
 0x206   : > { %2950 = vmatprep.subr.bf16.mxu1 %v16982_v60  ;;  %v16991_v30 = vld [vmem:[%s22832_s2 + $0x70] ss:$8 sps:$4 sm:$0xff]  }
 0x207   : > { %2735 = vmatmul.mubr.bf16.vlgmr.msra.gmra.mxu0 %v14590_v15  ;;  %23144 = vst [vmem:[#allocation46_spill] sm:$0xff] %v16991_v30  ;;  %v16997_v17 = vld [vmem:[%s22832_s2 + $0x170] ss:$8 sps:$4 sm:$0xff]   ;;  %v17003_v15 = vld [vmem:[%s22832_s2 + $0x64] ss:$8 sps:$4 sm:$0xff]  }
 0x208   : > { %11707 = vmatmul.mubr.msk.bf16.vlgmr.msra.gmra.mxu1 %vm1242_vm0, %v14591_v0  ;;  %2898 = vmatpush1.bf16.msra.mxu0 %v16991_v30  ;;  %23145 = vst [vmem:[#allocation47_spill] sm:$0xff] %v16997_v17  ;;  %23146 = vst [vmem:[#allocation48_spill] sm:$0xff] %v17003_v15  ;;  %v17009_v0 = vld [vmem:[%s22832_s2 + $0x164] ss:$8 sps:$4 sm:$0xff]  }
 0x209   : > { %2951 = vmatpush1.bf16.msra.mxu1 %v16997_v17  ;;  %2899 = vmatprep.subr.bf16.mxu0 %v17003_v15  ;;  %23147 = vst [vmem:[#allocation49_spill] sm:$0xff] %v17009_v0  ;;  %v14596_v30 = vld [vmem:[%s15466_s21 + $0xd4] ss:$20 sps:$4 sm:$0xff]   ;;  %v17030_v60 = vld [vmem:[%s15466_s21 + $0x14c] ss:$20 sps:$4 sm:$0xff]  }
 0x20a   : > { %2952 = vmatprep.subr.bf16.mxu1 %v17009_v0  ;;  %2744 = vmatprep.mubr.bf16.mxu0 %v14596_v30  ;;  %v17017_v17 = vld [vmem:[%s22832_s2 + $0x60] ss:$8 sps:$4 sm:$0xff]   ;;  %23151 = vst [vmem:[#allocation53_spill] sm:$0xff] %v17030_v60  ;;  %v17035_v30 = vld [vmem:[%s22832_s2 + $0x54] ss:$8 sps:$4 sm:$0xff]  }
 0x20b   : > { %2797 = vmatprep.mubr.bf16.mxu1 %v23139_v34  ;;  %23148 = vst [vmem:[#allocation50_spill] sm:$0xff] %v17017_v17  ;;  %v17023_v15 = vld [vmem:[%s22832_s2 + $0x160] ss:$8 sps:$4 sm:$0xff]   ;;  %23152 = vst [vmem:[#allocation54_spill] sm:$0xff] %v17035_v30 }
 0x20c   : > { %2900 = vmatpush1.bf16.msra.mxu0 %v17017_v17  ;;  %23149 = vst [vmem:[#allocation51_spill] sm:$0xff] %v17023_v15  ;;  %v17027_v0 = vld [vmem:[%s15466_s21 + $0x144] ss:$20 sps:$4 sm:$0xff]  }
 0x20d   : > { %2953 = vmatpush1.bf16.msra.mxu1 %v17023_v15  ;;  %23150 = vst [vmem:[#allocation52_spill] sm:$0xff] %v17027_v0  ;;  %2901 = vmatprep.subr.bf16.mxu0 %v17035_v30  ;;  %v17041_v17 = vld [vmem:[%s22832_s2 + $0x154] ss:$8 sps:$4 sm:$0xff]   ;;  %v17056_v30 = vld [vmem:[%s22832_s2 + $0x150] ss:$8 sps:$4 sm:$0xff]  }
 0x20e   : > { %23153 = vst [vmem:[#allocation55_spill] sm:$0xff] %v17041_v17  ;;  %2954 = vmatprep.subr.bf16.mxu1 %v17041_v17  ;;  %v14602_v15 = vld [vmem:[%s15466_s21 + $0xd8] ss:$20 sps:$4 sm:$0xff]   ;;  %23155 = vst [vmem:[#allocation57_spill] sm:$0xff] %v17056_v30 }
 0x20f   : > { %2745 = vmatmul.mubr.bf16.gmra.mxu0 %v14601_v40  ;;  %v17062_v40 = vld [vmem:[%s22832_s2 + $0x44] ss:$8 sps:$4 sm:$0xff]   ;;  %v17225_v17 = vld [vmem:[%s22832_s2 + $0xe0] ss:$8 sps:$4 sm:$0xff]  }
 0x210   : > { %11708 = vmatmul.mubr.msk.bf16.gmra.mxu1 %vm1242_vm0, %v14602_v15  ;;  %2902 = vmatpush1.bf16.msra.mxu0 %v17050_v61  ;;  %23156 = vst [vmem:[#allocation58_spill] sm:$0xff] %v17062_v40  ;;  %v17068_v15 = vld [vmem:[%s22832_s2 + $0x144] ss:$8 sps:$4 sm:$0xff]   ;;  %23183 = vst [vmem:[#allocation85_spill] sm:$0xff] %v17225_v17 }
 0x211   : > { %2955 = vmatpush1.bf16.msra.mxu1 %v17056_v30  ;;  %2903 = vmatprep.subr.bf16.mxu0 %v17062_v40  ;;  %23157 = vst [vmem:[#allocation59_spill] sm:$0xff] %v17068_v15  ;;  %v17076_v30 = vld [vmem:[%s22832_s2 + $0x40] ss:$8 sps:$4 sm:$0xff]  }
 0x212   : > { %2956 = vmatprep.subr.bf16.mxu1 %v17068_v15  ;;  %2929 = vmatprep.mubr.bf16.mxu0 %v17027_v0  ;;  %23158 = vst [vmem:[#allocation60_spill] sm:$0xff] %v17076_v30  ;;  %v17082_v40 = vld [vmem:[%s22832_s2 + $0x140] ss:$8 sps:$4 sm:$0xff]   ;;  %v17088_v0 = vld [vmem:[%s22832_s2 + $0x34] ss:$8 sps:$4 sm:$0xff]  }
 0x213   : > { %2982 = vmatprep.mubr.bf16.mxu1 %v17030_v60  ;;  %23159 = vst [vmem:[#allocation61_spill] sm:$0xff] %v17082_v40  ;;  %23160 = vst [vmem:[#allocation62_spill] sm:$0xff] %v17088_v0  ;;  %v17094_v60 = vld [vmem:[%s22832_s2 + $0x134] ss:$8 sps:$4 sm:$0xff]  }
 0x214   : > { %2904 = vmatpush1.bf16.msra.mxu0 %v17076_v30  ;;  %23161 = vst [vmem:[#allocation63_spill] sm:$0xff] %v17094_v60  ;;  %v17100_v30 = vld [vmem:[%s22832_s2 + $0x30] ss:$8 sps:$4 sm:$0xff]  }
 0x215   : > { %2957 = vmatpush1.bf16.msra.mxu1 %v17082_v40  ;;  %2905 = vmatprep.subr.bf16.mxu0 %v17088_v0  ;;  %23162 = vst [vmem:[#allocation64_spill] sm:$0xff] %v17100_v30  ;;  %v17106_v40 = vld [vmem:[%s22832_s2 + $0x130] ss:$8 sps:$4 sm:$0xff]   ;;  %v17112_v0 = vld [vmem:[%s22832_s2 + $0x24] ss:$8 sps:$4 sm:$0xff]  }
 0x216   : > { %2958 = vmatprep.subr.bf16.mxu1 %v17094_v60  ;;  %23163 = vst [vmem:[#allocation65_spill] sm:$0xff] %v17106_v40  ;;  %23164 = vst [vmem:[#allocation66_spill] sm:$0xff] %v17112_v0  ;;  %v17118_v60 = vld [vmem:[%s22832_s2 + $0x124] ss:$8 sps:$4 sm:$0xff]  }
 0x217   : > { %23165 = vst [vmem:[#allocation67_spill] sm:$0xff] %v17118_v60 }
 0x218   : > { %2906 = vmatpush1.bf16.msra.mxu0 %v17100_v30  ;;  %v17124_v30 = vld [vmem:[%s22832_s2 + $0x20] ss:$8 sps:$4 sm:$0xff]  }
 0x219   : > { %2959 = vmatpush1.bf16.msra.mxu1 %v17106_v40  ;;  %2907 = vmatprep.subr.bf16.mxu0 %v17112_v0  ;;  %23166 = vst [vmem:[#allocation68_spill] sm:$0xff] %v17124_v30  ;;  %v17130_v40 = vld [vmem:[%s22832_s2 + $0x120] ss:$8 sps:$4 sm:$0xff]   ;;  %v17136_v0 = vld [vmem:[%s22832_s2 + $0x14] ss:$8 sps:$4 sm:$0xff]  }
 0x21a   : > { %2960 = vmatprep.subr.bf16.mxu1 %v17118_v60  ;;  %23167 = vst [vmem:[#allocation69_spill] sm:$0xff] %v17130_v40  ;;  %23168 = vst [vmem:[#allocation70_spill] sm:$0xff] %v17136_v0  ;;  %v17142_v60 = vld [vmem:[%s22832_s2 + $0x114] ss:$8 sps:$4 sm:$0xff]  }
 0x21b   : > { %23169 = vst [vmem:[#allocation71_spill] sm:$0xff] %v17142_v60 }
 0x21c   : > { %2908 = vmatpush1.bf16.msra.mxu0 %v17124_v30  ;;  %v17148_v30 = vld [vmem:[%s22832_s2 + $0x10] ss:$8 sps:$4 sm:$0xff]  }
 0x21d   : > { %2961 = vmatpush1.bf16.msra.mxu1 %v17130_v40  ;;  %2909 = vmatprep.subr.bf16.mxu0 %v17136_v0  ;;  %23170 = vst [vmem:[#allocation72_spill] sm:$0xff] %v17148_v30  ;;  %v17154_v40 = vld [vmem:[%s22832_s2 + $0x110] ss:$8 sps:$4 sm:$0xff]   ;;  %v17160_v0 = vld [vmem:[%s22832_s2 + $0x4] ss:$8 sps:$4 sm:$0xff]  }
 0x21e   : > { %2962 = vmatprep.subr.bf16.mxu1 %v17142_v60  ;;  %23171 = vst [vmem:[#allocation73_spill] sm:$0xff] %v17154_v40  ;;  %23172 = vst [vmem:[#allocation74_spill] sm:$0xff] %v17160_v0  ;;  %v17166_v60 = vld [vmem:[%s22832_s2 + $0x104] ss:$8 sps:$4 sm:$0xff]  }
 0x21f   : > { %23173 = vst [vmem:[#allocation75_spill] sm:$0xff] %v17166_v60 }
 0x220   : > { %2910 = vmatpush1.bf16.msra.mxu0 %v17148_v30  ;;  %v17172_v30 = vld [vmem:[%s22832_s2] ss:$8 sps:$4 sm:$0xff]  }
 0x221   : > { %2963 = vmatpush1.bf16.msra.mxu1 %v17154_v40  ;;  %2911 = vmatprep.subr.bf16.mxu0 %v17160_v0  ;;  %23174 = vst [vmem:[#allocation76_spill] sm:$0xff] %v17172_v30  ;;  %v17178_v40 = vld [vmem:[%s22832_s2 + $0x100] ss:$8 sps:$4 sm:$0xff]   ;;  %v17181_v0 = vpop.f32.mrf.mxu1 }
 0x222   : > { %2964 = vmatprep.subr.bf16.mxu1 %v17166_v60  ;;  %23175 = vst [vmem:[#allocation77_spill] sm:$0xff] %v17178_v40  ;;  %23176 = vst [vmem:[#allocation78_spill] sm:$0xff] %v17181_v0  ;;  %v17186_v60 = vld [vmem:[%s22832_s2 + $0xf4] ss:$8 sps:$4 sm:$0xff]   ;;  %v17199_v0 = vld [vmem:[%s22832_s2 + $0xf0] ss:$8 sps:$4 sm:$0xff]  }
 0x223   : > { %23177 = vst [vmem:[#allocation79_spill] sm:$0xff] %v17186_v60  ;;  %23179 = vst [vmem:[#allocation81_spill] sm:$0xff] %v17199_v0 }
 0x224   : > { %2912 = vmatpush1.bf16.msra.mxu0 %v17172_v30  ;;  %v17192_v30 = vld [vmem:[%s22832_s2 + $0x1f4] ss:$8 sps:$4 sm:$0xff]  }
 0x225   : > { %2965 = vmatpush1.bf16.msra.mxu1 %v17178_v40  ;;  %2913 = vmatprep.subr.bf16.mxu0 %v17186_v60  ;;  %23178 = vst [vmem:[#allocation80_spill] sm:$0xff] %v17192_v30  ;;  %v17205_v60 = vld [vmem:[%s22832_s2 + $0x1f0] ss:$8 sps:$4 sm:$0xff]  }
 0x226   : > { %2966 = vmatprep.subr.bf16.mxu1 %v17192_v30  ;;  %23180 = vst [vmem:[#allocation82_spill] sm:$0xff] %v17205_v60  ;;  %v17211_v30 = vld [vmem:[%s22832_s2 + $0xe4] ss:$8 sps:$4 sm:$0xff]  }
 0x227   : > { %23181 = vst [vmem:[#allocation83_spill] sm:$0xff] %v17211_v30 }
 0x228   : > { %v2276_v15 = vpop.f32.mrf.mxu1  ;;  %2914 = vmatpush2.bf16.msra.mxu0 %v17199_v0 }
 0x229   : > { %v2277_v61 = vadd.f32 %v2276_v15, %v16872_v25  ;;  %2967 = vmatpush2.bf16.msra.mxu1 %v17205_v60  ;;  %2915 = vmatprep.subr.bf16.mxu0 %v17211_v30  ;;  %v17217_v25 = vld [vmem:[%s22832_s2 + $0x1e4] ss:$8 sps:$4 sm:$0xff]   ;;  %v17231_v30 = vld [vmem:[%s22832_s2 + $0x1e0] ss:$8 sps:$4 sm:$0xff]  }
 0x22a   : > { %v2278_v40 = vpop.f32.mrf.mxu1  ;;  %23182 = vst [vmem:[#allocation84_spill] sm:$0xff] %v17217_v25  ;;  %2968 = vmatprep.subr.bf16.mxu1 %v17217_v25  ;;  %23184 = vst [vmem:[#allocation86_spill] sm:$0xff] %v17231_v30 }
 0x22b   : > { %v2279_v15 = vadd.f32 %v2278_v40, %v16898_v54  ;;  %v17245_v54 = vld [vmem:[%s22832_s2 + $0x1d4] ss:$8 sps:$4 sm:$0xff]  }
 0x22c   : > { %v2280_v0 = vpop.f32.mrf.mxu1  ;;  %2916 = vmatpush2.bf16.msra.mxu0 %v17225_v17  ;;  %23187 = vst [vmem:[#allocation89_spill] sm:$0xff] %v17245_v54  ;;  %v17280_v17 = vld [vmem:[%s22832_s2 + $0xc0] ss:$8 sps:$4 sm:$0xff]  }
 0x22d   : > { %v2281_v60 = vadd.f32 %v2280_v0, %v16901_v33  ;;  %2969 = vmatpush2.bf16.msra.mxu1 %v17231_v30  ;;  %v17239_v33 = vld [vmem:[%s22832_s2 + $0xd4] ss:$8 sps:$4 sm:$0xff]   ;;  %23192 = vst [vmem:[#allocation94_spill] sm:$0xff] %v17280_v17 }
 0x22e   : > { %v17234_v25 = vpop.f32.mrf.mxu1  ;;  %23186 = vst [vmem:[#allocation88_spill] sm:$0xff] %v17239_v33  ;;  %2917 = vmatprep.subr.bf16.mxu0 %v17239_v33  ;;  %2970 = vmatprep.subr.bf16.mxu1 %v17245_v54  ;;  %v17258_v33 = vld [vmem:[%s22832_s2 + $0x1d0] ss:$8 sps:$4 sm:$0xff]   ;;  %v17264_v54 = vld [vmem:[%s22832_s2 + $0xc4] ss:$8 sps:$4 sm:$0xff]  }
 0x22f   : > { %23185 = vst [vmem:[#allocation87_spill] sm:$0xff] %v17234_v25  ;;  %v17252_v25 = vld [vmem:[%s22832_s2 + $0xd0] ss:$8 sps:$4 sm:$0xff]   ;;  %23189 = vst [vmem:[#allocation91_spill] sm:$0xff] %v17258_v33 }
 0x230   : > { %v2286_v0 = vpop.f32.mrf.mxu1  ;;  %23188 = vst [vmem:[#allocation90_spill] sm:$0xff] %v17252_v25  ;;  %2918 = vmatpush2.bf16.msra.mxu0 %v17252_v25  ;;  %23190 = vst [vmem:[#allocation92_spill] sm:$0xff] %v17264_v54 }
 0x231   : > { %v2287_v40 = vadd.f32 %v2286_v0, %v16930_v1  ;;  %2971 = vmatpush2.bf16.msra.mxu1 %v17258_v33  ;;  %2919 = vmatprep.subr.bf16.mxu0 %v17264_v54  ;;  %v17270_v1 = vld [vmem:[%s22832_s2 + $0x1c4] ss:$8 sps:$4 sm:$0xff]   ;;  %v17286_v54 = vld [vmem:[%s22832_s2 + $0x1c0] ss:$8 sps:$4 sm:$0xff]  }
 0x232   : > { %v2288_v30 = vpop.f32.mrf.mxu1  ;;  %23191 = vst [vmem:[#allocation93_spill] sm:$0xff] %v17270_v1  ;;  %2972 = vmatprep.subr.bf16.mxu1 %v17270_v1  ;;  %23193 = vst [vmem:[#allocation95_spill] sm:$0xff] %v17286_v54  ;;  %v17289_v1 = vpop.f32.mrf.mxu0 }
 0x233   : > { %v2289_v0 = vadd.f32 %v2288_v30, %v16956_v10  ;;  %23194 = vst [vmem:[#allocation96_spill] sm:$0xff] %v17289_v1  ;;  %v17302_v30 = vld [vmem:[%s22832_s2 + $0x1b4] ss:$8 sps:$4 sm:$0xff]   ;;  %v17314_v1 = vld [vmem:[%s22832_s2 + $0x1b0] ss:$8 sps:$4 sm:$0xff]  }
 0x234   : > { %v2290_v25 = vpop.f32.mrf.mxu1  ;;  %2920 = vmatpush2.bf16.msra.mxu0 %v17280_v17  ;;  %23197 = vst [vmem:[#allocation99_spill] sm:$0xff] %v17302_v30  ;;  %23199 = vst [vmem:[#allocation101_spill] sm:$0xff] %v17314_v1 }
 0x235   : > { %v17275_v33 = vadd.f32 %v2290_v25, %v16959_v5  ;;  %2973 = vmatpush2.bf16.msra.mxu1 %v17286_v54  ;;  %v17296_v5 = vld [vmem:[%s22832_s2 + $0xb4] ss:$8 sps:$4 sm:$0xff]  }
 0x236   : > { %v17291_v10 = vpop.f32.mrf.mxu1  ;;  %23196 = vst [vmem:[#allocation98_spill] sm:$0xff] %v17296_v5  ;;  %2921 = vmatprep.subr.bf16.mxu0 %v17296_v5  ;;  %2974 = vmatprep.subr.bf16.mxu1 %v17302_v30 }
 0x237   : > { %23195 = vst [vmem:[#allocation97_spill] sm:$0xff] %v17291_v10  ;;  %v2329_v25 = vpop.f32.mrf.mxu0  ;;  %v17308_v10 = vld [vmem:[%s22832_s2 + $0xb0] ss:$8 sps:$4 sm:$0xff]  }
 0x238   : > { %v2382_v54 = vpop.f32.mrf.mxu1  ;;  %v2330_v17 = vadd.f32 %v2329_v25, %v2277_v61  ;;  %23198 = vst [vmem:[#allocation100_spill] sm:$0xff] %v17308_v10  ;;  %2922 = vmatpush2.bf16.msra.mxu0 %v17308_v10  ;;  %v17320_v61 = vld [vmem:[%s22832_s2 + $0xa4] ss:$8 sps:$4 sm:$0xff]  }
 0x239   : > { %2975 = vmatpush2.bf16.msra.mxu1 %v17314_v1  ;;  %v2331_v5 = vpop.f32.mrf.mxu0  ;;  %23200 = vst [vmem:[#allocation102_spill] sm:$0xff] %v17320_v61  ;;  %2923 = vmatprep.subr.bf16.mxu0 %v17320_v61  ;;  %v17326_v25 = vld [vmem:[%s22832_s2 + $0x1a4] ss:$8 sps:$4 sm:$0xff]   ;;  %v17340_v61 = vld [vmem:[%s22832_s2 + $0x1a0] ss:$8 sps:$4 sm:$0xff]  }
 0x23a   : > { %v2384_v3 = vpop.f32.mrf.mxu1  ;;  %23201 = vst [vmem:[#allocation103_spill] sm:$0xff] %v17326_v25  ;;  %2976 = vmatprep.subr.bf16.mxu1 %v17326_v25  ;;  %v2383_v10 = vadd.f32 %v2382_v54, %v2330_v17  ;;  %v2332_v30 = vadd.f32 %v2331_v5, %v2279_v15  ;;  %23204 = vst [vmem:[#allocation106_spill] sm:$0xff] %v17340_v61  ;;  %v17389_v25 = vld [vmem:[%s15466_s21 + $0x148] ss:$20 sps:$4 sm:$0xff]  }
 0x23b   : > { %v2333_v8 = vpop.f32.mrf.mxu0  ;;  %23214 = vst [vmem:[#allocation116_spill] sm:$0xff] %v17389_v25 }
 0x23c   : > { %v2386_v1 = vpop.f32.mrf.mxu1  ;;  %v17329_v52 = vadd.f32 %v2384_v3, %v2332_v30  ;;  %v2334_v58 = vadd.f32 %v2333_v8, %v2281_v60  ;;  %2924 = vmatpush2.bf16.msra.mxu0 %v17334_v4  ;;  %v17350_v3 = vld [vmem:[%s22832_s2 + $0x94] ss:$8 sps:$4 sm:$0xff]   ;;  %v2401_v60 = vadd.f32 %v2383_v10, %v16443_v45  ;;  %v17382_v10 = vld [vmem:[%s22832_s2 + $0x184] ss:$8 sps:$4 sm:$0xff]  }
 0x23d   : > { %2977 = vmatpush2.bf16.msra.mxu1 %v17340_v61  ;;  %v17343_v17 = vpop.f32.mrf.mxu0  ;;  %23207 = vst [vmem:[#allocation109_spill] sm:$0xff] %v17350_v3  ;;  %2925 = vmatprep.subr.bf16.mxu0 %v17350_v3  ;;  %v17356_v8 = vld [vmem:[%s22832_s2 + $0x194] ss:$8 sps:$4 sm:$0xff]   ;;  %23212 = vst [vmem:[#allocation114_spill] sm:$0xff] %v17382_v10 }
 0x23e   : > { %23202 = vst [vmem:[#allocation104_spill] sm:$0xff] %v17329_v52  ;;  %23205 = vst [vmem:[#allocation107_spill] sm:$0xff] %v17343_v17  ;;  %v17345_v15 = vpop.f32.mrf.mxu1  ;;  %2978 = vmatprep.subr.bf16.mxu1 %v17356_v8  ;;  %v2387_v54 = vadd.f32 %v2386_v1, %v2334_v58  ;;  %v17364_v17 = vld [vmem:[%s22832_s2 + $0x90] ss:$8 sps:$4 sm:$0xff]  }
 0x23f   : > { %23206 = vst [vmem:[#allocation108_spill] sm:$0xff] %v17345_v15  ;;  %23208 = vst [vmem:[#allocation110_spill] sm:$0xff] %v17356_v8  ;;  %v2339_v5 = vpop.f32.mrf.mxu0  ;;  %v17370_v8 = vld [vmem:[%s22832_s2 + $0x190] ss:$8 sps:$4 sm:$0xff]  }
 0x240   : > { %v2392_v30 = vpop.f32.mrf.mxu1  ;;  %v2403_v52 = vadd.f32 %v2387_v54, %v16443_v45  ;;  %v2340_v15 = vadd.f32 %v2339_v5, %v2287_v40  ;;  %23209 = vst [vmem:[#allocation111_spill] sm:$0xff] %v17364_v17  ;;  %2926 = vmatpush2.bf16.msra.mxu0 %v17364_v17  ;;  %23210 = vst [vmem:[#allocation112_spill] sm:$0xff] %v17370_v8  ;;  %v17376_v40 = vld [vmem:[%s22832_s2 + $0x84] ss:$8 sps:$4 sm:$0xff]   ;;  %v2409_v54 = vmax.f32 %v2401_v60, 0.0 }
 0x241   : > { %2979 = vmatpush2.bf16.msra.mxu1 %v17370_v8  ;;  %v2341_v58 = vpop.f32.mrf.mxu0  ;;  %23211 = vst [vmem:[#allocation113_spill] sm:$0xff] %v17376_v40  ;;  %2927 = vmatprep.subr.bf16.mxu0 %v17376_v40  ;;  %v17386_v4 = vld [vmem:[%s15466_s21 + $0x140] ss:$20 sps:$4 sm:$0xff]  }
 0x242   : > { %v2394_v1 = vpop.f32.mrf.mxu1  ;;  %2980 = vmatprep.subr.bf16.mxu1 %v17382_v10  ;;  %v2411_v5 = vmax.f32 %v2403_v52, 0.0  ;;  %v2342_v17 = vadd.f32 %v2341_v58, %v2289_v0  ;;  %v2393_v8 = vadd.f32 %v2392_v30, %v2340_v15  ;;  %23213 = vst [vmem:[#allocation115_spill] sm:$0xff] %v17386_v4  ;;  %v17397_v10 = vld [vmem:[%s22832_s2 + $0x80] ss:$8 sps:$4 sm:$0xff]   ;;  %v17417_v15 = vld [vmem:[%s22831_s1 + $0x74] ss:$8 sps:$4 sm:$0xff]  }
 0x243   : > { %v2343_v3 = vpop.f32.mrf.mxu0  ;;  %v17403_v52 = vld [vmem:[%s22832_s2 + $0x180] ss:$8 sps:$4 sm:$0xff]  }
 0x244   : > { %v2396_v61 = vpop.f32.mrf.mxu1  ;;  %v17391_v40 = vpack.c.bf16 %v2411_v5, %v2409_v54  ;;  %v2344_v29 = vadd.f32 %v2343_v3, %v17275_v33  ;;  %2928 = vmatpush2.bf16.msra.mxu0 %v17397_v10  ;;  %v17406_v0 = vadd.f32 %v2394_v1, %v2342_v17  ;;  %v17411_v33 = vld [vmem:[%s22832_s2 + $0x234] ss:$8 sps:$4 sm:$0xff]   ;;  %v2405_v3 = vadd.f32 %v2393_v8, %v16443_v45  ;;  %v17433_v1 = vld [vmem:[%s22832_s2 + $0x230] ss:$8 sps:$4 sm:$0xff]   ;;  %v17451_v8 = vld [vmem:[%s22831_s1 + $0x64] ss:$8 sps:$4 sm:$0xff]  }
 0x245   : > { %2981 = vmatpush2.bf16.msra.mxu1 %v17403_v52  ;;  %3011 = vmatprep.subr.bf16.mxu0 %v17411_v33  ;;  %v17422_v30 = vld [vmem:[%s15466_s21 + $0x16c] ss:$20 sps:$4 sm:$0xff]   ;;  %v17425_v17 = vld [vmem:[%s15466_s21 + $0x174] ss:$20 sps:$4 sm:$0xff]  }
 0x246   : > { %23215 = vst [vmem:[#allocation117_spill] sm:$0xff] %v17391_v40  ;;  %23216 = vst [vmem:[#allocation118_spill] sm:$0xff] %v17406_v0  ;;  %3056 = vmatprep.subr.bf16.mxu1 %v17417_v15  ;;  %v2397_v60 = vadd.f32 %v2396_v61, %v2344_v29  ;;  %v17439_v29 = vld [vmem:[%s22831_s1 + $0x70] ss:$8 sps:$4 sm:$0xff]   ;;  %v17445_v61 = vld [vmem:[%s22832_s2 + $0x224] ss:$8 sps:$4 sm:$0xff]  }
 0x247   : > { %23217 = vst [vmem:[#allocation119_spill] sm:$0xff] %v17422_v30  ;;  %23218 = vst [vmem:[#allocation120_spill] sm:$0xff] %v17425_v17  ;;  %2930 = vmatmul.mubr.bf16.vlgmr.msra.gmra.mxu0 %v17386_v4  ;;  %v2413_v54 = vmax.f32 %v2405_v3, 0.0  ;;  %v17460_v40 = vld [vmem:[%s15466_s21 + $0x170] ss:$20 sps:$4 sm:$0xff]  }
 0x248   : > { %2983 = vmatmul.mubr.bf16.vlgmr.msra.gmra.mxu1 %v17389_v25  ;;  %v2407_v58 = vadd.f32 %v2397_v60, %v16443_v45  ;;  %3012 = vmatpush1.bf16.msra.mxu0 %v17433_v1  ;;  %v17457_v60 = vld [vmem:[%s15466_s21 + $0x168] ss:$20 sps:$4 sm:$0xff]   ;;  %23220 = vst [vmem:[#allocation122_spill] sm:$0xff] %v17460_v40 }
 0x249   : > { %3057 = vmatpush1.bf16.msra.mxu1 %v17439_v29  ;;  %3013 = vmatprep.subr.bf16.mxu0 %v17445_v61  ;;  %23219 = vst [vmem:[#allocation121_spill] sm:$0xff] %v17457_v60  ;;  %v17467_v25 = vld [vmem:[%s22832_s2 + $0x220] ss:$8 sps:$4 sm:$0xff]  }
 0x24a   : > { %3058 = vmatprep.subr.bf16.mxu1 %v17451_v8  ;;  %v2415_v5 = vmax.f32 %v2407_v58, 0.0  ;;  %2939 = vmatprep.mubr.bf16.mxu0 %v17422_v30  ;;  %v17473_v3 = vld [vmem:[%s22831_s1 + $0x60] ss:$8 sps:$4 sm:$0xff]   ;;  %v17479_v58 = vld [vmem:[%s22832_s2 + $0x214] ss:$8 sps:$4 sm:$0xff]  }
 0x24b   : > { %2992 = vmatprep.mubr.bf16.mxu1 %v17425_v17  ;;  %v17505_v17 = vld [vmem:[%s22832_s2 + $0x204] ss:$8 sps:$4 sm:$0xff]   ;;  %v17522_v4 = vld [vmem:[%s22832_s2 + $0x200] ss:$8 sps:$4 sm:$0xff]  }
 0x24c   : > { %v17462_v0 = vpack.c.bf16 %v2415_v5, %v2413_v54  ;;  %3014 = vmatpush1.bf16.msra.mxu0 %v17467_v25  ;;  %v17485_v54 = vld [vmem:[%s22831_s1 + $0x54] ss:$8 sps:$4 sm:$0xff]   ;;  %v17493_v5 = vld [vmem:[%s22832_s2 + $0x210] ss:$8 sps:$4 sm:$0xff]   ;;  %23222 = vst [vmem:[#allocation124_spill] sm:$0xff] %v17505_v17 }
 0x24d   : > { %3059 = vmatpush1.bf16.msra.mxu1 %v17473_v3  ;;  %3015 = vmatprep.subr.bf16.mxu0 %v17479_v58  ;;  %v17517_v30 = vld [vmem:[%s15466_s21 + $0x150] ss:$20 sps:$4 sm:$0xff]  }
 0x24e   : > { %23221 = vst [vmem:[#allocation123_spill] sm:$0xff] %v17462_v0  ;;  %3060 = vmatprep.subr.bf16.mxu1 %v17485_v54  ;;  %v17499_v0 = vld [vmem:[%s22831_s1 + $0x50] ss:$8 sps:$4 sm:$0xff]  }
 0x24f   : > { %2940 = vmatmul.mubr.bf16.gmra.mxu0 %v17457_v60  ;;  %v14671_v60 = vld [vmem:[%s15466_s21 + $0xf4] ss:$20 sps:$4 sm:$0xff]  }
 0x250   : > { %2993 = vmatmul.mubr.bf16.gmra.mxu1 %v17460_v40  ;;  %3016 = vmatpush1.bf16.msra.mxu0 %v17493_v5  ;;  %v17511_v40 = vld [vmem:[%s22831_s1 + $0x44] ss:$8 sps:$4 sm:$0xff]  }
 0x251   : > { %3061 = vmatpush1.bf16.msra.mxu1 %v17499_v0  ;;  %3017 = vmatprep.subr.bf16.mxu0 %v17505_v17  ;;  %23223 = vst [vmem:[#allocation125_spill] sm:$0xff] %v17511_v40  ;;  %v17528_v17 = vld [vmem:[%s22831_s1 + $0x40] ss:$8 sps:$4 sm:$0xff]  }
 0x252   : > { %3062 = vmatprep.subr.bf16.mxu1 %v17511_v40  ;;  %3035 = vmatprep.mubr.bf16.mxu0 %v23139_v34  ;;  %v17540_v40 = vld [vmem:[%s22831_s1 + $0x174] ss:$8 sps:$4 sm:$0xff]  }
 0x253   : > { %3088 = vmatprep.mubr.bf16.mxu1 %v14671_v60  ;;  %v17534_v60 = vld [vmem:[%s22831_s1 + $0x34] ss:$8 sps:$4 sm:$0xff]  }
 0x254   : > { %3018 = vmatpush1.bf16.msra.mxu0 %v17522_v4  ;;  %23224 = vst [vmem:[#allocation126_spill] sm:$0xff] %v17534_v60 }
 0x255   : > { %3063 = vmatpush1.bf16.msra.mxu1 %v17528_v17  ;;  %3109 = vmatprep.subr.bf16.mxu0 %v17540_v40 }
 0x256   : > { %3064 = vmatprep.subr.bf16.mxu1 %v17534_v60  ;;  %v17551_v60 = vld [vmem:[%s15466_s21 + $0x178] ss:$20 sps:$4 sm:$0xff]  }
 0x257   : > { %11731 = vmatmul.mubr.msk.bf16.vlgmr.msra.gmra.mxu0 %vm1242_vm0, %v17517_v30 }
 0x258   : > { %3110 = vmatpush1.bf16.msra.mxu0 %v16578_v18  ;;  %3045 = vmatprep.mubr.bf16.mxu0 %v23139_v34  ;;  %v17582_v18 = vpop.f32.mrf.mxu0 }
 0x259   : > { %3065 = vmatpush1.bf16.msra.mxu1 %v16572_v16  ;;  %3111 = vmatprep.subr.bf16.mxu0 %v16590_v20  ;;  %v14676_v16 = vld [vmem:[%s15466_s21 + $0xfc] ss:$20 sps:$4 sm:$0xff]   ;;  %23225 = vst [vmem:[#allocation127_spill] sm:$0xff] %v17582_v18 }
 0x25a   : > { %3066 = vmatprep.subr.bf16.mxu1 %v16584_v57  ;;  %v17584_v57 = vpop.f32.mrf.mxu1 }
 0x25b   : > { %23226 = vst [vmem:[#allocation128_spill] sm:$0xff] %v17584_v57 }
 0x25c   : > { %3112 = vmatpush1.bf16.msra.mxu0 %v16604_v23 }
 0x25d   : > { %3067 = vmatpush1.bf16.msra.mxu1 %v16598_v22  ;;  %3113 = vmatprep.subr.bf16.mxu0 %v16616_v26 }
 0x25e   : > { %3068 = vmatprep.subr.bf16.mxu1 %v16610_v24 }
 0x25f   : > { %11732 = vmatmul.mubr.msk.bf16.gmra.mxu0 %vm1242_vm0, %v17551_v60 }
 0x260   : > { %3114 = vmatpush1.bf16.msra.mxu0 %v16629_v2  ;;  %3141 = vmatprep.mubr.bf16.mxu0 %v14676_v16 }
 0x261   : > { %3069 = vmatpush1.bf16.msra.mxu1 %v16623_v63  ;;  %3115 = vmatprep.subr.bf16.mxu0 %v16641_v28 }
 0x262   : > { %3070 = vmatprep.subr.bf16.mxu1 %v16635_v27 }
 0x264   : > { %3116 = vmatpush1.bf16.msra.mxu0 %v16654_v11 }
 0x265   : > { %3071 = vmatpush1.bf16.msra.mxu1 %v16648_v31  ;;  %3117 = vmatprep.subr.bf16.mxu0 %v16666_v36 }
 0x266   : > { %3072 = vmatprep.subr.bf16.mxu1 %v16660_v35 }
 0x268   : > { %3118 = vmatpush1.bf16.msra.mxu0 %v16678_v32 }
 0x269   : > { %3073 = vmatpush2.bf16.msra.mxu1 %v16672_v38  ;;  %3119 = vmatprep.subr.bf16.mxu0 %v16690_v41 }
 0x26a   : > { %3074 = vmatprep.subr.bf16.mxu1 %v16684_v37 }
 0x26c   : > { %3120 = vmatpush1.bf16.msra.mxu0 %v16702_v42 }
 0x26d   : > { %3075 = vmatpush2.bf16.msra.mxu1 %v16696_v19  ;;  %3121 = vmatprep.subr.bf16.mxu0 %v16714_v44  ;;  %v23230_v44 = vld [vmem:[#allocation24_spill] sm:$0xff] }
 0x26e   : > { %3076 = vmatprep.subr.bf16.mxu1 %v16708_v43 }
 0x270   : > { %3122 = vmatpush1.bf16.msra.mxu0 %v16726_v47 }
 0x271   : > { %3077 = vmatpush2.bf16.msra.mxu1 %v16720_v46  ;;  %3123 = vmatprep.subr.bf16.mxu0 %v16738_v49  ;;  %v23231_v46 = vld [vmem:[#allocation25_spill] sm:$0xff] }
 0x272   : > { %3078 = vmatprep.subr.bf16.mxu1 %v16732_v48  ;;  %v23234_v48 = vld [vmem:[#allocation28_spill] sm:$0xff] }
 0x274   : > { %3124 = vmatpush1.bf16.msra.mxu0 %v16750_v51 }
 0x275   : > { %3079 = vmatpush2.bf16.msra.mxu1 %v16744_v50  ;;  %3125 = vmatprep.subr.bf16.mxu0 %v16766_v59  ;;  %v14677_v50 = vld [vmem:[%s15466_s21 + $0xf0] ss:$20 sps:$4 sm:$0xff]  }
 0x276   : > { %3080 = vmatprep.subr.bf16.mxu1 %v16760_v56  ;;  %v23236_v56 = vld [vmem:[#allocation30_spill] sm:$0xff] }
 0x277   : > { %v2524_v20 = vpop.f32.mrf.mxu0 }
 0x278   : > { %v2577_v22 = vpop.f32.mrf.mxu1  ;;  %3126 = vmatpush2.bf16.msra.mxu0 %v16778_v9  ;;  %v23238_v9 = vld [vmem:[#allocation32_spill] sm:$0xff] }
 0x279   : > { %v2578_v23 = vadd.f32 %v2577_v22, %v2524_v20  ;;  %3081 = vmatpush2.bf16.msra.mxu1 %v16772_v7  ;;  %v2526_v24 = vpop.f32.mrf.mxu0  ;;  %3127 = vmatprep.subr.bf16.mxu0 %v16790_v14  ;;  %v23237_v7 = vld [vmem:[#allocation31_spill] sm:$0xff]  ;;  %v23242_v20 = vld [vmem:[#allocation36_spill] sm:$0xff]  ;;  %v23243_v22 = vld [vmem:[#allocation37_spill] sm:$0xff] }
 0x27a   : > { %v2579_v26 = vpop.f32.mrf.mxu1  ;;  %3082 = vmatprep.subr.bf16.mxu1 %v16784_v13  ;;  %v14678_v14 = vld [vmem:[%s15466_s21 + $0x11c] ss:$20 sps:$4 sm:$0xff]  }
 0x27b   : > { %v2580_v63 = vadd.f32 %v2579_v26, %v2526_v24  ;;  %v2528_v2 = vpop.f32.mrf.mxu0  ;;  %v14679_v24 = vld [vmem:[%s15466_s21 + $0x118] ss:$20 sps:$4 sm:$0xff]  }
 0x27c   : > { %v2581_v27 = vpop.f32.mrf.mxu1  ;;  %3128 = vmatpush2.bf16.msra.mxu0 %v16802_v6  ;;  %v23229_v6 = vld [vmem:[#allocation23_spill] sm:$0xff] }
 0x27d   : > { %v2582_v28 = vadd.f32 %v2581_v27, %v2528_v2  ;;  %3083 = vmatpush2.bf16.msra.mxu1 %v16796_v62  ;;  %v17594_v31 = vpop.f32.mrf.mxu0  ;;  %3129 = vmatprep.subr.bf16.mxu0 %v16818_v21  ;;  %v23239_v21 = vld [vmem:[#allocation33_spill] sm:$0xff]  ;;  %v23245_v2 = vld [vmem:[#allocation39_spill] sm:$0xff] }
 0x27e   : > { %23227 = vst [vmem:[#allocation129_spill] sm:$0xff] %v17594_v31  ;;  %v17596_v11 = vpop.f32.mrf.mxu1  ;;  %3084 = vmatprep.subr.bf16.mxu1 %v16812_v12 }
 0x27f   : > { %23228 = vst [vmem:[#allocation130_spill] sm:$0xff] %v17596_v11  ;;  %v2534_v35 = vpop.f32.mrf.mxu0 }
 0x280   : > { %v2587_v36 = vpop.f32.mrf.mxu1  ;;  %3130 = vmatpush2.bf16.msra.mxu0 %v16830_v55  ;;  %v23235_v55 = vld [vmem:[#allocation29_spill] sm:$0xff] }
 0x281   : > { %v2588_v38 = vadd.f32 %v2587_v36, %v2534_v35  ;;  %3085 = vmatpush2.bf16.msra.mxu1 %v16824_v39  ;;  %v2536_v32 = vpop.f32.mrf.mxu0  ;;  %3131 = vmatprep.subr.bf16.mxu0 %v23229_v6  ;;  %v23233_v39 = vld [vmem:[#allocation27_spill] sm:$0xff]  ;;  %v23247_v35 = vld [vmem:[#allocation41_spill] sm:$0xff] }
 0x282   : > { %v2589_v37 = vpop.f32.mrf.mxu1  ;;  %3086 = vmatprep.subr.bf16.mxu1 %v16836_v53  ;;  %v23240_v53 = vld [vmem:[#allocation34_spill] sm:$0xff]  ;;  %v23249_v6 = vld [vmem:[#allocation43_spill] sm:$0xff] }
 0x283   : > { %v2590_v41 = vadd.f32 %v2589_v37, %v2536_v32  ;;  %v2538_v19 = vpop.f32.mrf.mxu0 }
 0x284   : > { %v2591_v42 = vpop.f32.mrf.mxu1  ;;  %3132 = vmatpush2.bf16.msra.mxu0 %v23231_v46  ;;  %v23252_v46 = vld [vmem:[#allocation46_spill] sm:$0xff] }
 0x285   : > { %v2592_v43 = vadd.f32 %v2591_v42, %v2538_v19  ;;  %3087 = vmatpush2.bf16.msra.mxu1 %v23230_v44  ;;  %v17606_v47 = vpop.f32.mrf.mxu0  ;;  %3133 = vmatprep.subr.bf16.mxu0 %v23233_v39  ;;  %v23250_v19 = vld [vmem:[#allocation44_spill] sm:$0xff]  ;;  %v23251_v42 = vld [vmem:[#allocation45_spill] sm:$0xff] }
 0x286   : > { %23232 = vst [vmem:[#allocation23_spill] sm:$0xff] %v17606_v47  ;;  %3170 = vmatprep.subr.bf16.mxu1 %v23234_v48  ;;  %v14680_v44 = vld [vmem:[%s15466_s21 + $0xf8] ss:$20 sps:$4 sm:$0xff]   ;;  %v23255_v48 = vld [vmem:[#allocation49_spill] sm:$0xff] }
 0x287   : > { %v2630_v49 = vpop.f32.mrf.mxu0  ;;  %v23254_v39 = vld [vmem:[#allocation48_spill] sm:$0xff] }
 0x288   : > { %3089 = vmatmul.mubr.bf16.vlgmr.msra.gmra.mxu1 %v14677_v50  ;;  %v17611_v51 = vadd.f32 %v2630_v49, %v2578_v23  ;;  %3134 = vmatpush2.bf16.msra.mxu0 %v23235_v55  ;;  %v14682_v49 = vld [vmem:[%s15466_s21 + $0x124] ss:$20 sps:$4 sm:$0xff]  }
 0x289   : > { %3171 = vmatpush1.bf16.msra.mxu1 %v23236_v56  ;;  %v2632_v59 = vpop.f32.mrf.mxu0  ;;  %3135 = vmatprep.subr.bf16.mxu0 %v23237_v7  ;;  %v23256_v50 = vld [vmem:[#allocation50_spill] sm:$0xff]  ;;  %v23257_v55 = vld [vmem:[#allocation51_spill] sm:$0xff] }
 0x28a   : > { %3172 = vmatprep.subr.bf16.mxu1 %v23238_v9  ;;  %v17617_v13 = vadd.f32 %v2632_v59, %v2580_v63  ;;  %3098 = vmatprep.mubr.bf16.mxu1 %v14678_v14  ;;  %v23244_v63 = vld [vmem:[#allocation38_spill] sm:$0xff]  ;;  %v23259_v59 = vld [vmem:[#allocation55_spill] sm:$0xff] }
 0x28b   : > { %v2634_v62 = vpop.f32.mrf.mxu0  ;;  %v23258_v56 = vld [vmem:[#allocation54_spill] sm:$0xff]  ;;  %v14683_v14 = vld [vmem:[%s15466_s21 + $0x120] ss:$20 sps:$4 sm:$0xff]  }
 0x28c   : > { %v17620_v12 = vadd.f32 %v2634_v62, %v2582_v28  ;;  %3136 = vmatpush2.bf16.msra.mxu0 %v23239_v21  ;;  %v23246_v28 = vld [vmem:[#allocation40_spill] sm:$0xff] }
 0x28d   : > { %3173 = vmatpush1.bf16.msra.mxu1 %v23240_v53  ;;  %v17624_v16 = vpop.f32.mrf.mxu0  ;;  %3137 = vmatprep.subr.bf16.mxu0 %v23242_v20  ;;  %v17658_v7 = vld [vmem:[%s15466_s21 + $0x194] ss:$20 sps:$4 sm:$0xff]   ;;  %v17661_v9 = vld [vmem:[%s15466_s21 + $0x19c] ss:$20 sps:$4 sm:$0xff]  }
 0x28e   : > { %23241 = vst [vmem:[#allocation24_spill] sm:$0xff] %v17624_v16  ;;  %3174 = vmatprep.subr.bf16.mxu1 %v23243_v22  ;;  %v14684_v62 = vld [vmem:[%s15466_s21 + $0x128] ss:$20 sps:$4 sm:$0xff]   ;;  %v23261_v53 = vld [vmem:[#allocation57_spill] sm:$0xff]  ;;  %v23263_v22 = vld [vmem:[#allocation59_spill] sm:$0xff] }
 0x28f   : > { %v2640_v23 = vpop.f32.mrf.mxu0  ;;  %v23260_v21 = vld [vmem:[#allocation56_spill] sm:$0xff]  ;;  %v23262_v20 = vld [vmem:[#allocation58_spill] sm:$0xff] }
 0x290   : > { %3099 = vmatmul.mubr.bf16.gmra.mxu1 %v14679_v24  ;;  %v17629_v26 = vadd.f32 %v2640_v23, %v2588_v38  ;;  %3138 = vmatpush2.bf16.msra.mxu0 %v23244_v63  ;;  %v23248_v38 = vld [vmem:[#allocation42_spill] sm:$0xff]  ;;  %v23264_v23 = vld [vmem:[#allocation60_spill] sm:$0xff]  ;;  %v23265_v24 = vld [vmem:[#allocation61_spill] sm:$0xff] }
 0x291   : > { %3175 = vmatpush1.bf16.msra.mxu1 %v23245_v2  ;;  %v2642_v27 = vpop.f32.mrf.mxu0  ;;  %3139 = vmatprep.subr.bf16.mxu0 %v23246_v28  ;;  %v23266_v63 = vld [vmem:[#allocation62_spill] sm:$0xff]  ;;  %v23267_v2 = vld [vmem:[#allocation63_spill] sm:$0xff]  ;;  %v23269_v28 = vld [vmem:[#allocation65_spill] sm:$0xff] }
 0x292   : > { %3176 = vmatprep.subr.bf16.mxu1 %v23247_v35  ;;  %v17635_v36 = vadd.f32 %v2642_v27, %v2590_v41  ;;  %3194 = vmatprep.mubr.bf16.mxu1 %v23139_v34  ;;  %v14681_v41 = vld [vmem:[%s15466_s21 + $0x100] ss:$20 sps:$4 sm:$0xff]   ;;  %v23268_v27 = vld [vmem:[#allocation64_spill] sm:$0xff]  ;;  %v23270_v35 = vld [vmem:[#allocation66_spill] sm:$0xff] }
 0x293   : > { %v2644_v32 = vpop.f32.mrf.mxu0 }
 0x294   : > { %v17638_v37 = vadd.f32 %v2644_v32, %v2592_v43  ;;  %3140 = vmatpush2.bf16.msra.mxu0 %v23248_v38  ;;  %v23253_v43 = vld [vmem:[#allocation47_spill] sm:$0xff]  ;;  %v23272_v38 = vld [vmem:[#allocation68_spill] sm:$0xff] }
 0x295   : > { %3177 = vmatpush1.bf16.msra.mxu1 %v23249_v6  ;;  %3304 = vmatprep.subr.bf16.mxu0 %v23250_v19  ;;  %v23271_v32 = vld [vmem:[#allocation67_spill] sm:$0xff]  ;;  %v23273_v6 = vld [vmem:[#allocation69_spill] sm:$0xff]  ;;  %v23274_v19 = vld [vmem:[#allocation70_spill] sm:$0xff] }
 0x296   : > { %3357 = vmatprep.subr.bf16.mxu1 %v23251_v42  ;;  %v23275_v42 = vld [vmem:[#allocation71_spill] sm:$0xff] }
 0x297   : > { %3142 = vmatmul.mubr.bf16.vlgmr.msra.gmra.mxu0 %v14680_v44  ;;  %v23276_v44 = vld [vmem:[#allocation72_spill] sm:$0xff] }
 0x298   : > { %11733 = vmatmul.mubr.msk.bf16.vlgmr.msra.gmra.mxu1 %vm1242_vm0, %v14681_v41  ;;  %3305 = vmatpush1.bf16.msra.mxu0 %v23252_v46  ;;  %v23277_v41 = vld [vmem:[#allocation73_spill] sm:$0xff]  ;;  %v23278_v46 = vld [vmem:[#allocation74_spill] sm:$0xff] }
 0x299   : > { %3358 = vmatpush1.bf16.msra.mxu1 %v23253_v43  ;;  %3306 = vmatprep.subr.bf16.mxu0 %v23254_v39  ;;  %v23279_v43 = vld [vmem:[#allocation75_spill] sm:$0xff]  ;;  %v23280_v39 = vld [vmem:[#allocation76_spill] sm:$0xff] }
 0x29a   : > { %3359 = vmatprep.subr.bf16.mxu1 %v23255_v48  ;;  %3151 = vmatprep.mubr.bf16.mxu0 %v14682_v49  ;;  %v23281_v48 = vld [vmem:[#allocation77_spill] sm:$0xff]  ;;  %v17690_v49 = vpop.f32.mrf.mxu1 }
 0x29b   : > { %3204 = vmatprep.mubr.bf16.mxu1 %v23139_v34  ;;  %23282 = vst [vmem:[#allocation25_spill] sm:$0xff] %v17690_v49 }
 0x29c   : > { %3307 = vmatpush1.bf16.msra.mxu0 %v23256_v50  ;;  %v23283_v50 = vld [vmem:[#allocation79_spill] sm:$0xff] }
 0x29d   : > { %3360 = vmatpush1.bf16.msra.mxu1 %v23257_v55  ;;  %3308 = vmatprep.subr.bf16.mxu0 %v23258_v56  ;;  %v23284_v55 = vld [vmem:[#allocation80_spill] sm:$0xff] }
 0x29e   : > { %3361 = vmatprep.subr.bf16.mxu1 %v23259_v59 }
 0x29f   : > { %3152 = vmatmul.mubr.bf16.gmra.mxu0 %v14683_v14  ;;  %v23285_v14 = vld [vmem:[#allocation81_spill] sm:$0xff] }
 0x2a0   : > { %11734 = vmatmul.mubr.msk.bf16.gmra.mxu1 %vm1242_vm0, %v14684_v62  ;;  %3309 = vmatpush1.bf16.msra.mxu0 %v23260_v21  ;;  %v23286_v62 = vld [vmem:[#allocation82_spill] sm:$0xff] }
 0x2a1   : > { %3362 = vmatpush1.bf16.msra.mxu1 %v23261_v53  ;;  %3310 = vmatprep.subr.bf16.mxu0 %v23262_v20  ;;  %v23287_v53 = vld [vmem:[#allocation83_spill] sm:$0xff]  ;;  %v23288_v20 = vld [vmem:[#allocation84_spill] sm:$0xff] }
 0x2a2   : > { %3363 = vmatprep.subr.bf16.mxu1 %v23263_v22  ;;  %3336 = vmatprep.mubr.bf16.mxu0 %v17658_v7 }
 0x2a3   : > { %3389 = vmatprep.mubr.bf16.mxu1 %v17661_v9 }
 0x2a4   : > { %3311 = vmatpush1.bf16.msra.mxu0 %v23264_v23 }
 0x2a5   : > { %3364 = vmatpush1.bf16.msra.mxu1 %v23265_v24  ;;  %3312 = vmatprep.subr.bf16.mxu0 %v23266_v63  ;;  %v23289_v63 = vld [vmem:[#allocation85_spill] sm:$0xff] }
 0x2a6   : > { %3365 = vmatprep.subr.bf16.mxu1 %v23267_v2  ;;  %v23290_v2 = vld [vmem:[#allocation86_spill] sm:$0xff] }
 0x2a8   : > { %3313 = vmatpush1.bf16.msra.mxu0 %v23268_v27 }
 0x2a9   : > { %3366 = vmatpush1.bf16.msra.mxu1 %v23269_v28  ;;  %3314 = vmatprep.subr.bf16.mxu0 %v23270_v35  ;;  %v23293_v28 = vld [vmem:[#allocation89_spill] sm:$0xff] }
 0x2aa   : > { %3367 = vmatprep.subr.bf16.mxu1 %v23271_v32 }
 0x2ac   : > { %3315 = vmatpush1.bf16.msra.mxu0 %v23272_v38  ;;  %v23294_v38 = vld [vmem:[#allocation90_spill] sm:$0xff] }
 0x2ad   : > { %3368 = vmatpush1.bf16.msra.mxu1 %v23273_v6  ;;  %3316 = vmatprep.subr.bf16.mxu0 %v23274_v19  ;;  %v23295_v6 = vld [vmem:[#allocation91_spill] sm:$0xff]  ;;  %v23296_v19 = vld [vmem:[#allocation92_spill] sm:$0xff] }
 0x2ae   : > { %3369 = vmatprep.subr.bf16.mxu1 %v23275_v42 }
 0x2b0   : > { %3317 = vmatpush1.bf16.msra.mxu0 %v23276_v44 }
 0x2b1   : > { %3370 = vmatpush1.bf16.msra.mxu1 %v23277_v41  ;;  %3318 = vmatprep.subr.bf16.mxu0 %v23278_v46  ;;  %v23298_v46 = vld [vmem:[#allocation94_spill] sm:$0xff] }
 0x2b2   : > { %3371 = vmatprep.subr.bf16.mxu1 %v23279_v43  ;;  %v23299_v43 = vld [vmem:[#allocation95_spill] sm:$0xff] }
 0x2b4   : > { %3319 = vmatpush1.bf16.msra.mxu0 %v23280_v39  ;;  %v17716_v39 = vpop.f32.mrf.mxu0 }
 0x2b5   : > { %3372 = vmatpush1.bf16.msra.mxu1 %v23281_v48  ;;  %3320 = vmatprep.subr.bf16.mxu0 %v23283_v50  ;;  %23300 = vst [vmem:[#allocation28_spill] sm:$0xff] %v17716_v39  ;;  %v23302_v48 = vld [vmem:[#allocation98_spill] sm:$0xff]  ;;  %v23303_v50 = vld [vmem:[#allocation99_spill] sm:$0xff] }
 0x2b6   : > { %3373 = vmatprep.subr.bf16.mxu1 %v23284_v55 }
 0x2b8   : > { %v2683_v56 = vpop.f32.mrf.mxu1  ;;  %3321 = vmatpush2.bf16.msra.mxu0 %v23285_v14 }
 0x2b9   : > { %v2684_v59 = vadd.f32 %v2683_v56, %v17611_v51  ;;  %3374 = vmatpush2.bf16.msra.mxu1 %v23286_v62  ;;  %3322 = vmatprep.subr.bf16.mxu0 %v23287_v53  ;;  %v23292_v51 = vld [vmem:[#allocation88_spill] sm:$0xff]  ;;  %v23306_v53 = vld [vmem:[#allocation102_spill] sm:$0xff] }
 0x2ba   : > { %v2685_v21 = vpop.f32.mrf.mxu1  ;;  %3375 = vmatprep.subr.bf16.mxu1 %v23288_v20  ;;  %v23304_v62 = vld [vmem:[#allocation100_spill] sm:$0xff]  ;;  %v23307_v20 = vld [vmem:[#allocation103_spill] sm:$0xff] }
 0x2bb   : > { %v2686_v22 = vadd.f32 %v2685_v21, %v17617_v13 }
 0x2bc   : > { %v2687_v23 = vpop.f32.mrf.mxu1  ;;  %3323 = vmatpush2.bf16.msra.mxu0 %v23289_v63 }
 0x2bd   : > { %v2688_v24 = vadd.f32 %v2687_v23, %v17620_v12  ;;  %3376 = vmatpush2.bf16.msra.mxu1 %v23290_v2  ;;  %3324 = vmatprep.subr.bf16.mxu0 %v23292_v51  ;;  %v23297_v12 = vld [vmem:[#allocation93_spill] sm:$0xff] }
 0x2be   : > { %v17703_v27 = vpop.f32.mrf.mxu1  ;;  %3377 = vmatprep.subr.bf16.mxu1 %v23293_v28 }
 0x2bf   : > { %23291 = vst [vmem:[#allocation27_spill] sm:$0xff] %v17703_v27  ;;  %v18037_v27 = vld [vmem:[%s22831_s1 + $0x1e0] ss:$8 sps:$4 sm:$0xff]  }
 0x2c0   : > { %v2693_v35 = vpop.f32.mrf.mxu1  ;;  %3325 = vmatpush2.bf16.msra.mxu0 %v23294_v38  ;;  %v23309_v38 = vld [vmem:[#allocation105_spill] sm:$0xff] }
 0x2c1   : > { %v2694_v32 = vadd.f32 %v2693_v35, %v17629_v26  ;;  %3378 = vmatpush2.bf16.msra.mxu1 %v23295_v6  ;;  %3326 = vmatprep.subr.bf16.mxu0 %v23296_v19  ;;  %v23313_v19 = vld [vmem:[#allocation109_spill] sm:$0xff] }
 0x2c2   : > { %v2695_v13 = vpop.f32.mrf.mxu1  ;;  %3379 = vmatprep.subr.bf16.mxu1 %v23297_v12  ;;  %v23314_v12 = vld [vmem:[#allocation110_spill] sm:$0xff] }
 0x2c3   : > { %v2696_v42 = vadd.f32 %v2695_v13, %v17635_v36  ;;  %v23305_v36 = vld [vmem:[#allocation101_spill] sm:$0xff] }
 0x2c4   : > { %v2697_v44 = vpop.f32.mrf.mxu1  ;;  %3327 = vmatpush2.bf16.msra.mxu0 %v23298_v46 }
 0x2c5   : > { %v2698_v41 = vadd.f32 %v2697_v44, %v17638_v37  ;;  %3380 = vmatpush2.bf16.msra.mxu1 %v23299_v43  ;;  %3328 = vmatprep.subr.bf16.mxu0 %v23302_v48 }
 0x2c6   : > { %v17718_v26 = vpop.f32.mrf.mxu1  ;;  %3381 = vmatprep.subr.bf16.mxu1 %v23303_v50  ;;  %v23315_v50 = vld [vmem:[#allocation111_spill] sm:$0xff] }
 0x2c7   : > { %23301 = vst [vmem:[#allocation29_spill] sm:$0xff] %v17718_v26  ;;  %v2736_v55 = vpop.f32.mrf.mxu0 }
 0x2c8   : > { %v2789_v56 = vpop.f32.mrf.mxu1  ;;  %v2737_v14 = vadd.f32 %v2736_v55, %v2684_v59  ;;  %3329 = vmatpush2.bf16.msra.mxu0 %v23304_v62  ;;  %v23310_v59 = vld [vmem:[#allocation106_spill] sm:$0xff]  ;;  %v23316_v55 = vld [vmem:[#allocation112_spill] sm:$0xff]  ;;  %v23317_v62 = vld [vmem:[#allocation113_spill] sm:$0xff] }
 0x2c9   : > { %3382 = vmatpush2.bf16.msra.mxu1 %v23305_v36  ;;  %v2738_v37 = vpop.f32.mrf.mxu0  ;;  %3330 = vmatprep.subr.bf16.mxu0 %v23306_v53  ;;  %v23318_v36 = vld [vmem:[#allocation114_spill] sm:$0xff] }
 0x2ca   : > { %v2791_v21 = vpop.f32.mrf.mxu1  ;;  %3383 = vmatprep.subr.bf16.mxu1 %v23307_v20  ;;  %v2790_v23 = vadd.f32 %v2789_v56, %v2737_v14  ;;  %v2739_v63 = vadd.f32 %v2738_v37, %v2686_v22 }
 0x2cb   : > { %v2740_v2 = vpop.f32.mrf.mxu0 }
 0x2cc   : > { %v2793_v51 = vpop.f32.mrf.mxu1  ;;  %v17726_v28 = vadd.f32 %v2791_v21, %v2739_v63  ;;  %v2741_v35 = vadd.f32 %v2740_v2, %v2688_v24  ;;  %3331 = vmatpush2.bf16.msra.mxu0 %v23309_v38  ;;  %v2808_v44 = vadd.f32 %v2790_v23, %v16443_v45  ;;  %v17743_v2 = vld [vmem:[%s15466_s21 + $0x190] ss:$20 sps:$4 sm:$0xff]  }
 0x2cd   : > { %3384 = vmatpush2.bf16.msra.mxu1 %v23310_v59  ;;  %v17730_v6 = vpop.f32.mrf.mxu0  ;;  %3332 = vmatprep.subr.bf16.mxu0 %v23313_v19  ;;  %23319 = vst [vmem:[#allocation33_spill] sm:$0xff] %v17743_v2  ;;  %v17758_v19 = vld [vmem:[%s15466_s21 + $0x1bc] ss:$20 sps:$4 sm:$0xff]  }
 0x2ce   : > { %23308 = vst [vmem:[#allocation30_spill] sm:$0xff] %v17726_v28  ;;  %23311 = vst [vmem:[#allocation31_spill] sm:$0xff] %v17730_v6  ;;  %v17732_v13 = vpop.f32.mrf.mxu1  ;;  %3385 = vmatprep.subr.bf16.mxu1 %v23314_v12  ;;  %v2794_v22 = vadd.f32 %v2793_v51, %v2741_v35  ;;  %v2816_v37 = vmax.f32 %v2808_v44, 0.0  ;;  %v17761_v12 = vld [vmem:[%s15466_s21 + $0x1c4] ss:$20 sps:$4 sm:$0xff]  }
 0x2cf   : > { %23312 = vst [vmem:[#allocation32_spill] sm:$0xff] %v17732_v13  ;;  %v2746_v46 = vpop.f32.mrf.mxu0  ;;  %23323 = vst [vmem:[#allocation38_spill] sm:$0xff] %v17758_v19  ;;  %v18031_v6 = vld [vmem:[%s22831_s1 + $0xa0] ss:$8 sps:$4 sm:$0xff]  }
 0x2d0   : > { %v2799_v43 = vpop.f32.mrf.mxu1  ;;  %v2810_v24 = vadd.f32 %v2794_v22, %v16443_v45  ;;  %v2747_v48 = vadd.f32 %v2746_v46, %v2694_v32  ;;  %3333 = vmatpush2.bf16.msra.mxu0 %v23315_v50  ;;  %v17746_v32 = vld [vmem:[%s15466_s21 + $0x198] ss:$20 sps:$4 sm:$0xff]   ;;  %23324 = vst [vmem:[#allocation39_spill] sm:$0xff] %v17761_v12  ;;  %v23334_v50 = vld [vmem:[#allocation53_spill] sm:$0xff] }
 0x2d1   : > { %3386 = vmatpush2.bf16.msra.mxu1 %v23316_v55  ;;  %v2748_v56 = vpop.f32.mrf.mxu0  ;;  %3334 = vmatprep.subr.bf16.mxu0 %v23317_v62  ;;  %23320 = vst [vmem:[#allocation34_spill] sm:$0xff] %v17746_v32  ;;  %v17850_v22 = vld [vmem:[%s22831_s1 + $0x154] ss:$8 sps:$4 sm:$0xff]   ;;  %v17858_v46 = vld [vmem:[%s22831_s1 + $0x10] ss:$8 sps:$4 sm:$0xff]  }
 0x2d2   : > { %v2801_v14 = vpop.f32.mrf.mxu1  ;;  %3387 = vmatprep.subr.bf16.mxu1 %v23318_v36  ;;  %v2818_v21 = vmax.f32 %v2810_v24, 0.0  ;;  %v2749_v53 = vadd.f32 %v2748_v56, %v2696_v42  ;;  %v2800_v20 = vadd.f32 %v2799_v43, %v2747_v48  ;;  %v17864_v43 = vld [vmem:[%s22831_s1 + $0x150] ss:$8 sps:$4 sm:$0xff]   ;;  %v17870_v24 = vld [vmem:[%s22831_s1 + $0x4] ss:$8 sps:$4 sm:$0xff]  }
 0x2d3   : > { %v2750_v23 = vpop.f32.mrf.mxu0  ;;  %v17876_v48 = vld [vmem:[%s22831_s1 + $0x144] ss:$8 sps:$4 sm:$0xff]   ;;  %v17883_v55 = vld [vmem:[%s22831_s1] ss:$8 sps:$4 sm:$0xff]   ;;  %v17901_v62 = vld [vmem:[%s22831_s1 + $0x134] ss:$8 sps:$4 sm:$0xff]  }
 0x2d4   : > { %v2803_v63 = vpop.f32.mrf.mxu1  ;;  %v17748_v51 = vpack.c.bf16 %v2818_v21, %v2816_v37  ;;  %v2751_v35 = vadd.f32 %v2750_v23, %v2698_v41  ;;  %3335 = vmatpush2.bf16.msra.mxu0 %v17397_v10  ;;  %v17752_v38 = vadd.f32 %v2801_v14, %v2749_v53  ;;  %v2812_v42 = vadd.f32 %v2800_v20, %v16443_v45  ;;  %v17776_v41 = vld [vmem:[%s15466_s21 + $0x1c0] ss:$20 sps:$4 sm:$0xff]  }
 0x2d5   : > { %3388 = vmatpush2.bf16.msra.mxu1 %v17403_v52  ;;  %3418 = vmatprep.subr.bf16.mxu0 %v17411_v33  ;;  %23326 = vst [vmem:[#allocation41_spill] sm:$0xff] %v17776_v41  ;;  %v17889_v56 = vld [vmem:[%s22831_s1 + $0x140] ss:$8 sps:$4 sm:$0xff]   ;;  %v17895_v14 = vld [vmem:[%s22831_s1 + $0xf4] ss:$8 sps:$4 sm:$0xff]  }
 0x2d6   : > { %23321 = vst [vmem:[#allocation36_spill] sm:$0xff] %v17748_v51  ;;  %23322 = vst [vmem:[#allocation37_spill] sm:$0xff] %v17752_v38  ;;  %3463 = vmatprep.subr.bf16.mxu1 %v17417_v15  ;;  %v2804_v59 = vadd.f32 %v2803_v63, %v2751_v35  ;;  %v2820_v52 = vmax.f32 %v2812_v42, 0.0  ;;  %v17773_v15 = vld [vmem:[%s15466_s21 + $0x1b8] ss:$20 sps:$4 sm:$0xff]  }
 0x2d7   : > { %3337 = vmatmul.mubr.bf16.vlgmr.msra.gmra.mxu0 %v17743_v2  ;;  %23325 = vst [vmem:[#allocation40_spill] sm:$0xff] %v17773_v15  ;;  %v17907_v36 = vld [vmem:[%s22831_s1 + $0xf0] ss:$8 sps:$4 sm:$0xff]   ;;  %v17919_v21 = vld [vmem:[%s22831_s1 + $0xe4] ss:$8 sps:$4 sm:$0xff]  }
 0x2d8   : > { %3390 = vmatmul.mubr.bf16.vlgmr.msra.gmra.mxu1 %v17746_v32  ;;  %v2814_v10 = vadd.f32 %v2804_v59, %v16443_v45  ;;  %3419 = vmatpush1.bf16.msra.mxu0 %v17433_v1  ;;  %v23328_v1 = vld [vmem:[#allocation124_spill] sm:$0xff]  ;;  %v17913_v37 = vld [vmem:[%s22831_s1 + $0x130] ss:$8 sps:$4 sm:$0xff]   ;;  %v17943_v63 = vld [vmem:[%s22831_s1 + $0xd4] ss:$8 sps:$4 sm:$0xff]  }
 0x2d9   : > { %3464 = vmatpush1.bf16.msra.mxu1 %v17439_v29  ;;  %3420 = vmatprep.subr.bf16.mxu0 %v17445_v61  ;;  %v23329_v29 = vld [vmem:[#allocation125_spill] sm:$0xff]  ;;  %v17925_v53 = vld [vmem:[%s22831_s1 + $0x124] ss:$8 sps:$4 sm:$0xff]   ;;  %v17931_v20 = vld [vmem:[%s22831_s1 + $0xe0] ss:$8 sps:$4 sm:$0xff]  }
 0x2da   : > { %3465 = vmatprep.subr.bf16.mxu1 %v17451_v8  ;;  %v2822_v33 = vmax.f32 %v2814_v10, 0.0  ;;  %3346 = vmatprep.mubr.bf16.mxu0 %v17758_v19  ;;  %v17793_v61 = vld [vmem:[%s15466_s21 + $0x1a0] ss:$20 sps:$4 sm:$0xff]   ;;  %v23332_v8 = vld [vmem:[#allocation126_spill] sm:$0xff] }
 0x2db   : > { %3399 = vmatprep.mubr.bf16.mxu1 %v17761_v12  ;;  %23331 = vst [vmem:[#allocation43_spill] sm:$0xff] %v17793_v61  ;;  %v17937_v23 = vld [vmem:[%s22831_s1 + $0x120] ss:$8 sps:$4 sm:$0xff]   ;;  %v17949_v35 = vld [vmem:[%s22831_s1 + $0x114] ss:$8 sps:$4 sm:$0xff]  }
 0x2dc   : > { %v17778_v44 = vpack.c.bf16 %v2822_v33, %v2820_v52  ;;  %3421 = vmatpush1.bf16.msra.mxu0 %v17467_v25  ;;  %v23330_v25 = vld [vmem:[#allocation52_spill] sm:$0xff]  ;;  %v17955_v42 = vld [vmem:[%s22831_s1 + $0xd0] ss:$8 sps:$4 sm:$0xff]  }
 0x2dd   : > { %3466 = vmatpush1.bf16.msra.mxu1 %v17473_v3  ;;  %3422 = vmatprep.subr.bf16.mxu0 %v17479_v58  ;;  %v17827_v3 = vld [vmem:[%s15466_s21 + $0x1c8] ss:$20 sps:$4 sm:$0xff]  }
 0x2de   : > { %23327 = vst [vmem:[#allocation42_spill] sm:$0xff] %v17778_v44  ;;  %3467 = vmatprep.subr.bf16.mxu1 %v17485_v54  ;;  %23333 = vst [vmem:[#allocation44_spill] sm:$0xff] %v17827_v3  ;;  %v17832_v58 = vld [vmem:[%s22831_s1 + $0x20] ss:$8 sps:$4 sm:$0xff]   ;;  %v17961_v59 = vld [vmem:[%s22831_s1 + $0x110] ss:$8 sps:$4 sm:$0xff]  }
 0x2df   : > { %3347 = vmatmul.mubr.bf16.gmra.mxu0 %v17773_v15  ;;  %v17838_v54 = vld [vmem:[%s22831_s1 + $0x160] ss:$8 sps:$4 sm:$0xff]   ;;  %v17967_v10 = vld [vmem:[%s22831_s1 + $0xc4] ss:$8 sps:$4 sm:$0xff]  }
 0x2e0   : > { %3400 = vmatmul.mubr.bf16.gmra.mxu1 %v17776_v41  ;;  %3423 = vmatpush1.bf16.msra.mxu0 %v17493_v5  ;;  %v17844_v5 = vld [vmem:[%s22831_s1 + $0x14] ss:$8 sps:$4 sm:$0xff]   ;;  %v17973_v52 = vld [vmem:[%s22831_s1 + $0x104] ss:$8 sps:$4 sm:$0xff]   ;;  %v17979_v33 = vld [vmem:[%s22831_s1 + $0xc0] ss:$8 sps:$4 sm:$0xff]  }
 0x2e1   : > { %3468 = vmatpush1.bf16.msra.mxu1 %v17499_v0  ;;  %3424 = vmatprep.subr.bf16.mxu0 %v23328_v1  ;;  %v17804_v0 = vld [vmem:[%s22831_s1 + $0x30] ss:$8 sps:$4 sm:$0xff]   ;;  %v17985_v1 = vld [vmem:[%s22831_s1 + $0x100] ss:$8 sps:$4 sm:$0xff]  }
 0x2e2   : > { %3469 = vmatprep.subr.bf16.mxu1 %v23329_v29  ;;  %3442 = vmatprep.mubr.bf16.mxu0 %v23139_v34  ;;  %v17988_v29 = vpop.f32.mrf.mxu0  ;;  %v18083_v32 = vld [vmem:[%s22831_s1 + $0x80] ss:$8 sps:$4 sm:$0xff]  }
 0x2e3   : > { %3495 = vmatprep.mubr.bf16.mxu1 %v23330_v25  ;;  %23335 = vst [vmem:[#allocation45_spill] sm:$0xff] %v17988_v29  ;;  %v17990_v25 = vpop.f32.mrf.mxu1  ;;  %v18013_v29 = vld [vmem:[%s22831_s1 + $0x1f0] ss:$8 sps:$4 sm:$0xff]   ;;  %23342 = vst [vmem:[#allocation54_spill] sm:$0xff] %v18083_v32  ;;  %v18089_v15 = vld [vmem:[%s22831_s1 + $0x1c0] ss:$8 sps:$4 sm:$0xff]  }
 0x2e4   : > { %3425 = vmatpush1.bf16.msra.mxu0 %v17522_v4  ;;  %v17810_v4 = vld [vmem:[%s22831_s1 + $0x170] ss:$8 sps:$4 sm:$0xff]   ;;  %23336 = vst [vmem:[#allocation46_spill] sm:$0xff] %v17990_v25  ;;  %23343 = vst [vmem:[#allocation55_spill] sm:$0xff] %v18089_v15 }
 0x2e5   : > { %3470 = vmatpush1.bf16.msra.mxu1 %v17528_v17  ;;  %3516 = vmatprep.subr.bf16.mxu0 %v17540_v40  ;;  %v17816_v40 = vld [vmem:[%s22831_s1 + $0x24] ss:$8 sps:$4 sm:$0xff]   ;;  %v18007_v25 = vld [vmem:[%s22831_s1 + $0xb0] ss:$8 sps:$4 sm:$0xff]  }
 0x2e6   : > { %3471 = vmatprep.subr.bf16.mxu1 %v23332_v8  ;;  %v17822_v17 = vld [vmem:[%s22831_s1 + $0x164] ss:$8 sps:$4 sm:$0xff]   ;;  %v17995_v8 = vld [vmem:[%s22831_s1 + $0xb4] ss:$8 sps:$4 sm:$0xff]  }
 0x2e7   : > { %11757 = vmatmul.mubr.msk.bf16.vlgmr.msra.gmra.mxu0 %vm1242_vm0, %v17793_v61 }
 0x2e8   : > { %3517 = vmatpush1.bf16.msra.mxu0 %v17810_v4  ;;  %3452 = vmatprep.mubr.bf16.mxu0 %v23139_v34 }
 0x2e9   : > { %3472 = vmatpush1.bf16.msra.mxu1 %v17804_v0  ;;  %3518 = vmatprep.subr.bf16.mxu0 %v17822_v17 }
 0x2ea   : > { %3473 = vmatprep.subr.bf16.mxu1 %v17816_v40 }
 0x2ec   : > { %3519 = vmatpush1.bf16.msra.mxu0 %v17838_v54 }
 0x2ed   : > { %3474 = vmatpush1.bf16.msra.mxu1 %v17832_v58  ;;  %3520 = vmatprep.subr.bf16.mxu0 %v17850_v22 }
 0x2ee   : > { %3475 = vmatprep.subr.bf16.mxu1 %v17844_v5 }
 0x2ef   : > { %11758 = vmatmul.mubr.msk.bf16.gmra.mxu0 %vm1242_vm0, %v17827_v3 }
 0x2f0   : > { %3521 = vmatpush1.bf16.msra.mxu0 %v17864_v43  ;;  %3548 = vmatprep.mubr.bf16.mxu0 %v23334_v50  ;;  %v18001_v50 = vld [vmem:[%s22831_s1 + $0x1f4] ss:$8 sps:$4 sm:$0xff]  }
 0x2f1   : > { %3476 = vmatpush1.bf16.msra.mxu1 %v17858_v46  ;;  %3522 = vmatprep.subr.bf16.mxu0 %v17876_v48 }
 0x2f2   : > { %3477 = vmatprep.subr.bf16.mxu1 %v17870_v24 }
 0x2f4   : > { %3523 = vmatpush1.bf16.msra.mxu0 %v17889_v56 }
 0x2f5   : > { %3478 = vmatpush1.bf16.msra.mxu1 %v17883_v55  ;;  %3524 = vmatprep.subr.bf16.mxu0 %v17901_v62 }
 0x2f6   : > { %3479 = vmatprep.subr.bf16.mxu1 %v17895_v14 }
 0x2f8   : > { %3525 = vmatpush1.bf16.msra.mxu0 %v17913_v37 }
 0x2f9   : > { %3480 = vmatpush2.bf16.msra.mxu1 %v17907_v36  ;;  %3526 = vmatprep.subr.bf16.mxu0 %v17925_v53 }
 0x2fa   : > { %3481 = vmatprep.subr.bf16.mxu1 %v17919_v21 }
 0x2fc   : > { %3527 = vmatpush1.bf16.msra.mxu0 %v17937_v23 }
 0x2fd   : > { %3482 = vmatpush2.bf16.msra.mxu1 %v17931_v20  ;;  %3528 = vmatprep.subr.bf16.mxu0 %v17949_v35 }
 0x2fe   : > { %3483 = vmatprep.subr.bf16.mxu1 %v17943_v63 }
 0x300   : > { %3529 = vmatpush1.bf16.msra.mxu0 %v17961_v59 }
 0x301   : > { %3484 = vmatpush2.bf16.msra.mxu1 %v17955_v42  ;;  %3530 = vmatprep.subr.bf16.mxu0 %v17973_v52 }
 0x302   : > { %3485 = vmatprep.subr.bf16.mxu1 %v17967_v10 }
 0x304   : > { %3531 = vmatpush1.bf16.msra.mxu0 %v17985_v1 }
 0x305   : > { %3486 = vmatpush2.bf16.msra.mxu1 %v17979_v33  ;;  %3532 = vmatprep.subr.bf16.mxu0 %v18001_v50 }
 0x306   : > { %3487 = vmatprep.subr.bf16.mxu1 %v17995_v8 }
 0x307   : > { %v2931_v44 = vpop.f32.mrf.mxu0 }
 0x308   : > { %v2984_v51 = vpop.f32.mrf.mxu1  ;;  %3533 = vmatpush2.bf16.msra.mxu0 %v18013_v29 }
 0x309   : > { %v2985_v38 = vadd.f32 %v2984_v51, %v2931_v44  ;;  %3488 = vmatpush2.bf16.msra.mxu1 %v18007_v25  ;;  %v2933_v26 = vpop.f32.mrf.mxu0  ;;  %v18019_v51 = vld [vmem:[%s22831_s1 + $0xa4] ss:$8 sps:$4 sm:$0xff]  }
 0x30a   : > { %v2986_v39 = vpop.f32.mrf.mxu1  ;;  %3489 = vmatprep.subr.bf16.mxu1 %v18019_v51  ;;  %v18025_v44 = vld [vmem:[%s22831_s1 + $0x1e4] ss:$8 sps:$4 sm:$0xff]  }
 0x30b   : > { %3534 = vmatprep.subr.bf16.mxu0 %v18025_v44  ;;  %v2987_v49 = vadd.f32 %v2986_v39, %v2933_v26  ;;  %v2935_v47 = vpop.f32.mrf.mxu0  ;;  %v18053_v26 = vld [vmem:[%s22831_s1 + $0x1d4] ss:$8 sps:$4 sm:$0xff]  }
 0x30c   : > { %v2988_v28 = vpop.f32.mrf.mxu1  ;;  %3535 = vmatpush2.bf16.msra.mxu0 %v18037_v27 }
 0x30d   : > { %v2989_v13 = vadd.f32 %v2988_v28, %v2935_v47  ;;  %3490 = vmatpush2.bf16.msra.mxu1 %v18031_v6  ;;  %v18040_v57 = vpop.f32.mrf.mxu0  ;;  %v18047_v47 = vld [vmem:[%s22831_s1 + $0x94] ss:$8 sps:$4 sm:$0xff]   ;;  %3536 = vmatprep.subr.bf16.mxu0 %v18053_v26 }
 0x30e   : > { %23337 = vst [vmem:[#allocation47_spill] sm:$0xff] %v18040_v57  ;;  %v18042_v39 = vpop.f32.mrf.mxu1  ;;  %3491 = vmatprep.subr.bf16.mxu1 %v18047_v47  ;;  %v18065_v57 = vld [vmem:[%s22831_s1 + $0x1d0] ss:$8 sps:$4 sm:$0xff]  }
 0x30f   : > { %23338 = vst [vmem:[#allocation48_spill] sm:$0xff] %v18042_v39  ;;  %v2941_v28 = vpop.f32.mrf.mxu0  ;;  %v18059_v39 = vld [vmem:[%s22831_s1 + $0x90] ss:$8 sps:$4 sm:$0xff]   ;;  %23339 = vst [vmem:[#allocation49_spill] sm:$0xff] %v18065_v57 }
 0x310   : > { %v2994_v16 = vpop.f32.mrf.mxu1  ;;  %3537 = vmatpush2.bf16.msra.mxu0 %v18065_v57 }
 0x311   : > { %v2995_v11 = vadd.f32 %v2994_v16, %v2941_v28  ;;  %3492 = vmatpush2.bf16.msra.mxu1 %v18059_v39  ;;  %v2943_v31 = vpop.f32.mrf.mxu0  ;;  %v18071_v16 = vld [vmem:[%s22831_s1 + $0x84] ss:$8 sps:$4 sm:$0xff]  }
 0x312   : > { %v2996_v18 = vpop.f32.mrf.mxu1  ;;  %23340 = vst [vmem:[#allocation50_spill] sm:$0xff] %v18071_v16  ;;  %3493 = vmatprep.subr.bf16.mxu1 %v18071_v16  ;;  %v18077_v28 = vld [vmem:[%s22831_s1 + $0x1c4] ss:$8 sps:$4 sm:$0xff]  }
 0x313   : > { %23341 = vst [vmem:[#allocation51_spill] sm:$0xff] %v18077_v28  ;;  %3538 = vmatprep.subr.bf16.mxu0 %v18077_v28  ;;  %v2997_v3 = vadd.f32 %v2996_v18, %v2943_v31  ;;  %v2945_v41 = vpop.f32.mrf.mxu0  ;;  %v18097_v18 = vld [vmem:[%s22831_s1 + $0x1b4] ss:$8 sps:$4 sm:$0xff]  }
 0x314   : > { %v2998_v12 = vpop.f32.mrf.mxu1  ;;  %3539 = vmatpush2.bf16.msra.mxu0 %v18089_v15  ;;  %23345 = vst [vmem:[#allocation57_spill] sm:$0xff] %v18097_v18  ;;  %v18103_v31 = vld [vmem:[%s22831_s1 + $0x234] ss:$8 sps:$4 sm:$0xff]  }
 0x315   : > { %v2999_v61 = vadd.f32 %v2998_v12, %v2945_v41  ;;  %3494 = vmatpush2.bf16.msra.mxu1 %v18083_v32  ;;  %v18092_v19 = vpop.f32.mrf.mxu0  ;;  %3540 = vmatprep.subr.bf16.mxu0 %v18097_v18  ;;  %23346 = vst [vmem:[#allocation58_spill] sm:$0xff] %v18103_v31  ;;  %v23347_v41 = vld [vmem:[#allocation115_spill] sm:$0xff]  ;;  %v18118_v18 = vld [vmem:[%s22831_s1 + $0x230] ss:$8 sps:$4 sm:$0xff]  }
 0x316   : > { %23344 = vst [vmem:[#allocation56_spill] sm:$0xff] %v18092_v19  ;;  %3577 = vmatprep.subr.bf16.mxu1 %v18103_v31  ;;  %v18112_v19 = vld [vmem:[%s22831_s1 + $0x1b0] ss:$8 sps:$4 sm:$0xff]   ;;  %23349 = vst [vmem:[#allocation60_spill] sm:$0xff] %v18118_v18  ;;  %v18141_v32 = vld [vmem:[%s22831_s1 + $0x1a0] ss:$8 sps:$4 sm:$0xff]  }
 0x317   : > { %v3037_v12 = vpop.f32.mrf.mxu0  ;;  %23348 = vst [vmem:[#allocation59_spill] sm:$0xff] %v18112_v19  ;;  %23353 = vst [vmem:[#allocation63_spill] sm:$0xff] %v18141_v32  ;;  %v18625_v28 = vld [vmem:[%s15466_s21 + $0x1e0] ss:$20 sps:$4 sm:$0xff]   ;;  %v18628_v16 = vld [vmem:[%s15466_s21 + $0x1e8] ss:$20 sps:$4 sm:$0xff]  }
 0x318   : > { %3496 = vmatmul.mubr.bf16.vlgmr.msra.gmra.mxu1 %v23347_v41  ;;  %v18107_v2 = vadd.f32 %v3037_v12, %v2985_v38  ;;  %3541 = vmatpush2.bf16.msra.mxu0 %v18112_v19  ;;  %v18124_v38 = vld [vmem:[%s22831_s1 + $0x1a4] ss:$8 sps:$4 sm:$0xff]   ;;  %23441 = vst [vmem:[#allocation159_spill] sm:$0xff] %v18625_v28  ;;  %23442 = vst [vmem:[#allocation160_spill] sm:$0xff] %v18628_v16 }
 0x319   : > { %3578 = vmatpush1.bf16.msra.mxu1 %v18118_v18  ;;  %v3039_v31 = vpop.f32.mrf.mxu0  ;;  %23350 = vst [vmem:[#allocation61_spill] sm:$0xff] %v18124_v38  ;;  %3542 = vmatprep.subr.bf16.mxu0 %v18124_v38  ;;  %v18130_v12 = vld [vmem:[%s22831_s1 + $0x224] ss:$8 sps:$4 sm:$0xff]   ;;  %v18147_v38 = vld [vmem:[%s22831_s1 + $0x220] ss:$8 sps:$4 sm:$0xff]  }
 0x31a   : > { %23351 = vst [vmem:[#allocation62_spill] sm:$0xff] %v18130_v12  ;;  %3579 = vmatprep.subr.bf16.mxu1 %v18130_v12  ;;  %v18133_v41 = vadd.f32 %v3039_v31, %v2987_v49  ;;  %v23352_v19 = vld [vmem:[#allocation119_spill] sm:$0xff]  ;;  %23354 = vst [vmem:[#allocation64_spill] sm:$0xff] %v18147_v38  ;;  %v23358_v31 = vld [vmem:[#allocation121_spill] sm:$0xff] }
 0x31b   : > { %3505 = vmatprep.mubr.bf16.mxu1 %v23352_v19  ;;  %v3041_v18 = vpop.f32.mrf.mxu0  ;;  %v18161_v19 = vld [vmem:[%s22831_s1 + $0x214] ss:$8 sps:$4 sm:$0xff]  }
 0x31c   : > { %v18136_v15 = vadd.f32 %v3041_v18, %v2989_v13  ;;  %3543 = vmatpush2.bf16.msra.mxu0 %v18141_v32  ;;  %v18155_v13 = vld [vmem:[%s22831_s1 + $0x194] ss:$8 sps:$4 sm:$0xff]   ;;  %23357 = vst [vmem:[#allocation67_spill] sm:$0xff] %v18161_v19  ;;  %v18199_v32 = vld [vmem:[%s22831_s1 + $0x180] ss:$8 sps:$4 sm:$0xff]  }
 0x31d   : > { %3580 = vmatpush1.bf16.msra.mxu1 %v18147_v38  ;;  %v18150_v49 = vpop.f32.mrf.mxu0  ;;  %23356 = vst [vmem:[#allocation66_spill] sm:$0xff] %v18155_v13  ;;  %3544 = vmatprep.subr.bf16.mxu0 %v18155_v13  ;;  %v18176_v13 = vld [vmem:[%s22831_s1 + $0x210] ss:$8 sps:$4 sm:$0xff]   ;;  %23363 = vst [vmem:[#allocation72_spill] sm:$0xff] %v18199_v32 }
 0x31e   : > { %23355 = vst [vmem:[#allocation65_spill] sm:$0xff] %v18150_v49  ;;  %3581 = vmatprep.subr.bf16.mxu1 %v18161_v19  ;;  %v18170_v49 = vld [vmem:[%s22831_s1 + $0x190] ss:$8 sps:$4 sm:$0xff]   ;;  %23360 = vst [vmem:[#allocation69_spill] sm:$0xff] %v18176_v13 }
 0x31f   : > { %v3047_v18 = vpop.f32.mrf.mxu0  ;;  %23359 = vst [vmem:[#allocation68_spill] sm:$0xff] %v18170_v49 }
 0x320   : > { %3506 = vmatmul.mubr.bf16.gmra.mxu1 %v23358_v31  ;;  %v18165_v38 = vadd.f32 %v3047_v18, %v2995_v11  ;;  %3545 = vmatpush2.bf16.msra.mxu0 %v18170_v49  ;;  %v18182_v11 = vld [vmem:[%s22831_s1 + $0x184] ss:$8 sps:$4 sm:$0xff]  }
 0x321   : > { %3582 = vmatpush1.bf16.msra.mxu1 %v18176_v13  ;;  %v3049_v19 = vpop.f32.mrf.mxu0  ;;  %23361 = vst [vmem:[#allocation70_spill] sm:$0xff] %v18182_v11  ;;  %3546 = vmatprep.subr.bf16.mxu0 %v18182_v11  ;;  %v18188_v18 = vld [vmem:[%s22831_s1 + $0x204] ss:$8 sps:$4 sm:$0xff]   ;;  %v18205_v11 = vld [vmem:[%s22831_s1 + $0x200] ss:$8 sps:$4 sm:$0xff]  }
 0x322   : > { %23362 = vst [vmem:[#allocation71_spill] sm:$0xff] %v18188_v18  ;;  %3583 = vmatprep.subr.bf16.mxu1 %v18188_v18  ;;  %v18191_v31 = vadd.f32 %v3049_v19, %v2997_v3  ;;  %3601 = vmatprep.mubr.bf16.mxu1 %v23139_v34  ;;  %23364 = vst [vmem:[#allocation73_spill] sm:$0xff] %v18205_v11  ;;  %v18211_v3 = vld [vmem:[%s22832_s2 + $0x74] ss:$8 sps:$4 sm:$0xff]   ;;  %v18226_v19 = vld [vmem:[%s22832_s2 + $0x70] ss:$8 sps:$4 sm:$0xff]  }
 0x323   : > { %v3051_v13 = vpop.f32.mrf.mxu0  ;;  %23365 = vst [vmem:[#allocation74_spill] sm:$0xff] %v18211_v3  ;;  %23368 = vst [vmem:[#allocation76_spill] sm:$0xff] %v18226_v19  ;;  %v18603_v18 = vld [vmem:[%s22832_s2 + $0x90] ss:$8 sps:$4 sm:$0xff]  }
 0x324   : > { %v18194_v49 = vadd.f32 %v3051_v13, %v2999_v61  ;;  %3547 = vmatpush2.bf16.msra.mxu0 %v18199_v32  ;;  %v18217_v61 = vld [vmem:[%s22832_s2 + $0x174] ss:$8 sps:$4 sm:$0xff]   ;;  %v23367_v13 = vld [vmem:[#allocation116_spill] sm:$0xff]  ;;  %23437 = vst [vmem:[#allocation155_spill] sm:$0xff] %v18603_v18 }
 0x325   : > { %3584 = vmatpush1.bf16.msra.mxu1 %v18205_v11  ;;  %3711 = vmatprep.subr.bf16.mxu0 %v18211_v3  ;;  %23366 = vst [vmem:[#allocation75_spill] sm:$0xff] %v18217_v61  ;;  %v18232_v3 = vld [vmem:[%s22832_s2 + $0x170] ss:$8 sps:$4 sm:$0xff]  }
 0x326   : > { %3764 = vmatprep.subr.bf16.mxu1 %v18217_v61  ;;  %23369 = vst [vmem:[#allocation77_spill] sm:$0xff] %v18232_v3  ;;  %v18277_v61 = vld [vmem:[%s15466_s21 + $0x1ec] ss:$20 sps:$4 sm:$0xff]  }
 0x327   : > { %3549 = vmatmul.mubr.bf16.vlgmr.msra.gmra.mxu0 %v23367_v13  ;;  %v18244_v13 = vld [vmem:[%s22832_s2 + $0x164] ss:$8 sps:$4 sm:$0xff]   ;;  %23378 = vst [vmem:[#allocation86_spill] sm:$0xff] %v18277_v61  ;;  %v23379_v11 = vld [vmem:[#allocation122_spill] sm:$0xff] }
 0x328   : > { %11759 = vmatmul.mubr.msk.bf16.vlgmr.msra.gmra.mxu1 %vm1242_vm0, %v17517_v30  ;;  %3712 = vmatpush1.bf16.msra.mxu0 %v18226_v19  ;;  %v18238_v30 = vld [vmem:[%s22832_s2 + $0x64] ss:$8 sps:$4 sm:$0xff]   ;;  %23371 = vst [vmem:[#allocation80_spill] sm:$0xff] %v18244_v13 }
 0x329   : > { %3765 = vmatpush1.bf16.msra.mxu1 %v18232_v3  ;;  %23370 = vst [vmem:[#allocation79_spill] sm:$0xff] %v18238_v30  ;;  %3713 = vmatprep.subr.bf16.mxu0 %v18238_v30  ;;  %v23372_v19 = vld [vmem:[#allocation120_spill] sm:$0xff] }
 0x32a   : > { %3766 = vmatprep.subr.bf16.mxu1 %v18244_v13  ;;  %3558 = vmatprep.mubr.bf16.mxu0 %v23372_v19  ;;  %v18252_v3 = vld [vmem:[%s22832_s2 + $0x60] ss:$8 sps:$4 sm:$0xff]   ;;  %v18264_v19 = vld [vmem:[%s22832_s2 + $0x54] ss:$8 sps:$4 sm:$0xff]  }
 0x32b   : > { %3611 = vmatprep.mubr.bf16.mxu1 %v23139_v34  ;;  %23373 = vst [vmem:[#allocation81_spill] sm:$0xff] %v18252_v3  ;;  %v18258_v30 = vld [vmem:[%s22832_s2 + $0x160] ss:$8 sps:$4 sm:$0xff]   ;;  %23375 = vst [vmem:[#allocation83_spill] sm:$0xff] %v18264_v19  ;;  %v18270_v13 = vld [vmem:[%s22832_s2 + $0x154] ss:$8 sps:$4 sm:$0xff]  }
 0x32c   : > { %3714 = vmatpush1.bf16.msra.mxu0 %v18252_v3  ;;  %23374 = vst [vmem:[#allocation82_spill] sm:$0xff] %v18258_v30  ;;  %23376 = vst [vmem:[#allocation84_spill] sm:$0xff] %v18270_v13  ;;  %v18274_v3 = vld [vmem:[%s15466_s21 + $0x1e4] ss:$20 sps:$4 sm:$0xff]  }
 0x32d   : > { %3767 = vmatpush1.bf16.msra.mxu1 %v18258_v30  ;;  %3715 = vmatprep.subr.bf16.mxu0 %v18264_v19  ;;  %23377 = vst [vmem:[#allocation85_spill] sm:$0xff] %v18274_v3  ;;  %v18285_v19 = vld [vmem:[%s22832_s2 + $0x50] ss:$8 sps:$4 sm:$0xff]   ;;  %v18462_v30 = vld [vmem:[%s22832_s2 + $0xe0] ss:$8 sps:$4 sm:$0xff]  }
 0x32e   : > { %3768 = vmatprep.subr.bf16.mxu1 %v18270_v13  ;;  %23380 = vst [vmem:[#allocation88_spill] sm:$0xff] %v18285_v19  ;;  %v18291_v13 = vld [vmem:[%s22832_s2 + $0x150] ss:$8 sps:$4 sm:$0xff]   ;;  %23410 = vst [vmem:[#allocation116_spill] sm:$0xff] %v18462_v30 }
 0x32f   : > { %3559 = vmatmul.mubr.bf16.gmra.mxu0 %v23379_v11  ;;  %23381 = vst [vmem:[#allocation89_spill] sm:$0xff] %v18291_v13  ;;  %v18297_v11 = vld [vmem:[%s22832_s2 + $0x44] ss:$8 sps:$4 sm:$0xff]  }
 0x330   : > { %11760 = vmatmul.mubr.msk.bf16.gmra.mxu1 %vm1242_vm0, %v17551_v60  ;;  %3716 = vmatpush1.bf16.msra.mxu0 %v18285_v19  ;;  %23382 = vst [vmem:[#allocation90_spill] sm:$0xff] %v18297_v11  ;;  %v18303_v60 = vld [vmem:[%s22832_s2 + $0x144] ss:$8 sps:$4 sm:$0xff]  }
 0x331   : > { %3769 = vmatpush1.bf16.msra.mxu1 %v18291_v13  ;;  %3717 = vmatprep.subr.bf16.mxu0 %v18297_v11  ;;  %23383 = vst [vmem:[#allocation91_spill] sm:$0xff] %v18303_v60  ;;  %v18311_v13 = vld [vmem:[%s22832_s2 + $0x40] ss:$8 sps:$4 sm:$0xff]  }
 0x332   : > { %3770 = vmatprep.subr.bf16.mxu1 %v18303_v60  ;;  %3743 = vmatprep.mubr.bf16.mxu0 %v18274_v3  ;;  %23384 = vst [vmem:[#allocation92_spill] sm:$0xff] %v18311_v13  ;;  %v18317_v11 = vld [vmem:[%s22832_s2 + $0x140] ss:$8 sps:$4 sm:$0xff]   ;;  %v18323_v3 = vld [vmem:[%s22832_s2 + $0x34] ss:$8 sps:$4 sm:$0xff]  }
 0x333   : > { %3796 = vmatprep.mubr.bf16.mxu1 %v18277_v61  ;;  %23385 = vst [vmem:[#allocation93_spill] sm:$0xff] %v18317_v11  ;;  %23386 = vst [vmem:[#allocation94_spill] sm:$0xff] %v18323_v3  ;;  %v18329_v61 = vld [vmem:[%s22832_s2 + $0x134] ss:$8 sps:$4 sm:$0xff]  }
 0x334   : > { %3718 = vmatpush1.bf16.msra.mxu0 %v18311_v13  ;;  %23387 = vst [vmem:[#allocation95_spill] sm:$0xff] %v18329_v61  ;;  %v18335_v13 = vld [vmem:[%s22832_s2 + $0x30] ss:$8 sps:$4 sm:$0xff]  }
 0x335   : > { %3771 = vmatpush1.bf16.msra.mxu1 %v18317_v11  ;;  %3719 = vmatprep.subr.bf16.mxu0 %v18323_v3  ;;  %23388 = vst [vmem:[#allocation98_spill] sm:$0xff] %v18335_v13  ;;  %v18341_v11 = vld [vmem:[%s22832_s2 + $0x130] ss:$8 sps:$4 sm:$0xff]   ;;  %v18347_v3 = vld [vmem:[%s22832_s2 + $0x24] ss:$8 sps:$4 sm:$0xff]  }
 0x336   : > { %3772 = vmatprep.subr.bf16.mxu1 %v18329_v61  ;;  %23389 = vst [vmem:[#allocation99_spill] sm:$0xff] %v18341_v11  ;;  %23390 = vst [vmem:[#allocation100_spill] sm:$0xff] %v18347_v3  ;;  %v18353_v61 = vld [vmem:[%s22832_s2 + $0x124] ss:$8 sps:$4 sm:$0xff]  }
 0x337   : > { %23391 = vst [vmem:[#allocation101_spill] sm:$0xff] %v18353_v61 }
 0x338   : > { %3720 = vmatpush1.bf16.msra.mxu0 %v18335_v13  ;;  %v18359_v13 = vld [vmem:[%s22832_s2 + $0x20] ss:$8 sps:$4 sm:$0xff]  }
 0x339   : > { %3773 = vmatpush1.bf16.msra.mxu1 %v18341_v11  ;;  %3721 = vmatprep.subr.bf16.mxu0 %v18347_v3  ;;  %23392 = vst [vmem:[#allocation102_spill] sm:$0xff] %v18359_v13  ;;  %v18365_v11 = vld [vmem:[%s22832_s2 + $0x120] ss:$8 sps:$4 sm:$0xff]   ;;  %v18371_v3 = vld [vmem:[%s22832_s2 + $0x14] ss:$8 sps:$4 sm:$0xff]  }
 0x33a   : > { %3774 = vmatprep.subr.bf16.mxu1 %v18353_v61  ;;  %23393 = vst [vmem:[#allocation103_spill] sm:$0xff] %v18365_v11  ;;  %23394 = vst [vmem:[#allocation105_spill] sm:$0xff] %v18371_v3  ;;  %v18377_v61 = vld [vmem:[%s22832_s2 + $0x114] ss:$8 sps:$4 sm:$0xff]  }
 0x33b   : > { %23395 = vst [vmem:[#allocation106_spill] sm:$0xff] %v18377_v61 }
 0x33c   : > { %3722 = vmatpush1.bf16.msra.mxu0 %v18359_v13  ;;  %v18383_v13 = vld [vmem:[%s22832_s2 + $0x10] ss:$8 sps:$4 sm:$0xff]  }
 0x33d   : > { %3775 = vmatpush1.bf16.msra.mxu1 %v18365_v11  ;;  %3723 = vmatprep.subr.bf16.mxu0 %v18371_v3  ;;  %23396 = vst [vmem:[#allocation109_spill] sm:$0xff] %v18383_v13  ;;  %v18389_v11 = vld [vmem:[%s22832_s2 + $0x110] ss:$8 sps:$4 sm:$0xff]   ;;  %v18395_v3 = vld [vmem:[%s22832_s2 + $0x4] ss:$8 sps:$4 sm:$0xff]  }
 0x33e   : > { %3776 = vmatprep.subr.bf16.mxu1 %v18377_v61  ;;  %23397 = vst [vmem:[#allocation110_spill] sm:$0xff] %v18389_v11  ;;  %23398 = vst [vmem:[#allocation111_spill] sm:$0xff] %v18395_v3  ;;  %v18401_v61 = vld [vmem:[%s22832_s2 + $0x104] ss:$8 sps:$4 sm:$0xff]  }
 0x33f   : > { %23399 = vst [vmem:[#allocation112_spill] sm:$0xff] %v18401_v61 }
 0x340   : > { %3724 = vmatpush1.bf16.msra.mxu0 %v18383_v13  ;;  %v18407_v13 = vld [vmem:[%s22832_s2] ss:$8 sps:$4 sm:$0xff]  }
 0x341   : > { %3777 = vmatpush1.bf16.msra.mxu1 %v18389_v11  ;;  %3725 = vmatprep.subr.bf16.mxu0 %v18395_v3  ;;  %23400 = vst [vmem:[#allocation113_spill] sm:$0xff] %v18407_v13  ;;  %v18413_v11 = vld [vmem:[%s22832_s2 + $0x100] ss:$8 sps:$4 sm:$0xff]   ;;  %v18416_v3 = vpop.f32.mrf.mxu1 }
 0x342   : > { %3778 = vmatprep.subr.bf16.mxu1 %v18401_v61  ;;  %23401 = vst [vmem:[#allocation114_spill] sm:$0xff] %v18413_v11  ;;  %23402 = vst [vmem:[#allocation124_spill] sm:$0xff] %v18416_v3  ;;  %v18421_v61 = vld [vmem:[%s22832_s2 + $0xf4] ss:$8 sps:$4 sm:$0xff]   ;;  %v18434_v3 = vld [vmem:[%s22832_s2 + $0xf0] ss:$8 sps:$4 sm:$0xff]  }
 0x343   : > { %23403 = vst [vmem:[#allocation125_spill] sm:$0xff] %v18421_v61  ;;  %23405 = vst [vmem:[#allocation126_spill] sm:$0xff] %v18434_v3 }
 0x344   : > { %3726 = vmatpush1.bf16.msra.mxu0 %v18407_v13  ;;  %v18427_v13 = vld [vmem:[%s22832_s2 + $0x1f4] ss:$8 sps:$4 sm:$0xff]  }
 0x345   : > { %3779 = vmatpush1.bf16.msra.mxu1 %v18413_v11  ;;  %3727 = vmatprep.subr.bf16.mxu0 %v18421_v61  ;;  %23404 = vst [vmem:[#allocation52_spill] sm:$0xff] %v18427_v13  ;;  %v18440_v61 = vld [vmem:[%s22832_s2 + $0x1f0] ss:$8 sps:$4 sm:$0xff]  }
 0x346   : > { %3780 = vmatprep.subr.bf16.mxu1 %v18427_v13  ;;  %23406 = vst [vmem:[#allocation53_spill] sm:$0xff] %v18440_v61  ;;  %v18446_v13 = vld [vmem:[%s22832_s2 + $0xe4] ss:$8 sps:$4 sm:$0xff]  }
 0x347   : > { %23407 = vst [vmem:[#allocation115_spill] sm:$0xff] %v18446_v13 }
 0x348   : > { %v3090_v60 = vpop.f32.mrf.mxu1  ;;  %3728 = vmatpush2.bf16.msra.mxu0 %v18434_v3 }
 0x349   : > { %v3091_v19 = vadd.f32 %v3090_v60, %v18107_v2  ;;  %3781 = vmatpush2.bf16.msra.mxu1 %v18440_v61  ;;  %3729 = vmatprep.subr.bf16.mxu0 %v18446_v13  ;;  %v18452_v2 = vld [vmem:[%s22832_s2 + $0x1e4] ss:$8 sps:$4 sm:$0xff]   ;;  %v18468_v13 = vld [vmem:[%s22832_s2 + $0x1e0] ss:$8 sps:$4 sm:$0xff]  }
 0x34a   : > { %v3092_v11 = vpop.f32.mrf.mxu1  ;;  %23408 = vst [vmem:[#allocation119_spill] sm:$0xff] %v18452_v2  ;;  %3782 = vmatprep.subr.bf16.mxu1 %v18452_v2  ;;  %23411 = vst [vmem:[#allocation120_spill] sm:$0xff] %v18468_v13 }
 0x34b   : > { %v18456_v60 = vadd.f32 %v3092_v11, %v18133_v41  ;;  %v18482_v41 = vld [vmem:[%s22832_s2 + $0x1d4] ss:$8 sps:$4 sm:$0xff]  }
 0x34c   : > { %v3094_v3 = vpop.f32.mrf.mxu1  ;;  %3730 = vmatpush2.bf16.msra.mxu0 %v18462_v30  ;;  %23414 = vst [vmem:[#allocation132_spill] sm:$0xff] %v18482_v41 }
 0x34d   : > { %23409 = vst [vmem:[#allocation121_spill] sm:$0xff] %v18456_v60  ;;  %v3095_v61 = vadd.f32 %v3094_v3, %v18136_v15  ;;  %3783 = vmatpush2.bf16.msra.mxu1 %v18468_v13  ;;  %v18476_v15 = vld [vmem:[%s22832_s2 + $0xd4] ss:$8 sps:$4 sm:$0xff]   ;;  %v18489_v60 = vld [vmem:[%s22832_s2 + $0xd0] ss:$8 sps:$4 sm:$0xff]  }
 0x34e   : > { %v18471_v2 = vpop.f32.mrf.mxu1  ;;  %23413 = vst [vmem:[#allocation131_spill] sm:$0xff] %v18476_v15  ;;  %3731 = vmatprep.subr.bf16.mxu0 %v18476_v15  ;;  %3784 = vmatprep.subr.bf16.mxu1 %v18482_v41  ;;  %23415 = vst [vmem:[#allocation133_spill] sm:$0xff] %v18489_v60  ;;  %v18501_v41 = vld [vmem:[%s22832_s2 + $0xc4] ss:$8 sps:$4 sm:$0xff]   ;;  %v18517_v13 = vld [vmem:[%s22832_s2 + $0xc0] ss:$8 sps:$4 sm:$0xff]  }
 0x34f   : > { %23412 = vst [vmem:[#allocation122_spill] sm:$0xff] %v18471_v2  ;;  %v18495_v2 = vld [vmem:[%s22832_s2 + $0x1d0] ss:$8 sps:$4 sm:$0xff]   ;;  %23417 = vst [vmem:[#allocation135_spill] sm:$0xff] %v18501_v41 }
 0x350   : > { %v3100_v3 = vpop.f32.mrf.mxu1  ;;  %3732 = vmatpush2.bf16.msra.mxu0 %v18489_v60  ;;  %23416 = vst [vmem:[#allocation134_spill] sm:$0xff] %v18495_v2  ;;  %23419 = vst [vmem:[#allocation137_spill] sm:$0xff] %v18517_v13 }
 0x351   : > { %v3101_v11 = vadd.f32 %v3100_v3, %v18165_v38  ;;  %3785 = vmatpush2.bf16.msra.mxu1 %v18495_v2  ;;  %3733 = vmatprep.subr.bf16.mxu0 %v18501_v41  ;;  %v18507_v38 = vld [vmem:[%s22832_s2 + $0x1c4] ss:$8 sps:$4 sm:$0xff]   ;;  %v18523_v41 = vld [vmem:[%s22832_s2 + $0x1c0] ss:$8 sps:$4 sm:$0xff]  }
 0x352   : > { %v3102_v15 = vpop.f32.mrf.mxu1  ;;  %23418 = vst [vmem:[#allocation136_spill] sm:$0xff] %v18507_v38  ;;  %3786 = vmatprep.subr.bf16.mxu1 %v18507_v38  ;;  %23420 = vst [vmem:[#allocation138_spill] sm:$0xff] %v18523_v41  ;;  %v18526_v38 = vpop.f32.mrf.mxu0 }
 0x353   : > { %v3103_v3 = vadd.f32 %v3102_v15, %v18191_v31  ;;  %23421 = vst [vmem:[#allocation139_spill] sm:$0xff] %v18526_v38  ;;  %v18551_v38 = vld [vmem:[%s22832_s2 + $0x1b0] ss:$8 sps:$4 sm:$0xff]  }
 0x354   : > { %v3104_v60 = vpop.f32.mrf.mxu1  ;;  %3734 = vmatpush2.bf16.msra.mxu0 %v18517_v13  ;;  %23426 = vst [vmem:[#allocation144_spill] sm:$0xff] %v18551_v38 }
 0x355   : > { %v18512_v2 = vadd.f32 %v3104_v60, %v18194_v49  ;;  %3787 = vmatpush2.bf16.msra.mxu1 %v18523_v41  ;;  %v18533_v49 = vld [vmem:[%s22832_s2 + $0xb4] ss:$8 sps:$4 sm:$0xff]  }
 0x356   : > { %v18528_v31 = vpop.f32.mrf.mxu1  ;;  %23423 = vst [vmem:[#allocation141_spill] sm:$0xff] %v18533_v49  ;;  %3735 = vmatprep.subr.bf16.mxu0 %v18533_v49  ;;  %v18539_v60 = vld [vmem:[%s22832_s2 + $0x1b4] ss:$8 sps:$4 sm:$0xff]  }
 0x357   : > { %23422 = vst [vmem:[#allocation140_spill] sm:$0xff] %v18528_v31  ;;  %23424 = vst [vmem:[#allocation142_spill] sm:$0xff] %v18539_v60  ;;  %3788 = vmatprep.subr.bf16.mxu1 %v18539_v60  ;;  %v3143_v15 = vpop.f32.mrf.mxu0  ;;  %v18545_v31 = vld [vmem:[%s22832_s2 + $0xb0] ss:$8 sps:$4 sm:$0xff]  }
 0x358   : > { %v3196_v41 = vpop.f32.mrf.mxu1  ;;  %v3144_v13 = vadd.f32 %v3143_v15, %v3091_v19  ;;  %23425 = vst [vmem:[#allocation143_spill] sm:$0xff] %v18545_v31  ;;  %3736 = vmatpush2.bf16.msra.mxu0 %v18545_v31  ;;  %v18561_v19 = vld [vmem:[%s22832_s2 + $0xa4] ss:$8 sps:$4 sm:$0xff]  }
 0x359   : > { %3789 = vmatpush2.bf16.msra.mxu1 %v18551_v38  ;;  %v18554_v49 = vpop.f32.mrf.mxu0  ;;  %23429 = vst [vmem:[#allocation147_spill] sm:$0xff] %v18561_v19  ;;  %3737 = vmatprep.subr.bf16.mxu0 %v18561_v19  ;;  %v18567_v15 = vld [vmem:[%s22832_s2 + $0x1a4] ss:$8 sps:$4 sm:$0xff]   ;;  %v18579_v19 = vld [vmem:[%s22832_s2 + $0x1a0] ss:$8 sps:$4 sm:$0xff]  }
 0x35a   : > { %23427 = vst [vmem:[#allocation145_spill] sm:$0xff] %v18554_v49  ;;  %v18556_v60 = vpop.f32.mrf.mxu1  ;;  %23430 = vst [vmem:[#allocation148_spill] sm:$0xff] %v18567_v15  ;;  %3790 = vmatprep.subr.bf16.mxu1 %v18567_v15  ;;  %v3197_v31 = vadd.f32 %v3196_v41, %v3144_v13  ;;  %v18595_v41 = vld [vmem:[%s22832_s2 + $0x194] ss:$8 sps:$4 sm:$0xff]  }
 0x35b   : > { %23428 = vst [vmem:[#allocation146_spill] sm:$0xff] %v18556_v60  ;;  %v3147_v38 = vpop.f32.mrf.mxu0  ;;  %v18573_v60 = vld [vmem:[%s22832_s2 + $0xa0] ss:$8 sps:$4 sm:$0xff]   ;;  %23432 = vst [vmem:[#allocation150_spill] sm:$0xff] %v18579_v19 }
 0x35c   : > { %v3200_v30 = vpop.f32.mrf.mxu1  ;;  %v3148_v49 = vadd.f32 %v3147_v38, %v3095_v61  ;;  %23431 = vst [vmem:[#allocation149_spill] sm:$0xff] %v18573_v60  ;;  %3738 = vmatpush2.bf16.msra.mxu0 %v18573_v60  ;;  %v18589_v61 = vld [vmem:[%s22832_s2 + $0x94] ss:$8 sps:$4 sm:$0xff]   ;;  %23436 = vst [vmem:[#allocation154_spill] sm:$0xff] %v18595_v41  ;;  %v3215_v38 = vadd.f32 %v3197_v31, %v16443_v45 }
 0x35d   : > { %3791 = vmatpush2.bf16.msra.mxu1 %v18579_v19  ;;  %v18582_v32 = vpop.f32.mrf.mxu0  ;;  %23435 = vst [vmem:[#allocation153_spill] sm:$0xff] %v18589_v61  ;;  %3739 = vmatprep.subr.bf16.mxu0 %v18589_v61 }
 0x35e   : > { %23433 = vst [vmem:[#allocation151_spill] sm:$0xff] %v18582_v32  ;;  %v18584_v13 = vpop.f32.mrf.mxu1  ;;  %3792 = vmatprep.subr.bf16.mxu1 %v18595_v41  ;;  %v3201_v19 = vadd.f32 %v3200_v30, %v3148_v49  ;;  %v18609_v41 = vld [vmem:[%s22832_s2 + $0x190] ss:$8 sps:$4 sm:$0xff]   ;;  %v3223_v49 = vmax.f32 %v3215_v38, 0.0 }
 0x35f   : > { %23434 = vst [vmem:[#allocation152_spill] sm:$0xff] %v18584_v13  ;;  %v3153_v32 = vpop.f32.mrf.mxu0  ;;  %23438 = vst [vmem:[#allocation156_spill] sm:$0xff] %v18609_v41  ;;  %v18661_v38 = vld [vmem:[%s15466_s21 + $0x20c] ss:$20 sps:$4 sm:$0xff]  }
 0x360   : > { %v3206_v60 = vpop.f32.mrf.mxu1  ;;  %v3217_v13 = vadd.f32 %v3201_v19, %v16443_v45  ;;  %v3154_v15 = vadd.f32 %v3153_v32, %v3101_v11  ;;  %3740 = vmatpush2.bf16.msra.mxu0 %v18603_v18  ;;  %v18615_v32 = vld [vmem:[%s22832_s2 + $0x84] ss:$8 sps:$4 sm:$0xff]   ;;  %23445 = vst [vmem:[#allocation163_spill] sm:$0xff] %v18661_v38 }
 0x361   : > { %3793 = vmatpush2.bf16.msra.mxu1 %v18609_v41  ;;  %v3155_v30 = vpop.f32.mrf.mxu0  ;;  %23439 = vst [vmem:[#allocation157_spill] sm:$0xff] %v18615_v32  ;;  %3741 = vmatprep.subr.bf16.mxu0 %v18615_v32  ;;  %v18621_v11 = vld [vmem:[%s22832_s2 + $0x184] ss:$8 sps:$4 sm:$0xff]  }
 0x362   : > { %v3208_v31 = vpop.f32.mrf.mxu1  ;;  %23440 = vst [vmem:[#allocation158_spill] sm:$0xff] %v18621_v11  ;;  %3794 = vmatprep.subr.bf16.mxu1 %v18621_v11  ;;  %v3225_v19 = vmax.f32 %v3217_v13, 0.0  ;;  %v3156_v18 = vadd.f32 %v3155_v30, %v3103_v3  ;;  %v3207_v41 = vadd.f32 %v3206_v60, %v3154_v15  ;;  %v18636_v11 = vld [vmem:[%s22832_s2 + $0x80] ss:$8 sps:$4 sm:$0xff]   ;;  %v18656_v15 = vld [vmem:[%s22831_s1 + $0x74] ss:$8 sps:$4 sm:$0xff]  }
 0x363   : > { %v3157_v61 = vpop.f32.mrf.mxu0  ;;  %v18642_v3 = vld [vmem:[%s22832_s2 + $0x180] ss:$8 sps:$4 sm:$0xff]  }
 0x364   : > { %v3210_v12 = vpop.f32.mrf.mxu1  ;;  %v18630_v32 = vpack.c.bf16 %v3225_v19, %v3223_v49  ;;  %v3158_v57 = vadd.f32 %v3157_v61, %v18512_v2  ;;  %3742 = vmatpush2.bf16.msra.mxu0 %v18636_v11  ;;  %v18645_v60 = vadd.f32 %v3208_v31, %v3156_v18  ;;  %v18650_v2 = vld [vmem:[%s22832_s2 + $0x234] ss:$8 sps:$4 sm:$0xff]   ;;  %v3219_v13 = vadd.f32 %v3207_v41, %v16443_v45  ;;  %v18672_v31 = vld [vmem:[%s22832_s2 + $0x230] ss:$8 sps:$4 sm:$0xff]   ;;  %v18690_v41 = vld [vmem:[%s22831_s1 + $0x64] ss:$8 sps:$4 sm:$0xff]  }
 0x365   : > { %3795 = vmatpush2.bf16.msra.mxu1 %v18642_v3  ;;  %3825 = vmatprep.subr.bf16.mxu0 %v18650_v2  ;;  %v18664_v18 = vld [vmem:[%s15466_s21 + $0x214] ss:$20 sps:$4 sm:$0xff]  }
 0x366   : > { %23443 = vst [vmem:[#allocation161_spill] sm:$0xff] %v18630_v32  ;;  %23444 = vst [vmem:[#allocation162_spill] sm:$0xff] %v18645_v60  ;;  %3870 = vmatprep.subr.bf16.mxu1 %v18656_v15  ;;  %v3211_v61 = vadd.f32 %v3210_v12, %v3158_v57  ;;  %v18678_v57 = vld [vmem:[%s22831_s1 + $0x70] ss:$8 sps:$4 sm:$0xff]   ;;  %v18684_v12 = vld [vmem:[%s22832_s2 + $0x224] ss:$8 sps:$4 sm:$0xff]  }
 0x367   : > { %23446 = vst [vmem:[#allocation164_spill] sm:$0xff] %v18664_v18  ;;  %3744 = vmatmul.mubr.bf16.vlgmr.msra.gmra.mxu0 %v18625_v28  ;;  %v3227_v49 = vmax.f32 %v3219_v13, 0.0  ;;  %v18699_v32 = vld [vmem:[%s15466_s21 + $0x210] ss:$20 sps:$4 sm:$0xff]  }
 0x368   : > { %3797 = vmatmul.mubr.bf16.vlgmr.msra.gmra.mxu1 %v18628_v16  ;;  %v3221_v30 = vadd.f32 %v3211_v61, %v16443_v45  ;;  %3826 = vmatpush1.bf16.msra.mxu0 %v18672_v31  ;;  %v18696_v61 = vld [vmem:[%s15466_s21 + $0x208] ss:$20 sps:$4 sm:$0xff]   ;;  %23448 = vst [vmem:[#allocation166_spill] sm:$0xff] %v18699_v32 }
 0x369   : > { %3871 = vmatpush1.bf16.msra.mxu1 %v18678_v57  ;;  %3827 = vmatprep.subr.bf16.mxu0 %v18684_v12  ;;  %23447 = vst [vmem:[#allocation165_spill] sm:$0xff] %v18696_v61  ;;  %v18706_v16 = vld [vmem:[%s22832_s2 + $0x220] ss:$8 sps:$4 sm:$0xff]  }
 0x36a   : > { %3872 = vmatprep.subr.bf16.mxu1 %v18690_v41  ;;  %v3229_v19 = vmax.f32 %v3221_v30, 0.0  ;;  %3753 = vmatprep.mubr.bf16.mxu0 %v18661_v38  ;;  %v18712_v13 = vld [vmem:[%s22831_s1 + $0x60] ss:$8 sps:$4 sm:$0xff]   ;;  %v18718_v30 = vld [vmem:[%s22832_s2 + $0x214] ss:$8 sps:$4 sm:$0xff]  }
 0x36b   : > { %3806 = vmatprep.mubr.bf16.mxu1 %v18664_v18  ;;  %v18744_v18 = vld [vmem:[%s22832_s2 + $0x204] ss:$8 sps:$4 sm:$0xff]   ;;  %v18761_v38 = vld [vmem:[%s22832_s2 + $0x200] ss:$8 sps:$4 sm:$0xff]  }
 0x36c   : > { %v18701_v60 = vpack.c.bf16 %v3229_v19, %v3227_v49  ;;  %3828 = vmatpush1.bf16.msra.mxu0 %v18706_v16  ;;  %v18724_v49 = vld [vmem:[%s22831_s1 + $0x54] ss:$8 sps:$4 sm:$0xff]   ;;  %v18732_v19 = vld [vmem:[%s22832_s2 + $0x210] ss:$8 sps:$4 sm:$0xff]   ;;  %v18767_v28 = vld [vmem:[%s22831_s1 + $0x40] ss:$8 sps:$4 sm:$0xff]  }
 0x36d   : > { %3873 = vmatpush1.bf16.msra.mxu1 %v18712_v13  ;;  %3829 = vmatprep.subr.bf16.mxu0 %v18718_v30 }
 0x36e   : > { %23449 = vst [vmem:[#allocation167_spill] sm:$0xff] %v18701_v60  ;;  %3874 = vmatprep.subr.bf16.mxu1 %v18724_v49  ;;  %v18738_v60 = vld [vmem:[%s22831_s1 + $0x50] ss:$8 sps:$4 sm:$0xff]  }
 0x36f   : > { %3754 = vmatmul.mubr.bf16.gmra.mxu0 %v18696_v61  ;;  %v18756_v61 = vld [vmem:[%s15466_s21 + $0x1f0] ss:$20 sps:$4 sm:$0xff]  }
 0x370   : > { %3807 = vmatmul.mubr.bf16.gmra.mxu1 %v18699_v32  ;;  %3830 = vmatpush1.bf16.msra.mxu0 %v18732_v19  ;;  %v18750_v32 = vld [vmem:[%s22831_s1 + $0x44] ss:$8 sps:$4 sm:$0xff]  }
 0x371   : > { %3875 = vmatpush1.bf16.msra.mxu1 %v18738_v60  ;;  %3831 = vmatprep.subr.bf16.mxu0 %v18744_v18  ;;  %23450 = vst [vmem:[#allocation168_spill] sm:$0xff] %v18750_v32 }
 0x372   : > { %3876 = vmatprep.subr.bf16.mxu1 %v18750_v32  ;;  %3849 = vmatprep.mubr.bf16.mxu0 %v23139_v34  ;;  %v18779_v32 = vld [vmem:[%s22831_s1 + $0x174] ss:$8 sps:$4 sm:$0xff]  }
 0x373   : > { %3902 = vmatprep.mubr.bf16.mxu1 %v17658_v7  ;;  %v18773_v7 = vld [vmem:[%s22831_s1 + $0x34] ss:$8 sps:$4 sm:$0xff]  }
 0x374   : > { %3832 = vmatpush1.bf16.msra.mxu0 %v18761_v38  ;;  %23451 = vst [vmem:[#allocation169_spill] sm:$0xff] %v18773_v7 }
 0x375   : > { %3877 = vmatpush1.bf16.msra.mxu1 %v18767_v28  ;;  %3923 = vmatprep.subr.bf16.mxu0 %v18779_v32 }
 0x376   : > { %3878 = vmatprep.subr.bf16.mxu1 %v18773_v7  ;;  %v18790_v7 = vld [vmem:[%s15466_s21 + $0x218] ss:$20 sps:$4 sm:$0xff]  }
 0x377   : > { %11783 = vmatmul.mubr.msk.bf16.vlgmr.msra.gmra.mxu0 %vm1242_vm0, %v18756_v61 }
 0x378   : > { %3924 = vmatpush1.bf16.msra.mxu0 %v17810_v4  ;;  %3859 = vmatprep.mubr.bf16.mxu0 %v23139_v34 }
 0x379   : > { %3879 = vmatpush1.bf16.msra.mxu1 %v17804_v0  ;;  %3925 = vmatprep.subr.bf16.mxu0 %v17822_v17  ;;  %v18823_v0 = vpop.f32.mrf.mxu1 }
 0x37a   : > { %3880 = vmatprep.subr.bf16.mxu1 %v17816_v40  ;;  %23453 = vst [vmem:[#allocation171_spill] sm:$0xff] %v18823_v0 }
 0x37c   : > { %3926 = vmatpush1.bf16.msra.mxu0 %v17838_v54 }
 0x37d   : > { %3881 = vmatpush1.bf16.msra.mxu1 %v17832_v58  ;;  %3927 = vmatprep.subr.bf16.mxu0 %v17850_v22 }
 0x37e   : > { %3882 = vmatprep.subr.bf16.mxu1 %v17844_v5 }
 0x37f   : > { %11784 = vmatmul.mubr.msk.bf16.gmra.mxu0 %vm1242_vm0, %v18790_v7 }
 0x380   : > { %3928 = vmatpush1.bf16.msra.mxu0 %v17864_v43  ;;  %3955 = vmatprep.mubr.bf16.mxu0 %v17661_v9  ;;  %v18821_v9 = vpop.f32.mrf.mxu0 }
 0x381   : > { %3883 = vmatpush1.bf16.msra.mxu1 %v17858_v46  ;;  %3929 = vmatprep.subr.bf16.mxu0 %v17876_v48  ;;  %23452 = vst [vmem:[#allocation170_spill] sm:$0xff] %v18821_v9 }
 0x382   : > { %3884 = vmatprep.subr.bf16.mxu1 %v17870_v24 }
 0x384   : > { %3930 = vmatpush1.bf16.msra.mxu0 %v17889_v56 }
 0x385   : > { %3885 = vmatpush1.bf16.msra.mxu1 %v17883_v55  ;;  %3931 = vmatprep.subr.bf16.mxu0 %v17901_v62  ;;  %v23456_v62 = vld [vmem:[#allocation49_spill] sm:$0xff] }
 0x386   : > { %3886 = vmatprep.subr.bf16.mxu1 %v17895_v14 }
 0x388   : > { %3932 = vmatpush1.bf16.msra.mxu0 %v17913_v37 }
 0x389   : > { %3887 = vmatpush2.bf16.msra.mxu1 %v17907_v36  ;;  %3933 = vmatprep.subr.bf16.mxu0 %v17925_v53 }
 0x38a   : > { %3888 = vmatprep.subr.bf16.mxu1 %v17919_v21 }
 0x38c   : > { %3934 = vmatpush1.bf16.msra.mxu0 %v17937_v23 }
 0x38d   : > { %3889 = vmatpush2.bf16.msra.mxu1 %v17931_v20  ;;  %3935 = vmatprep.subr.bf16.mxu0 %v17949_v35  ;;  %v23460_v35 = vld [vmem:[#allocation55_spill] sm:$0xff] }
 0x38e   : > { %3890 = vmatprep.subr.bf16.mxu1 %v17943_v63  ;;  %v23459_v63 = vld [vmem:[#allocation54_spill] sm:$0xff] }
 0x390   : > { %3936 = vmatpush1.bf16.msra.mxu0 %v17961_v59  ;;  %v23462_v59 = vld [vmem:[#allocation57_spill] sm:$0xff] }
 0x391   : > { %3891 = vmatpush2.bf16.msra.mxu1 %v17955_v42  ;;  %3937 = vmatprep.subr.bf16.mxu0 %v17973_v52 }
 0x392   : > { %3892 = vmatprep.subr.bf16.mxu1 %v17967_v10  ;;  %v23463_v10 = vld [vmem:[#allocation58_spill] sm:$0xff] }
 0x394   : > { %3938 = vmatpush1.bf16.msra.mxu0 %v17985_v1 }
 0x395   : > { %3893 = vmatpush2.bf16.msra.mxu1 %v17979_v33  ;;  %3939 = vmatprep.subr.bf16.mxu0 %v18001_v50  ;;  %v23464_v33 = vld [vmem:[#allocation33_spill] sm:$0xff] }
 0x396   : > { %3894 = vmatprep.subr.bf16.mxu1 %v17995_v8  ;;  %v23467_v50 = vld [vmem:[#allocation61_spill] sm:$0xff] }
 0x397   : > { %v3338_v4 = vpop.f32.mrf.mxu0 }
 0x398   : > { %v3391_v40 = vpop.f32.mrf.mxu1  ;;  %3940 = vmatpush2.bf16.msra.mxu0 %v18013_v29  ;;  %v23465_v29 = vld [vmem:[#allocation59_spill] sm:$0xff] }
 0x399   : > { %v3392_v17 = vadd.f32 %v3391_v40, %v3338_v4  ;;  %3895 = vmatpush2.bf16.msra.mxu1 %v18007_v25  ;;  %v3340_v58 = vpop.f32.mrf.mxu0  ;;  %3941 = vmatprep.subr.bf16.mxu0 %v18025_v44  ;;  %v23466_v25 = vld [vmem:[#allocation60_spill] sm:$0xff]  ;;  %v23470_v4 = vld [vmem:[#allocation63_spill] sm:$0xff] }
 0x39a   : > { %v3393_v54 = vpop.f32.mrf.mxu1  ;;  %3896 = vmatprep.subr.bf16.mxu1 %v18019_v51  ;;  %v23468_v51 = vld [vmem:[#allocation62_spill] sm:$0xff]  ;;  %v23471_v40 = vld [vmem:[#allocation64_spill] sm:$0xff] }
 0x39b   : > { %v3394_v5 = vadd.f32 %v3393_v54, %v3340_v58  ;;  %v3342_v22 = vpop.f32.mrf.mxu0  ;;  %v23473_v58 = vld [vmem:[#allocation66_spill] sm:$0xff]  ;;  %v23474_v54 = vld [vmem:[#allocation67_spill] sm:$0xff] }
 0x39c   : > { %v3395_v46 = vpop.f32.mrf.mxu1  ;;  %3942 = vmatpush2.bf16.msra.mxu0 %v18037_v27  ;;  %v23458_v27 = vld [vmem:[#allocation51_spill] sm:$0xff] }
 0x39d   : > { %v3396_v43 = vadd.f32 %v3395_v46, %v3342_v22  ;;  %3897 = vmatpush2.bf16.msra.mxu1 %v18031_v6  ;;  %v18833_v24 = vpop.f32.mrf.mxu0  ;;  %3943 = vmatprep.subr.bf16.mxu0 %v18053_v26  ;;  %v23457_v6 = vld [vmem:[#allocation50_spill] sm:$0xff]  ;;  %v23475_v46 = vld [vmem:[#allocation40_spill] sm:$0xff] }
 0x39e   : > { %23454 = vst [vmem:[#allocation172_spill] sm:$0xff] %v18833_v24  ;;  %v18835_v48 = vpop.f32.mrf.mxu1  ;;  %3898 = vmatprep.subr.bf16.mxu1 %v18047_v47 }
 0x39f   : > { %23455 = vst [vmem:[#allocation173_spill] sm:$0xff] %v18835_v48  ;;  %v3348_v55 = vpop.f32.mrf.mxu0 }
 0x3a0   : > { %v3401_v56 = vpop.f32.mrf.mxu1  ;;  %3944 = vmatpush2.bf16.msra.mxu0 %v23456_v62  ;;  %v23478_v62 = vld [vmem:[#allocation70_spill] sm:$0xff] }
 0x3a1   : > { %v3402_v14 = vadd.f32 %v3401_v56, %v3348_v55  ;;  %3899 = vmatpush2.bf16.msra.mxu1 %v18059_v39  ;;  %v3350_v36 = vpop.f32.mrf.mxu0  ;;  %3945 = vmatprep.subr.bf16.mxu0 %v23458_v27  ;;  %v23469_v39 = vld [vmem:[#allocation38_spill] sm:$0xff]  ;;  %v23476_v55 = vld [vmem:[#allocation68_spill] sm:$0xff]  ;;  %v23477_v56 = vld [vmem:[#allocation69_spill] sm:$0xff] }
 0x3a2   : > { %v3403_v37 = vpop.f32.mrf.mxu1  ;;  %3900 = vmatprep.subr.bf16.mxu1 %v23457_v6 }
 0x3a3   : > { %v3404_v21 = vadd.f32 %v3403_v37, %v3350_v36  ;;  %v3352_v53 = vpop.f32.mrf.mxu0  ;;  %v23479_v36 = vld [vmem:[#allocation71_spill] sm:$0xff] }
 0x3a4   : > { %v3405_v20 = vpop.f32.mrf.mxu1  ;;  %3946 = vmatpush2.bf16.msra.mxu0 %v23460_v35  ;;  %v23484_v35 = vld [vmem:[#allocation34_spill] sm:$0xff] }
 0x3a5   : > { %v3406_v23 = vadd.f32 %v3405_v20, %v3352_v53  ;;  %3901 = vmatpush2.bf16.msra.mxu1 %v23459_v63  ;;  %v18845_v42 = vpop.f32.mrf.mxu0  ;;  %3947 = vmatprep.subr.bf16.mxu0 %v23462_v59  ;;  %v23480_v53 = vld [vmem:[#allocation72_spill] sm:$0xff]  ;;  %v23482_v20 = vld [vmem:[#allocation74_spill] sm:$0xff]  ;;  %v23483_v63 = vld [vmem:[#allocation75_spill] sm:$0xff] }
 0x3a6   : > { %23461 = vst [vmem:[#allocation49_spill] sm:$0xff] %v18845_v42  ;;  %3984 = vmatprep.subr.bf16.mxu1 %v23463_v10  ;;  %v23485_v59 = vld [vmem:[#allocation43_spill] sm:$0xff]  ;;  %v23487_v10 = vld [vmem:[#allocation77_spill] sm:$0xff] }
 0x3a7   : > { %v3444_v52 = vpop.f32.mrf.mxu0 }
 0x3a8   : > { %3903 = vmatmul.mubr.bf16.vlgmr.msra.gmra.mxu1 %v23464_v33  ;;  %v18850_v1 = vadd.f32 %v3444_v52, %v3392_v17  ;;  %3948 = vmatpush2.bf16.msra.mxu0 %v23465_v29  ;;  %v23489_v52 = vld [vmem:[#allocation80_spill] sm:$0xff]  ;;  %v23490_v33 = vld [vmem:[#allocation39_spill] sm:$0xff]  ;;  %v23491_v29 = vld [vmem:[#allocation81_spill] sm:$0xff] }
 0x3a9   : > { %3985 = vmatpush1.bf16.msra.mxu1 %v23466_v25  ;;  %v3446_v8 = vpop.f32.mrf.mxu0  ;;  %3949 = vmatprep.subr.bf16.mxu0 %v23467_v50  ;;  %v23492_v25 = vld [vmem:[#allocation82_spill] sm:$0xff]  ;;  %v23494_v50 = vld [vmem:[#allocation84_spill] sm:$0xff] }
 0x3aa   : > { %3986 = vmatprep.subr.bf16.mxu1 %v23468_v51  ;;  %v18856_v44 = vadd.f32 %v3446_v8, %v3394_v5  ;;  %3912 = vmatprep.mubr.bf16.mxu1 %v23469_v39  ;;  %v23493_v8 = vld [vmem:[#allocation83_spill] sm:$0xff] }
 0x3ab   : > { %v3448_v47 = vpop.f32.mrf.mxu0  ;;  %v18897_v51 = vld [vmem:[%s15466_s21 + $0x234] ss:$20 sps:$4 sm:$0xff]   ;;  %v18900_v39 = vld [vmem:[%s15466_s21 + $0x23c] ss:$20 sps:$4 sm:$0xff]  }
 0x3ac   : > { %v18859_v26 = vadd.f32 %v3448_v47, %v3396_v43  ;;  %3950 = vmatpush2.bf16.msra.mxu0 %v23470_v4  ;;  %v23495_v47 = vld [vmem:[#allocation41_spill] sm:$0xff]  ;;  %v23496_v4 = vld [vmem:[#allocation44_spill] sm:$0xff] }
 0x3ad   : > { %3987 = vmatpush1.bf16.msra.mxu1 %v23471_v40  ;;  %v18863_v17 = vpop.f32.mrf.mxu0  ;;  %3951 = vmatprep.subr.bf16.mxu0 %v23473_v58  ;;  %v23497_v40 = vld [vmem:[#allocation88_spill] sm:$0xff]  ;;  %v23498_v58 = vld [vmem:[#allocation89_spill] sm:$0xff] }
 0x3ae   : > { %23472 = vst [vmem:[#allocation50_spill] sm:$0xff] %v18863_v17  ;;  %3988 = vmatprep.subr.bf16.mxu1 %v23474_v54  ;;  %v23499_v54 = vld [vmem:[#allocation90_spill] sm:$0xff] }
 0x3af   : > { %v3454_v22 = vpop.f32.mrf.mxu0 }
 0x3b0   : > { %3913 = vmatmul.mubr.bf16.gmra.mxu1 %v23475_v46  ;;  %v18868_v5 = vadd.f32 %v3454_v22, %v3402_v14  ;;  %3952 = vmatpush2.bf16.msra.mxu0 %v23476_v55  ;;  %v23481_v14 = vld [vmem:[#allocation73_spill] sm:$0xff]  ;;  %v23500_v22 = vld [vmem:[#allocation91_spill] sm:$0xff]  ;;  %v23501_v46 = vld [vmem:[#allocation92_spill] sm:$0xff] }
 0x3b1   : > { %3989 = vmatpush1.bf16.msra.mxu1 %v23477_v56  ;;  %v3456_v43 = vpop.f32.mrf.mxu0  ;;  %3953 = vmatprep.subr.bf16.mxu0 %v23478_v62  ;;  %v23502_v55 = vld [vmem:[#allocation93_spill] sm:$0xff]  ;;  %v23503_v56 = vld [vmem:[#allocation94_spill] sm:$0xff] }
 0x3b2   : > { %3990 = vmatprep.subr.bf16.mxu1 %v23479_v36  ;;  %v18874_v37 = vadd.f32 %v3456_v43, %v3404_v21  ;;  %4008 = vmatprep.mubr.bf16.mxu1 %v23139_v34  ;;  %v23486_v21 = vld [vmem:[#allocation76_spill] sm:$0xff]  ;;  %v23504_v43 = vld [vmem:[#allocation95_spill] sm:$0xff]  ;;  %v23505_v62 = vld [vmem:[#allocation98_spill] sm:$0xff] }
 0x3b3   : > { %v3458_v6 = vpop.f32.mrf.mxu0  ;;  %v23506_v36 = vld [vmem:[#allocation99_spill] sm:$0xff] }
 0x3b4   : > { %v18877_v27 = vadd.f32 %v3458_v6, %v3406_v23  ;;  %3954 = vmatpush2.bf16.msra.mxu0 %v23480_v53  ;;  %v23488_v23 = vld [vmem:[#allocation79_spill] sm:$0xff]  ;;  %v23507_v6 = vld [vmem:[#allocation100_spill] sm:$0xff]  ;;  %v23508_v53 = vld [vmem:[#allocation101_spill] sm:$0xff] }
 0x3b5   : > { %3991 = vmatpush1.bf16.msra.mxu1 %v23481_v14  ;;  %4118 = vmatprep.subr.bf16.mxu0 %v23482_v20  ;;  %v23509_v14 = vld [vmem:[#allocation102_spill] sm:$0xff]  ;;  %v23510_v20 = vld [vmem:[#allocation103_spill] sm:$0xff] }
 0x3b6   : > { %4171 = vmatprep.subr.bf16.mxu1 %v23483_v63  ;;  %v23511_v63 = vld [vmem:[#allocation105_spill] sm:$0xff] }
 0x3b7   : > { %3956 = vmatmul.mubr.bf16.vlgmr.msra.gmra.mxu0 %v23484_v35  ;;  %v23512_v35 = vld [vmem:[#allocation106_spill] sm:$0xff] }
 0x3b8   : > { %11785 = vmatmul.mubr.msk.bf16.vlgmr.msra.gmra.mxu1 %vm1242_vm0, %v23485_v59  ;;  %4119 = vmatpush1.bf16.msra.mxu0 %v23486_v21  ;;  %v23513_v59 = vld [vmem:[#allocation109_spill] sm:$0xff]  ;;  %v23514_v21 = vld [vmem:[#allocation110_spill] sm:$0xff] }
 0x3b9   : > { %4172 = vmatpush1.bf16.msra.mxu1 %v23487_v10  ;;  %4120 = vmatprep.subr.bf16.mxu0 %v23488_v23  ;;  %v23515_v10 = vld [vmem:[#allocation111_spill] sm:$0xff]  ;;  %v23516_v23 = vld [vmem:[#allocation112_spill] sm:$0xff] }
 0x3ba   : > { %4173 = vmatprep.subr.bf16.mxu1 %v23489_v52  ;;  %3965 = vmatprep.mubr.bf16.mxu0 %v23490_v33  ;;  %v23517_v52 = vld [vmem:[#allocation113_spill] sm:$0xff]  ;;  %v23518_v33 = vld [vmem:[#allocation114_spill] sm:$0xff] }
 0x3bb   : > { %4018 = vmatprep.mubr.bf16.mxu1 %v23139_v34 }
 0x3bc   : > { %4121 = vmatpush1.bf16.msra.mxu0 %v23491_v29  ;;  %v18929_v29 = vpop.f32.mrf.mxu1 }
 0x3bd   : > { %4174 = vmatpush1.bf16.msra.mxu1 %v23492_v25  ;;  %4122 = vmatprep.subr.bf16.mxu0 %v23493_v8  ;;  %23519 = vst [vmem:[#allocation51_spill] sm:$0xff] %v18929_v29  ;;  %v23520_v25 = vld [vmem:[#allocation125_spill] sm:$0xff]  ;;  %v23521_v8 = vld [vmem:[#allocation52_spill] sm:$0xff] }
 0x3be   : > { %4175 = vmatprep.subr.bf16.mxu1 %v23494_v50 }
 0x3bf   : > { %3966 = vmatmul.mubr.bf16.gmra.mxu0 %v23495_v47 }
 0x3c0   : > { %11786 = vmatmul.mubr.msk.bf16.gmra.mxu1 %vm1242_vm0, %v23496_v4  ;;  %4123 = vmatpush1.bf16.msra.mxu0 %v23497_v40  ;;  %v23522_v4 = vld [vmem:[#allocation126_spill] sm:$0xff]  ;;  %v23523_v40 = vld [vmem:[#allocation53_spill] sm:$0xff] }
 0x3c1   : > { %4176 = vmatpush1.bf16.msra.mxu1 %v23498_v58  ;;  %4124 = vmatprep.subr.bf16.mxu0 %v23499_v54  ;;  %v23524_v54 = vld [vmem:[#allocation115_spill] sm:$0xff] }
 0x3c2   : > { %4177 = vmatprep.subr.bf16.mxu1 %v23500_v22  ;;  %4150 = vmatprep.mubr.bf16.mxu0 %v18897_v51  ;;  %v23525_v22 = vld [vmem:[#allocation119_spill] sm:$0xff] }
 0x3c3   : > { %4203 = vmatprep.mubr.bf16.mxu1 %v18900_v39 }
 0x3c4   : > { %4125 = vmatpush1.bf16.msra.mxu0 %v23501_v46 }
 0x3c5   : > { %4178 = vmatpush1.bf16.msra.mxu1 %v23502_v55  ;;  %4126 = vmatprep.subr.bf16.mxu0 %v23503_v56 }
 0x3c6   : > { %4179 = vmatprep.subr.bf16.mxu1 %v23504_v43  ;;  %v23526_v43 = vld [vmem:[#allocation116_spill] sm:$0xff] }
 0x3c8   : > { %4127 = vmatpush1.bf16.msra.mxu0 %v23505_v62  ;;  %v23527_v62 = vld [vmem:[#allocation120_spill] sm:$0xff] }
 0x3c9   : > { %4180 = vmatpush1.bf16.msra.mxu1 %v23506_v36  ;;  %4128 = vmatprep.subr.bf16.mxu0 %v23507_v6  ;;  %v23530_v6 = vld [vmem:[#allocation132_spill] sm:$0xff] }
 0x3ca   : > { %4181 = vmatprep.subr.bf16.mxu1 %v23508_v53 }
 0x3cc   : > { %4129 = vmatpush1.bf16.msra.mxu0 %v23509_v14 }
 0x3cd   : > { %4182 = vmatpush1.bf16.msra.mxu1 %v23510_v20  ;;  %4130 = vmatprep.subr.bf16.mxu0 %v23511_v63  ;;  %v23531_v20 = vld [vmem:[#allocation133_spill] sm:$0xff]  ;;  %v23532_v63 = vld [vmem:[#allocation134_spill] sm:$0xff] }
 0x3ce   : > { %4183 = vmatprep.subr.bf16.mxu1 %v23512_v35  ;;  %v23533_v35 = vld [vmem:[#allocation135_spill] sm:$0xff] }
 0x3d0   : > { %4131 = vmatpush1.bf16.msra.mxu0 %v23513_v59 }
 0x3d1   : > { %4184 = vmatpush1.bf16.msra.mxu1 %v23514_v21  ;;  %4132 = vmatprep.subr.bf16.mxu0 %v23515_v10 }
 0x3d2   : > { %4185 = vmatprep.subr.bf16.mxu1 %v23516_v23  ;;  %v23535_v23 = vld [vmem:[#allocation137_spill] sm:$0xff] }
 0x3d4   : > { %4133 = vmatpush1.bf16.msra.mxu0 %v23517_v52  ;;  %v23536_v52 = vld [vmem:[#allocation138_spill] sm:$0xff] }
 0x3d5   : > { %4186 = vmatpush1.bf16.msra.mxu1 %v23518_v33  ;;  %4134 = vmatprep.subr.bf16.mxu0 %v23520_v25  ;;  %v18955_v33 = vpop.f32.mrf.mxu0  ;;  %v23539_v25 = vld [vmem:[#allocation141_spill] sm:$0xff] }
 0x3d6   : > { %4187 = vmatprep.subr.bf16.mxu1 %v23521_v8  ;;  %23537 = vst [vmem:[#allocation55_spill] sm:$0xff] %v18955_v33  ;;  %v23540_v8 = vld [vmem:[#allocation142_spill] sm:$0xff] }
 0x3d8   : > { %v3497_v50 = vpop.f32.mrf.mxu1  ;;  %4135 = vmatpush2.bf16.msra.mxu0 %v23522_v4 }
 0x3d9   : > { %v3498_v47 = vadd.f32 %v3497_v50, %v18850_v1  ;;  %4188 = vmatpush2.bf16.msra.mxu1 %v23523_v40  ;;  %4136 = vmatprep.subr.bf16.mxu0 %v23524_v54  ;;  %v23529_v1 = vld [vmem:[#allocation131_spill] sm:$0xff] }
 0x3da   : > { %v3499_v58 = vpop.f32.mrf.mxu1  ;;  %4189 = vmatprep.subr.bf16.mxu1 %v23525_v22  ;;  %v23543_v22 = vld [vmem:[#allocation147_spill] sm:$0xff] }
 0x3db   : > { %v3500_v46 = vadd.f32 %v3499_v58, %v18856_v44  ;;  %v23541_v58 = vld [vmem:[#allocation143_spill] sm:$0xff] }
 0x3dc   : > { %v3501_v55 = vpop.f32.mrf.mxu1  ;;  %4137 = vmatpush2.bf16.msra.mxu0 %v23526_v43 }
 0x3dd   : > { %v3502_v56 = vadd.f32 %v3501_v55, %v18859_v26  ;;  %4190 = vmatpush2.bf16.msra.mxu1 %v23527_v62  ;;  %4138 = vmatprep.subr.bf16.mxu0 %v23529_v1  ;;  %v23534_v26 = vld [vmem:[#allocation136_spill] sm:$0xff] }
 0x3de   : > { %v18942_v36 = vpop.f32.mrf.mxu1  ;;  %4191 = vmatprep.subr.bf16.mxu1 %v23530_v6  ;;  %v23544_v55 = vld [vmem:[#allocation148_spill] sm:$0xff] }
 0x3df   : > { %23528 = vst [vmem:[#allocation54_spill] sm:$0xff] %v18942_v36 }
 0x3e0   : > { %v3507_v53 = vpop.f32.mrf.mxu1  ;;  %4139 = vmatpush2.bf16.msra.mxu0 %v23531_v20 }
 0x3e1   : > { %v3508_v14 = vadd.f32 %v3507_v53, %v18868_v5  ;;  %4192 = vmatpush2.bf16.msra.mxu1 %v23532_v63  ;;  %4140 = vmatprep.subr.bf16.mxu0 %v23533_v35  ;;  %v23546_v63 = vld [vmem:[#allocation149_spill] sm:$0xff] }
 0x3e2   : > { %v3509_v44 = vpop.f32.mrf.mxu1  ;;  %4193 = vmatprep.subr.bf16.mxu1 %v23534_v26  ;;  %v23550_v26 = vld [vmem:[#allocation153_spill] sm:$0xff] }
 0x3e3   : > { %v3510_v59 = vadd.f32 %v3509_v44, %v18874_v37  ;;  %v23542_v37 = vld [vmem:[#allocation144_spill] sm:$0xff] }
 0x3e4   : > { %v3511_v21 = vpop.f32.mrf.mxu1  ;;  %4141 = vmatpush2.bf16.msra.mxu0 %v23535_v23 }
 0x3e5   : > { %v3512_v10 = vadd.f32 %v3511_v21, %v18877_v27  ;;  %4194 = vmatpush2.bf16.msra.mxu1 %v23536_v52  ;;  %4142 = vmatprep.subr.bf16.mxu0 %v23539_v25  ;;  %v23551_v21 = vld [vmem:[#allocation154_spill] sm:$0xff] }
 0x3e6   : > { %v18957_v5 = vpop.f32.mrf.mxu1  ;;  %4195 = vmatprep.subr.bf16.mxu1 %v23540_v8 }
 0x3e7   : > { %23538 = vst [vmem:[#allocation57_spill] sm:$0xff] %v18957_v5  ;;  %v3550_v50 = vpop.f32.mrf.mxu0 }
 0x3e8   : > { %v3603_v4 = vpop.f32.mrf.mxu1  ;;  %v3551_v40 = vadd.f32 %v3550_v50, %v3498_v47  ;;  %4143 = vmatpush2.bf16.msra.mxu0 %v23541_v58  ;;  %v23547_v47 = vld [vmem:[#allocation150_spill] sm:$0xff]  ;;  %v23552_v50 = vld [vmem:[#allocation155_spill] sm:$0xff] }
 0x3e9   : > { %4196 = vmatpush2.bf16.msra.mxu1 %v23542_v37  ;;  %v3552_v27 = vpop.f32.mrf.mxu0  ;;  %4144 = vmatprep.subr.bf16.mxu0 %v23543_v22  ;;  %v23554_v37 = vld [vmem:[#allocation157_spill] sm:$0xff] }
 0x3ea   : > { %v3605_v54 = vpop.f32.mrf.mxu1  ;;  %4197 = vmatprep.subr.bf16.mxu1 %v23544_v55  ;;  %v3604_v43 = vadd.f32 %v3603_v4, %v3551_v40  ;;  %v3553_v62 = vadd.f32 %v3552_v27, %v3500_v46  ;;  %v23553_v4 = vld [vmem:[#allocation156_spill] sm:$0xff]  ;;  %v23555_v27 = vld [vmem:[#allocation158_spill] sm:$0xff] }
 0x3eb   : > { %v3554_v1 = vpop.f32.mrf.mxu0 }
 0x3ec   : > { %v3607_v6 = vpop.f32.mrf.mxu1  ;;  %v18965_v53 = vadd.f32 %v3605_v54, %v3553_v62  ;;  %v3555_v20 = vadd.f32 %v3554_v1, %v3502_v56  ;;  %4145 = vmatpush2.bf16.msra.mxu0 %v23546_v63  ;;  %v3622_v23 = vadd.f32 %v3604_v43, %v16443_v45 }
 0x3ed   : > { %4198 = vmatpush2.bf16.msra.mxu1 %v23547_v47  ;;  %v18969_v44 = vpop.f32.mrf.mxu0  ;;  %4146 = vmatprep.subr.bf16.mxu0 %v23550_v26 }
 0x3ee   : > { %23545 = vst [vmem:[#allocation58_spill] sm:$0xff] %v18965_v53  ;;  %23548 = vst [vmem:[#allocation33_spill] sm:$0xff] %v18969_v44  ;;  %v18971_v35 = vpop.f32.mrf.mxu1  ;;  %4199 = vmatprep.subr.bf16.mxu1 %v23551_v21  ;;  %v3608_v46 = vadd.f32 %v3607_v6, %v3555_v20  ;;  %v3630_v54 = vmax.f32 %v3622_v23, 0.0  ;;  %v18982_v6 = vld [vmem:[%s15466_s21 + $0x230] ss:$20 sps:$4 sm:$0xff]  }
 0x3ef   : > { %23549 = vst [vmem:[#allocation59_spill] sm:$0xff] %v18971_v35  ;;  %v3560_v52 = vpop.f32.mrf.mxu0  ;;  %23556 = vst [vmem:[#allocation60_spill] sm:$0xff] %v18982_v6  ;;  %v18997_v21 = vld [vmem:[%s15466_s21 + $0x25c] ss:$20 sps:$4 sm:$0xff]   ;;  %v19000_v23 = vld [vmem:[%s15466_s21 + $0x264] ss:$20 sps:$4 sm:$0xff]  }
 0x3f0   : > { %v3613_v25 = vpop.f32.mrf.mxu1  ;;  %v3624_v56 = vadd.f32 %v3608_v46, %v16443_v45  ;;  %v3561_v8 = vadd.f32 %v3560_v52, %v3508_v14  ;;  %4147 = vmatpush2.bf16.msra.mxu0 %v23552_v50  ;;  %v18985_v14 = vld [vmem:[%s15466_s21 + $0x238] ss:$20 sps:$4 sm:$0xff]   ;;  %23560 = vst [vmem:[#allocation63_spill] sm:$0xff] %v18997_v21  ;;  %23561 = vst [vmem:[#allocation64_spill] sm:$0xff] %v19000_v23 }
 0x3f1   : > { %4200 = vmatpush2.bf16.msra.mxu1 %v23553_v4  ;;  %v3562_v40 = vpop.f32.mrf.mxu0  ;;  %4148 = vmatprep.subr.bf16.mxu0 %v23554_v37  ;;  %23557 = vst [vmem:[#allocation61_spill] sm:$0xff] %v18985_v14  ;;  %v19103_v52 = vld [vmem:[%s22831_s1 + $0x150] ss:$8 sps:$4 sm:$0xff]   ;;  %v19122_v50 = vld [vmem:[%s22831_s1] ss:$8 sps:$4 sm:$0xff]  }
 0x3f2   : > { %v3615_v58 = vpop.f32.mrf.mxu1  ;;  %4201 = vmatprep.subr.bf16.mxu1 %v23555_v27  ;;  %v3632_v22 = vmax.f32 %v3624_v56, 0.0  ;;  %v3563_v55 = vadd.f32 %v3562_v40, %v3510_v59  ;;  %v3614_v43 = vadd.f32 %v3613_v25, %v3561_v8  ;;  %v19109_v25 = vld [vmem:[%s22831_s1 + $0x4] ss:$8 sps:$4 sm:$0xff]   ;;  %v23570_v8 = vld [vmem:[#allocation86_spill] sm:$0xff]  ;;  %v19128_v4 = vld [vmem:[%s22831_s1 + $0x140] ss:$8 sps:$4 sm:$0xff]  }
 0x3f3   : > { %v3564_v62 = vpop.f32.mrf.mxu0  ;;  %v19115_v56 = vld [vmem:[%s22831_s1 + $0x144] ss:$8 sps:$4 sm:$0xff]   ;;  %v19134_v40 = vld [vmem:[%s22831_s1 + $0xf4] ss:$8 sps:$4 sm:$0xff]   ;;  %v19146_v37 = vld [vmem:[%s22831_s1 + $0xf0] ss:$8 sps:$4 sm:$0xff]  }
 0x3f4   : > { %v3617_v1 = vpop.f32.mrf.mxu1  ;;  %v18987_v20 = vpack.c.bf16 %v3632_v22, %v3630_v54  ;;  %v3565_v63 = vadd.f32 %v3564_v62, %v3512_v10  ;;  %4149 = vmatpush2.bf16.msra.mxu0 %v18636_v11  ;;  %v18991_v47 = vadd.f32 %v3615_v58, %v3563_v55  ;;  %v3626_v59 = vadd.f32 %v3614_v43, %v16443_v45  ;;  %v19015_v10 = vld [vmem:[%s15466_s21 + $0x260] ss:$20 sps:$4 sm:$0xff]  }
 0x3f5   : > { %4202 = vmatpush2.bf16.msra.mxu1 %v18642_v3  ;;  %4232 = vmatprep.subr.bf16.mxu0 %v18650_v2  ;;  %23563 = vst [vmem:[#allocation67_spill] sm:$0xff] %v19015_v10  ;;  %v19140_v58 = vld [vmem:[%s22831_s1 + $0x134] ss:$8 sps:$4 sm:$0xff]   ;;  %v19152_v27 = vld [vmem:[%s22831_s1 + $0x130] ss:$8 sps:$4 sm:$0xff]  }
 0x3f6   : > { %23558 = vst [vmem:[#allocation62_spill] sm:$0xff] %v18987_v20  ;;  %23559 = vst [vmem:[#allocation38_spill] sm:$0xff] %v18991_v47  ;;  %4277 = vmatprep.subr.bf16.mxu1 %v18656_v15  ;;  %v3618_v26 = vadd.f32 %v3617_v1, %v3565_v63  ;;  %v3634_v3 = vmax.f32 %v3626_v59, 0.0  ;;  %v19012_v15 = vld [vmem:[%s15466_s21 + $0x258] ss:$20 sps:$4 sm:$0xff]  }
 0x3f7   : > { %4151 = vmatmul.mubr.bf16.vlgmr.msra.gmra.mxu0 %v18982_v6  ;;  %23562 = vst [vmem:[#allocation66_spill] sm:$0xff] %v19012_v15  ;;  %v19158_v54 = vld [vmem:[%s22831_s1 + $0xe4] ss:$8 sps:$4 sm:$0xff]   ;;  %v19170_v55 = vld [vmem:[%s22831_s1 + $0xe0] ss:$8 sps:$4 sm:$0xff]  }
 0x3f8   : > { %4204 = vmatmul.mubr.bf16.vlgmr.msra.gmra.mxu1 %v18985_v14  ;;  %v3628_v11 = vadd.f32 %v3618_v26, %v16443_v45  ;;  %4233 = vmatpush1.bf16.msra.mxu0 %v18672_v31  ;;  %v23565_v31 = vld [vmem:[#allocation168_spill] sm:$0xff]  ;;  %v19182_v62 = vld [vmem:[%s22831_s1 + $0xd4] ss:$8 sps:$4 sm:$0xff]   ;;  %v19194_v63 = vld [vmem:[%s22831_s1 + $0xd0] ss:$8 sps:$4 sm:$0xff]  }
 0x3f9   : > { %4278 = vmatpush1.bf16.msra.mxu1 %v18678_v57  ;;  %4234 = vmatprep.subr.bf16.mxu0 %v18684_v12  ;;  %v19032_v57 = vld [vmem:[%s15466_s21 + $0x240] ss:$20 sps:$4 sm:$0xff]  }
 0x3fa   : > { %4279 = vmatprep.subr.bf16.mxu1 %v18690_v41  ;;  %v3636_v2 = vmax.f32 %v3628_v11, 0.0  ;;  %4160 = vmatprep.mubr.bf16.mxu0 %v18997_v21  ;;  %23567 = vst [vmem:[#allocation68_spill] sm:$0xff] %v19032_v57  ;;  %v23568_v12 = vld [vmem:[#allocation169_spill] sm:$0xff]  ;;  %v19071_v41 = vld [vmem:[%s22831_s1 + $0x20] ss:$8 sps:$4 sm:$0xff]  }
 0x3fb   : > { %4213 = vmatprep.mubr.bf16.mxu1 %v19000_v23  ;;  %v19164_v22 = vld [vmem:[%s22831_s1 + $0x124] ss:$8 sps:$4 sm:$0xff]   ;;  %v19176_v43 = vld [vmem:[%s22831_s1 + $0x120] ss:$8 sps:$4 sm:$0xff]   ;;  %v19188_v1 = vld [vmem:[%s22831_s1 + $0x114] ss:$8 sps:$4 sm:$0xff]  }
 0x3fc   : > { %v19017_v46 = vpack.c.bf16 %v3636_v2, %v3634_v3  ;;  %4235 = vmatpush1.bf16.msra.mxu0 %v18706_v16  ;;  %v23566_v16 = vld [vmem:[#allocation85_spill] sm:$0xff]  ;;  %v19206_v26 = vld [vmem:[%s22831_s1 + $0xc4] ss:$8 sps:$4 sm:$0xff]   ;;  %v19218_v3 = vld [vmem:[%s22831_s1 + $0xc0] ss:$8 sps:$4 sm:$0xff]  }
 0x3fd   : > { %4280 = vmatpush1.bf16.msra.mxu1 %v18712_v13  ;;  %4236 = vmatprep.subr.bf16.mxu0 %v18718_v30  ;;  %v19077_v13 = vld [vmem:[%s22831_s1 + $0x160] ss:$8 sps:$4 sm:$0xff]   ;;  %v19083_v30 = vld [vmem:[%s22831_s1 + $0x14] ss:$8 sps:$4 sm:$0xff]   ;;  %v19200_v59 = vld [vmem:[%s22831_s1 + $0x110] ss:$8 sps:$4 sm:$0xff]  }
 0x3fe   : > { %23564 = vst [vmem:[#allocation40_spill] sm:$0xff] %v19017_v46  ;;  %4281 = vmatprep.subr.bf16.mxu1 %v18724_v49  ;;  %v19089_v49 = vld [vmem:[%s22831_s1 + $0x154] ss:$8 sps:$4 sm:$0xff]   ;;  %v19212_v11 = vld [vmem:[%s22831_s1 + $0x104] ss:$8 sps:$4 sm:$0xff]  }
 0x3ff   : > { %4161 = vmatmul.mubr.bf16.gmra.mxu0 %v19012_v15  ;;  %v19224_v2 = vld [vmem:[%s22831_s1 + $0x100] ss:$8 sps:$4 sm:$0xff]   ;;  %v19361_v6 = vld [vmem:[%s22831_s1 + $0x230] ss:$8 sps:$4 sm:$0xff]  }
 0x400   : > { %4214 = vmatmul.mubr.bf16.gmra.mxu1 %v19015_v10  ;;  %4237 = vmatpush1.bf16.msra.mxu0 %v18732_v19  ;;  %v19097_v19 = vld [vmem:[%s22831_s1 + $0x10] ss:$8 sps:$4 sm:$0xff]   ;;  %v19274_v35 = vld [vmem:[%s22831_s1 + $0xa0] ss:$8 sps:$4 sm:$0xff]   ;;  %23588 = vst [vmem:[#allocation84_spill] sm:$0xff] %v19361_v6 }
 0x401   : > { %4282 = vmatpush1.bf16.msra.mxu1 %v18738_v60  ;;  %4238 = vmatprep.subr.bf16.mxu0 %v18744_v18  ;;  %v19043_v60 = vld [vmem:[%s22831_s1 + $0x30] ss:$8 sps:$4 sm:$0xff]   ;;  %v19280_v44 = vld [vmem:[%s22831_s1 + $0x1e0] ss:$8 sps:$4 sm:$0xff]  }
 0x402   : > { %4283 = vmatprep.subr.bf16.mxu1 %v23565_v31  ;;  %4256 = vmatprep.mubr.bf16.mxu0 %v23139_v34  ;;  %v19066_v18 = vld [vmem:[%s15466_s21 + $0x268] ss:$20 sps:$4 sm:$0xff]   ;;  %v19227_v31 = vpop.f32.mrf.mxu0 }
 0x403   : > { %4309 = vmatprep.mubr.bf16.mxu1 %v23566_v16  ;;  %23569 = vst [vmem:[#allocation69_spill] sm:$0xff] %v19066_v18  ;;  %23571 = vst [vmem:[#allocation70_spill] sm:$0xff] %v19227_v31  ;;  %v19229_v16 = vpop.f32.mrf.mxu1  ;;  %v19252_v31 = vld [vmem:[%s22831_s1 + $0x1f0] ss:$8 sps:$4 sm:$0xff]   ;;  %v19332_v14 = vld [vmem:[%s22831_s1 + $0x1c0] ss:$8 sps:$4 sm:$0xff]  }
 0x404   : > { %4239 = vmatpush1.bf16.msra.mxu0 %v18761_v38  ;;  %v19049_v38 = vld [vmem:[%s22831_s1 + $0x170] ss:$8 sps:$4 sm:$0xff]   ;;  %23572 = vst [vmem:[#allocation71_spill] sm:$0xff] %v19229_v16  ;;  %23582 = vst [vmem:[#allocation80_spill] sm:$0xff] %v19332_v14 }
 0x405   : > { %4284 = vmatpush1.bf16.msra.mxu1 %v18767_v28  ;;  %4330 = vmatprep.subr.bf16.mxu0 %v18779_v32  ;;  %v19055_v28 = vld [vmem:[%s22831_s1 + $0x24] ss:$8 sps:$4 sm:$0xff]   ;;  %v19246_v16 = vld [vmem:[%s22831_s1 + $0xb0] ss:$8 sps:$4 sm:$0xff]  }
 0x406   : > { %4285 = vmatprep.subr.bf16.mxu1 %v23568_v12  ;;  %v19061_v32 = vld [vmem:[%s22831_s1 + $0x164] ss:$8 sps:$4 sm:$0xff]   ;;  %v19234_v12 = vld [vmem:[%s22831_s1 + $0xb4] ss:$8 sps:$4 sm:$0xff]  }
 0x407   : > { %11809 = vmatmul.mubr.msk.bf16.vlgmr.msra.gmra.mxu0 %vm1242_vm0, %v19032_v57  ;;  %v19326_v57 = vld [vmem:[%s22831_s1 + $0x80] ss:$8 sps:$4 sm:$0xff]  }
 0x408   : > { %4331 = vmatpush1.bf16.msra.mxu0 %v19049_v38  ;;  %4266 = vmatprep.mubr.bf16.mxu0 %v23139_v34  ;;  %23581 = vst [vmem:[#allocation79_spill] sm:$0xff] %v19326_v57 }
 0x409   : > { %4286 = vmatpush1.bf16.msra.mxu1 %v19043_v60  ;;  %4332 = vmatprep.subr.bf16.mxu0 %v19061_v32 }
 0x40a   : > { %4287 = vmatprep.subr.bf16.mxu1 %v19055_v28 }
 0x40c   : > { %4333 = vmatpush1.bf16.msra.mxu0 %v19077_v13 }
 0x40d   : > { %4288 = vmatpush1.bf16.msra.mxu1 %v19071_v41  ;;  %4334 = vmatprep.subr.bf16.mxu0 %v19089_v49 }
 0x40e   : > { %4289 = vmatprep.subr.bf16.mxu1 %v19083_v30 }
 0x40f   : > { %11810 = vmatmul.mubr.msk.bf16.gmra.mxu0 %vm1242_vm0, %v19066_v18 }
 0x410   : > { %4335 = vmatpush1.bf16.msra.mxu0 %v19103_v52  ;;  %4362 = vmatprep.mubr.bf16.mxu0 %v23570_v8  ;;  %v19240_v8 = vld [vmem:[%s22831_s1 + $0x1f4] ss:$8 sps:$4 sm:$0xff]  }
 0x411   : > { %4290 = vmatpush1.bf16.msra.mxu1 %v19097_v19  ;;  %4336 = vmatprep.subr.bf16.mxu0 %v19115_v56 }
 0x412   : > { %4291 = vmatprep.subr.bf16.mxu1 %v19109_v25 }
 0x414   : > { %4337 = vmatpush1.bf16.msra.mxu0 %v19128_v4 }
 0x415   : > { %4292 = vmatpush1.bf16.msra.mxu1 %v19122_v50  ;;  %4338 = vmatprep.subr.bf16.mxu0 %v19140_v58 }
 0x416   : > { %4293 = vmatprep.subr.bf16.mxu1 %v19134_v40 }
 0x418   : > { %4339 = vmatpush1.bf16.msra.mxu0 %v19152_v27 }
 0x419   : > { %4294 = vmatpush2.bf16.msra.mxu1 %v19146_v37  ;;  %4340 = vmatprep.subr.bf16.mxu0 %v19164_v22 }
 0x41a   : > { %4295 = vmatprep.subr.bf16.mxu1 %v19158_v54 }
 0x41c   : > { %4341 = vmatpush1.bf16.msra.mxu0 %v19176_v43 }
 0x41d   : > { %4296 = vmatpush2.bf16.msra.mxu1 %v19170_v55  ;;  %4342 = vmatprep.subr.bf16.mxu0 %v19188_v1 }
 0x41e   : > { %4297 = vmatprep.subr.bf16.mxu1 %v19182_v62 }
 0x420   : > { %4343 = vmatpush1.bf16.msra.mxu0 %v19200_v59 }
 0x421   : > { %4298 = vmatpush2.bf16.msra.mxu1 %v19194_v63  ;;  %4344 = vmatprep.subr.bf16.mxu0 %v19212_v11 }
 0x422   : > { %4299 = vmatprep.subr.bf16.mxu1 %v19206_v26 }
 0x424   : > { %4345 = vmatpush1.bf16.msra.mxu0 %v19224_v2 }
 0x425   : > { %4300 = vmatpush2.bf16.msra.mxu1 %v19218_v3  ;;  %4346 = vmatprep.subr.bf16.mxu0 %v19240_v8 }
 0x426   : > { %4301 = vmatprep.subr.bf16.mxu1 %v19234_v12 }
 0x427   : > { %v3745_v46 = vpop.f32.mrf.mxu0 }
 0x428   : > { %v3798_v20 = vpop.f32.mrf.mxu1  ;;  %4347 = vmatpush2.bf16.msra.mxu0 %v19252_v31 }
 0x429   : > { %v3799_v47 = vadd.f32 %v3798_v20, %v3745_v46  ;;  %4302 = vmatpush2.bf16.msra.mxu1 %v19246_v16  ;;  %v19255_v5 = vpop.f32.mrf.mxu0  ;;  %v19262_v20 = vld [vmem:[%s22831_s1 + $0xa4] ss:$8 sps:$4 sm:$0xff]  }
 0x42a   : > { %23573 = vst [vmem:[#allocation72_spill] sm:$0xff] %v19255_v5  ;;  %v19257_v33 = vpop.f32.mrf.mxu1  ;;  %4303 = vmatprep.subr.bf16.mxu1 %v19262_v20  ;;  %v19268_v46 = vld [vmem:[%s22831_s1 + $0x1e4] ss:$8 sps:$4 sm:$0xff]  }
 0x42b   : > { %23574 = vst [vmem:[#allocation73_spill] sm:$0xff] %v19257_v33  ;;  %4348 = vmatprep.subr.bf16.mxu0 %v19268_v46  ;;  %v3749_v29 = vpop.f32.mrf.mxu0 }
 0x42c   : > { %v3802_v42 = vpop.f32.mrf.mxu1  ;;  %4349 = vmatpush2.bf16.msra.mxu0 %v19280_v44 }
 0x42d   : > { %v3803_v53 = vadd.f32 %v3802_v42, %v3749_v29  ;;  %4304 = vmatpush2.bf16.msra.mxu1 %v19274_v35  ;;  %v19283_v36 = vpop.f32.mrf.mxu0  ;;  %v19290_v42 = vld [vmem:[%s22831_s1 + $0x94] ss:$8 sps:$4 sm:$0xff]  }
 0x42e   : > { %23575 = vst [vmem:[#allocation74_spill] sm:$0xff] %v19283_v36  ;;  %v19285_v33 = vpop.f32.mrf.mxu1  ;;  %4305 = vmatprep.subr.bf16.mxu1 %v19290_v42  ;;  %v19296_v29 = vld [vmem:[%s22831_s1 + $0x1d4] ss:$8 sps:$4 sm:$0xff]   ;;  %v19308_v36 = vld [vmem:[%s22831_s1 + $0x1d0] ss:$8 sps:$4 sm:$0xff]  }
 0x42f   : > { %23576 = vst [vmem:[#allocation75_spill] sm:$0xff] %v19285_v33  ;;  %4350 = vmatprep.subr.bf16.mxu0 %v19296_v29  ;;  %v3755_v5 = vpop.f32.mrf.mxu0  ;;  %v19302_v33 = vld [vmem:[%s22831_s1 + $0x90] ss:$8 sps:$4 sm:$0xff]   ;;  %23578 = vst [vmem:[#allocation43_spill] sm:$0xff] %v19308_v36 }
 0x430   : > { %v3808_v0 = vpop.f32.mrf.mxu1  ;;  %23577 = vst [vmem:[#allocation34_spill] sm:$0xff] %v19302_v33  ;;  %4351 = vmatpush2.bf16.msra.mxu0 %v19308_v36 }
 0x431   : > { %v3809_v17 = vadd.f32 %v3808_v0, %v3755_v5  ;;  %4306 = vmatpush2.bf16.msra.mxu1 %v19302_v33  ;;  %v3757_v48 = vpop.f32.mrf.mxu0  ;;  %v19314_v0 = vld [vmem:[%s22831_s1 + $0x84] ss:$8 sps:$4 sm:$0xff]  }
 0x432   : > { %v3810_v24 = vpop.f32.mrf.mxu1  ;;  %23579 = vst [vmem:[#allocation76_spill] sm:$0xff] %v19314_v0  ;;  %4307 = vmatprep.subr.bf16.mxu1 %v19314_v0  ;;  %v19320_v5 = vld [vmem:[%s22831_s1 + $0x1c4] ss:$8 sps:$4 sm:$0xff]  }
 0x433   : > { %23580 = vst [vmem:[#allocation77_spill] sm:$0xff] %v19320_v5  ;;  %4352 = vmatprep.subr.bf16.mxu0 %v19320_v5  ;;  %v3811_v9 = vadd.f32 %v3810_v24, %v3757_v48  ;;  %v3759_v18 = vpop.f32.mrf.mxu0  ;;  %v19340_v24 = vld [vmem:[%s22831_s1 + $0x1b4] ss:$8 sps:$4 sm:$0xff]  }
 0x434   : > { %v3812_v10 = vpop.f32.mrf.mxu1  ;;  %4353 = vmatpush2.bf16.msra.mxu0 %v19332_v14  ;;  %23584 = vst [vmem:[#allocation81_spill] sm:$0xff] %v19340_v24  ;;  %v19346_v48 = vld [vmem:[%s22831_s1 + $0x234] ss:$8 sps:$4 sm:$0xff]  }
 0x435   : > { %v3813_v23 = vadd.f32 %v3812_v10, %v3759_v18  ;;  %4308 = vmatpush2.bf16.msra.mxu1 %v19326_v57  ;;  %v19335_v15 = vpop.f32.mrf.mxu0  ;;  %4354 = vmatprep.subr.bf16.mxu0 %v19340_v24  ;;  %23585 = vst [vmem:[#allocation82_spill] sm:$0xff] %v19346_v48  ;;  %v23586_v18 = vld [vmem:[#allocation159_spill] sm:$0xff]  ;;  %v13286_v0 = vld [vmem:[%s15466_s21 + $0x288] ss:$20 sps:$4 sm:$0xff]  }
 0x436   : > { %23583 = vst [vmem:[#allocation39_spill] sm:$0xff] %v19335_v15  ;;  %4391 = vmatprep.subr.bf16.mxu1 %v19346_v48  ;;  %v19355_v15 = vld [vmem:[%s22831_s1 + $0x1b0] ss:$8 sps:$4 sm:$0xff]   ;;  %v19442_v24 = vld [vmem:[%s22831_s1 + $0x180] ss:$8 sps:$4 sm:$0xff]  }
 0x437   : > { %v3851_v10 = vpop.f32.mrf.mxu0  ;;  %23587 = vst [vmem:[#allocation83_spill] sm:$0xff] %v19355_v15  ;;  %23603 = vst [vmem:[#allocation100_spill] sm:$0xff] %v19442_v24 }
 0x438   : > { %4310 = vmatmul.mubr.bf16.vlgmr.msra.gmra.mxu1 %v23586_v18  ;;  %v19350_v21 = vadd.f32 %v3851_v10, %v3799_v47  ;;  %4355 = vmatpush2.bf16.msra.mxu0 %v19355_v15  ;;  %v19369_v47 = vld [vmem:[%s22831_s1 + $0x1a4] ss:$8 sps:$4 sm:$0xff]  }
 0x439   : > { %4392 = vmatpush1.bf16.msra.mxu1 %v19361_v6  ;;  %v19364_v48 = vpop.f32.mrf.mxu0  ;;  %23590 = vst [vmem:[#allocation44_spill] sm:$0xff] %v19369_v47  ;;  %4356 = vmatprep.subr.bf16.mxu0 %v19369_v47  ;;  %v19375_v10 = vld [vmem:[%s22831_s1 + $0x224] ss:$8 sps:$4 sm:$0xff]   ;;  %v19390_v47 = vld [vmem:[%s22831_s1 + $0x220] ss:$8 sps:$4 sm:$0xff]  }
 0x43a   : > { %23589 = vst [vmem:[#allocation41_spill] sm:$0xff] %v19364_v48  ;;  %23591 = vst [vmem:[#allocation88_spill] sm:$0xff] %v19375_v10  ;;  %4393 = vmatprep.subr.bf16.mxu1 %v19375_v10  ;;  %v23592_v18 = vld [vmem:[#allocation163_spill] sm:$0xff] }
 0x43b   : > { %4319 = vmatprep.mubr.bf16.mxu1 %v23592_v18  ;;  %v3855_v15 = vpop.f32.mrf.mxu0  ;;  %v19384_v48 = vld [vmem:[%s22831_s1 + $0x1a0] ss:$8 sps:$4 sm:$0xff]   ;;  %23594 = vst [vmem:[#allocation90_spill] sm:$0xff] %v19390_v47 }
 0x43c   : > { %v19379_v6 = vadd.f32 %v3855_v15, %v3803_v53  ;;  %23593 = vst [vmem:[#allocation89_spill] sm:$0xff] %v19384_v48  ;;  %4357 = vmatpush2.bf16.msra.mxu0 %v19384_v48  ;;  %v19398_v53 = vld [vmem:[%s22831_s1 + $0x194] ss:$8 sps:$4 sm:$0xff]  }
 0x43d   : > { %4394 = vmatpush1.bf16.msra.mxu1 %v19390_v47  ;;  %v19393_v10 = vpop.f32.mrf.mxu0  ;;  %23596 = vst [vmem:[#allocation92_spill] sm:$0xff] %v19398_v53  ;;  %4358 = vmatprep.subr.bf16.mxu0 %v19398_v53  ;;  %v19404_v15 = vld [vmem:[%s22831_s1 + $0x214] ss:$8 sps:$4 sm:$0xff]   ;;  %v19419_v53 = vld [vmem:[%s22831_s1 + $0x210] ss:$8 sps:$4 sm:$0xff]  }
 0x43e   : > { %23595 = vst [vmem:[#allocation91_spill] sm:$0xff] %v19393_v10  ;;  %23597 = vst [vmem:[#allocation93_spill] sm:$0xff] %v19404_v15  ;;  %4395 = vmatprep.subr.bf16.mxu1 %v19404_v15  ;;  %v23598_v48 = vld [vmem:[#allocation165_spill] sm:$0xff] }
 0x43f   : > { %v3861_v18 = vpop.f32.mrf.mxu0  ;;  %v19413_v10 = vld [vmem:[%s22831_s1 + $0x190] ss:$8 sps:$4 sm:$0xff]   ;;  %23600 = vst [vmem:[#allocation95_spill] sm:$0xff] %v19419_v53 }
 0x440   : > { %4320 = vmatmul.mubr.bf16.gmra.mxu1 %v23598_v48  ;;  %v19408_v47 = vadd.f32 %v3861_v18, %v3809_v17  ;;  %23599 = vst [vmem:[#allocation94_spill] sm:$0xff] %v19413_v10  ;;  %4359 = vmatpush2.bf16.msra.mxu0 %v19413_v10  ;;  %v19425_v17 = vld [vmem:[%s22831_s1 + $0x184] ss:$8 sps:$4 sm:$0xff]  }
 0x441   : > { %4396 = vmatpush1.bf16.msra.mxu1 %v19419_v53  ;;  %v3863_v15 = vpop.f32.mrf.mxu0  ;;  %23601 = vst [vmem:[#allocation98_spill] sm:$0xff] %v19425_v17  ;;  %4360 = vmatprep.subr.bf16.mxu0 %v19425_v17  ;;  %v19431_v48 = vld [vmem:[%s22831_s1 + $0x204] ss:$8 sps:$4 sm:$0xff]   ;;  %v19448_v17 = vld [vmem:[%s22831_s1 + $0x200] ss:$8 sps:$4 sm:$0xff]  }
 0x442   : > { %23602 = vst [vmem:[#allocation99_spill] sm:$0xff] %v19431_v48  ;;  %4397 = vmatprep.subr.bf16.mxu1 %v19431_v48  ;;  %v19434_v18 = vadd.f32 %v3863_v15, %v3811_v9  ;;  %4415 = vmatprep.mubr.bf16.mxu1 %v23139_v34  ;;  %23604 = vst [vmem:[#allocation101_spill] sm:$0xff] %v19448_v17  ;;  %v14891_v9 = vld [vmem:[%s22832_s2 + $0x74] ss:$8 sps:$4 sm:$0xff]   ;;  %v14893_v15 = vld [vmem:[%s22832_s2 + $0x70] ss:$8 sps:$4 sm:$0xff]  }
 0x443   : > { %v3865_v53 = vpop.f32.mrf.mxu0 }
 0x444   : > { %v19437_v10 = vadd.f32 %v3865_v53, %v3813_v23  ;;  %4361 = vmatpush2.bf16.msra.mxu0 %v19442_v24  ;;  %v14892_v23 = vld [vmem:[%s22832_s2 + $0x174] ss:$8 sps:$4 sm:$0xff]   ;;  %v23605_v53 = vld [vmem:[#allocation160_spill] sm:$0xff] }
 0x445   : > { %4398 = vmatpush1.bf16.msra.mxu1 %v19448_v17  ;;  %4525 = vmatprep.subr.bf16.mxu0 %v14891_v9  ;;  %v14894_v17 = vld [vmem:[%s22832_s2 + $0x170] ss:$8 sps:$4 sm:$0xff]   ;;  %v14895_v9 = vld [vmem:[%s22832_s2 + $0x64] ss:$8 sps:$4 sm:$0xff]  }
 0x446   : > { %4578 = vmatprep.subr.bf16.mxu1 %v14892_v23  ;;  %v23606_v23 = vld [vmem:[#allocation164_spill] sm:$0xff]  ;;  %v23607_v24 = vld [vmem:[#allocation166_spill] sm:$0xff] }
 0x447   : > { %4363 = vmatmul.mubr.bf16.vlgmr.msra.gmra.mxu0 %v23605_v53  ;;  %v14897_v53 = vld [vmem:[%s22832_s2 + $0x60] ss:$8 sps:$4 sm:$0xff]  }
 0x448   : > { %11811 = vmatmul.mubr.msk.bf16.vlgmr.msra.gmra.mxu1 %vm1242_vm0, %v18756_v61  ;;  %4526 = vmatpush1.bf16.msra.mxu0 %v14893_v15  ;;  %v14896_v61 = vld [vmem:[%s22832_s2 + $0x164] ss:$8 sps:$4 sm:$0xff]   ;;  %v14899_v15 = vld [vmem:[%s22832_s2 + $0x54] ss:$8 sps:$4 sm:$0xff]  }
 0x449   : > { %4579 = vmatpush1.bf16.msra.mxu1 %v14894_v17  ;;  %4527 = vmatprep.subr.bf16.mxu0 %v14895_v9  ;;  %v14898_v17 = vld [vmem:[%s22832_s2 + $0x160] ss:$8 sps:$4 sm:$0xff]   ;;  %v14900_v9 = vld [vmem:[%s22832_s2 + $0x154] ss:$8 sps:$4 sm:$0xff]  }
 0x44a   : > { %4580 = vmatprep.subr.bf16.mxu1 %v14896_v61  ;;  %4372 = vmatprep.mubr.bf16.mxu0 %v23606_v23  ;;  %v13285_v61 = vld [vmem:[%s15466_s21 + $0x284] ss:$20 sps:$4 sm:$0xff]   ;;  %v13288_v23 = vld [vmem:[%s15466_s21 + $0x28c] ss:$20 sps:$4 sm:$0xff]  }
 0x44b   : > { %4425 = vmatprep.mubr.bf16.mxu1 %v23139_v34 }
 0x44c   : > { %4528 = vmatpush1.bf16.msra.mxu0 %v14897_v53  ;;  %v14901_v53 = vld [vmem:[%s22832_s2 + $0x50] ss:$8 sps:$4 sm:$0xff]  }
 0x44d   : > { %4581 = vmatpush1.bf16.msra.mxu1 %v14898_v17  ;;  %4529 = vmatprep.subr.bf16.mxu0 %v14899_v15  ;;  %v14902_v17 = vld [vmem:[%s22832_s2 + $0x150] ss:$8 sps:$4 sm:$0xff]   ;;  %v14903_v15 = vld [vmem:[%s22832_s2 + $0x44] ss:$8 sps:$4 sm:$0xff]  }
 0x44e   : > { %4582 = vmatprep.subr.bf16.mxu1 %v14900_v9  ;;  %v14906_v9 = vld [vmem:[%s22832_s2 + $0x140] ss:$8 sps:$4 sm:$0xff]  }
 0x44f   : > { %4373 = vmatmul.mubr.bf16.gmra.mxu0 %v23607_v24  ;;  %v14904_v24 = vld [vmem:[%s22832_s2 + $0x144] ss:$8 sps:$4 sm:$0xff]  }
 0x450   : > { %11812 = vmatmul.mubr.msk.bf16.gmra.mxu1 %vm1242_vm0, %v18790_v7  ;;  %4530 = vmatpush1.bf16.msra.mxu0 %v14901_v53  ;;  %v14905_v7 = vld [vmem:[%s22832_s2 + $0x40] ss:$8 sps:$4 sm:$0xff]   ;;  %v14907_v53 = vld [vmem:[%s22832_s2 + $0x34] ss:$8 sps:$4 sm:$0xff]  }
 0x451   : > { %4583 = vmatpush1.bf16.msra.mxu1 %v14902_v17  ;;  %4531 = vmatprep.subr.bf16.mxu0 %v14903_v15  ;;  %v14910_v17 = vld [vmem:[%s22832_s2 + $0x130] ss:$8 sps:$4 sm:$0xff]   ;;  %v14911_v15 = vld [vmem:[%s22832_s2 + $0x24] ss:$8 sps:$4 sm:$0xff]  }
 0x452   : > { %4584 = vmatprep.subr.bf16.mxu1 %v14904_v24  ;;  %4557 = vmatprep.mubr.bf16.mxu0 %v13285_v61  ;;  %v14908_v61 = vld [vmem:[%s22832_s2 + $0x134] ss:$8 sps:$4 sm:$0xff]   ;;  %v14912_v24 = vld [vmem:[%s22832_s2 + $0x124] ss:$8 sps:$4 sm:$0xff]  }
 0x453   : > { %4610 = vmatprep.mubr.bf16.mxu1 %v13288_v23  ;;  %v14909_v23 = vld [vmem:[%s22832_s2 + $0x30] ss:$8 sps:$4 sm:$0xff]  }
 0x454   : > { %4532 = vmatpush1.bf16.msra.mxu0 %v14905_v7  ;;  %v14913_v7 = vld [vmem:[%s22832_s2 + $0x20] ss:$8 sps:$4 sm:$0xff]  }
 0x455   : > { %4585 = vmatpush1.bf16.msra.mxu1 %v14906_v9  ;;  %4533 = vmatprep.subr.bf16.mxu0 %v14907_v53  ;;  %v14914_v9 = vld [vmem:[%s22832_s2 + $0x120] ss:$8 sps:$4 sm:$0xff]   ;;  %v14915_v53 = vld [vmem:[%s22832_s2 + $0x14] ss:$8 sps:$4 sm:$0xff]  }
 0x456   : > { %4586 = vmatprep.subr.bf16.mxu1 %v14908_v61  ;;  %v14916_v61 = vld [vmem:[%s22832_s2 + $0x114] ss:$8 sps:$4 sm:$0xff]  }
 0x458   : > { %4534 = vmatpush1.bf16.msra.mxu0 %v14909_v23  ;;  %v14917_v23 = vld [vmem:[%s22832_s2 + $0x10] ss:$8 sps:$4 sm:$0xff]  }
 0x459   : > { %4587 = vmatpush1.bf16.msra.mxu1 %v14910_v17  ;;  %4535 = vmatprep.subr.bf16.mxu0 %v14911_v15  ;;  %v14918_v17 = vld [vmem:[%s22832_s2 + $0x110] ss:$8 sps:$4 sm:$0xff]   ;;  %v14919_v15 = vld [vmem:[%s22832_s2 + $0x4] ss:$8 sps:$4 sm:$0xff]  }
 0x45a   : > { %4588 = vmatprep.subr.bf16.mxu1 %v14912_v24  ;;  %v14920_v24 = vld [vmem:[%s22832_s2 + $0x104] ss:$8 sps:$4 sm:$0xff]  }
 0x45c   : > { %4536 = vmatpush1.bf16.msra.mxu0 %v14913_v7  ;;  %v14921_v7 = vld [vmem:[%s22832_s2] ss:$8 sps:$4 sm:$0xff]  }
 0x45d   : > { %4589 = vmatpush1.bf16.msra.mxu1 %v14914_v9  ;;  %4537 = vmatprep.subr.bf16.mxu0 %v14915_v53  ;;  %v14922_v9 = vld [vmem:[%s22832_s2 + $0x100] ss:$8 sps:$4 sm:$0xff]   ;;  %v19557_v53 = vpop.f32.mrf.mxu1 }
 0x45e   : > { %4590 = vmatprep.subr.bf16.mxu1 %v14916_v61  ;;  %23608 = vst [vmem:[#allocation102_spill] sm:$0xff] %v19557_v53  ;;  %v14923_v61 = vld [vmem:[%s22832_s2 + $0xf4] ss:$8 sps:$4 sm:$0xff]  }
 0x460   : > { %4538 = vmatpush1.bf16.msra.mxu0 %v14917_v23  ;;  %v14924_v23 = vld [vmem:[%s22832_s2 + $0x1f4] ss:$8 sps:$4 sm:$0xff]  }
 0x461   : > { %4591 = vmatpush1.bf16.msra.mxu1 %v14918_v17  ;;  %4539 = vmatprep.subr.bf16.mxu0 %v14919_v15 }
 0x462   : > { %4592 = vmatprep.subr.bf16.mxu1 %v14920_v24  ;;  %v14925_v24 = vld [vmem:[%s22832_s2 + $0xf0] ss:$8 sps:$4 sm:$0xff]  }
 0x464   : > { %4540 = vmatpush1.bf16.msra.mxu0 %v14921_v7  ;;  %v14926_v7 = vld [vmem:[%s22832_s2 + $0x1f0] ss:$8 sps:$4 sm:$0xff]  }
 0x465   : > { %4593 = vmatpush1.bf16.msra.mxu1 %v14922_v9  ;;  %4541 = vmatprep.subr.bf16.mxu0 %v14923_v61  ;;  %v14927_v61 = vld [vmem:[%s22832_s2 + $0xe4] ss:$8 sps:$4 sm:$0xff]  }
 0x466   : > { %4594 = vmatprep.subr.bf16.mxu1 %v14924_v23 }
 0x468   : > { %v3904_v17 = vpop.f32.mrf.mxu1  ;;  %4542 = vmatpush2.bf16.msra.mxu0 %v14925_v24  ;;  %v14929_v24 = vld [vmem:[%s22832_s2 + $0xe0] ss:$8 sps:$4 sm:$0xff]  }
 0x469   : > { %v3905_v15 = vadd.f32 %v3904_v17, %v19350_v21  ;;  %4595 = vmatpush2.bf16.msra.mxu1 %v14926_v7  ;;  %4543 = vmatprep.subr.bf16.mxu0 %v14927_v61  ;;  %v14928_v21 = vld [vmem:[%s22832_s2 + $0x1e4] ss:$8 sps:$4 sm:$0xff]   ;;  %v14930_v7 = vld [vmem:[%s22832_s2 + $0x1e0] ss:$8 sps:$4 sm:$0xff]   ;;  %v14931_v61 = vld [vmem:[%s22832_s2 + $0xd4] ss:$8 sps:$4 sm:$0xff]  }
 0x46a   : > { %v19572_v9 = vpop.f32.mrf.mxu1  ;;  %4596 = vmatprep.subr.bf16.mxu1 %v14928_v21 }
 0x46b   : > { %23609 = vst [vmem:[#allocation103_spill] sm:$0xff] %v19572_v9 }
 0x46c   : > { %v3908_v23 = vpop.f32.mrf.mxu1  ;;  %4544 = vmatpush2.bf16.msra.mxu0 %v14929_v24  ;;  %v14933_v24 = vld [vmem:[%s22832_s2 + $0xd0] ss:$8 sps:$4 sm:$0xff]  }
 0x46d   : > { %v3909_v17 = vadd.f32 %v3908_v23, %v19379_v6  ;;  %4597 = vmatpush2.bf16.msra.mxu1 %v14930_v7  ;;  %4545 = vmatprep.subr.bf16.mxu0 %v14931_v61  ;;  %v14932_v6 = vld [vmem:[%s22832_s2 + $0x1d4] ss:$8 sps:$4 sm:$0xff]   ;;  %v14934_v7 = vld [vmem:[%s22832_s2 + $0x1d0] ss:$8 sps:$4 sm:$0xff]   ;;  %v14935_v61 = vld [vmem:[%s22832_s2 + $0xc4] ss:$8 sps:$4 sm:$0xff]  }
 0x46e   : > { %v19587_v53 = vpop.f32.mrf.mxu1  ;;  %4598 = vmatprep.subr.bf16.mxu1 %v14932_v6 }
 0x46f   : > { %23610 = vst [vmem:[#allocation105_spill] sm:$0xff] %v19587_v53  ;;  %v19618_v53 = vpop.f32.mrf.mxu0 }
 0x470   : > { %v3914_v21 = vpop.f32.mrf.mxu1  ;;  %4546 = vmatpush2.bf16.msra.mxu0 %v14933_v24  ;;  %23611 = vst [vmem:[#allocation106_spill] sm:$0xff] %v19618_v53 }
 0x471   : > { %v3915_v23 = vadd.f32 %v3914_v21, %v19408_v47  ;;  %4599 = vmatpush2.bf16.msra.mxu1 %v14934_v7  ;;  %4547 = vmatprep.subr.bf16.mxu0 %v14935_v61  ;;  %v14936_v47 = vld [vmem:[%s22832_s2 + $0x1c4] ss:$8 sps:$4 sm:$0xff]   ;;  %v14937_v7 = vld [vmem:[%s22832_s2 + $0xc0] ss:$8 sps:$4 sm:$0xff]  }
 0x472   : > { %v3916_v9 = vpop.f32.mrf.mxu1  ;;  %4600 = vmatprep.subr.bf16.mxu1 %v14936_v47  ;;  %v14938_v61 = vld [vmem:[%s22832_s2 + $0x1c0] ss:$8 sps:$4 sm:$0xff]  }
 0x473   : > { %v3917_v6 = vadd.f32 %v3916_v9, %v19434_v18  ;;  %v14939_v18 = vld [vmem:[%s22832_s2 + $0xb4] ss:$8 sps:$4 sm:$0xff]  }
 0x474   : > { %v3918_v21 = vpop.f32.mrf.mxu1  ;;  %4548 = vmatpush2.bf16.msra.mxu0 %v14937_v7  ;;  %v14941_v7 = vld [vmem:[%s22832_s2 + $0xb0] ss:$8 sps:$4 sm:$0xff]  }
 0x475   : > { %v19610_v24 = vadd.f32 %v3918_v21, %v19437_v10  ;;  %4601 = vmatpush2.bf16.msra.mxu1 %v14938_v61  ;;  %4549 = vmatprep.subr.bf16.mxu0 %v14939_v18  ;;  %v14940_v10 = vld [vmem:[%s22832_s2 + $0x1b4] ss:$8 sps:$4 sm:$0xff]   ;;  %v14942_v61 = vld [vmem:[%s22832_s2 + $0x1b0] ss:$8 sps:$4 sm:$0xff]  }
 0x476   : > { %v19620_v48 = vpop.f32.mrf.mxu1  ;;  %4602 = vmatprep.subr.bf16.mxu1 %v14940_v10  ;;  %v14943_v10 = vld [vmem:[%s22832_s2 + $0xa4] ss:$8 sps:$4 sm:$0xff]  }
 0x477   : > { %23612 = vst [vmem:[#allocation109_spill] sm:$0xff] %v19620_v48  ;;  %v3957_v9 = vpop.f32.mrf.mxu0 }
 0x478   : > { %v4010_v47 = vpop.f32.mrf.mxu1  ;;  %v3958_v21 = vadd.f32 %v3957_v9, %v3905_v15  ;;  %4550 = vmatpush2.bf16.msra.mxu0 %v14941_v7  ;;  %v14944_v15 = vld [vmem:[%s22832_s2 + $0x1a4] ss:$8 sps:$4 sm:$0xff]  }
 0x479   : > { %4603 = vmatpush2.bf16.msra.mxu1 %v14942_v61  ;;  %v19634_v48 = vpop.f32.mrf.mxu0  ;;  %4551 = vmatprep.subr.bf16.mxu0 %v14943_v10  ;;  %v14945_v61 = vld [vmem:[%s22832_s2 + $0xa0] ss:$8 sps:$4 sm:$0xff]  }
 0x47a   : > { %23613 = vst [vmem:[#allocation110_spill] sm:$0xff] %v19634_v48  ;;  %v19636_v18 = vpop.f32.mrf.mxu1  ;;  %4604 = vmatprep.subr.bf16.mxu1 %v14944_v15  ;;  %v4011_v9 = vadd.f32 %v4010_v47, %v3958_v21  ;;  %v14947_v47 = vld [vmem:[%s22832_s2 + $0x94] ss:$8 sps:$4 sm:$0xff]  }
 0x47b   : > { %23614 = vst [vmem:[#allocation111_spill] sm:$0xff] %v19636_v18  ;;  %v3961_v7 = vpop.f32.mrf.mxu0  ;;  %v14946_v18 = vld [vmem:[%s22832_s2 + $0x1a0] ss:$8 sps:$4 sm:$0xff]  }
 0x47c   : > { %v4014_v53 = vpop.f32.mrf.mxu1  ;;  %v3962_v14 = vadd.f32 %v3961_v7, %v3909_v17  ;;  %4552 = vmatpush2.bf16.msra.mxu0 %v14945_v61  ;;  %v14948_v17 = vld [vmem:[%s22832_s2 + $0x194] ss:$8 sps:$4 sm:$0xff]   ;;  %v4029_v21 = vadd.f32 %v4011_v9, %v16443_v45 }
 0x47d   : > { %4605 = vmatpush2.bf16.msra.mxu1 %v14946_v18  ;;  %v19650_v10 = vpop.f32.mrf.mxu0  ;;  %4553 = vmatprep.subr.bf16.mxu0 %v14947_v47  ;;  %v14950_v47 = vld [vmem:[%s22832_s2 + $0x190] ss:$8 sps:$4 sm:$0xff]  }
 0x47e   : > { %23615 = vst [vmem:[#allocation112_spill] sm:$0xff] %v19650_v10  ;;  %v19652_v48 = vpop.f32.mrf.mxu1  ;;  %4606 = vmatprep.subr.bf16.mxu1 %v14948_v17  ;;  %v4015_v15 = vadd.f32 %v4014_v53, %v3962_v14  ;;  %v14951_v14 = vld [vmem:[%s22832_s2 + $0x84] ss:$8 sps:$4 sm:$0xff]  }
 0x47f   : > { %23616 = vst [vmem:[#allocation113_spill] sm:$0xff] %v19652_v48  ;;  %v3967_v7 = vpop.f32.mrf.mxu0  ;;  %v14949_v48 = vld [vmem:[%s22832_s2 + $0x90] ss:$8 sps:$4 sm:$0xff]   ;;  %v14952_v53 = vld [vmem:[%s22832_s2 + $0x184] ss:$8 sps:$4 sm:$0xff]  }
 0x480   : > { %v4020_v61 = vpop.f32.mrf.mxu1  ;;  %v4031_v18 = vadd.f32 %v4015_v15, %v16443_v45  ;;  %v3968_v10 = vadd.f32 %v3967_v7, %v3915_v23  ;;  %4554 = vmatpush2.bf16.msra.mxu0 %v14949_v48  ;;  %v4037_v23 = vmax.f32 %v4029_v21, 0.0  ;;  %v14955_v21 = vld [vmem:[%s22832_s2 + $0x234] ss:$8 sps:$4 sm:$0xff]  }
 0x481   : > { %4607 = vmatpush2.bf16.msra.mxu1 %v14950_v47  ;;  %v3969_v17 = vpop.f32.mrf.mxu0  ;;  %4555 = vmatprep.subr.bf16.mxu0 %v14951_v14  ;;  %v13283_v47 = vld [vmem:[%s15466_s21 + $0x280] ss:$20 sps:$4 sm:$0xff]  }
 0x482   : > { %v4022_v9 = vpop.f32.mrf.mxu1  ;;  %4608 = vmatprep.subr.bf16.mxu1 %v14952_v53  ;;  %v4039_v48 = vmax.f32 %v4031_v18, 0.0  ;;  %v3970_v15 = vadd.f32 %v3969_v17, %v3917_v6  ;;  %v4021_v7 = vadd.f32 %v4020_v61, %v3968_v10  ;;  %v14953_v14 = vld [vmem:[%s22832_s2 + $0x80] ss:$8 sps:$4 sm:$0xff]   ;;  %v14957_v53 = vld [vmem:[%s22832_s2 + $0x230] ss:$8 sps:$4 sm:$0xff]  }
 0x483   : > { %v3971_v57 = vpop.f32.mrf.mxu0  ;;  %v14954_v6 = vld [vmem:[%s22832_s2 + $0x180] ss:$8 sps:$4 sm:$0xff]  }
 0x484   : > { %v4024_v5 = vpop.f32.mrf.mxu1  ;;  %v19676_v36 = vpack.c.bf16 %v4039_v48, %v4037_v23  ;;  %v3972_v33 = vadd.f32 %v3971_v57, %v19610_v24  ;;  %4556 = vmatpush2.bf16.msra.mxu0 %v14953_v14  ;;  %v19685_v10 = vadd.f32 %v4022_v9, %v3970_v15  ;;  %v14956_v57 = vld [vmem:[%s22831_s1 + $0x74] ss:$8 sps:$4 sm:$0xff]   ;;  %v4033_v24 = vadd.f32 %v4021_v7, %v16443_v45  ;;  %v14958_v23 = vld [vmem:[%s22831_s1 + $0x70] ss:$8 sps:$4 sm:$0xff]   ;;  %v14961_v14 = vld [vmem:[%s22832_s2 + $0x220] ss:$8 sps:$4 sm:$0xff]  }
 0x485   : > { %4609 = vmatpush2.bf16.msra.mxu1 %v14954_v6  ;;  %4639 = vmatprep.subr.bf16.mxu0 %v14955_v21  ;;  %v13291_v18 = vld [vmem:[%s15466_s21 + $0x2ac] ss:$20 sps:$4 sm:$0xff]   ;;  %v13294_v17 = vld [vmem:[%s15466_s21 + $0x2b4] ss:$20 sps:$4 sm:$0xff]   ;;  %v13292_v7 = vld [vmem:[%s15466_s21 + $0x2b0] ss:$20 sps:$4 sm:$0xff]  }
 0x486   : > { %4684 = vmatprep.subr.bf16.mxu1 %v14956_v57  ;;  %v4025_v61 = vadd.f32 %v4024_v5, %v3972_v33  ;;  %v14959_v33 = vld [vmem:[%s22832_s2 + $0x224] ss:$8 sps:$4 sm:$0xff]   ;;  %v4041_v5 = vmax.f32 %v4033_v24, 0.0  ;;  %v14962_v6 = vld [vmem:[%s22831_s1 + $0x60] ss:$8 sps:$4 sm:$0xff]  }
 0x487   : > { %4558 = vmatmul.mubr.bf16.vlgmr.msra.gmra.mxu0 %v13283_v47  ;;  %v13289_v15 = vld [vmem:[%s15466_s21 + $0x2a8] ss:$20 sps:$4 sm:$0xff]  }
 0x488   : > { %4611 = vmatmul.mubr.bf16.vlgmr.msra.gmra.mxu1 %v13286_v0  ;;  %v4035_v9 = vadd.f32 %v4025_v61, %v16443_v45  ;;  %4640 = vmatpush1.bf16.msra.mxu0 %v14957_v53  ;;  %v14960_v0 = vld [vmem:[%s22831_s1 + $0x64] ss:$8 sps:$4 sm:$0xff]   ;;  %v14963_v21 = vld [vmem:[%s22832_s2 + $0x214] ss:$8 sps:$4 sm:$0xff]   ;;  %v14965_v24 = vld [vmem:[%s22832_s2 + $0x210] ss:$8 sps:$4 sm:$0xff]  }
 0x489   : > { %4685 = vmatpush1.bf16.msra.mxu1 %v14958_v23  ;;  %4641 = vmatprep.subr.bf16.mxu0 %v14959_v33  ;;  %v14964_v57 = vld [vmem:[%s22831_s1 + $0x54] ss:$8 sps:$4 sm:$0xff]   ;;  %v14966_v61 = vld [vmem:[%s22831_s1 + $0x50] ss:$8 sps:$4 sm:$0xff]   ;;  %v14969_v53 = vld [vmem:[%s22832_s2 + $0x200] ss:$8 sps:$4 sm:$0xff]  }
 0x48a   : > { %4686 = vmatprep.subr.bf16.mxu1 %v14960_v0  ;;  %v4043_v48 = vmax.f32 %v4035_v9, 0.0  ;;  %4567 = vmatprep.mubr.bf16.mxu0 %v13291_v18  ;;  %v14967_v18 = vld [vmem:[%s22832_s2 + $0x204] ss:$8 sps:$4 sm:$0xff]   ;;  %v14970_v23 = vld [vmem:[%s22831_s1 + $0x40] ss:$8 sps:$4 sm:$0xff]  }
 0x48b   : > { %4620 = vmatprep.mubr.bf16.mxu1 %v13294_v17  ;;  %v14968_v17 = vld [vmem:[%s22831_s1 + $0x44] ss:$8 sps:$4 sm:$0xff]   ;;  %v14971_v33 = vld [vmem:[%s22831_s1 + $0x34] ss:$8 sps:$4 sm:$0xff]  }
 0x48c   : > { %v19711_v47 = vpack.c.bf16 %v4043_v48, %v4041_v5  ;;  %4642 = vmatpush1.bf16.msra.mxu0 %v14961_v14  ;;  %v13295_v9 = vld [vmem:[%s15466_s21 + $0x290] ss:$20 sps:$4 sm:$0xff]   ;;  %v13296_v0 = vld [vmem:[%s15466_s21 + $0x2b8] ss:$20 sps:$4 sm:$0xff]  }
 0x48d   : > { %4687 = vmatpush1.bf16.msra.mxu1 %v14962_v6  ;;  %4643 = vmatprep.subr.bf16.mxu0 %v14963_v21  ;;  %v23634_v14 = vld [vmem:[#allocation6_spill] sm:$0xff]  ;;  %v23635_v21 = vld [vmem:[#allocation63_spill] sm:$0xff] }
 0x48e   : > { %4688 = vmatprep.subr.bf16.mxu1 %v14964_v57  ;;  %v23636_v57 = vld [vmem:[#allocation35_spill] sm:$0xff] }
 0x48f   : > { %4568 = vmatmul.mubr.bf16.gmra.mxu0 %v13289_v15  ;;  %v23632_v15 = vld [vmem:[#allocation44_spill] sm:$0xff] }
 0x490   : > { %4621 = vmatmul.mubr.bf16.gmra.mxu1 %v13292_v7  ;;  %4644 = vmatpush1.bf16.msra.mxu0 %v14965_v24  ;;  %v23633_v7 = vld [vmem:[#allocation88_spill] sm:$0xff] }
 0x491   : > { %4689 = vmatpush1.bf16.msra.mxu1 %v14966_v61  ;;  %4645 = vmatprep.subr.bf16.mxu0 %v14967_v18  ;;  %v23637_v18 = vld [vmem:[#allocation10_spill] sm:$0xff] }
 0x492   : > { %4690 = vmatprep.subr.bf16.mxu1 %v14968_v17  ;;  %4663 = vmatprep.mubr.bf16.mxu0 %v23139_v34 }
 0x493   : > { %4716 = vmatprep.mubr.bf16.mxu1 %v18897_v51  ;;  %v14972_v51 = vld [vmem:[%s22831_s1 + $0x174] ss:$8 sps:$4 sm:$0xff]  }
 0x494   : > { %4646 = vmatpush1.bf16.msra.mxu0 %v14969_v53  ;;  %v23638_v53 = vld [vmem:[#allocation89_spill] sm:$0xff] }
 0x495   : > { %4691 = vmatpush1.bf16.msra.mxu1 %v14970_v23  ;;  %4737 = vmatprep.subr.bf16.mxu0 %v14972_v51  ;;  %v23639_v23 = vld [vmem:[#allocation90_spill] sm:$0xff] }
 0x496   : > { %4692 = vmatprep.subr.bf16.mxu1 %v14971_v33  ;;  %v23640_v33 = vld [vmem:[#allocation87_spill] sm:$0xff] }
 0x497   : > { %11835 = vmatmul.mubr.msk.bf16.vlgmr.msra.gmra.mxu0 %vm1242_vm0, %v13295_v9 }
 0x498   : > { %4738 = vmatpush1.bf16.msra.mxu0 %v19049_v38  ;;  %4673 = vmatprep.mubr.bf16.mxu0 %v23139_v34 }
 0x499   : > { %4693 = vmatpush1.bf16.msra.mxu1 %v19043_v60  ;;  %4739 = vmatprep.subr.bf16.mxu0 %v19061_v32  ;;  %v19789_v60 = vpop.f32.mrf.mxu1 }
 0x49a   : > { %4694 = vmatprep.subr.bf16.mxu1 %v19055_v28 }
 0x49c   : > { %4740 = vmatpush1.bf16.msra.mxu0 %v19077_v13 }
 0x49d   : > { %4695 = vmatpush1.bf16.msra.mxu1 %v19071_v41  ;;  %4741 = vmatprep.subr.bf16.mxu0 %v19089_v49 }
 0x49e   : > { %4696 = vmatprep.subr.bf16.mxu1 %v19083_v30 }
 0x49f   : > { %11836 = vmatmul.mubr.msk.bf16.gmra.mxu0 %vm1242_vm0, %v13296_v0 }
 0x4a0   : > { %4742 = vmatpush1.bf16.msra.mxu0 %v19103_v52  ;;  %4769 = vmatprep.mubr.bf16.mxu0 %v18900_v39  ;;  %v19787_v39 = vpop.f32.mrf.mxu0 }
 0x4a1   : > { %4697 = vmatpush1.bf16.msra.mxu1 %v19097_v19  ;;  %4743 = vmatprep.subr.bf16.mxu0 %v19115_v56 }
 0x4a2   : > { %4698 = vmatprep.subr.bf16.mxu1 %v19109_v25 }
 0x4a4   : > { %4744 = vmatpush1.bf16.msra.mxu0 %v19128_v4 }
 0x4a5   : > { %4699 = vmatpush1.bf16.msra.mxu1 %v19122_v50  ;;  %4745 = vmatprep.subr.bf16.mxu0 %v19140_v58  ;;  %v23617_v58 = vld [vmem:[#allocation34_spill] sm:$0xff] }
 0x4a6   : > { %4700 = vmatprep.subr.bf16.mxu1 %v19134_v40 }
 0x4a8   : > { %4746 = vmatpush1.bf16.msra.mxu0 %v19152_v27 }
 0x4a9   : > { %4701 = vmatpush2.bf16.msra.mxu1 %v19146_v37  ;;  %4747 = vmatprep.subr.bf16.mxu0 %v19164_v22  ;;  %v23618_v37 = vld [vmem:[#allocation43_spill] sm:$0xff] }
 0x4aa   : > { %4702 = vmatprep.subr.bf16.mxu1 %v19158_v54 }
 0x4ac   : > { %4748 = vmatpush1.bf16.msra.mxu0 %v19176_v43 }
 0x4ad   : > { %4703 = vmatpush2.bf16.msra.mxu1 %v19170_v55  ;;  %4749 = vmatprep.subr.bf16.mxu0 %v19188_v1  ;;  %v23621_v1 = vld [vmem:[#allocation79_spill] sm:$0xff] }
 0x4ae   : > { %4704 = vmatprep.subr.bf16.mxu1 %v19182_v62 }
 0x4b0   : > { %4750 = vmatpush1.bf16.msra.mxu0 %v19200_v59 }
 0x4b1   : > { %4705 = vmatpush2.bf16.msra.mxu1 %v19194_v63  ;;  %4751 = vmatprep.subr.bf16.mxu0 %v19212_v11  ;;  %v23622_v63 = vld [vmem:[#allocation80_spill] sm:$0xff]  ;;  %v23624_v11 = vld [vmem:[#allocation82_spill] sm:$0xff] }
 0x4b2   : > { %4706 = vmatprep.subr.bf16.mxu1 %v19206_v26  ;;  %v23623_v26 = vld [vmem:[#allocation81_spill] sm:$0xff] }
 0x4b4   : > { %4752 = vmatpush1.bf16.msra.mxu0 %v19224_v2  ;;  %v23625_v2 = vld [vmem:[#allocation60_spill] sm:$0xff] }
 0x4b5   : > { %4707 = vmatpush2.bf16.msra.mxu1 %v19218_v3  ;;  %4753 = vmatprep.subr.bf16.mxu0 %v19240_v8 }
 0x4b6   : > { %4708 = vmatprep.subr.bf16.mxu1 %v19234_v12 }
 0x4b7   : > { %v4152_v38 = vpop.f32.mrf.mxu0 }
 0x4b8   : > { %v4205_v28 = vpop.f32.mrf.mxu1  ;;  %4754 = vmatpush2.bf16.msra.mxu0 %v19252_v31  ;;  %v23626_v31 = vld [vmem:[#allocation3_spill] sm:$0xff] }
 0x4b9   : > { %v4206_v32 = vadd.f32 %v4205_v28, %v4152_v38  ;;  %4709 = vmatpush2.bf16.msra.mxu1 %v19246_v16  ;;  %v4154_v41 = vpop.f32.mrf.mxu0  ;;  %4755 = vmatprep.subr.bf16.mxu0 %v19268_v46  ;;  %v23627_v16 = vld [vmem:[#allocation4_spill] sm:$0xff]  ;;  %v23642_v28 = vld [vmem:[#allocation93_spill] sm:$0xff] }
 0x4ba   : > { %v4207_v13 = vpop.f32.mrf.mxu1  ;;  %4710 = vmatprep.subr.bf16.mxu1 %v19262_v20  ;;  %v1343_v12 = vadd.f32 %v23627_v16, %v23626_v31  ;;  %v23628_v20 = vld [vmem:[#allocation83_spill] sm:$0xff]  ;;  %v23629_v46 = vld [vmem:[#allocation84_spill] sm:$0xff] }
 0x4bb   : > { %v19797_v30 = vadd.f32 %v4207_v13, %v4154_v41  ;;  %v4156_v49 = vpop.f32.mrf.mxu0  ;;  %v23641_v38 = vld [vmem:[#allocation92_spill] sm:$0xff]  ;;  %v23644_v13 = vld [vmem:[#allocation107_spill] sm:$0xff] }
 0x4bc   : > { %v4209_v19 = vpop.f32.mrf.mxu1  ;;  %4756 = vmatpush2.bf16.msra.mxu0 %v19280_v44  ;;  %v23620_v44 = vld [vmem:[#allocation77_spill] sm:$0xff]  ;;  %v1396_v6 = vadd.f32 %v23634_v14, %v1343_v12  ;;  %v23654_v12 = vld [vmem:[#allocation100_spill] sm:$0xff] }
 0x4bd   : > { %v4210_v52 = vadd.f32 %v4209_v19, %v4156_v49  ;;  %4711 = vmatpush2.bf16.msra.mxu1 %v19274_v35  ;;  %v19801_v25 = vpop.f32.mrf.mxu0  ;;  %4757 = vmatprep.subr.bf16.mxu0 %v19296_v29  ;;  %v23619_v35 = vld [vmem:[#allocation76_spill] sm:$0xff]  ;;  %v23631_v29 = vld [vmem:[#allocation22_spill] sm:$0xff]  ;;  %v23658_v14 = vld [vmem:[#allocation13_spill] sm:$0xff] }
 0x4be   : > { %v19803_v56 = vpop.f32.mrf.mxu1  ;;  %4712 = vmatprep.subr.bf16.mxu1 %v19290_v42  ;;  %v23630_v42 = vld [vmem:[#allocation21_spill] sm:$0xff]  ;;  %v1865_v17 = vadd.f32 %v23637_v18, %v1396_v6  ;;  %v13311_v18 = vld [vmem:[%s22834_s4 + $0xcc] ss:$20 sps:$4 sm:$0xff]  }
 0x4bf   : > { %v4162_v50 = vpop.f32.mrf.mxu0  ;;  %v2177_v5 = vadd.f32 %v23631_v29, %v23630_v42  ;;  %v13305_v42 = vld [vmem:[%s22834_s4 + $0xf4] ss:$20 sps:$4 sm:$0xff]  }
 0x4c0   : > { %v4215_v4 = vpop.f32.mrf.mxu1  ;;  %4758 = vmatpush2.bf16.msra.mxu0 %v23618_v37  ;;  %v23648_v37 = vld [vmem:[#allocation94_spill] sm:$0xff] }
 0x4c1   : > { %v4216_v40 = vadd.f32 %v4215_v4, %v4162_v50  ;;  %4713 = vmatpush2.bf16.msra.mxu1 %v23617_v58  ;;  %v4164_v27 = vpop.f32.mrf.mxu0  ;;  %4759 = vmatprep.subr.bf16.mxu0 %v23620_v44  ;;  %v2230_v24 = vadd.f32 %v23636_v57, %v2177_v5  ;;  %v23645_v50 = vld [vmem:[#allocation66_spill] sm:$0xff]  ;;  %v23651_v44 = vld [vmem:[#allocation99_spill] sm:$0xff] }
 0x4c2   : > { %v4217_v54 = vpop.f32.mrf.mxu1  ;;  %4714 = vmatprep.subr.bf16.mxu1 %v23619_v35  ;;  %v23650_v35 = vld [vmem:[#allocation98_spill] sm:$0xff]  ;;  %v13306_v57 = vld [vmem:[%s22834_s4 + $0x370] ss:$20 sps:$4 sm:$0xff]  }
 0x4c3   : > { %v4218_v22 = vadd.f32 %v4217_v54, %v4164_v27  ;;  %v4166_v55 = vpop.f32.mrf.mxu0  ;;  %v2283_v51 = vadd.f32 %v23640_v33, %v2230_v24  ;;  %v23649_v27 = vld [vmem:[#allocation95_spill] sm:$0xff]  ;;  %v23659_v24 = vld [vmem:[#allocation104_spill] sm:$0xff] }
 0x4c4   : > { %v4219_v43 = vpop.f32.mrf.mxu1  ;;  %4760 = vmatpush2.bf16.msra.mxu0 %v23622_v63 }
 0x4c5   : > { %v4220_v62 = vadd.f32 %v4219_v43, %v4166_v55  ;;  %4715 = vmatpush2.bf16.msra.mxu1 %v23621_v1  ;;  %v19813_v59 = vpop.f32.mrf.mxu0  ;;  %4761 = vmatprep.subr.bf16.mxu0 %v23623_v26  ;;  %v2336_v49 = vadd.f32 %v23644_v13, %v2283_v51  ;;  %v13299_v55 = vld [vmem:[%s22834_s4 + $0x11c] ss:$20 sps:$4 sm:$0xff]   ;;  %v23652_v1 = vld [vmem:[#allocation15_spill] sm:$0xff]  ;;  %v23653_v26 = vld [vmem:[#allocation108_spill] sm:$0xff] }
 0x4c6   : > { %4798 = vmatprep.subr.bf16.mxu1 %v23624_v11  ;;  %v13302_v43 = vld [vmem:[%s22834_s4 + $0x39c] ss:$20 sps:$4 sm:$0xff]   ;;  %v13317_v13 = vld [vmem:[%s22834_s4 + $0xa4] ss:$20 sps:$4 sm:$0xff]  }
 0x4c7   : > { %v4258_v3 = vpop.f32.mrf.mxu0  ;;  %v2389_v11 = vadd.f32 %v23653_v26, %v2336_v49  ;;  %v13320_v49 = vld [vmem:[%s22834_s4 + $0x324] ss:$20 sps:$4 sm:$0xff]  }
 0x4c8   : > { %4717 = vmatmul.mubr.bf16.vlgmr.msra.gmra.mxu1 %v23625_v2  ;;  %v19820_v8 = vadd.f32 %v4258_v3, %v4206_v32  ;;  %4762 = vmatpush2.bf16.msra.mxu0 %v23628_v20  ;;  %v23643_v32 = vld [vmem:[#allocation14_spill] sm:$0xff]  ;;  %v14973_v2 = vld [vmem:[%s22833_s3] sm:$0x3]  ;;  %v23655_v20 = vld [vmem:[#allocation101_spill] sm:$0xff] }
 0x4c9   : > { %4799 = vmatpush1.bf16.msra.mxu1 %v23629_v46  ;;  %v19826_v48 = vpop.f32.mrf.mxu0  ;;  %4763 = vmatprep.subr.bf16.mxu0 %v23632_v15  ;;  %v1918_v41 = vadd.f32 %v23643_v32, %v1865_v17  ;;  %v13300_v46 = vld [vmem:[%s22834_s4 + $0x398] ss:$20 sps:$4 sm:$0xff]   ;;  %v23656_v15 = vld [vmem:[#allocation61_spill] sm:$0xff]  ;;  %v13312_v32 = vld [vmem:[%s22834_s4 + $0x348] ss:$20 sps:$4 sm:$0xff]  }
 0x4ca   : > { %4800 = vmatprep.subr.bf16.mxu1 %v23633_v7  ;;  %4726 = vmatprep.mubr.bf16.mxu1 %v23635_v21  ;;  %v23657_v7 = vld [vmem:[#allocation68_spill] sm:$0xff]  ;;  %v13303_v21 = vld [vmem:[%s22834_s4 + $0xf0] ss:$20 sps:$4 sm:$0xff]  }
 0x4cb   : > { %v4262_v61 = vpop.f32.mrf.mxu0  ;;  %v13314_v17 = vld [vmem:[%s22834_s4 + $0x34c] ss:$20 sps:$4 sm:$0xff]   ;;  %v13327_v26 = vld [vmem:[%s22834_s4 + $0x50] ss:$20 sps:$4 sm:$0xff]  }
 0x4cc   : > { %v19834_v9 = vadd.f32 %v4262_v61, %v4210_v52  ;;  %4764 = vmatpush2.bf16.msra.mxu0 %v23638_v53  ;;  %v23646_v52 = vld [vmem:[#allocation7_spill] sm:$0xff] }
 0x4cd   : > { %4801 = vmatpush1.bf16.msra.mxu1 %v23639_v23  ;;  %v19839_v0 = vpop.f32.mrf.mxu0  ;;  %4765 = vmatprep.subr.bf16.mxu0 %v23641_v38  ;;  %v19847_v4 = vsub.s32 1, %v23646_v52  ;;  %v23660_v23 = vld [vmem:[#allocation64_spill] sm:$0xff] }
 0x4ce   : > { %4802 = vmatprep.subr.bf16.mxu1 %v23642_v28  ;;  %v13309_v38 = vld [vmem:[%s22834_s4 + $0xc8] ss:$20 sps:$4 sm:$0xff]  }
 0x4cf   : > { %v4268_v19 = vpop.f32.mrf.mxu0  ;;  %23647 = vst [vmem:[#allocation114_spill] sm:$0xff] %v19847_v4  ;;  %v19870_v31 = vrot.slane %v14973_v2, %v19847_v4  ;;  %v13338_v2 = vld [vmem:[%s22834_s4 + $0x2ac] ss:$20 sps:$4 sm:$0xff]   ;;  %v23721_v4 = vld [vmem:[#allocation54_spill] sm:$0xff] }
 0x4d0   : > { %4727 = vmatmul.mubr.bf16.gmra.mxu1 %v23645_v50  ;;  %v19849_v58 = vadd.f32 %v4268_v19, %v4216_v40  ;;  %4766 = vmatpush2.bf16.msra.mxu0 %v23648_v37  ;;  %v1971_v40 = vadd.f32 %v23652_v1, %v1918_v41  ;;  %v23661_v19 = vld [vmem:[#allocation67_spill] sm:$0xff]  ;;  %v23662_v50 = vld [vmem:[#allocation69_spill] sm:$0xff] }
 0x4d1   : > { %4803 = vmatpush1.bf16.msra.mxu1 %v23649_v27  ;;  %v4270_v54 = vpop.f32.mrf.mxu0  ;;  %4767 = vmatprep.subr.bf16.mxu0 %v23650_v35  ;;  %v2404_v5 = vadd.f32 %v2389_v11, %v19870_v31  ;;  %v1995_v6 = vadd.f32 %v19870_v31, %v23658_v14  ;;  %v2402_v61 = vadd.f32 %v23659_v24, %v19870_v31  ;;  %v13315_v27 = vld [vmem:[%s22834_s4 + $0xa0] ss:$20 sps:$4 sm:$0xff]   ;;  %v13323_v35 = vld [vmem:[%s22834_s4 + $0x7c] ss:$20 sps:$4 sm:$0xff]   ;;  %v13348_v14 = vld [vmem:[%s22834_s4 + $0x4d8] ss:$20 sps:$4 sm:$0xff]  }
 0x4d2   : > { %4804 = vmatprep.subr.bf16.mxu1 %v23651_v44  ;;  %v19862_v63 = vadd.f32 %v4270_v54, %v4218_v22  ;;  %4822 = vmatprep.mubr.bf16.mxu1 %v23139_v34  ;;  %v13297_v22 = vld [vmem:[%s22834_s4 + $0x118] ss:$20 sps:$4 sm:$0xff]   ;;  %v1997_v29 = vadd.f32 %v19870_v31, %v1971_v40  ;;  %v13318_v54 = vld [vmem:[%s22834_s4 + $0x320] ss:$20 sps:$4 sm:$0xff]   ;;  %v13326_v44 = vld [vmem:[%s22834_s4 + $0x2fc] ss:$20 sps:$4 sm:$0xff]  }
 0x4d3   : > { %v4272_v3 = vpop.f32.mrf.mxu0  ;;  %v2412_v33 = vmax.f32 %v2404_v5, 0.0  ;;  %v2003_v51 = vmax.f32 %v1995_v6, 0.0  ;;  %v2410_v28 = vmax.f32 %v2402_v61, 0.0  ;;  %v13329_v1 = vld [vmem:[%s22834_s4 + $0x54] ss:$20 sps:$4 sm:$0xff]  }
 0x4d4   : > { %v19872_v16 = vadd.f32 %v4272_v3, %v4220_v62  ;;  %4768 = vmatpush2.bf16.msra.mxu0 %v23654_v12  ;;  %v13308_v62 = vld [vmem:[%s22834_s4 + $0x374] ss:$20 sps:$4 sm:$0xff]   ;;  %v2005_v53 = vmax.f32 %v1997_v29, 0.0  ;;  %v13330_v11 = vld [vmem:[%s22834_s4 + $0x2d0] ss:$20 sps:$4 sm:$0xff]  }
 0x4d5   : > { %4805 = vmatpush1.bf16.msra.mxu1 %v23655_v20  ;;  %8986 = vmatprep.subr.bf16.mxu0 %v13299_v55  ;;  %v19928_v37 = vpack.c.bf16 %v2412_v33, %v2410_v28  ;;  %v13321_v55 = vld [vmem:[%s22834_s4 + $0x78] ss:$20 sps:$4 sm:$0xff]   ;;  %v13332_v40 = vld [vmem:[%s22834_s4 + $0x2d4] ss:$20 sps:$4 sm:$0xff]   ;;  %v13347_v29 = vld [vmem:[%s22834_s4 + $0x25c] ss:$20 sps:$4 sm:$0xff]  }
 0x4d6   : > { %9039 = vmatprep.subr.bf16.mxu1 %v13302_v43  ;;  %v19917_v41 = vpack.c.bf16 %v2005_v53, %v2003_v51  ;;  %v13324_v43 = vld [vmem:[%s22834_s4 + $0x2f8] ss:$20 sps:$4 sm:$0xff]   ;;  %v13333_v12 = vld [vmem:[%s22834_s4 + $0x28] ss:$20 sps:$4 sm:$0xff]   ;;  %v13351_v61 = vld [vmem:[%s22834_s4 + $0x230] ss:$20 sps:$4 sm:$0xff]  }
 0x4d7   : > { %4770 = vmatmul.mubr.bf16.vlgmr.msra.gmra.mxu0 %v23656_v15  ;;  %v13335_v3 = vld [vmem:[%s22834_s4 + $0x2c] ss:$20 sps:$4 sm:$0xff]   ;;  %v13336_v20 = vld [vmem:[%s22834_s4 + $0x2a8] ss:$20 sps:$4 sm:$0xff]  }
 0x4d8   : > { %11837 = vmatmul.mubr.msk.bf16.vlgmr.msra.gmra.mxu1 %vm1242_vm0, %v23657_v7  ;;  %8987 = vmatpush1.bf16.msra.mxu0 %v13297_v22  ;;  %v13341_v22 = vld [vmem:[%s22834_s4 + $0x4] ss:$20 sps:$4 sm:$0xff]   ;;  %v13350_v5 = vld [vmem:[%s22834_s4 + $0x4dc] ss:$20 sps:$4 sm:$0xff]   ;;  %v19995_v7 = vpop.f32.mrf.mxu1  ;;  %v13353_v6 = vld [vmem:[%s22834_s4 + $0x234] ss:$20 sps:$4 sm:$0xff]  }
 0x4d9   : > { %9040 = vmatpush1.bf16.msra.mxu1 %v13300_v46  ;;  %8988 = vmatprep.subr.bf16.mxu0 %v13305_v42  ;;  %v13344_v46 = vld [vmem:[%s22834_s4 + $0x284] ss:$20 sps:$4 sm:$0xff]   ;;  %v13339_v42 = vld [vmem:[%s22834_s4] ss:$20 sps:$4 sm:$0xff]   ;;  %v13357_v51 = vld [vmem:[%s22834_s4 + $0x208] ss:$20 sps:$4 sm:$0xff]  }
 0x4da   : > { %9041 = vmatprep.subr.bf16.mxu1 %v13308_v62  ;;  %4779 = vmatprep.mubr.bf16.mxu0 %v23660_v23  ;;  %v13342_v62 = vld [vmem:[%s22834_s4 + $0x280] ss:$20 sps:$4 sm:$0xff]   ;;  %v13345_v15 = vld [vmem:[%s22834_s4 + $0x258] ss:$20 sps:$4 sm:$0xff]   ;;  %v13360_v28 = vld [vmem:[%s22834_s4 + $0x488] ss:$20 sps:$4 sm:$0xff]  }
 0x4db   : > { %4832 = vmatprep.mubr.bf16.mxu1 %v23139_v34  ;;  %v13359_v53 = vld [vmem:[%s22834_s4 + $0x20c] ss:$20 sps:$4 sm:$0xff]  }
 0x4dc   : > { %8989 = vmatpush1.bf16.msra.mxu0 %v13303_v21  ;;  %v13356_v21 = vld [vmem:[%s22834_s4 + $0x4b4] ss:$20 sps:$4 sm:$0xff]  }
 0x4dd   : > { %9042 = vmatpush1.bf16.msra.mxu1 %v13306_v57  ;;  %8990 = vmatprep.subr.bf16.mxu0 %v13311_v18 }
 0x4de   : > { %9043 = vmatprep.subr.bf16.mxu1 %v13314_v17  ;;  %v13354_v17 = vld [vmem:[%s22834_s4 + $0x4b0] ss:$20 sps:$4 sm:$0xff]  }
 0x4df   : > { %4780 = vmatmul.mubr.bf16.gmra.mxu0 %v23661_v19 }
 0x4e0   : > { %11838 = vmatmul.mubr.msk.bf16.gmra.mxu1 %vm1242_vm0, %v23662_v50  ;;  %8991 = vmatpush1.bf16.msra.mxu0 %v13309_v38 }
 0x4e1   : > { %9018 = vmatprep.mubr.bf16.mxu0 %v19917_v41  ;;  %9044 = vmatpush1.bf16.msra.mxu1 %v13312_v32  ;;  %v13365_v32 = vld [vmem:[%s22834_s4 + $0x1e4] ss:$20 sps:$4 sm:$0xff]  }
 0x4e2   : > { %9071 = vmatprep.mubr.bf16.mxu1 %v19928_v37  ;;  %8992 = vmatprep.subr.bf16.mxu0 %v13317_v13  ;;  %v23663_v13 = vld [vmem:[#allocation5_spill] sm:$0xff] }
 0x4e3   : > { %9045 = vmatprep.subr.bf16.mxu1 %v13320_v49  ;;  %v23664_v49 = vld [vmem:[#allocation9_spill] sm:$0xff] }
 0x4e4   : > { %8993 = vmatpush1.bf16.msra.mxu0 %v13315_v27  ;;  %v1353_v19 = vadd.f32 %v23664_v49, %v23663_v13  ;;  %v23675_v13 = vld [vmem:[#allocation20_spill] sm:$0xff] }
 0x4e5   : > { %9046 = vmatpush1.bf16.msra.mxu1 %v13318_v54  ;;  %8994 = vmatprep.subr.bf16.mxu0 %v13323_v35  ;;  %v13363_v54 = vld [vmem:[%s22834_s4 + $0x1e0] ss:$20 sps:$4 sm:$0xff]  }
 0x4e6   : > { %9047 = vmatprep.subr.bf16.mxu1 %v13326_v44  ;;  %v23665_v35 = vld [vmem:[#allocation11_spill] sm:$0xff] }
 0x4e7   : > { %v1406_v44 = vadd.f32 %v23665_v35, %v1353_v19  ;;  %v23676_v19 = vld [vmem:[#allocation24_spill] sm:$0xff] }
 0x4e8   : > { %8995 = vmatpush1.bf16.msra.mxu0 %v13321_v55  ;;  %v23666_v55 = vld [vmem:[#allocation26_spill] sm:$0xff]  ;;  %v23678_v35 = vld [vmem:[#allocation48_spill] sm:$0xff] }
 0x4e9   : > { %9048 = vmatpush1.bf16.msra.mxu1 %v13324_v43  ;;  %8996 = vmatprep.subr.bf16.mxu0 %v13329_v1  ;;  %v23667_v43 = vld [vmem:[#allocation78_spill] sm:$0xff] }
 0x4ea   : > { %9049 = vmatprep.subr.bf16.mxu1 %v13332_v40  ;;  %v2187_v1 = vadd.f32 %v23667_v43, %v23666_v55 }
 0x4ec   : > { %8997 = vmatpush1.bf16.msra.mxu0 %v13327_v26  ;;  %v13366_v26 = vld [vmem:[%s22834_s4 + $0x460] ss:$20 sps:$4 sm:$0xff]  }
 0x4ed   : > { %9050 = vmatpush1.bf16.msra.mxu1 %v13330_v11  ;;  %8998 = vmatprep.subr.bf16.mxu0 %v13335_v3  ;;  %v13374_v3 = vld [vmem:[%s22834_s4 + $0x43c] ss:$20 sps:$4 sm:$0xff]  }
 0x4ee   : > { %9051 = vmatprep.subr.bf16.mxu1 %v13338_v2  ;;  %v23668_v2 = vld [vmem:[#allocation12_spill] sm:$0xff] }
 0x4f0   : > { %8999 = vmatpush1.bf16.msra.mxu0 %v13333_v12  ;;  %v1875_v12 = vadd.f32 %v23668_v2, %v1406_v44  ;;  %v23680_v2 = vld [vmem:[#allocation27_spill] sm:$0xff] }
 0x4f1   : > { %9052 = vmatpush1.bf16.msra.mxu1 %v13336_v20  ;;  %9000 = vmatprep.subr.bf16.mxu0 %v13341_v22  ;;  %v23669_v20 = vld [vmem:[#allocation96_spill] sm:$0xff] }
 0x4f2   : > { %9053 = vmatprep.subr.bf16.mxu1 %v13344_v46  ;;  %v2240_v22 = vadd.f32 %v23669_v20, %v2187_v1  ;;  %v13383_v1 = vld [vmem:[%s22834_s4 + $0x16c] ss:$20 sps:$4 sm:$0xff]   ;;  %v23681_v20 = vld [vmem:[#allocation65_spill] sm:$0xff] }
 0x4f4   : > { %9001 = vmatpush1.bf16.msra.mxu0 %v13339_v42 }
 0x4f5   : > { %9054 = vmatpush1.bf16.msra.mxu1 %v13342_v62  ;;  %9002 = vmatprep.subr.bf16.mxu0 %v13347_v29  ;;  %v13369_v62 = vld [vmem:[%s22834_s4 + $0x1b8] ss:$20 sps:$4 sm:$0xff]  }
 0x4f6   : > { %9055 = vmatprep.subr.bf16.mxu1 %v13350_v5  ;;  %v23671_v5 = vld [vmem:[#allocation97_spill] sm:$0xff] }
 0x4f8   : > { %v4311_v57 = vpop.f32.mrf.mxu1  ;;  %9003 = vmatpush2.bf16.msra.mxu0 %v13345_v15  ;;  %v2293_v15 = vadd.f32 %v23671_v5, %v2240_v22 }
 0x4f9   : > { %v4312_v24 = vadd.f32 %v4311_v57, %v19820_v8  ;;  %9056 = vmatpush2.bf16.msra.mxu1 %v13348_v14  ;;  %9004 = vmatprep.subr.bf16.mxu0 %v13353_v6  ;;  %v13362_v8 = vld [vmem:[%s22834_s4 + $0x48c] ss:$20 sps:$4 sm:$0xff]   ;;  %v20071_v14 = vpop.f32.mrf.mxu0  ;;  %v13380_v57 = vld [vmem:[%s22834_s4 + $0x414] ss:$20 sps:$4 sm:$0xff]  }
 0x4fa   : > { %v20010_v18 = vpop.f32.mrf.mxu1  ;;  %9057 = vmatprep.subr.bf16.mxu1 %v13356_v21  ;;  %v13377_v21 = vld [vmem:[%s22834_s4 + $0x194] ss:$20 sps:$4 sm:$0xff]  }
 0x4fc   : > { %v4315_v23 = vpop.f32.mrf.mxu1  ;;  %9005 = vmatpush2.bf16.msra.mxu0 %v13351_v61  ;;  %v23672_v61 = vld [vmem:[#allocation127_spill] sm:$0xff] }
 0x4fd   : > { %v20022_v33 = vadd.f32 %v4315_v23, %v19834_v9  ;;  %9058 = vmatpush2.bf16.msra.mxu1 %v13354_v17  ;;  %9006 = vmatprep.subr.bf16.mxu0 %v13359_v53  ;;  %v13368_v9 = vld [vmem:[%s22834_s4 + $0x464] ss:$20 sps:$4 sm:$0xff]   ;;  %v2346_v17 = vadd.f32 %v23672_v61, %v2293_v15  ;;  %v23673_v53 = vld [vmem:[#allocation129_spill] sm:$0xff] }
 0x4fe   : > { %v20027_v38 = vpop.f32.mrf.mxu1  ;;  %9059 = vmatprep.subr.bf16.mxu1 %v13362_v8  ;;  %v23674_v8 = vld [vmem:[#allocation130_spill] sm:$0xff]  ;;  %v23682_v15 = vld [vmem:[#allocation31_spill] sm:$0xff] }
 0x4ff   : > { %v2584_v23 = vadd.f32 %v23674_v8, %v23673_v53  ;;  %v13389_v53 = vld [vmem:[%s22834_s4 + $0x144] ss:$20 sps:$4 sm:$0xff]  }
 0x500   : > { %v4321_v50 = vpop.f32.mrf.mxu1  ;;  %9007 = vmatpush2.bf16.msra.mxu0 %v13357_v51 }
 0x501   : > { %v20041_v27 = vadd.f32 %v4321_v50, %v19849_v58  ;;  %9060 = vmatpush2.bf16.msra.mxu1 %v13360_v28  ;;  %9008 = vmatprep.subr.bf16.mxu0 %v13365_v32  ;;  %v13371_v58 = vld [vmem:[%s22834_s4 + $0x1bc] ss:$20 sps:$4 sm:$0xff]   ;;  %v2637_v50 = vadd.f32 %v23676_v19, %v2584_v23 }
 0x502   : > { %v4323_v40 = vpop.f32.mrf.mxu1  ;;  %9061 = vmatprep.subr.bf16.mxu1 %v13368_v9  ;;  %v13375_v9 = vld [vmem:[%s22834_s4 + $0x190] ss:$20 sps:$4 sm:$0xff]  }
 0x503   : > { %v20056_v11 = vadd.f32 %v4323_v40, %v19862_v63  ;;  %v23670_v63 = vld [vmem:[#allocation19_spill] sm:$0xff]  ;;  %v23685_v19 = vld [vmem:[#allocation17_spill] sm:$0xff] }
 0x504   : > { %v4325_v46 = vpop.f32.mrf.mxu1  ;;  %9009 = vmatpush2.bf16.msra.mxu0 %v13363_v54  ;;  %v1928_v29 = vadd.f32 %v23670_v63, %v1875_v12  ;;  %v23677_v54 = vld [vmem:[#allocation47_spill] sm:$0xff]  ;;  %v2690_v12 = vadd.f32 %v23680_v2, %v2637_v50  ;;  %v1999_v50 = vadd.f32 %v19870_v31, %v23685_v19  ;;  %v23689_v2 = vld [vmem:[#allocation145_spill] sm:$0xff] }
 0x505   : > { %v20064_v42 = vadd.f32 %v4325_v46, %v19872_v16  ;;  %9062 = vmatpush2.bf16.msra.mxu1 %v13366_v26  ;;  %9010 = vmatprep.subr.bf16.mxu0 %v13371_v58  ;;  %v13372_v16 = vld [vmem:[%s22834_s4 + $0x438] ss:$20 sps:$4 sm:$0xff]   ;;  %v2991_v44 = vadd.f32 %v23678_v35, %v23677_v54 }
 0x506   : > { %v20073_v6 = vpop.f32.mrf.mxu1  ;;  %9063 = vmatprep.subr.bf16.mxu1 %v13374_v3  ;;  %v1981_v49 = vadd.f32 %v23675_v13, %v1928_v29  ;;  %v13386_v26 = vld [vmem:[%s22834_s4 + $0x3ec] ss:$20 sps:$4 sm:$0xff]   ;;  %v13381_v29 = vld [vmem:[%s22834_s4 + $0x168] ss:$20 sps:$4 sm:$0xff]  }
 0x507   : > { %v4364_v51 = vpop.f32.mrf.mxu0  ;;  %v23679_v58 = vld [vmem:[#allocation128_spill] sm:$0xff]  ;;  %v3044_v22 = vadd.f32 %v23681_v20, %v2991_v44  ;;  %v13387_v44 = vld [vmem:[%s22834_s4 + $0x140] ss:$20 sps:$4 sm:$0xff]  }
 0x508   : > { %v4417_v28 = vpop.f32.mrf.mxu1  ;;  %v4365_v32 = vadd.f32 %v4364_v51, %v4312_v24  ;;  %9011 = vmatpush2.bf16.msra.mxu0 %v13369_v62  ;;  %v13378_v24 = vld [vmem:[%s22834_s4 + $0x410] ss:$20 sps:$4 sm:$0xff]   ;;  %v2399_v3 = vadd.f32 %v23679_v58, %v2346_v17  ;;  %v2001_v5 = vadd.f32 %v19870_v31, %v1981_v49 }
 0x509   : > { %9064 = vmatpush2.bf16.msra.mxu1 %v13372_v16  ;;  %v20094_v55 = vpop.f32.mrf.mxu0  ;;  %9012 = vmatprep.subr.bf16.mxu0 %v13377_v21  ;;  %v2743_v16 = vadd.f32 %v23682_v15, %v2690_v12  ;;  %v23683_v21 = vld [vmem:[#allocation122_spill] sm:$0xff] }
 0x50a   : > { %v20096_v43 = vpop.f32.mrf.mxu1  ;;  %v4418_v40 = vadd.f32 %v4417_v28, %v4365_v32  ;;  %9065 = vmatprep.subr.bf16.mxu1 %v13380_v57  ;;  %v3097_v57 = vadd.f32 %v23683_v21, %v3044_v22  ;;  %v13392_v51 = vld [vmem:[%s22834_s4 + $0x3c4] ss:$20 sps:$4 sm:$0xff]   ;;  %v2408_v28 = vadd.f32 %v2399_v3, %v19870_v31  ;;  %v23688_v3 = vld [vmem:[#allocation121_spill] sm:$0xff]  ;;  %v23690_v21 = vld [vmem:[#allocation152_spill] sm:$0xff] }
 0x50b   : > { %v4368_v46 = vpop.f32.mrf.mxu0  ;;  %v23684_v32 = vld [vmem:[#allocation151_spill] sm:$0xff]  ;;  %v3146_v12 = vadd.f32 %v23689_v2, %v23688_v3  ;;  %v13398_v15 = vld [vmem:[%s22834_s4 + $0x89c] ss:$20 sps:$4 sm:$0xff]  }
 0x50c   : > { %v4421_v62 = vpop.f32.mrf.mxu1  ;;  %v4369_v63 = vadd.f32 %v4368_v46, %v20022_v33  ;;  %9013 = vmatpush2.bf16.msra.mxu0 %v13375_v9  ;;  %v13384_v33 = vld [vmem:[%s22834_s4 + $0x3e8] ss:$20 sps:$4 sm:$0xff]   ;;  %v4436_v8 = vadd.f32 %v4418_v40, %v16443_v45  ;;  %v3150_v9 = vadd.f32 %v23684_v32, %v3097_v57  ;;  %v23696_v2 = vld [vmem:[#allocation117_spill] sm:$0xff] }
 0x50d   : > { %9066 = vmatpush2.bf16.msra.mxu1 %v13378_v24  ;;  %v20117_v61 = vpop.f32.mrf.mxu0  ;;  %9014 = vmatprep.subr.bf16.mxu0 %v13383_v1  ;;  %v2009_v24 = vmax.f32 %v2001_v5, 0.0  ;;  %v23686_v1 = vld [vmem:[#allocation118_spill] sm:$0xff] }
 0x50e   : > { %v20119_v17 = vpop.f32.mrf.mxu1  ;;  %v4422_v23 = vadd.f32 %v4421_v62, %v4369_v63  ;;  %9067 = vmatprep.subr.bf16.mxu1 %v13386_v26  ;;  %v2406_v40 = vadd.f32 %v23686_v1, %v19870_v31  ;;  %v23687_v26 = vld [vmem:[#allocation32_spill] sm:$0xff]  ;;  %v13395_v46 = vld [vmem:[%s22834_s4 + $0x61c] ss:$20 sps:$4 sm:$0xff]   ;;  %v4444_v62 = vmax.f32 %v4436_v8, 0.0  ;;  %v3203_v57 = vadd.f32 %v23690_v21, %v3150_v9 }
 0x50f   : > { %v4374_v13 = vpop.f32.mrf.mxu0  ;;  %v2796_v58 = vadd.f32 %v23687_v26, %v2743_v16  ;;  %v2416_v16 = vmax.f32 %v2408_v28, 0.0  ;;  %v13393_v28 = vld [vmem:[%s22834_s4 + $0x618] ss:$20 sps:$4 sm:$0xff]   ;;  %v13404_v26 = vld [vmem:[%s22834_s4 + $0x874] ss:$20 sps:$4 sm:$0xff]  }
 0x510   : > { %v4427_v49 = vpop.f32.mrf.mxu1  ;;  %v4438_v54 = vadd.f32 %v4422_v23, %v16443_v45  ;;  %v4375_v35 = vadd.f32 %v4374_v13, %v20041_v27  ;;  %9015 = vmatpush2.bf16.msra.mxu0 %v13381_v29  ;;  %v13390_v27 = vld [vmem:[%s22834_s4 + $0x3c0] ss:$20 sps:$4 sm:$0xff]   ;;  %v2007_v23 = vmax.f32 %v1999_v50, 0.0  ;;  %v2414_v8 = vmax.f32 %v2406_v40, 0.0  ;;  %v23693_v1 = vld [vmem:[#allocation16_spill] sm:$0xff] }
 0x511   : > { %9068 = vmatpush2.bf16.msra.mxu1 %v13384_v33  ;;  %v4376_v20 = vpop.f32.mrf.mxu0  ;;  %9016 = vmatprep.subr.bf16.mxu0 %v13389_v53 }
 0x512   : > { %v4429_v22 = vpop.f32.mrf.mxu1  ;;  %v4446_v63 = vmax.f32 %v4438_v54, 0.0  ;;  %v4377_v29 = vadd.f32 %v4376_v20, %v20056_v11  ;;  %v4428_v5 = vadd.f32 %v4427_v49, %v4375_v35  ;;  %9069 = vmatprep.subr.bf16.mxu1 %v13392_v51  ;;  %v2811_v11 = vadd.f32 %v2796_v58, %v19870_v31  ;;  %v23691_v49 = vld [vmem:[#allocation146_spill] sm:$0xff]  ;;  %v13401_v35 = vld [vmem:[%s22834_s4 + $0x5f4] ss:$20 sps:$4 sm:$0xff]  }
 0x513   : > { %v4378_v33 = vpop.f32.mrf.mxu0  ;;  %v3199_v51 = vadd.f32 %v23691_v49, %v3146_v12  ;;  %v20170_v54 = vpack.c.bf16 %v2009_v24, %v2007_v23  ;;  %v20177_v40 = vpack.c.bf16 %v2416_v16, %v2414_v8  ;;  %v23695_v58 = vld [vmem:[#allocation30_spill] sm:$0xff]  ;;  %v23700_v49 = vld [vmem:[#allocation123_spill] sm:$0xff] }
 0x514   : > { %v4431_v53 = vpop.f32.mrf.mxu1  ;;  %v20156_v32 = vpack.c.bf16 %v4446_v63, %v4444_v62  ;;  %v4379_v13 = vadd.f32 %v4378_v33, %v20064_v42  ;;  %9017 = vmatpush2.bf16.msra.mxu0 %v13387_v44  ;;  %v20161_v19 = vadd.f32 %v4429_v22, %v4377_v29  ;;  %v4440_v9 = vadd.f32 %v4428_v5, %v16443_v45  ;;  %v13396_v42 = vld [vmem:[%s22834_s4 + $0x898] ss:$20 sps:$4 sm:$0xff]   ;;  %v13399_v22 = vld [vmem:[%s22834_s4 + $0x5f0] ss:$20 sps:$4 sm:$0xff]   ;;  %v13408_v33 = vld [vmem:[%s22834_s4 + $0x848] ss:$20 sps:$4 sm:$0xff]  }
 0x515   : > { %9070 = vmatpush2.bf16.msra.mxu1 %v13390_v27  ;;  %9092 = vmatprep.subr.bf16.mxu0 %v13395_v46  ;;  %23692 = vst [vmem:[#allocation125_spill] sm:$0xff] %v20170_v54  ;;  %v3218_v44 = vadd.f32 %v3203_v57, %v19870_v31  ;;  %23694 = vst [vmem:[#allocation52_spill] sm:$0xff] %v20177_v40  ;;  %v2809_v3 = vadd.f32 %v23695_v58, %v19870_v31  ;;  %v2819_v12 = vmax.f32 %v2811_v11, 0.0  ;;  %v13402_v62 = vld [vmem:[%s22834_s4 + $0x870] ss:$20 sps:$4 sm:$0xff]  }
 0x516   : > { %v4432_v50 = vadd.f32 %v4431_v53, %v4379_v13  ;;  %9145 = vmatprep.subr.bf16.mxu1 %v13398_v15  ;;  %v3216_v20 = vadd.f32 %v3199_v51, %v19870_v31  ;;  %v4448_v27 = vmax.f32 %v4440_v9, 0.0  ;;  %v13407_v63 = vld [vmem:[%s22834_s4 + $0x5cc] ss:$20 sps:$4 sm:$0xff]   ;;  %v13405_v57 = vld [vmem:[%s22834_s4 + $0x5c8] ss:$20 sps:$4 sm:$0xff]  }
 0x517   : > { %9019 = vmatmul.mubr.bf16.vlgmr.msra.gmra.mxu0 %v23693_v1  ;;  %v3226_v29 = vmax.f32 %v3218_v44, 0.0  ;;  %v13410_v5 = vld [vmem:[%s22834_s4 + $0x84c] ss:$20 sps:$4 sm:$0xff]   ;;  %v2817_v15 = vmax.f32 %v2809_v3, 0.0  ;;  %v13413_v23 = vld [vmem:[%s22834_s4 + $0x5a4] ss:$20 sps:$4 sm:$0xff]  }
 0x518   : > { %v4442_v24 = vadd.f32 %v4432_v50, %v16443_v45  ;;  %9072 = vmatmul.mubr.bf16.vlgmr.msra.gmra.mxu1 %v23696_v2  ;;  %9028 = vmatprep.mubr.bf16.mxu0 %v20170_v54  ;;  %v3224_v21 = vmax.f32 %v3216_v20, 0.0  ;;  %v23698_v13 = vld [vmem:[#allocation18_spill] sm:$0xff]  ;;  %v13411_v51 = vld [vmem:[%s22834_s4 + $0x5a0] ss:$20 sps:$4 sm:$0xff]   ;;  %v13423_v58 = vld [vmem:[%s22834_s4 + $0x550] ss:$20 sps:$4 sm:$0xff]  }
 0x519   : > { %9081 = vmatprep.mubr.bf16.mxu1 %v20177_v40  ;;  %9093 = vmatpush1.bf16.msra.mxu0 %v13393_v28  ;;  %v20209_v53 = vpack.c.bf16 %v2819_v12, %v2817_v15  ;;  %v13416_v11 = vld [vmem:[%s22834_s4 + $0x824] ss:$20 sps:$4 sm:$0xff]   ;;  %v13414_v28 = vld [vmem:[%s22834_s4 + $0x820] ss:$20 sps:$4 sm:$0xff]   ;;  %v13419_v9 = vld [vmem:[%s22834_s4 + $0x57c] ss:$20 sps:$4 sm:$0xff]  }
 0x51a   : > { %v4450_v46 = vmax.f32 %v4442_v24, 0.0  ;;  %9146 = vmatpush1.bf16.msra.mxu1 %v13396_v42  ;;  %9094 = vmatprep.subr.bf16.mxu0 %v13401_v35  ;;  %v20215_v8 = vpack.c.bf16 %v3226_v29, %v3224_v21  ;;  %v13422_v50 = vld [vmem:[%s22834_s4 + $0x7fc] ss:$20 sps:$4 sm:$0xff]   ;;  %v13417_v42 = vld [vmem:[%s22834_s4 + $0x578] ss:$20 sps:$4 sm:$0xff]  }
 0x51b   : > { %9147 = vmatprep.subr.bf16.mxu1 %v13404_v26  ;;  %23697 = vst [vmem:[#allocation126_spill] sm:$0xff] %v20209_v53  ;;  %v13420_v35 = vld [vmem:[%s22834_s4 + $0x7f8] ss:$20 sps:$4 sm:$0xff]   ;;  %v13425_v44 = vld [vmem:[%s22834_s4 + $0x554] ss:$20 sps:$4 sm:$0xff]  }
 0x51c   : > { %v20201_v16 = vpack.c.bf16 %v4450_v46, %v4448_v27  ;;  %23699 = vst [vmem:[#allocation53_spill] sm:$0xff] %v20215_v8  ;;  %v13428_v26 = vld [vmem:[%s22834_s4 + $0x7d4] ss:$20 sps:$4 sm:$0xff]   ;;  %v13426_v3 = vld [vmem:[%s22834_s4 + $0x7d0] ss:$20 sps:$4 sm:$0xff]  }
 0x51d   : > { %9095 = vmatpush1.bf16.msra.mxu0 %v13399_v22  ;;  %v13431_v24 = vld [vmem:[%s22834_s4 + $0x52c] ss:$20 sps:$4 sm:$0xff]   ;;  %v13429_v20 = vld [vmem:[%s22834_s4 + $0x528] ss:$20 sps:$4 sm:$0xff]   ;;  %v13437_v27 = vld [vmem:[%s22834_s4 + $0x504] ss:$20 sps:$4 sm:$0xff]  }
 0x51e   : > { %9148 = vmatpush1.bf16.msra.mxu1 %v13402_v62  ;;  %9096 = vmatprep.subr.bf16.mxu0 %v13407_v63  ;;  %v13434_v12 = vld [vmem:[%s22834_s4 + $0x7ac] ss:$20 sps:$4 sm:$0xff]   ;;  %v13432_v22 = vld [vmem:[%s22834_s4 + $0x7a8] ss:$20 sps:$4 sm:$0xff]   ;;  %v13440_v46 = vld [vmem:[%s22834_s4 + $0x784] ss:$20 sps:$4 sm:$0xff]  }
 0x51f   : > { %9029 = vmatmul.mubr.bf16.gmra.mxu0 %v23698_v13  ;;  %9149 = vmatprep.subr.bf16.mxu1 %v13410_v5  ;;  %v13435_v62 = vld [vmem:[%s22834_s4 + $0x500] ss:$20 sps:$4 sm:$0xff]   ;;  %v13443_v29 = vld [vmem:[%s22834_s4 + $0x75c] ss:$20 sps:$4 sm:$0xff]   ;;  %v13441_v15 = vld [vmem:[%s22834_s4 + $0x758] ss:$20 sps:$4 sm:$0xff]  }
 0x520   : > { %9082 = vmatmul.mubr.bf16.gmra.mxu1 %v23700_v49  ;;  %9124 = vmatprep.mubr.bf16.mxu0 %v20209_v53  ;;  %v13438_v63 = vld [vmem:[%s22834_s4 + $0x780] ss:$20 sps:$4 sm:$0xff]   ;;  %v13446_v5 = vld [vmem:[%s22834_s4 + $0x9dc] ss:$20 sps:$4 sm:$0xff]   ;;  %v13444_v21 = vld [vmem:[%s22834_s4 + $0x9d8] ss:$20 sps:$4 sm:$0xff]  }
 0x521   : > { %9097 = vmatpush1.bf16.msra.mxu0 %v13405_v57  ;;  %9177 = vmatprep.mubr.bf16.mxu1 %v20215_v8  ;;  %v13449_v57 = vld [vmem:[%s22834_s4 + $0x734] ss:$20 sps:$4 sm:$0xff]   ;;  %v23728_v53 = vld [vmem:[#allocation162_spill] sm:$0xff] }
 0x522   : > { %9150 = vmatpush1.bf16.msra.mxu1 %v13408_v33  ;;  %9098 = vmatprep.subr.bf16.mxu0 %v13413_v23  ;;  %v13452_v33 = vld [vmem:[%s22834_s4 + $0x9b4] ss:$20 sps:$4 sm:$0xff]   ;;  %v13447_v23 = vld [vmem:[%s22834_s4 + $0x730] ss:$20 sps:$4 sm:$0xff]   ;;  %v3220_v49 = vadd.f32 %v23728_v53, %v19870_v31 }
 0x523   : > { %9151 = vmatprep.subr.bf16.mxu1 %v13416_v11  ;;  %v13450_v11 = vld [vmem:[%s22834_s4 + $0x9b0] ss:$20 sps:$4 sm:$0xff]  }
 0x524   : > { %v13494_v53 = vld [vmem:[%s22834_s4 + $0xd9c] ss:$20 sps:$4 sm:$0xff]   ;;  %v3228_v40 = vmax.f32 %v3220_v49, 0.0 }
 0x525   : > { %9099 = vmatpush1.bf16.msra.mxu0 %v13411_v51  ;;  %v13455_v51 = vld [vmem:[%s22834_s4 + $0x70c] ss:$20 sps:$4 sm:$0xff]  }
 0x526   : > { %9152 = vmatpush1.bf16.msra.mxu1 %v13414_v28  ;;  %9100 = vmatprep.subr.bf16.mxu0 %v13419_v9  ;;  %v13458_v28 = vld [vmem:[%s22834_s4 + $0x98c] ss:$20 sps:$4 sm:$0xff]   ;;  %v13453_v9 = vld [vmem:[%s22834_s4 + $0x708] ss:$20 sps:$4 sm:$0xff]  }
 0x527   : > { %9153 = vmatprep.subr.bf16.mxu1 %v13422_v50  ;;  %v13456_v50 = vld [vmem:[%s22834_s4 + $0x988] ss:$20 sps:$4 sm:$0xff]  }
 0x529   : > { %9101 = vmatpush1.bf16.msra.mxu0 %v13417_v42  ;;  %v13461_v42 = vld [vmem:[%s22834_s4 + $0x6e4] ss:$20 sps:$4 sm:$0xff]  }
 0x52a   : > { %9154 = vmatpush1.bf16.msra.mxu1 %v13420_v35  ;;  %9102 = vmatprep.subr.bf16.mxu0 %v13425_v44  ;;  %v13464_v35 = vld [vmem:[%s22834_s4 + $0x964] ss:$20 sps:$4 sm:$0xff]  }
 0x52b   : > { %9155 = vmatprep.subr.bf16.mxu1 %v13428_v26  ;;  %v23701_v44 = vld [vmem:[#allocation23_spill] sm:$0xff]  ;;  %v23702_v26 = vld [vmem:[#allocation25_spill] sm:$0xff] }
 0x52d   : > { %9103 = vmatpush1.bf16.msra.mxu0 %v13423_v58  ;;  %v2594_v58 = vadd.f32 %v23702_v26, %v23701_v44  ;;  %v13476_v26 = vld [vmem:[%s22834_s4 + $0x914] ss:$20 sps:$4 sm:$0xff]  }
 0x52e   : > { %9156 = vmatpush1.bf16.msra.mxu1 %v13426_v3  ;;  %9104 = vmatprep.subr.bf16.mxu0 %v13431_v24  ;;  %v13459_v3 = vld [vmem:[%s22834_s4 + $0x6e0] ss:$20 sps:$4 sm:$0xff]   ;;  %v23703_v24 = vld [vmem:[#allocation56_spill] sm:$0xff] }
 0x52f   : > { %9157 = vmatprep.subr.bf16.mxu1 %v13434_v12  ;;  %v23704_v12 = vld [vmem:[#allocation124_spill] sm:$0xff] }
 0x531   : > { %9105 = vmatpush1.bf16.msra.mxu0 %v13429_v20  ;;  %v3001_v20 = vadd.f32 %v23704_v12, %v23703_v24  ;;  %v23711_v12 = vld [vmem:[#allocation172_spill] sm:$0xff] }
 0x532   : > { %9158 = vmatpush1.bf16.msra.mxu1 %v13432_v22  ;;  %9106 = vmatprep.subr.bf16.mxu0 %v13437_v27  ;;  %v13462_v22 = vld [vmem:[%s22834_s4 + $0x960] ss:$20 sps:$4 sm:$0xff]   ;;  %v13467_v27 = vld [vmem:[%s22834_s4 + $0x6bc] ss:$20 sps:$4 sm:$0xff]  }
 0x533   : > { %9159 = vmatprep.subr.bf16.mxu1 %v13440_v46  ;;  %v23705_v46 = vld [vmem:[#allocation28_spill] sm:$0xff] }
 0x535   : > { %9107 = vmatpush1.bf16.msra.mxu0 %v13435_v62  ;;  %v2647_v62 = vadd.f32 %v23705_v46, %v2594_v58  ;;  %v23710_v58 = vld [vmem:[#allocation170_spill] sm:$0xff] }
 0x536   : > { %9160 = vmatpush1.bf16.msra.mxu1 %v13438_v63  ;;  %9108 = vmatprep.subr.bf16.mxu0 %v13443_v29  ;;  %v13470_v63 = vld [vmem:[%s22834_s4 + $0x93c] ss:$20 sps:$4 sm:$0xff]   ;;  %v23706_v29 = vld [vmem:[#allocation139_spill] sm:$0xff] }
 0x537   : > { %9161 = vmatprep.subr.bf16.mxu1 %v13446_v5  ;;  %v3054_v5 = vadd.f32 %v23706_v29, %v3001_v20  ;;  %v23712_v20 = vld [vmem:[#allocation173_spill] sm:$0xff]  ;;  %v23714_v29 = vld [vmem:[#allocation75_spill] sm:$0xff] }
 0x539   : > { %9109 = vmatpush2.bf16.msra.mxu0 %v13441_v15  ;;  %v23707_v15 = vld [vmem:[#allocation29_spill] sm:$0xff] }
 0x53a   : > { %9162 = vmatpush2.bf16.msra.mxu1 %v13444_v21  ;;  %9110 = vmatprep.subr.bf16.mxu0 %v13449_v57  ;;  %v2700_v21 = vadd.f32 %v23707_v15, %v2647_v62  ;;  %v20338_v57 = vpop.f32.mrf.mxu0  ;;  %v13471_v62 = vld [vmem:[%s22834_s4 + $0x690] ss:$20 sps:$4 sm:$0xff]  }
 0x53b   : > { %9163 = vmatprep.subr.bf16.mxu1 %v13452_v33  ;;  %v20340_v33 = vpop.f32.mrf.mxu1  ;;  %v13474_v15 = vld [vmem:[%s22834_s4 + $0x910] ss:$20 sps:$4 sm:$0xff]  }
 0x53d   : > { %9111 = vmatpush2.bf16.msra.mxu0 %v13447_v23  ;;  %v13465_v23 = vld [vmem:[%s22834_s4 + $0x6b8] ss:$20 sps:$4 sm:$0xff]  }
 0x53e   : > { %9164 = vmatpush2.bf16.msra.mxu1 %v13450_v11  ;;  %9112 = vmatprep.subr.bf16.mxu0 %v13455_v51  ;;  %v23708_v11 = vld [vmem:[#allocation140_spill] sm:$0xff] }
 0x53f   : > { %9165 = vmatprep.subr.bf16.mxu1 %v13458_v28  ;;  %v3107_v51 = vadd.f32 %v23708_v11, %v3054_v5  ;;  %v13468_v28 = vld [vmem:[%s22834_s4 + $0x938] ss:$20 sps:$4 sm:$0xff]  }
 0x541   : > { %9113 = vmatpush2.bf16.msra.mxu0 %v13453_v9  ;;  %v13473_v9 = vld [vmem:[%s22834_s4 + $0x694] ss:$20 sps:$4 sm:$0xff]  }
 0x542   : > { %9166 = vmatpush2.bf16.msra.mxu1 %v13456_v50  ;;  %9114 = vmatprep.subr.bf16.mxu0 %v13461_v42  ;;  %v23709_v50 = vld [vmem:[#allocation45_spill] sm:$0xff] }
 0x543   : > { %9167 = vmatprep.subr.bf16.mxu1 %v13464_v35  ;;  %v2753_v42 = vadd.f32 %v23709_v50, %v2700_v21  ;;  %v13479_v21 = vld [vmem:[%s22834_s4 + $0x66c] ss:$20 sps:$4 sm:$0xff]  }
 0x545   : > { %9115 = vmatpush2.bf16.msra.mxu0 %v13459_v3  ;;  %v3160_v3 = vadd.f32 %v23710_v58, %v3107_v51  ;;  %v23716_v51 = vld [vmem:[#allocation50_spill] sm:$0xff] }
 0x546   : > { %9168 = vmatpush2.bf16.msra.mxu1 %v13462_v22  ;;  %9116 = vmatprep.subr.bf16.mxu0 %v13467_v27  ;;  %v3398_v22 = vadd.f32 %v23712_v20, %v23711_v12  ;;  %v23718_v12 = vld [vmem:[#allocation72_spill] sm:$0xff]  ;;  %v23719_v20 = vld [vmem:[#allocation73_spill] sm:$0xff] }
 0x547   : > { %v4559_v35 = vpop.f32.mrf.mxu0  ;;  %9169 = vmatprep.subr.bf16.mxu1 %v13470_v63  ;;  %v23713_v63 = vld [vmem:[#allocation74_spill] sm:$0xff] }
 0x548   : > { %v4612_v44 = vpop.f32.mrf.mxu1  ;;  %v3805_v5 = vadd.f32 %v23714_v29, %v23713_v63  ;;  %v3451_v50 = vadd.f32 %v23716_v51, %v3398_v22  ;;  %v3801_v63 = vadd.f32 %v23719_v20, %v23718_v12  ;;  %v23720_v29 = vld [vmem:[#allocation91_spill] sm:$0xff]  ;;  %v23722_v51 = vld [vmem:[#allocation41_spill] sm:$0xff] }
 0x549   : > { %v20357_v24 = vadd.f32 %v4612_v44, %v4559_v35  ;;  %9117 = vmatpush2.bf16.msra.mxu0 %v13465_v23  ;;  %v20361_v27 = vpop.f32.mrf.mxu0  ;;  %v23715_v23 = vld [vmem:[#allocation46_spill] sm:$0xff] }
 0x54a   : > { %v20363_v46 = vpop.f32.mrf.mxu1  ;;  %9170 = vmatpush2.bf16.msra.mxu1 %v13468_v28  ;;  %9118 = vmatprep.subr.bf16.mxu0 %v13473_v9  ;;  %v2806_v11 = vadd.f32 %v23715_v23, %v2753_v42  ;;  %v13482_v28 = vld [vmem:[%s22834_s4 + $0x8ec] ss:$20 sps:$4 sm:$0xff]   ;;  %v3858_v34 = vadd.f32 %v23720_v29, %v3805_v5  ;;  %v3504_v42 = vadd.f32 %v23721_v4, %v3451_v50  ;;  %v13480_v5 = vld [vmem:[%s22834_s4 + $0x8e8] ss:$20 sps:$4 sm:$0xff]   ;;  %v13485_v4 = vld [vmem:[%s22834_s4 + $0x644] ss:$20 sps:$4 sm:$0xff]  }
 0x54b   : > { %v4563_v35 = vpop.f32.mrf.mxu0  ;;  %9171 = vmatprep.subr.bf16.mxu1 %v13476_v26  ;;  %v23717_v9 = vld [vmem:[#allocation171_spill] sm:$0xff]  ;;  %v13477_v26 = vld [vmem:[%s22834_s4 + $0x668] ss:$20 sps:$4 sm:$0xff]   ;;  %v23724_v50 = vld [vmem:[#allocation33_spill] sm:$0xff] }
 0x54c   : > { %v4616_v44 = vpop.f32.mrf.mxu1  ;;  %v3213_v58 = vadd.f32 %v23717_v9, %v3160_v3  ;;  %v3854_v3 = vadd.f32 %v23722_v51, %v3801_v63  ;;  %v23723_v9 = vld [vmem:[#allocation105_spill] sm:$0xff]  ;;  %v23726_v63 = vld [vmem:[#allocation112_spill] sm:$0xff] }
 0x54d   : > { %v20385_v52 = vadd.f32 %v4616_v44, %v4563_v35  ;;  %9119 = vmatpush2.bf16.msra.mxu0 %v13471_v62  ;;  %v20388_v22 = vpop.f32.mrf.mxu0  ;;  %v3911_v8 = vadd.f32 %v23723_v9, %v3858_v34  ;;  %v2815_v62 = vadd.f32 %v2806_v11, %v19870_v31  ;;  %v3557_v35 = vadd.f32 %v23724_v50, %v3504_v42  ;;  %v13488_v34 = vld [vmem:[%s22834_s4 + $0x8c4] ss:$20 sps:$4 sm:$0xff]   ;;  %v23727_v9 = vld [vmem:[#allocation37_spill] sm:$0xff] }
 0x54e   : > { %v20390_v23 = vpop.f32.mrf.mxu1  ;;  %9172 = vmatpush2.bf16.msra.mxu1 %v13474_v15  ;;  %9120 = vmatprep.subr.bf16.mxu0 %v13479_v21  ;;  %v3222_v15 = vadd.f32 %v3213_v58, %v19870_v31  ;;  %v23725_v21 = vld [vmem:[#allocation103_spill] sm:$0xff]  ;;  %v2813_v11 = vadd.f32 %v23727_v9, %v19870_v31  ;;  %v23729_v58 = vld [vmem:[#allocation110_spill] sm:$0xff] }
 0x54f   : > { %v4569_v44 = vpop.f32.mrf.mxu0  ;;  %9173 = vmatprep.subr.bf16.mxu1 %v13482_v28  ;;  %v3907_v20 = vadd.f32 %v23725_v21, %v3854_v3  ;;  %v3964_v29 = vadd.f32 %v23726_v63, %v3911_v8  ;;  %v13483_v28 = vld [vmem:[%s22834_s4 + $0x640] ss:$20 sps:$4 sm:$0xff]  }
 0x550   : > { %v4622_v12 = vpop.f32.mrf.mxu1  ;;  %v13486_v8 = vld [vmem:[%s22834_s4 + $0x8c0] ss:$20 sps:$4 sm:$0xff]  }
 0x551   : > { %v20411_v51 = vadd.f32 %v4622_v12, %v4569_v44  ;;  %9121 = vmatpush2.bf16.msra.mxu0 %v13477_v26  ;;  %v4571_v42 = vpop.f32.mrf.mxu0  ;;  %v3960_v13 = vadd.f32 %v23729_v58, %v3907_v20  ;;  %v13491_v26 = vld [vmem:[%s22834_s4 + $0xb1c] ss:$20 sps:$4 sm:$0xff]   ;;  %v2823_v44 = vmax.f32 %v2815_v62, 0.0  ;;  %v23730_v12 = vld [vmem:[#allocation59_spill] sm:$0xff] }
 0x552   : > { %v4624_v50 = vpop.f32.mrf.mxu1  ;;  %9174 = vmatpush2.bf16.msra.mxu1 %v13480_v5  ;;  %9122 = vmatprep.subr.bf16.mxu0 %v13485_v4  ;;  %v3610_v21 = vadd.f32 %v23730_v12, %v3557_v35  ;;  %v3230_v5 = vmax.f32 %v3222_v15, 0.0  ;;  %v23731_v4 = vld [vmem:[#allocation113_spill] sm:$0xff]  ;;  %v23732_v62 = vld [vmem:[#allocation111_spill] sm:$0xff]  ;;  %v13489_v35 = vld [vmem:[%s22834_s4 + $0xb18] ss:$20 sps:$4 sm:$0xff]  }
 0x553   : > { %v20421_v3 = vadd.f32 %v4624_v50, %v4571_v42  ;;  %v4573_v63 = vpop.f32.mrf.mxu0  ;;  %9175 = vmatprep.subr.bf16.mxu1 %v13488_v34  ;;  %v4017_v20 = vadd.f32 %v23731_v4, %v3964_v29  ;;  %v2821_v50 = vmax.f32 %v2813_v11, 0.0  ;;  %v4013_v54 = vadd.f32 %v23732_v62, %v3960_v13  ;;  %v13492_v29 = vld [vmem:[%s22834_s4 + $0xd98] ss:$20 sps:$4 sm:$0xff]   ;;  %v13497_v13 = vld [vmem:[%s22834_s4 + $0xaf4] ss:$20 sps:$4 sm:$0xff]  }
 0x554   : > { %v4626_v9 = vpop.f32.mrf.mxu1  ;;  %v3625_v34 = vadd.f32 %v3610_v21, %v19870_v31  ;;  %v13500_v12 = vld [vmem:[%s22834_s4 + $0xd74] ss:$20 sps:$4 sm:$0xff]   ;;  %v13498_v4 = vld [vmem:[%s22834_s4 + $0xd70] ss:$20 sps:$4 sm:$0xff]   ;;  %v13506_v62 = vld [vmem:[%s22834_s4 + $0xd4c] ss:$20 sps:$4 sm:$0xff]  }
 0x555   : > { %v20434_v42 = vadd.f32 %v4626_v9, %v4573_v63  ;;  %9123 = vmatpush2.bf16.msra.mxu0 %v13483_v28  ;;  %v20436_v58 = vpop.f32.mrf.mxu0  ;;  %v20446_v11 = vpack.c.bf16 %v2823_v44, %v2821_v50  ;;  %v4032_v49 = vadd.f32 %v4017_v20, %v19870_v31  ;;  %v23735_v44 = vld [vmem:[#allocation58_spill] sm:$0xff]  ;;  %v23736_v63 = vld [vmem:[#allocation161_spill] sm:$0xff]  ;;  %v13503_v20 = vld [vmem:[%s22834_s4 + $0xacc] ss:$20 sps:$4 sm:$0xff]  }
 0x556   : > { %9176 = vmatpush2.bf16.msra.mxu1 %v13486_v8  ;;  %9198 = vmatprep.subr.bf16.mxu0 %v13491_v26  ;;  %v23733_v8 = vld [vmem:[#allocation36_spill] sm:$0xff]  ;;  %v20456_v26 = vpack.c.bf16 %v3230_v5, %v3228_v40  ;;  %v3623_v21 = vadd.f32 %v23735_v44, %v19870_v31  ;;  %v13495_v40 = vld [vmem:[%s22834_s4 + $0xaf0] ss:$20 sps:$4 sm:$0xff]  }
 0x557   : > { %v4665_v15 = vpop.f32.mrf.mxu0  ;;  %9251 = vmatprep.subr.bf16.mxu1 %v13494_v53  ;;  %v3633_v53 = vmax.f32 %v3625_v34, 0.0 }
 0x558   : > { %v20453_v28 = vadd.f32 %v4665_v15, %v20357_v24  ;;  %9125 = vmatmul.mubr.bf16.vlgmr.msra.gmra.mxu0 %v23733_v8  ;;  %23734 = vst [vmem:[#allocation115_spill] sm:$0xff] %v20456_v26  ;;  %v4030_v24 = vadd.f32 %v4013_v54, %v19870_v31  ;;  %v4040_v54 = vmax.f32 %v4032_v49, 0.0 }
 0x559   : > { %9178 = vmatmul.mubr.bf16.vlgmr.msra.gmra.mxu1 %v23736_v63  ;;  %9134 = vmatprep.mubr.bf16.mxu0 %v20446_v11  ;;  %v20465_v9 = vpop.f32.mrf.mxu0 }
 0x55a   : > { %9187 = vmatprep.mubr.bf16.mxu1 %v20456_v26  ;;  %9199 = vmatpush1.bf16.msra.mxu0 %v13489_v35  ;;  %v3631_v35 = vmax.f32 %v3623_v21, 0.0  ;;  %v4038_v15 = vmax.f32 %v4030_v24, 0.0  ;;  %v23738_v21 = vld [vmem:[#allocation42_spill] sm:$0xff] }
 0x55b   : > { %9252 = vmatpush1.bf16.msra.mxu1 %v13492_v29  ;;  %v4669_v5 = vpop.f32.mrf.mxu0  ;;  %9200 = vmatprep.subr.bf16.mxu0 %v13497_v13  ;;  %v13501_v29 = vld [vmem:[%s22834_s4 + $0xac8] ss:$20 sps:$4 sm:$0xff]  }
 0x55c   : > { %v20479_v50 = vadd.f32 %v4669_v5, %v20385_v52  ;;  %9253 = vmatprep.subr.bf16.mxu1 %v13500_v12  ;;  %v13504_v52 = vld [vmem:[%s22834_s4 + $0xd48] ss:$20 sps:$4 sm:$0xff]   ;;  %v20492_v49 = vpack.c.bf16 %v3633_v53, %v3631_v35  ;;  %v13509_v12 = vld [vmem:[%s22834_s4 + $0xaa4] ss:$20 sps:$4 sm:$0xff]   ;;  %v20501_v24 = vpack.c.bf16 %v4040_v54, %v4038_v15 }
 0x55d   : > { %v20484_v34 = vpop.f32.mrf.mxu0  ;;  %v23740_v5 = vld [vmem:[#allocation167_spill] sm:$0xff]  ;;  %v13515_v54 = vld [vmem:[%s22834_s4 + $0xa7c] ss:$20 sps:$4 sm:$0xff]   ;;  %v13513_v15 = vld [vmem:[%s22834_s4 + $0xa78] ss:$20 sps:$4 sm:$0xff]  }
 0x55e   : > { %9201 = vmatpush1.bf16.msra.mxu0 %v13495_v40  ;;  %23737 = vst [vmem:[#allocation119_spill] sm:$0xff] %v20492_v49  ;;  %23739 = vst [vmem:[#allocation116_spill] sm:$0xff] %v20501_v24  ;;  %v13512_v40 = vld [vmem:[%s22834_s4 + $0xd24] ss:$20 sps:$4 sm:$0xff]   ;;  %v13518_v35 = vld [vmem:[%s22834_s4 + $0xcfc] ss:$20 sps:$4 sm:$0xff]  }
 0x55f   : > { %9254 = vmatpush1.bf16.msra.mxu1 %v13498_v4  ;;  %v4675_v13 = vpop.f32.mrf.mxu0  ;;  %9202 = vmatprep.subr.bf16.mxu0 %v13503_v20  ;;  %v13510_v20 = vld [vmem:[%s22834_s4 + $0xd20] ss:$20 sps:$4 sm:$0xff]  }
 0x560   : > { %v20498_v44 = vadd.f32 %v4675_v13, %v20411_v51  ;;  %9135 = vmatmul.mubr.bf16.gmra.mxu0 %v23738_v21  ;;  %9255 = vmatprep.subr.bf16.mxu1 %v13506_v62  ;;  %v13507_v51 = vld [vmem:[%s22834_s4 + $0xaa0] ss:$20 sps:$4 sm:$0xff]  }
 0x561   : > { %9188 = vmatmul.mubr.bf16.gmra.mxu1 %v23740_v5  ;;  %9230 = vmatprep.mubr.bf16.mxu0 %v20492_v49  ;;  %v20508_v53 = vpop.f32.mrf.mxu0  ;;  %v13524_v13 = vld [vmem:[%s22834_s4 + $0xcd4] ss:$20 sps:$4 sm:$0xff]   ;;  %v23745_v49 = vld [vmem:[#allocation55_spill] sm:$0xff] }
 0x562   : > { %9203 = vmatpush1.bf16.msra.mxu0 %v13501_v29  ;;  %9283 = vmatprep.mubr.bf16.mxu1 %v20501_v24  ;;  %v13516_v29 = vld [vmem:[%s22834_s4 + $0xcf8] ss:$20 sps:$4 sm:$0xff]   ;;  %v13563_v24 = vld [vmem:[%s22834_s4 + $0xbbc] ss:$20 sps:$4 sm:$0xff]  }
 0x563   : > { %9256 = vmatpush1.bf16.msra.mxu1 %v13504_v52  ;;  %v4679_v4 = vpop.f32.mrf.mxu0  ;;  %9204 = vmatprep.subr.bf16.mxu0 %v13509_v12  ;;  %v13519_v52 = vld [vmem:[%s22834_s4 + $0xa50] ss:$20 sps:$4 sm:$0xff]  }
 0x564   : > { %v20521_v62 = vadd.f32 %v4679_v4, %v20434_v42  ;;  %9257 = vmatprep.subr.bf16.mxu1 %v13512_v40  ;;  %v13521_v42 = vld [vmem:[%s22834_s4 + $0xa54] ss:$20 sps:$4 sm:$0xff]   ;;  %v13522_v12 = vld [vmem:[%s22834_s4 + $0xcd0] ss:$20 sps:$4 sm:$0xff]   ;;  %v13527_v40 = vld [vmem:[%s22834_s4 + $0xa2c] ss:$20 sps:$4 sm:$0xff]  }
 0x565   : > { %v13525_v4 = vld [vmem:[%s22834_s4 + $0xa28] ss:$20 sps:$4 sm:$0xff]   ;;  %v23748_v21 = vld [vmem:[#allocation109_spill] sm:$0xff] }
 0x566   : > { %9205 = vmatpush1.bf16.msra.mxu0 %v13507_v51  ;;  %v13530_v51 = vld [vmem:[%s22834_s4 + $0xcac] ss:$20 sps:$4 sm:$0xff]  }
 0x567   : > { %9258 = vmatpush1.bf16.msra.mxu1 %v13510_v20  ;;  %9206 = vmatprep.subr.bf16.mxu0 %v13515_v54  ;;  %v13528_v20 = vld [vmem:[%s22834_s4 + $0xca8] ss:$20 sps:$4 sm:$0xff]   ;;  %v13533_v54 = vld [vmem:[%s22834_s4 + $0xa04] ss:$20 sps:$4 sm:$0xff]  }
 0x568   : > { %9259 = vmatprep.subr.bf16.mxu1 %v13518_v35  ;;  %v13536_v35 = vld [vmem:[%s22834_s4 + $0xc84] ss:$20 sps:$4 sm:$0xff]  }
 0x56a   : > { %9207 = vmatpush1.bf16.msra.mxu0 %v13513_v15  ;;  %v13531_v15 = vld [vmem:[%s22834_s4 + $0xa00] ss:$20 sps:$4 sm:$0xff]  }
 0x56b   : > { %9260 = vmatpush1.bf16.msra.mxu1 %v13516_v29  ;;  %9208 = vmatprep.subr.bf16.mxu0 %v13521_v42  ;;  %v13534_v29 = vld [vmem:[%s22834_s4 + $0xc80] ss:$20 sps:$4 sm:$0xff]   ;;  %v13539_v42 = vld [vmem:[%s22834_s4 + $0xc5c] ss:$20 sps:$4 sm:$0xff]  }
 0x56c   : > { %9261 = vmatprep.subr.bf16.mxu1 %v13524_v13  ;;  %v13542_v13 = vld [vmem:[%s22834_s4 + $0xedc] ss:$20 sps:$4 sm:$0xff]  }
 0x56e   : > { %9209 = vmatpush1.bf16.msra.mxu0 %v13519_v52  ;;  %v13537_v52 = vld [vmem:[%s22834_s4 + $0xc58] ss:$20 sps:$4 sm:$0xff]  }
 0x56f   : > { %9262 = vmatpush1.bf16.msra.mxu1 %v13522_v12  ;;  %9210 = vmatprep.subr.bf16.mxu0 %v13527_v40  ;;  %v13540_v12 = vld [vmem:[%s22834_s4 + $0xed8] ss:$20 sps:$4 sm:$0xff]   ;;  %v13545_v40 = vld [vmem:[%s22834_s4 + $0xc34] ss:$20 sps:$4 sm:$0xff]  }
 0x570   : > { %9263 = vmatprep.subr.bf16.mxu1 %v13530_v51  ;;  %v13548_v51 = vld [vmem:[%s22834_s4 + $0xeb4] ss:$20 sps:$4 sm:$0xff]  }
 0x572   : > { %9211 = vmatpush1.bf16.msra.mxu0 %v13525_v4  ;;  %v13543_v4 = vld [vmem:[%s22834_s4 + $0xc30] ss:$20 sps:$4 sm:$0xff]  }
 0x573   : > { %9264 = vmatpush1.bf16.msra.mxu1 %v13528_v20  ;;  %9212 = vmatprep.subr.bf16.mxu0 %v13533_v54  ;;  %v13546_v20 = vld [vmem:[%s22834_s4 + $0xeb0] ss:$20 sps:$4 sm:$0xff]   ;;  %v13551_v54 = vld [vmem:[%s22834_s4 + $0xc0c] ss:$20 sps:$4 sm:$0xff]  }
 0x574   : > { %9265 = vmatprep.subr.bf16.mxu1 %v13536_v35  ;;  %v13554_v35 = vld [vmem:[%s22834_s4 + $0xe8c] ss:$20 sps:$4 sm:$0xff]  }
 0x576   : > { %9213 = vmatpush1.bf16.msra.mxu0 %v13531_v15  ;;  %v13549_v15 = vld [vmem:[%s22834_s4 + $0xc08] ss:$20 sps:$4 sm:$0xff]  }
 0x577   : > { %9266 = vmatpush1.bf16.msra.mxu1 %v13534_v29  ;;  %9214 = vmatprep.subr.bf16.mxu0 %v13539_v42  ;;  %v13552_v29 = vld [vmem:[%s22834_s4 + $0xe88] ss:$20 sps:$4 sm:$0xff]   ;;  %v13557_v42 = vld [vmem:[%s22834_s4 + $0xbe4] ss:$20 sps:$4 sm:$0xff]  }
 0x578   : > { %9267 = vmatprep.subr.bf16.mxu1 %v13542_v13  ;;  %v13560_v13 = vld [vmem:[%s22834_s4 + $0xe64] ss:$20 sps:$4 sm:$0xff]  }
 0x57a   : > { %9215 = vmatpush2.bf16.msra.mxu0 %v13537_v52  ;;  %v23741_v52 = vld [vmem:[#allocation49_spill] sm:$0xff] }
 0x57b   : > { %9268 = vmatpush2.bf16.msra.mxu1 %v13540_v12  ;;  %9216 = vmatprep.subr.bf16.mxu0 %v13545_v40  ;;  %v23742_v12 = vld [vmem:[#allocation51_spill] sm:$0xff] }
 0x57c   : > { %9269 = vmatprep.subr.bf16.mxu1 %v13548_v51  ;;  %v3408_v40 = vadd.f32 %v23742_v12, %v23741_v52  ;;  %v13555_v51 = vld [vmem:[%s22834_s4 + $0xbe0] ss:$20 sps:$4 sm:$0xff]   ;;  %v23746_v12 = vld [vmem:[#allocation106_spill] sm:$0xff] }
 0x57e   : > { %9217 = vmatpush2.bf16.msra.mxu0 %v13543_v4  ;;  %v23743_v4 = vld [vmem:[#allocation39_spill] sm:$0xff]  ;;  %v3461_v52 = vadd.f32 %v23745_v49, %v3408_v40  ;;  %v13569_v40 = vld [vmem:[%s22834_s4 + $0xb94] ss:$20 sps:$4 sm:$0xff]  }
 0x57f   : > { %9270 = vmatpush2.bf16.msra.mxu1 %v13546_v20  ;;  %9218 = vmatprep.subr.bf16.mxu0 %v13551_v54  ;;  %v23744_v20 = vld [vmem:[#allocation102_spill] sm:$0xff] }
 0x580   : > { %9271 = vmatprep.subr.bf16.mxu1 %v13554_v35  ;;  %v3815_v54 = vadd.f32 %v23744_v20, %v23743_v4  ;;  %v13558_v35 = vld [vmem:[%s22834_s4 + $0xe60] ss:$20 sps:$4 sm:$0xff]   ;;  %v20628_v4 = vpop.f32.mrf.mxu1  ;;  %v13561_v20 = vld [vmem:[%s22834_s4 + $0xbb8] ss:$20 sps:$4 sm:$0xff]  }
 0x582   : > { %9219 = vmatpush2.bf16.msra.mxu0 %v13549_v15  ;;  %v13566_v15 = vld [vmem:[%s22834_s4 + $0xe3c] ss:$20 sps:$4 sm:$0xff]   ;;  %v3868_v5 = vadd.f32 %v23746_v12, %v3815_v54 }
 0x583   : > { %9272 = vmatpush2.bf16.msra.mxu1 %v13552_v29  ;;  %9220 = vmatprep.subr.bf16.mxu0 %v13557_v42  ;;  %v23747_v29 = vld [vmem:[#allocation57_spill] sm:$0xff]  ;;  %v23749_v54 = vld [vmem:[#allocation70_spill] sm:$0xff] }
 0x584   : > { %9273 = vmatprep.subr.bf16.mxu1 %v13560_v13  ;;  %v3514_v42 = vadd.f32 %v23747_v29, %v3461_v52  ;;  %v3921_v26 = vadd.f32 %v23748_v21, %v3868_v5  ;;  %v13564_v13 = vld [vmem:[%s22834_s4 + $0xe38] ss:$20 sps:$4 sm:$0xff]   ;;  %v13572_v21 = vld [vmem:[%s22834_s4 + $0xe14] ss:$20 sps:$4 sm:$0xff]   ;;  %v4212_v5 = vadd.f32 %v19803_v56, %v19801_v25  ;;  %v13567_v12 = vld [vmem:[%s22834_s4 + $0xb90] ss:$20 sps:$4 sm:$0xff]  }
 0x585   : > { %v13570_v29 = vld [vmem:[%s22834_s4 + $0xe10] ss:$20 sps:$4 sm:$0xff]  }
 0x586   : > { %9221 = vmatpush2.bf16.msra.mxu0 %v13555_v51  ;;  %v3567_v52 = vadd.f32 %v23749_v54, %v3514_v42  ;;  %v23750_v25 = vld [vmem:[#allocation71_spill] sm:$0xff] }
 0x587   : > { %9274 = vmatpush2.bf16.msra.mxu1 %v13558_v35  ;;  %9222 = vmatprep.subr.bf16.mxu0 %v13563_v24  ;;  %v3974_v24 = vadd.f32 %v19787_v39, %v3921_v26  ;;  %v13575_v39 = vld [vmem:[%s22834_s4 + $0xb6c] ss:$20 sps:$4 sm:$0xff]  }
 0x588   : > { %v4718_v49 = vpop.f32.mrf.mxu1  ;;  %9275 = vmatprep.subr.bf16.mxu1 %v13566_v15  ;;  %v3620_v56 = vadd.f32 %v23750_v25, %v3567_v52 }
 0x589   : > { %v20643_v51 = vadd.f32 %v4718_v49, %v20453_v28  ;;  %v4265_v28 = vadd.f32 %v19839_v0, %v4212_v5  ;;  %v13578_v0 = vld [vmem:[%s22834_s4 + $0xdec] ss:$20 sps:$4 sm:$0xff]   ;;  %v4027_v42 = vadd.f32 %v19789_v60, %v3974_v24  ;;  %v13576_v60 = vld [vmem:[%s22834_s4 + $0xde8] ss:$20 sps:$4 sm:$0xff]  }
 0x58a   : > { %v20651_v35 = vpop.f32.mrf.mxu1  ;;  %9223 = vmatpush2.bf16.msra.mxu0 %v13561_v20  ;;  %v4261_v20 = vadd.f32 %v19826_v48, %v19797_v30  ;;  %v13581_v30 = vld [vmem:[%s22834_s4 + $0xb44] ss:$20 sps:$4 sm:$0xff]   ;;  %v3629_v48 = vadd.f32 %v3620_v56, %v19870_v31  ;;  %v4615_v56 = vadd.f32 %v20363_v46, %v20361_v27 }
 0x58b   : > { %9276 = vmatpush2.bf16.msra.mxu1 %v13564_v13  ;;  %9224 = vmatprep.subr.bf16.mxu0 %v13569_v40  ;;  %v4318_v49 = vadd.f32 %v20027_v38, %v4265_v28  ;;  %v23751_v5 = vld [vmem:[#allocation38_spill] sm:$0xff]  ;;  %v4034_v28 = vadd.f32 %v19685_v10, %v19870_v31 }
 0x58c   : > { %v4722_v15 = vpop.f32.mrf.mxu1  ;;  %9277 = vmatprep.subr.bf16.mxu1 %v13572_v21  ;;  %v4314_v40 = vadd.f32 %v20010_v18, %v4261_v20  ;;  %v13584_v18 = vld [vmem:[%s22834_s4 + $0xdc4] ss:$20 sps:$4 sm:$0xff]   ;;  %v3637_v25 = vmax.f32 %v3629_v48, 0.0  ;;  %v13590_v10 = vld [vmem:[%s22834_s4 + $0x129c] ss:$20 sps:$4 sm:$0xff]   ;;  %v20721_v20 = vpop.f32.mrf.mxu0 }
 0x58d   : > { %v20665_v26 = vadd.f32 %v4722_v15, %v20479_v50  ;;  %v13573_v50 = vld [vmem:[%s22834_s4 + $0xb68] ss:$20 sps:$4 sm:$0xff]   ;;  %v4371_v54 = vadd.f32 %v20117_v61, %v4318_v49  ;;  %v4036_v61 = vadd.f32 %v4027_v42, %v19870_v31  ;;  %v4042_v27 = vmax.f32 %v4034_v28, 0.0 }
 0x58e   : > { %v20674_v13 = vpop.f32.mrf.mxu1  ;;  %9225 = vmatpush2.bf16.msra.mxu0 %v13567_v12  ;;  %v4367_v21 = vadd.f32 %v20094_v55, %v4314_v40  ;;  %v3627_v12 = vadd.f32 %v23751_v5, %v19870_v31  ;;  %v13582_v55 = vld [vmem:[%s22834_s4 + $0xdc0] ss:$20 sps:$4 sm:$0xff]   ;;  %v4668_v40 = vadd.f32 %v20465_v9, %v4615_v56  ;;  %v13588_v9 = vld [vmem:[%s22834_s4 + $0x1298] ss:$20 sps:$4 sm:$0xff]   ;;  %v13594_v56 = vld [vmem:[%s22834_s4 + $0x1270] ss:$20 sps:$4 sm:$0xff]  }
 0x58f   : > { %9278 = vmatpush2.bf16.msra.mxu1 %v13570_v29  ;;  %9226 = vmatprep.subr.bf16.mxu0 %v13575_v39  ;;  %v4424_v15 = vadd.f32 %v20119_v17, %v4371_v54  ;;  %v13587_v39 = vld [vmem:[%s22834_s4 + $0x101c] ss:$20 sps:$4 sm:$0xff]   ;;  %v4044_v17 = vmax.f32 %v4036_v61, 0.0 }
 0x590   : > { %v4728_v52 = vpop.f32.mrf.mxu1  ;;  %9279 = vmatprep.subr.bf16.mxu1 %v13578_v0  ;;  %v4420_v42 = vadd.f32 %v20096_v43, %v4367_v21  ;;  %v4619_v43 = vadd.f32 %v20390_v23, %v20388_v22  ;;  %v23752_v21 = vld [vmem:[#allocation62_spill] sm:$0xff] }
 0x591   : > { %v20689_v38 = vadd.f32 %v4728_v52, %v20498_v44  ;;  %v13579_v44 = vld [vmem:[%s22834_s4 + $0xb40] ss:$20 sps:$4 sm:$0xff]   ;;  %v4439_v46 = vadd.f32 %v4424_v15, %v19870_v31  ;;  %v13585_v52 = vld [vmem:[%s22834_s4 + $0x1018] ss:$20 sps:$4 sm:$0xff]   ;;  %v20744_v22 = vpack.c.bf16 %v4044_v17, %v4042_v27 }
 0x592   : > { %v20696_v24 = vpop.f32.mrf.mxu1  ;;  %9227 = vmatpush2.bf16.msra.mxu0 %v13573_v50  ;;  %v3635_v50 = vmax.f32 %v3627_v12, 0.0  ;;  %v4437_v61 = vadd.f32 %v4420_v42, %v19870_v31  ;;  %v4672_v5 = vadd.f32 %v20484_v34, %v4619_v43 }
 0x593   : > { %9280 = vmatpush2.bf16.msra.mxu1 %v13576_v60  ;;  %9228 = vmatprep.subr.bf16.mxu0 %v13581_v30  ;;  %v4721_v60 = vadd.f32 %v20651_v35, %v4668_v40  ;;  %v4447_v28 = vmax.f32 %v4439_v46, 0.0 }
 0x594   : > { %v4732_v29 = vpop.f32.mrf.mxu1  ;;  %9281 = vmatprep.subr.bf16.mxu1 %v13584_v18  ;;  %v20737_v48 = vpack.c.bf16 %v3637_v25, %v3635_v50  ;;  %v13593_v18 = vld [vmem:[%s22834_s4 + $0xff4] ss:$20 sps:$4 sm:$0xff]   ;;  %v4445_v17 = vmax.f32 %v4437_v61, 0.0  ;;  %v13605_v61 = vld [vmem:[%s22834_s4 + $0xfa4] ss:$20 sps:$4 sm:$0xff]  }
 0x595   : > { %v20715_v0 = vadd.f32 %v4732_v29, %v20521_v62 }
 0x596   : > { %v20723_v49 = vpop.f32.mrf.mxu1  ;;  %9229 = vmatpush2.bf16.msra.mxu0 %v13579_v44 }
 0x597   : > { %9282 = vmatpush2.bf16.msra.mxu1 %v13582_v55  ;;  %v4771_v62 = vpop.f32.mrf.mxu0  ;;  %9304 = vmatprep.subr.bf16.mxu0 %v13587_v39  ;;  %v13591_v55 = vld [vmem:[%s22834_s4 + $0xff0] ss:$20 sps:$4 sm:$0xff]   ;;  %v4725_v39 = vadd.f32 %v20674_v13, %v4672_v5  ;;  %v13602_v13 = vld [vmem:[%s22834_s4 + $0x124c] ss:$20 sps:$4 sm:$0xff]  }
 0x598   : > { %v4824_v54 = vpop.f32.mrf.mxu1  ;;  %v4772_v30 = vadd.f32 %v4771_v62, %v20643_v51  ;;  %9357 = vmatprep.subr.bf16.mxu1 %v13590_v10  ;;  %v13596_v51 = vld [vmem:[%s22834_s4 + $0x1274] ss:$20 sps:$4 sm:$0xff]   ;;  %v13599_v10 = vld [vmem:[%s22834_s4 + $0xfcc] ss:$20 sps:$4 sm:$0xff]  }
 0x599   : > { %9231 = vmatmul.mubr.bf16.vlgmr.msra.gmra.mxu0 %v23752_v21  ;;  %v4773_v23 = vpop.f32.mrf.mxu0 }
 0x59a   : > { %v4826_v35 = vpop.f32.mrf.mxu1  ;;  %v4825_v12 = vadd.f32 %v4824_v54, %v4772_v30  ;;  %9284 = vmatmul.mubr.bf16.vlgmr.msra.gmra.mxu1 %v19676_v36  ;;  %9240 = vmatprep.mubr.bf16.mxu0 %v20737_v48  ;;  %v4774_v44 = vadd.f32 %v4773_v23, %v4721_v60  ;;  %v13597_v54 = vld [vmem:[%s22834_s4 + $0xfc8] ss:$20 sps:$4 sm:$0xff]  }
 0x59b   : > { %9293 = vmatprep.mubr.bf16.mxu1 %v20744_v22  ;;  %9305 = vmatpush1.bf16.msra.mxu0 %v13585_v52  ;;  %v4775_v15 = vpop.f32.mrf.mxu0  ;;  %v20772_v52 = vpack.c.bf16 %v4447_v28, %v4445_v17  ;;  %v23753_v23 = vld [vmem:[#allocation40_spill] sm:$0xff]  ;;  %v13611_v17 = vld [vmem:[%s22834_s4 + $0xf7c] ss:$20 sps:$4 sm:$0xff]  }
 0x59c   : > { %v4828_v29 = vpop.f32.mrf.mxu1  ;;  %9358 = vmatpush1.bf16.msra.mxu1 %v13588_v9  ;;  %v4827_v34 = vadd.f32 %v4826_v35, %v4774_v44  ;;  %v4776_v25 = vadd.f32 %v4775_v15, %v20665_v26  ;;  %9306 = vmatprep.subr.bf16.mxu0 %v13593_v18  ;;  %v4843_v40 = vadd.f32 %v4825_v12, %v16443_v45  ;;  %v13600_v18 = vld [vmem:[%s22834_s4 + $0x1248] ss:$20 sps:$4 sm:$0xff]  }
 0x59d   : > { %9359 = vmatprep.subr.bf16.mxu1 %v13596_v51  ;;  %v4777_v42 = vpop.f32.mrf.mxu0 }
 0x59e   : > { %v4830_v50 = vpop.f32.mrf.mxu1  ;;  %v4829_v26 = vadd.f32 %v4828_v29, %v4776_v25  ;;  %v4778_v27 = vadd.f32 %v4777_v42, %v4725_v39  ;;  %v4844_v46 = vadd.f32 %v4827_v34, %v19870_v31  ;;  %v4851_v5 = vmax.f32 %v4843_v40, 0.0  ;;  %v13603_v29 = vld [vmem:[%s22834_s4 + $0xfa0] ss:$20 sps:$4 sm:$0xff]   ;;  %v13614_v42 = vld [vmem:[%s22834_s4 + $0x11fc] ss:$20 sps:$4 sm:$0xff]  }
 0x59f   : > { %9307 = vmatpush1.bf16.msra.mxu0 %v13591_v55  ;;  %v4781_v62 = vpop.f32.mrf.mxu0 }
 0x5a0   : > { %v4834_v43 = vpop.f32.mrf.mxu1  ;;  %v4845_v60 = vadd.f32 %v4829_v26, %v16443_v45  ;;  %9360 = vmatpush1.bf16.msra.mxu1 %v13594_v56  ;;  %v4831_v30 = vadd.f32 %v4830_v50, %v4778_v27  ;;  %v4782_v9 = vadd.f32 %v4781_v62, %v20689_v38  ;;  %9308 = vmatprep.subr.bf16.mxu0 %v13599_v10  ;;  %v13608_v38 = vld [vmem:[%s22834_s4 + $0x1224] ss:$20 sps:$4 sm:$0xff]   ;;  %v4852_v39 = vmax.f32 %v4844_v46, 0.0  ;;  %v13606_v10 = vld [vmem:[%s22834_s4 + $0x1220] ss:$20 sps:$4 sm:$0xff]  }
 0x5a1   : > { %9241 = vmatmul.mubr.bf16.gmra.mxu0 %v23753_v23  ;;  %9361 = vmatprep.subr.bf16.mxu1 %v13602_v13  ;;  %v20783_v35 = vpop.f32.mrf.mxu0  ;;  %v13612_v27 = vld [vmem:[%s22834_s4 + $0x11f8] ss:$20 sps:$4 sm:$0xff]   ;;  %v13617_v46 = vld [vmem:[%s22834_s4 + $0xf54] ss:$20 sps:$4 sm:$0xff]  }
 0x5a2   : > { %v20785_v51 = vpop.f32.mrf.mxu1  ;;  %v4853_v12 = vmax.f32 %v4845_v60, 0.0  ;;  %v4846_v44 = vadd.f32 %v4831_v30, %v19870_v31  ;;  %9294 = vmatmul.mubr.bf16.gmra.mxu1 %v19711_v47  ;;  %9336 = vmatprep.mubr.bf16.mxu0 %v20772_v52  ;;  %v4835_v28 = vadd.f32 %v4834_v43, %v4782_v9  ;;  %v13620_v62 = vld [vmem:[%s22834_s4 + $0x11d4] ss:$20 sps:$4 sm:$0xff]   ;;  %v13618_v30 = vld [vmem:[%s22834_s4 + $0x11d0] ss:$20 sps:$4 sm:$0xff]  }
 0x5a3   : > { %9309 = vmatpush1.bf16.msra.mxu0 %v13597_v54  ;;  %v4785_v15 = vpop.f32.mrf.mxu0  ;;  %v13623_v9 = vld [vmem:[%s22834_s4 + $0xf2c] ss:$20 sps:$4 sm:$0xff]  }
 0x5a4   : > { %v4838_v55 = vpop.f32.mrf.mxu1  ;;  %v20796_v34 = vpack.c.bf16 %v4853_v12, %v4851_v5  ;;  %v4854_v25 = vmax.f32 %v4846_v44, 0.0  ;;  %9362 = vmatpush1.bf16.msra.mxu1 %v13600_v18  ;;  %v4786_v56 = vadd.f32 %v4785_v15, %v20715_v0  ;;  %9310 = vmatprep.subr.bf16.mxu0 %v13605_v61  ;;  %v4847_v50 = vadd.f32 %v4835_v28, %v16443_v45  ;;  %v13609_v0 = vld [vmem:[%s22834_s4 + $0xf78] ss:$20 sps:$4 sm:$0xff]   ;;  %v13621_v61 = vld [vmem:[%s22834_s4 + $0xf28] ss:$20 sps:$4 sm:$0xff]  }
 0x5a5   : > { %9363 = vmatprep.subr.bf16.mxu1 %v13608_v38  ;;  %v13626_v18 = vld [vmem:[%s22834_s4 + $0x11ac] ss:$20 sps:$4 sm:$0xff]   ;;  %v13624_v38 = vld [vmem:[%s22834_s4 + $0x11a8] ss:$20 sps:$4 sm:$0xff]   ;;  %v13629_v5 = vld [vmem:[%s22834_s4 + $0xf04] ss:$20 sps:$4 sm:$0xff]  }
 0x5a6   : > { %v4839_v13 = vadd.f32 %v4838_v55, %v4786_v56  ;;  %v20809_v40 = vpack.c.bf16 %v4854_v25, %v4852_v39  ;;  %v4855_v54 = vmax.f32 %v4847_v50, 0.0  ;;  %v13632_v12 = vld [vmem:[%s22834_s4 + $0x1184] ss:$20 sps:$4 sm:$0xff]   ;;  %v13627_v44 = vld [vmem:[%s22834_s4 + $0xf00] ss:$20 sps:$4 sm:$0xff]  }
 0x5a7   : > { %9311 = vmatpush1.bf16.msra.mxu0 %v13603_v29  ;;  %v13630_v28 = vld [vmem:[%s22834_s4 + $0x1180] ss:$20 sps:$4 sm:$0xff]   ;;  %v13635_v15 = vld [vmem:[%s22834_s4 + $0x115c] ss:$20 sps:$4 sm:$0xff]   ;;  %v13633_v55 = vld [vmem:[%s22834_s4 + $0x1158] ss:$20 sps:$4 sm:$0xff]  }
 0x5a8   : > { %9364 = vmatpush1.bf16.msra.mxu1 %v13606_v10  ;;  %v4849_v26 = vadd.f32 %v4839_v13, %v16443_v45  ;;  %9312 = vmatprep.subr.bf16.mxu0 %v13611_v17  ;;  %v13615_v45 = vld [vmem:[%s22834_s4 + $0xf50] ss:$20 sps:$4 sm:$0xff]   ;;  %v13636_v39 = vld [vmem:[%s22834_s4 + $0x13d8] ss:$20 sps:$4 sm:$0xff]   ;;  %v13641_v25 = vld [vmem:[%s22834_s4 + $0x1134] ss:$20 sps:$4 sm:$0xff]  }
 0x5a9   : > { %9365 = vmatprep.subr.bf16.mxu1 %v13614_v42  ;;  %9389 = vmatprep.mubr.bf16.mxu1 %v20809_v40  ;;  %v13638_v29 = vld [vmem:[%s22834_s4 + $0x13dc] ss:$20 sps:$4 sm:$0xff]   ;;  %v13644_v56 = vld [vmem:[%s22834_s4 + $0x13b4] ss:$20 sps:$4 sm:$0xff]   ;;  %v13647_v42 = vld [vmem:[%s22834_s4 + $0x110c] ss:$20 sps:$4 sm:$0xff]  }
 0x5aa   : > { %v4857_v43 = vmax.f32 %v4849_v26, 0.0  ;;  %v13639_v10 = vld [vmem:[%s22834_s4 + $0x1130] ss:$20 sps:$4 sm:$0xff]   ;;  %v13650_v50 = vld [vmem:[%s22834_s4 + $0x138c] ss:$20 sps:$4 sm:$0xff]  }
 0x5ab   : > { %9313 = vmatpush1.bf16.msra.mxu0 %v13609_v0  ;;  %v13642_v17 = vld [vmem:[%s22834_s4 + $0x13b0] ss:$20 sps:$4 sm:$0xff]   ;;  %v13645_v13 = vld [vmem:[%s22834_s4 + $0x1108] ss:$20 sps:$4 sm:$0xff]  }
 0x5ac   : > { %v20828_v60 = vpack.c.bf16 %v4857_v43, %v4855_v54  ;;  %9366 = vmatpush1.bf16.msra.mxu1 %v13612_v27  ;;  %9314 = vmatprep.subr.bf16.mxu0 %v13617_v46  ;;  %v13648_v0 = vld [vmem:[%s22834_s4 + $0x1388] ss:$20 sps:$4 sm:$0xff]   ;;  %v13653_v26 = vld [vmem:[%s22834_s4 + $0x10e4] ss:$20 sps:$4 sm:$0xff]   ;;  %v4222_v46 = vadd.f32 %v19995_v7, %v19813_v59  ;;  %v4629_v54 = vadd.f32 %v20628_v4, %v20436_v58  ;;  %v13654_v43 = vld [vmem:[%s22834_s4 + $0x1360] ss:$20 sps:$4 sm:$0xff]   ;;  %v4787_v4 = vpop.f32.mrf.mxu0 }
 0x5ad   : > { %9367 = vmatprep.subr.bf16.mxu1 %v13620_v62  ;;  %v13656_v27 = vld [vmem:[%s22834_s4 + $0x1364] ss:$20 sps:$4 sm:$0xff]   ;;  %v13651_v62 = vld [vmem:[%s22834_s4 + $0x10e0] ss:$20 sps:$4 sm:$0xff]   ;;  %v13662_v7 = vld [vmem:[%s22834_s4 + $0x133c] ss:$20 sps:$4 sm:$0xff]  }
 0x5ae   : > { %v4275_v59 = vadd.f32 %v20071_v14, %v4222_v46 }
 0x5af   : > { %9315 = vmatpush1.bf16.msra.mxu0 %v13615_v45  ;;  %v13659_v45 = vld [vmem:[%s22834_s4 + $0x10bc] ss:$20 sps:$4 sm:$0xff]  }
 0x5b0   : > { %9368 = vmatpush1.bf16.msra.mxu1 %v13618_v30  ;;  %9316 = vmatprep.subr.bf16.mxu0 %v13623_v9  ;;  %v4682_v30 = vadd.f32 %v20721_v20, %v4629_v54  ;;  %v4328_v58 = vadd.f32 %v20073_v6, %v4275_v59  ;;  %v13657_v9 = vld [vmem:[%s22834_s4 + $0x10b8] ss:$20 sps:$4 sm:$0xff]   ;;  %v13665_v6 = vld [vmem:[%s22834_s4 + $0x1094] ss:$20 sps:$4 sm:$0xff]  }
 0x5b1   : > { %9369 = vmatprep.subr.bf16.mxu1 %v13626_v18  ;;  %v4678_v18 = vadd.f32 %v20508_v53, %v20421_v3  ;;  %v13681_v59 = vld [vmem:[%s22834_s4 + $0x120] ss:$20 sps:$4 sm:$0xff]  }
 0x5b2   : > { %v4735_v14 = vadd.f32 %v20723_v49, %v4682_v30  ;;  %v4381_v20 = vadd.f32 %v20338_v57, %v4328_v58  ;;  %v4840_v49 = vpop.f32.mrf.mxu1  ;;  %v13666_v57 = vld [vmem:[%s22834_s4 + $0x1310] ss:$20 sps:$4 sm:$0xff]  }
 0x5b3   : > { %9317 = vmatpush1.bf16.msra.mxu0 %v13621_v61  ;;  %v13660_v61 = vld [vmem:[%s22834_s4 + $0x1338] ss:$20 sps:$4 sm:$0xff]   ;;  %v4731_v3 = vadd.f32 %v20696_v24, %v4678_v18 }
 0x5b4   : > { %9370 = vmatpush1.bf16.msra.mxu1 %v13624_v38  ;;  %9318 = vmatprep.subr.bf16.mxu0 %v13629_v5  ;;  %v13668_v38 = vld [vmem:[%s22834_s4 + $0x1314] ss:$20 sps:$4 sm:$0xff]   ;;  %v4788_v53 = vadd.f32 %v4787_v4, %v4735_v14  ;;  %v13663_v5 = vld [vmem:[%s22834_s4 + $0x1090] ss:$20 sps:$4 sm:$0xff]   ;;  %v4434_v24 = vadd.f32 %v20340_v33, %v4381_v20 }
 0x5b5   : > { %9371 = vmatprep.subr.bf16.mxu1 %v13632_v12  ;;  %v4784_v12 = vadd.f32 %v20783_v35, %v4731_v3  ;;  %v13669_v35 = vld [vmem:[%s22834_s4 + $0x1068] ss:$20 sps:$4 sm:$0xff]   ;;  %v13677_v33 = vld [vmem:[%s22834_s4 + $0x1044] ss:$20 sps:$4 sm:$0xff]  }
 0x5b6   : > { %v13689_v4 = vld [vmem:[%s22834_s4 + $0xfc] ss:$20 sps:$4 sm:$0xff]   ;;  %v13690_v3 = vld [vmem:[%s22834_s4 + $0x378] ss:$20 sps:$4 sm:$0xff]  }
 0x5b7   : > { %9319 = vmatpush1.bf16.msra.mxu0 %v13627_v44  ;;  %v13671_v44 = vld [vmem:[%s22834_s4 + $0x106c] ss:$20 sps:$4 sm:$0xff]  }
 0x5b8   : > { %9372 = vmatpush1.bf16.msra.mxu1 %v13630_v28  ;;  %9320 = vmatprep.subr.bf16.mxu0 %v13635_v15  ;;  %v13674_v28 = vld [vmem:[%s22834_s4 + $0x12ec] ss:$20 sps:$4 sm:$0xff]   ;;  %v4841_v15 = vadd.f32 %v4840_v49, %v4788_v53  ;;  %v13695_v49 = vld [vmem:[%s22834_s4 + $0xd4] ss:$20 sps:$4 sm:$0xff]  }
 0x5b9   : > { %9373 = vmatprep.subr.bf16.mxu1 %v13638_v29  ;;  %v4837_v29 = vadd.f32 %v20785_v51, %v4784_v12  ;;  %v5631_v51 = vld [vmem:[%s22835_s5] sm:$0x1f]  ;;  %v13698_v12 = vld [vmem:[%s22834_s4 + $0x354] ss:$20 sps:$4 sm:$0xff]  }
 0x5bb   : > { %9321 = vmatpush2.bf16.msra.mxu0 %v13633_v55  ;;  %v13672_v55 = vld [vmem:[%s22834_s4 + $0x12e8] ss:$20 sps:$4 sm:$0xff]  }
 0x5bc   : > { %9374 = vmatpush2.bf16.msra.mxu1 %v13636_v39  ;;  %9322 = vmatprep.subr.bf16.mxu0 %v13641_v25  ;;  %v4443_v39 = vadd.f32 %v4434_v24, %v19870_v31  ;;  %v13680_v25 = vld [vmem:[%s22834_s4 + $0x12c4] ss:$20 sps:$4 sm:$0xff]  }
 0x5bd   : > { %9375 = vmatprep.subr.bf16.mxu1 %v13644_v56  ;;  %v4850_v56 = vadd.f32 %v4841_v15, %v19870_v31  ;;  %v13693_v24 = vld [vmem:[%s22834_s4 + $0xd0] ss:$20 sps:$4 sm:$0xff]  }
 0x5be   : > { %v13696_v15 = vld [vmem:[%s22834_s4 + $0x350] ss:$20 sps:$4 sm:$0xff]  }
 0x5bf   : > { %9323 = vmatpush2.bf16.msra.mxu0 %v13639_v10  ;;  %v4441_v10 = vadd.f32 %v20161_v19, %v19870_v31  ;;  %v13683_v19 = vld [vmem:[%s22834_s4 + $0x124] ss:$20 sps:$4 sm:$0xff]  }
 0x5c0   : > { %9376 = vmatpush2.bf16.msra.mxu1 %v13642_v17  ;;  %9324 = vmatprep.subr.bf16.mxu0 %v13647_v42  ;;  %v13675_v17 = vld [vmem:[%s22834_s4 + $0x1040] ss:$20 sps:$4 sm:$0xff]   ;;  %v4848_v42 = vadd.f32 %v4837_v29, %v19870_v31  ;;  %v4858_v31 = vmax.f32 %v4850_v56, 0.0 }
 0x5c1   : > { %9377 = vmatprep.subr.bf16.mxu1 %v13650_v50  ;;  %v13678_v50 = vld [vmem:[%s22834_s4 + $0x12c0] ss:$20 sps:$4 sm:$0xff]   ;;  %v4449_v46 = vmax.f32 %v4441_v10, 0.0 }
 0x5c2   : > { %v4856_v54 = vmax.f32 %v4848_v42, 0.0  ;;  %v13705_v56 = vld [vmem:[%s22834_s4 + $0x80] ss:$20 sps:$4 sm:$0xff]   ;;  %v13716_v42 = vld [vmem:[%s22834_s4 + $0x2dc] ss:$20 sps:$4 sm:$0xff]  }
 0x5c3   : > { %9325 = vmatpush2.bf16.msra.mxu0 %v13645_v13  ;;  %v23754_v13 = vld [vmem:[#allocation8_spill] sm:$0xff]  ;;  %v13708_v10 = vld [vmem:[%s22834_s4 + $0x300] ss:$20 sps:$4 sm:$0xff]  }
 0x5c4   : > { %9378 = vmatpush2.bf16.msra.mxu1 %v13648_v0  ;;  %9326 = vmatprep.subr.bf16.mxu0 %v13653_v26  ;;  %v20977_v0 = vrot.slane %v5631_v51, %v23754_v13  ;;  %v4451_v26 = vmax.f32 %v4443_v39, 0.0  ;;  %v21002_v18 = vpack.c.bf16 %v4858_v31, %v4856_v54  ;;  %v13702_v39 = vld [vmem:[%s22834_s4 + $0x328] ss:$20 sps:$4 sm:$0xff]   ;;  %v13710_v51 = vld [vmem:[%s22834_s4 + $0x304] ss:$20 sps:$4 sm:$0xff]  }
 0x5c5   : > { %9379 = vmatprep.subr.bf16.mxu1 %v13656_v27  ;;  %v13686_v27 = vld [vmem:[%s22834_s4 + $0x3a4] ss:$20 sps:$4 sm:$0xff]   ;;  %v13728_v54 = vld [vmem:[%s22834_s4 + $0x28c] ss:$20 sps:$4 sm:$0xff]  }
 0x5c6   : > { %v20992_v30 = vpack.c.bf16 %v4451_v26, %v4449_v46  ;;  %v13719_v26 = vld [vmem:[%s22834_s4 + $0x34] ss:$20 sps:$4 sm:$0xff]   ;;  %v13717_v31 = vld [vmem:[%s22834_s4 + $0x30] ss:$20 sps:$4 sm:$0xff]  }
 0x5c7   : > { %9327 = vmatpush2.bf16.msra.mxu0 %v13651_v62  ;;  %v13720_v46 = vld [vmem:[%s22834_s4 + $0x2b0] ss:$20 sps:$4 sm:$0xff]  }
 0x5c8   : > { %9380 = vmatpush2.bf16.msra.mxu1 %v13654_v43  ;;  %9328 = vmatprep.subr.bf16.mxu0 %v13659_v45 }
 0x5c9   : > { %9381 = vmatprep.subr.bf16.mxu1 %v13662_v7  ;;  %v13684_v7 = vld [vmem:[%s22834_s4 + $0x3a0] ss:$20 sps:$4 sm:$0xff]  }
 0x5cb   : > { %9329 = vmatpush2.bf16.msra.mxu0 %v13657_v9 }
 0x5cc   : > { %9382 = vmatpush2.bf16.msra.mxu1 %v13660_v61  ;;  %9330 = vmatprep.subr.bf16.mxu0 %v13665_v6  ;;  %v13692_v61 = vld [vmem:[%s22834_s4 + $0x37c] ss:$20 sps:$4 sm:$0xff]  }
 0x5cd   : > { %9383 = vmatprep.subr.bf16.mxu1 %v13668_v38  ;;  %v13687_v38 = vld [vmem:[%s22834_s4 + $0xf8] ss:$20 sps:$4 sm:$0xff]  }
 0x5cf   : > { %9331 = vmatpush2.bf16.msra.mxu0 %v13663_v5 }
 0x5d0   : > { %9384 = vmatpush2.bf16.msra.mxu1 %v13666_v57  ;;  %9332 = vmatprep.subr.bf16.mxu0 %v13671_v44 }
 0x5d1   : > { %9385 = vmatprep.subr.bf16.mxu1 %v13674_v28 }
 0x5d3   : > { %9333 = vmatpush2.bf16.msra.mxu0 %v13669_v35  ;;  %v13701_v35 = vld [vmem:[%s22834_s4 + $0xac] ss:$20 sps:$4 sm:$0xff]  }
 0x5d4   : > { %9386 = vmatpush2.bf16.msra.mxu1 %v13672_v55  ;;  %9334 = vmatprep.subr.bf16.mxu0 %v13677_v33  ;;  %v13704_v55 = vld [vmem:[%s22834_s4 + $0x32c] ss:$20 sps:$4 sm:$0xff]   ;;  %v13699_v33 = vld [vmem:[%s22834_s4 + $0xa8] ss:$20 sps:$4 sm:$0xff]  }
 0x5d5   : > { %9387 = vmatprep.subr.bf16.mxu1 %v13680_v25  ;;  %v13707_v25 = vld [vmem:[%s22834_s4 + $0x84] ss:$20 sps:$4 sm:$0xff]  }
 0x5d7   : > { %9335 = vmatpush2.bf16.msra.mxu0 %v13675_v17  ;;  %v9020_v62 = vpop.f32.mrf.mxu0  ;;  %v13713_v17 = vld [vmem:[%s22834_s4 + $0x5c] ss:$20 sps:$4 sm:$0xff]  }
 0x5d8   : > { %9388 = vmatpush2.bf16.msra.mxu1 %v13678_v50  ;;  %v9021_v43 = vadd.f32 %v9020_v62, %v20977_v0  ;;  %v9073_v45 = vpop.f32.mrf.mxu1  ;;  %9410 = vmatprep.subr.bf16.mxu0 %v13683_v19  ;;  %v13711_v50 = vld [vmem:[%s22834_s4 + $0x58] ss:$20 sps:$4 sm:$0xff]  }
 0x5d9   : > { %9463 = vmatprep.subr.bf16.mxu1 %v13686_v27  ;;  %v20994_v58 = vpop.f32.mrf.mxu0  ;;  %v13714_v19 = vld [vmem:[%s22834_s4 + $0x2d8] ss:$20 sps:$4 sm:$0xff]   ;;  %v13722_v27 = vld [vmem:[%s22834_s4 + $0x2b4] ss:$20 sps:$4 sm:$0xff]  }
 0x5da   : > { %v20999_v9 = vadd.f32 %v9073_v45, %v9021_v43  ;;  %9337 = vmatmul.mubr.bf16.vlgmr.msra.gmra.mxu0 %v20156_v32  ;;  %v21004_v14 = vpop.f32.mrf.mxu1  ;;  %v13725_v62 = vld [vmem:[%s22834_s4 + $0xc] ss:$20 sps:$4 sm:$0xff]   ;;  %v13723_v43 = vld [vmem:[%s22834_s4 + $0x8] ss:$20 sps:$4 sm:$0xff]  }
 0x5db   : > { %9390 = vmatmul.mubr.bf16.vlgmr.msra.gmra.mxu1 %v20796_v34  ;;  %9346 = vmatprep.mubr.bf16.mxu0 %v20992_v30  ;;  %v21011_v6 = vpop.f32.mrf.mxu0  ;;  %v13726_v45 = vld [vmem:[%s22834_s4 + $0x288] ss:$20 sps:$4 sm:$0xff]  }
 0x5dc   : > { %9399 = vmatprep.mubr.bf16.mxu1 %v21002_v18  ;;  %9411 = vmatpush1.bf16.msra.mxu0 %v13681_v59  ;;  %v21014_v20 = vpop.f32.mrf.mxu1  ;;  %v13731_v59 = vld [vmem:[%s22834_s4 + $0x264] ss:$20 sps:$4 sm:$0xff]  }
 0x5dd   : > { %9464 = vmatpush1.bf16.msra.mxu1 %v13684_v7  ;;  %9412 = vmatprep.subr.bf16.mxu0 %v13689_v4  ;;  %v21022_v53 = vpop.f32.mrf.mxu0  ;;  %v13734_v7 = vld [vmem:[%s22834_s4 + $0x4e4] ss:$20 sps:$4 sm:$0xff]   ;;  %v13729_v4 = vld [vmem:[%s22834_s4 + $0x260] ss:$20 sps:$4 sm:$0xff]  }
 0x5de   : > { %9465 = vmatprep.subr.bf16.mxu1 %v13692_v61  ;;  %v21027_v5 = vpop.f32.mrf.mxu1  ;;  %v13732_v61 = vld [vmem:[%s22834_s4 + $0x4e0] ss:$20 sps:$4 sm:$0xff]  }
 0x5df   : > { %v9030_v57 = vpop.f32.mrf.mxu0 }
 0x5e0   : > { %9413 = vmatpush1.bf16.msra.mxu0 %v13687_v38  ;;  %v9031_v44 = vadd.f32 %v9030_v57, %v20977_v0  ;;  %v9083_v28 = vpop.f32.mrf.mxu1  ;;  %v13737_v38 = vld [vmem:[%s22834_s4 + $0x23c] ss:$20 sps:$4 sm:$0xff]   ;;  %v13743_v57 = vld [vmem:[%s22834_s4 + $0x214] ss:$20 sps:$4 sm:$0xff]  }
 0x5e1   : > { %9466 = vmatpush1.bf16.msra.mxu1 %v13690_v3  ;;  %9414 = vmatprep.subr.bf16.mxu0 %v13695_v49  ;;  %v13740_v3 = vld [vmem:[%s22834_s4 + $0x4bc] ss:$20 sps:$4 sm:$0xff]   ;;  %v13735_v49 = vld [vmem:[%s22834_s4 + $0x238] ss:$20 sps:$4 sm:$0xff]  }
 0x5e2   : > { %v21042_v29 = vadd.f32 %v9083_v28, %v9031_v44  ;;  %9347 = vmatmul.mubr.bf16.gmra.mxu0 %v20201_v16  ;;  %9467 = vmatprep.subr.bf16.mxu1 %v13698_v12  ;;  %v13738_v12 = vld [vmem:[%s22834_s4 + $0x4b8] ss:$20 sps:$4 sm:$0xff]   ;;  %v13746_v44 = vld [vmem:[%s22834_s4 + $0x494] ss:$20 sps:$4 sm:$0xff]   ;;  %v13744_v28 = vld [vmem:[%s22834_s4 + $0x490] ss:$20 sps:$4 sm:$0xff]  }
 0x5e3   : > { %9400 = vmatmul.mubr.bf16.gmra.mxu1 %v20828_v60  ;;  %9442 = vmatprep.mubr.bf16.mxu0 %v19917_v41 }
 0x5e4   : > { %23755 = vst [vmem:[#allocation120_spill] sm:$0xff] %v21042_v29  ;;  %9415 = vmatpush1.bf16.msra.mxu0 %v13693_v24  ;;  %9495 = vmatprep.mubr.bf16.mxu1 %v19928_v37  ;;  %v13741_v24 = vld [vmem:[%s22834_s4 + $0x210] ss:$20 sps:$4 sm:$0xff]  }
 0x5e5   : > { %9468 = vmatpush1.bf16.msra.mxu1 %v13696_v15  ;;  %9416 = vmatprep.subr.bf16.mxu0 %v13701_v35  ;;  %v13749_v15 = vld [vmem:[%s22834_s4 + $0x1ec] ss:$20 sps:$4 sm:$0xff]  }
 0x5e6   : > { %9469 = vmatprep.subr.bf16.mxu1 %v13704_v55  ;;  %v13752_v35 = vld [vmem:[%s22834_s4 + $0x46c] ss:$20 sps:$4 sm:$0xff]   ;;  %v13747_v55 = vld [vmem:[%s22834_s4 + $0x1e8] ss:$20 sps:$4 sm:$0xff]  }
 0x5e8   : > { %9417 = vmatpush1.bf16.msra.mxu0 %v13699_v33  ;;  %v13750_v33 = vld [vmem:[%s22834_s4 + $0x468] ss:$20 sps:$4 sm:$0xff]  }
 0x5e9   : > { %9470 = vmatpush1.bf16.msra.mxu1 %v13702_v39  ;;  %9418 = vmatprep.subr.bf16.mxu0 %v13707_v25  ;;  %v13755_v39 = vld [vmem:[%s22834_s4 + $0x1c4] ss:$20 sps:$4 sm:$0xff]  }
 0x5ea   : > { %9471 = vmatprep.subr.bf16.mxu1 %v13710_v51  ;;  %v13758_v25 = vld [vmem:[%s22834_s4 + $0x444] ss:$20 sps:$4 sm:$0xff]   ;;  %v13753_v51 = vld [vmem:[%s22834_s4 + $0x1c0] ss:$20 sps:$4 sm:$0xff]  }
 0x5ec   : > { %9419 = vmatpush1.bf16.msra.mxu0 %v13705_v56  ;;  %v13756_v56 = vld [vmem:[%s22834_s4 + $0x440] ss:$20 sps:$4 sm:$0xff]  }
 0x5ed   : > { %9472 = vmatpush1.bf16.msra.mxu1 %v13708_v10  ;;  %9420 = vmatprep.subr.bf16.mxu0 %v13713_v17  ;;  %v13761_v10 = vld [vmem:[%s22834_s4 + $0x19c] ss:$20 sps:$4 sm:$0xff]  }
 0x5ee   : > { %9473 = vmatprep.subr.bf16.mxu1 %v13716_v42  ;;  %v13764_v17 = vld [vmem:[%s22834_s4 + $0x41c] ss:$20 sps:$4 sm:$0xff]   ;;  %v13759_v42 = vld [vmem:[%s22834_s4 + $0x198] ss:$20 sps:$4 sm:$0xff]  }
 0x5f0   : > { %9421 = vmatpush1.bf16.msra.mxu0 %v13711_v50  ;;  %v13762_v50 = vld [vmem:[%s22834_s4 + $0x418] ss:$20 sps:$4 sm:$0xff]  }
 0x5f1   : > { %9474 = vmatpush1.bf16.msra.mxu1 %v13714_v19  ;;  %9422 = vmatprep.subr.bf16.mxu0 %v13719_v26  ;;  %v13767_v19 = vld [vmem:[%s22834_s4 + $0x174] ss:$20 sps:$4 sm:$0xff]  }
 0x5f2   : > { %9475 = vmatprep.subr.bf16.mxu1 %v13722_v27  ;;  %v13770_v26 = vld [vmem:[%s22834_s4 + $0x3f4] ss:$20 sps:$4 sm:$0xff]   ;;  %v13765_v27 = vld [vmem:[%s22834_s4 + $0x170] ss:$20 sps:$4 sm:$0xff]  }
 0x5f4   : > { %9423 = vmatpush1.bf16.msra.mxu0 %v13717_v31  ;;  %v13768_v31 = vld [vmem:[%s22834_s4 + $0x3f0] ss:$20 sps:$4 sm:$0xff]  }
 0x5f5   : > { %9476 = vmatpush1.bf16.msra.mxu1 %v13720_v46  ;;  %9424 = vmatprep.subr.bf16.mxu0 %v13725_v62  ;;  %v13773_v46 = vld [vmem:[%s22834_s4 + $0x14c] ss:$20 sps:$4 sm:$0xff]  }
 0x5f6   : > { %9477 = vmatprep.subr.bf16.mxu1 %v13728_v54  ;;  %v13776_v62 = vld [vmem:[%s22834_s4 + $0x3cc] ss:$20 sps:$4 sm:$0xff]   ;;  %v13771_v54 = vld [vmem:[%s22834_s4 + $0x148] ss:$20 sps:$4 sm:$0xff]  }
 0x5f8   : > { %9425 = vmatpush1.bf16.msra.mxu0 %v13723_v43  ;;  %v13774_v43 = vld [vmem:[%s22834_s4 + $0x3c8] ss:$20 sps:$4 sm:$0xff]  }
 0x5f9   : > { %9478 = vmatpush1.bf16.msra.mxu1 %v13726_v45  ;;  %9426 = vmatprep.subr.bf16.mxu0 %v13731_v59  ;;  %v13779_v45 = vld [vmem:[%s22834_s4 + $0x624] ss:$20 sps:$4 sm:$0xff]  }
 0x5fa   : > { %9479 = vmatprep.subr.bf16.mxu1 %v13734_v7  ;;  %v13782_v59 = vld [vmem:[%s22834_s4 + $0x8a4] ss:$20 sps:$4 sm:$0xff]   ;;  %v13777_v7 = vld [vmem:[%s22834_s4 + $0x620] ss:$20 sps:$4 sm:$0xff]  }
 0x5fc   : > { %9427 = vmatpush2.bf16.msra.mxu0 %v13729_v4  ;;  %v13780_v4 = vld [vmem:[%s22834_s4 + $0x8a0] ss:$20 sps:$4 sm:$0xff]  }
 0x5fd   : > { %9480 = vmatpush2.bf16.msra.mxu1 %v13732_v61  ;;  %9428 = vmatprep.subr.bf16.mxu0 %v13737_v38  ;;  %v13785_v61 = vld [vmem:[%s22834_s4 + $0x5fc] ss:$20 sps:$4 sm:$0xff]  }
 0x5fe   : > { %9481 = vmatprep.subr.bf16.mxu1 %v13740_v3  ;;  %v13788_v38 = vld [vmem:[%s22834_s4 + $0x87c] ss:$20 sps:$4 sm:$0xff]  }
 0x5ff   : > { %v23756_v3 = vld [vmem:[#allocation125_spill] sm:$0xff] }
 0x600   : > { %9429 = vmatpush2.bf16.msra.mxu0 %v13735_v49  ;;  %v23757_v49 = vld [vmem:[#allocation52_spill] sm:$0xff] }
 0x601   : > { %9482 = vmatpush2.bf16.msra.mxu1 %v13738_v12  ;;  %9430 = vmatprep.subr.bf16.mxu0 %v13743_v57  ;;  %v13783_v12 = vld [vmem:[%s22834_s4 + $0x5f8] ss:$20 sps:$4 sm:$0xff]  }
 0x602   : > { %9483 = vmatprep.subr.bf16.mxu1 %v13746_v44  ;;  %v13786_v57 = vld [vmem:[%s22834_s4 + $0x878] ss:$20 sps:$4 sm:$0xff]   ;;  %v13791_v44 = vld [vmem:[%s22834_s4 + $0x5d4] ss:$20 sps:$4 sm:$0xff]  }
 0x604   : > { %9431 = vmatpush2.bf16.msra.mxu0 %v13741_v24  ;;  %v13794_v24 = vld [vmem:[%s22834_s4 + $0x854] ss:$20 sps:$4 sm:$0xff]  }
 0x605   : > { %9484 = vmatpush2.bf16.msra.mxu1 %v13744_v28  ;;  %9432 = vmatprep.subr.bf16.mxu0 %v13749_v15  ;;  %v13789_v28 = vld [vmem:[%s22834_s4 + $0x5d0] ss:$20 sps:$4 sm:$0xff]  }
 0x606   : > { %9485 = vmatprep.subr.bf16.mxu1 %v13752_v35  ;;  %v13792_v15 = vld [vmem:[%s22834_s4 + $0x850] ss:$20 sps:$4 sm:$0xff]   ;;  %v13797_v35 = vld [vmem:[%s22834_s4 + $0x5ac] ss:$20 sps:$4 sm:$0xff]  }
 0x608   : > { %9433 = vmatpush2.bf16.msra.mxu0 %v13747_v55  ;;  %v23758_v55 = vld [vmem:[#allocation18_spill] sm:$0xff] }
 0x609   : > { %9486 = vmatpush2.bf16.msra.mxu1 %v13750_v33  ;;  %9434 = vmatprep.subr.bf16.mxu0 %v13755_v39  ;;  %v13800_v33 = vld [vmem:[%s22834_s4 + $0x82c] ss:$20 sps:$4 sm:$0xff]  }
 0x60a   : > { %9487 = vmatprep.subr.bf16.mxu1 %v13758_v25  ;;  %v23759_v39 = vld [vmem:[#allocation123_spill] sm:$0xff]  ;;  %v23760_v25 = vld [vmem:[#allocation126_spill] sm:$0xff] }
 0x60c   : > { %9435 = vmatpush2.bf16.msra.mxu0 %v13753_v51  ;;  %v23761_v51 = vld [vmem:[#allocation53_spill] sm:$0xff] }
 0x60d   : > { %9488 = vmatpush2.bf16.msra.mxu1 %v13756_v56  ;;  %9436 = vmatprep.subr.bf16.mxu0 %v13761_v10  ;;  %v13795_v56 = vld [vmem:[%s22834_s4 + $0x5a8] ss:$20 sps:$4 sm:$0xff]  }
 0x60e   : > { %9489 = vmatprep.subr.bf16.mxu1 %v13764_v17  ;;  %v13798_v10 = vld [vmem:[%s22834_s4 + $0x828] ss:$20 sps:$4 sm:$0xff]   ;;  %v13803_v17 = vld [vmem:[%s22834_s4 + $0x584] ss:$20 sps:$4 sm:$0xff]  }
 0x610   : > { %9437 = vmatpush2.bf16.msra.mxu0 %v13759_v42  ;;  %v13806_v42 = vld [vmem:[%s22834_s4 + $0x804] ss:$20 sps:$4 sm:$0xff]  }
 0x611   : > { %9490 = vmatpush2.bf16.msra.mxu1 %v13762_v50  ;;  %9438 = vmatprep.subr.bf16.mxu0 %v13767_v19  ;;  %v13801_v50 = vld [vmem:[%s22834_s4 + $0x580] ss:$20 sps:$4 sm:$0xff]  }
 0x612   : > { %9491 = vmatprep.subr.bf16.mxu1 %v13770_v26  ;;  %v13804_v19 = vld [vmem:[%s22834_s4 + $0x800] ss:$20 sps:$4 sm:$0xff]   ;;  %v13809_v26 = vld [vmem:[%s22834_s4 + $0x55c] ss:$20 sps:$4 sm:$0xff]  }
 0x614   : > { %9439 = vmatpush2.bf16.msra.mxu0 %v13765_v27  ;;  %v13812_v27 = vld [vmem:[%s22834_s4 + $0x7dc] ss:$20 sps:$4 sm:$0xff]  }
 0x615   : > { %9492 = vmatpush2.bf16.msra.mxu1 %v13768_v31  ;;  %9440 = vmatprep.subr.bf16.mxu0 %v13773_v46  ;;  %v13807_v31 = vld [vmem:[%s22834_s4 + $0x558] ss:$20 sps:$4 sm:$0xff]  }
 0x616   : > { %9493 = vmatprep.subr.bf16.mxu1 %v13776_v62  ;;  %v13810_v46 = vld [vmem:[%s22834_s4 + $0x7d8] ss:$20 sps:$4 sm:$0xff]   ;;  %v13815_v62 = vld [vmem:[%s22834_s4 + $0x534] ss:$20 sps:$4 sm:$0xff]  }
 0x618   : > { %9441 = vmatpush2.bf16.msra.mxu0 %v13771_v54  ;;  %v13818_v54 = vld [vmem:[%s22834_s4 + $0x7b4] ss:$20 sps:$4 sm:$0xff]  }
 0x619   : > { %9494 = vmatpush2.bf16.msra.mxu1 %v13774_v43  ;;  %9516 = vmatprep.subr.bf16.mxu0 %v13779_v45  ;;  %v13813_v43 = vld [vmem:[%s22834_s4 + $0x530] ss:$20 sps:$4 sm:$0xff]  }
 0x61a   : > { %9569 = vmatprep.subr.bf16.mxu1 %v13782_v59  ;;  %v13816_v45 = vld [vmem:[%s22834_s4 + $0x7b0] ss:$20 sps:$4 sm:$0xff]   ;;  %v13821_v59 = vld [vmem:[%s22834_s4 + $0x50c] ss:$20 sps:$4 sm:$0xff]  }
 0x61b   : > { %9443 = vmatmul.mubr.bf16.vlgmr.msra.gmra.mxu0 %v23693_v1 }
 0x61c   : > { %9496 = vmatmul.mubr.bf16.vlgmr.msra.gmra.mxu1 %v23696_v2  ;;  %9452 = vmatprep.mubr.bf16.mxu0 %v23756_v3 }
 0x61d   : > { %9505 = vmatprep.mubr.bf16.mxu1 %v23757_v49  ;;  %9517 = vmatpush1.bf16.msra.mxu0 %v13777_v7  ;;  %v13824_v7 = vld [vmem:[%s22834_s4 + $0x78c] ss:$20 sps:$4 sm:$0xff]  }
 0x61e   : > { %9570 = vmatpush1.bf16.msra.mxu1 %v13780_v4  ;;  %9518 = vmatprep.subr.bf16.mxu0 %v13785_v61  ;;  %v13819_v4 = vld [vmem:[%s22834_s4 + $0x508] ss:$20 sps:$4 sm:$0xff]  }
 0x61f   : > { %9571 = vmatprep.subr.bf16.mxu1 %v13788_v38  ;;  %v13822_v61 = vld [vmem:[%s22834_s4 + $0x788] ss:$20 sps:$4 sm:$0xff]   ;;  %v13827_v38 = vld [vmem:[%s22834_s4 + $0x764] ss:$20 sps:$4 sm:$0xff]  }
 0x621   : > { %9519 = vmatpush1.bf16.msra.mxu0 %v13783_v12  ;;  %v13830_v12 = vld [vmem:[%s22834_s4 + $0x9e4] ss:$20 sps:$4 sm:$0xff]  }
 0x622   : > { %9572 = vmatpush1.bf16.msra.mxu1 %v13786_v57  ;;  %9520 = vmatprep.subr.bf16.mxu0 %v13791_v44  ;;  %v13825_v57 = vld [vmem:[%s22834_s4 + $0x760] ss:$20 sps:$4 sm:$0xff]  }
 0x623   : > { %9453 = vmatmul.mubr.bf16.gmra.mxu0 %v23758_v55  ;;  %9573 = vmatprep.subr.bf16.mxu1 %v13794_v24  ;;  %v13828_v44 = vld [vmem:[%s22834_s4 + $0x9e0] ss:$20 sps:$4 sm:$0xff]   ;;  %v13833_v24 = vld [vmem:[%s22834_s4 + $0x73c] ss:$20 sps:$4 sm:$0xff]  }
 0x624   : > { %9506 = vmatmul.mubr.bf16.gmra.mxu1 %v23759_v39  ;;  %9548 = vmatprep.mubr.bf16.mxu0 %v23760_v25 }
 0x625   : > { %9521 = vmatpush1.bf16.msra.mxu0 %v13789_v28  ;;  %9601 = vmatprep.mubr.bf16.mxu1 %v23761_v51  ;;  %v13836_v28 = vld [vmem:[%s22834_s4 + $0x9bc] ss:$20 sps:$4 sm:$0xff]  }
 0x626   : > { %9574 = vmatpush1.bf16.msra.mxu1 %v13792_v15  ;;  %9522 = vmatprep.subr.bf16.mxu0 %v13797_v35  ;;  %v13831_v15 = vld [vmem:[%s22834_s4 + $0x738] ss:$20 sps:$4 sm:$0xff]  }
 0x627   : > { %9575 = vmatprep.subr.bf16.mxu1 %v13800_v33  ;;  %v13834_v35 = vld [vmem:[%s22834_s4 + $0x9b8] ss:$20 sps:$4 sm:$0xff]   ;;  %v13839_v33 = vld [vmem:[%s22834_s4 + $0x714] ss:$20 sps:$4 sm:$0xff]  }
 0x629   : > { %9523 = vmatpush1.bf16.msra.mxu0 %v13795_v56  ;;  %v13842_v56 = vld [vmem:[%s22834_s4 + $0x994] ss:$20 sps:$4 sm:$0xff]  }
 0x62a   : > { %9576 = vmatpush1.bf16.msra.mxu1 %v13798_v10  ;;  %9524 = vmatprep.subr.bf16.mxu0 %v13803_v17  ;;  %v13837_v10 = vld [vmem:[%s22834_s4 + $0x710] ss:$20 sps:$4 sm:$0xff]  }
 0x62b   : > { %9577 = vmatprep.subr.bf16.mxu1 %v13806_v42  ;;  %v13840_v17 = vld [vmem:[%s22834_s4 + $0x990] ss:$20 sps:$4 sm:$0xff]   ;;  %v13845_v42 = vld [vmem:[%s22834_s4 + $0x6ec] ss:$20 sps:$4 sm:$0xff]  }
 0x62d   : > { %9525 = vmatpush1.bf16.msra.mxu0 %v13801_v50  ;;  %v13848_v50 = vld [vmem:[%s22834_s4 + $0x96c] ss:$20 sps:$4 sm:$0xff]  }
 0x62e   : > { %9578 = vmatpush1.bf16.msra.mxu1 %v13804_v19  ;;  %9526 = vmatprep.subr.bf16.mxu0 %v13809_v26  ;;  %v13843_v19 = vld [vmem:[%s22834_s4 + $0x6e8] ss:$20 sps:$4 sm:$0xff]  }
 0x62f   : > { %9579 = vmatprep.subr.bf16.mxu1 %v13812_v27  ;;  %v13846_v26 = vld [vmem:[%s22834_s4 + $0x968] ss:$20 sps:$4 sm:$0xff]   ;;  %v13851_v27 = vld [vmem:[%s22834_s4 + $0x6c4] ss:$20 sps:$4 sm:$0xff]  }
 0x631   : > { %9527 = vmatpush1.bf16.msra.mxu0 %v13807_v31  ;;  %v13854_v31 = vld [vmem:[%s22834_s4 + $0x944] ss:$20 sps:$4 sm:$0xff]  }
 0x632   : > { %9580 = vmatpush1.bf16.msra.mxu1 %v13810_v46  ;;  %9528 = vmatprep.subr.bf16.mxu0 %v13815_v62  ;;  %v13849_v46 = vld [vmem:[%s22834_s4 + $0x6c0] ss:$20 sps:$4 sm:$0xff]  }
 0x633   : > { %9581 = vmatprep.subr.bf16.mxu1 %v13818_v54  ;;  %v13852_v62 = vld [vmem:[%s22834_s4 + $0x940] ss:$20 sps:$4 sm:$0xff]   ;;  %v13857_v54 = vld [vmem:[%s22834_s4 + $0x69c] ss:$20 sps:$4 sm:$0xff]  }
 0x635   : > { %9529 = vmatpush1.bf16.msra.mxu0 %v13813_v43  ;;  %v13860_v43 = vld [vmem:[%s22834_s4 + $0x91c] ss:$20 sps:$4 sm:$0xff]  }
 0x636   : > { %9582 = vmatpush1.bf16.msra.mxu1 %v13816_v45  ;;  %9530 = vmatprep.subr.bf16.mxu0 %v13821_v59  ;;  %v13855_v45 = vld [vmem:[%s22834_s4 + $0x698] ss:$20 sps:$4 sm:$0xff]  }
 0x637   : > { %9583 = vmatprep.subr.bf16.mxu1 %v13824_v7  ;;  %v13858_v59 = vld [vmem:[%s22834_s4 + $0x918] ss:$20 sps:$4 sm:$0xff]   ;;  %v13863_v7 = vld [vmem:[%s22834_s4 + $0x674] ss:$20 sps:$4 sm:$0xff]  }
 0x639   : > { %9531 = vmatpush1.bf16.msra.mxu0 %v13819_v4  ;;  %v13866_v4 = vld [vmem:[%s22834_s4 + $0x8f4] ss:$20 sps:$4 sm:$0xff]  }
 0x63a   : > { %9584 = vmatpush1.bf16.msra.mxu1 %v13822_v61  ;;  %9532 = vmatprep.subr.bf16.mxu0 %v13827_v38  ;;  %v13861_v61 = vld [vmem:[%s22834_s4 + $0x670] ss:$20 sps:$4 sm:$0xff]  }
 0x63b   : > { %9585 = vmatprep.subr.bf16.mxu1 %v13830_v12  ;;  %v13864_v38 = vld [vmem:[%s22834_s4 + $0x8f0] ss:$20 sps:$4 sm:$0xff]   ;;  %v13869_v12 = vld [vmem:[%s22834_s4 + $0x64c] ss:$20 sps:$4 sm:$0xff]  }
 0x63d   : > { %9533 = vmatpush2.bf16.msra.mxu0 %v13825_v57  ;;  %v13872_v57 = vld [vmem:[%s22834_s4 + $0x8cc] ss:$20 sps:$4 sm:$0xff]  }
 0x63e   : > { %9586 = vmatpush2.bf16.msra.mxu1 %v13828_v44  ;;  %9534 = vmatprep.subr.bf16.mxu0 %v13833_v24  ;;  %v13867_v44 = vld [vmem:[%s22834_s4 + $0x648] ss:$20 sps:$4 sm:$0xff]  }
 0x63f   : > { %9587 = vmatprep.subr.bf16.mxu1 %v13836_v28  ;;  %v13870_v24 = vld [vmem:[%s22834_s4 + $0x8c8] ss:$20 sps:$4 sm:$0xff]   ;;  %v13875_v28 = vld [vmem:[%s22834_s4 + $0xb24] ss:$20 sps:$4 sm:$0xff]  }
 0x641   : > { %9535 = vmatpush2.bf16.msra.mxu0 %v13831_v15  ;;  %v13878_v15 = vld [vmem:[%s22834_s4 + $0xda4] ss:$20 sps:$4 sm:$0xff]  }
 0x642   : > { %9588 = vmatpush2.bf16.msra.mxu1 %v13834_v35  ;;  %9536 = vmatprep.subr.bf16.mxu0 %v13839_v33  ;;  %v13873_v35 = vld [vmem:[%s22834_s4 + $0xb20] ss:$20 sps:$4 sm:$0xff]  }
 0x643   : > { %9589 = vmatprep.subr.bf16.mxu1 %v13842_v56  ;;  %v13876_v33 = vld [vmem:[%s22834_s4 + $0xda0] ss:$20 sps:$4 sm:$0xff]   ;;  %v13881_v56 = vld [vmem:[%s22834_s4 + $0xafc] ss:$20 sps:$4 sm:$0xff]  }
 0x645   : > { %9537 = vmatpush2.bf16.msra.mxu0 %v13837_v10  ;;  %v13884_v10 = vld [vmem:[%s22834_s4 + $0xd7c] ss:$20 sps:$4 sm:$0xff]  }
 0x646   : > { %9590 = vmatpush2.bf16.msra.mxu1 %v13840_v17  ;;  %9538 = vmatprep.subr.bf16.mxu0 %v13845_v42  ;;  %v23762_v17 = vld [vmem:[#allocation115_spill] sm:$0xff]  ;;  %v13879_v42 = vld [vmem:[%s22834_s4 + $0xaf8] ss:$20 sps:$4 sm:$0xff]  }
 0x647   : > { %9591 = vmatprep.subr.bf16.mxu1 %v13848_v50  ;;  %v13882_v50 = vld [vmem:[%s22834_s4 + $0xd78] ss:$20 sps:$4 sm:$0xff]  }
 0x649   : > { %9539 = vmatpush2.bf16.msra.mxu0 %v13843_v19  ;;  %v13887_v19 = vld [vmem:[%s22834_s4 + $0xad4] ss:$20 sps:$4 sm:$0xff]  }
 0x64a   : > { %9592 = vmatpush2.bf16.msra.mxu1 %v13846_v26  ;;  %9540 = vmatprep.subr.bf16.mxu0 %v13851_v27  ;;  %v13890_v26 = vld [vmem:[%s22834_s4 + $0xd54] ss:$20 sps:$4 sm:$0xff]   ;;  %v13885_v27 = vld [vmem:[%s22834_s4 + $0xad0] ss:$20 sps:$4 sm:$0xff]  }
 0x64b   : > { %9593 = vmatprep.subr.bf16.mxu1 %v13854_v31  ;;  %v13888_v31 = vld [vmem:[%s22834_s4 + $0xd50] ss:$20 sps:$4 sm:$0xff]  }
 0x64d   : > { %9541 = vmatpush2.bf16.msra.mxu0 %v13849_v46  ;;  %v13893_v46 = vld [vmem:[%s22834_s4 + $0xaac] ss:$20 sps:$4 sm:$0xff]  }
 0x64e   : > { %9594 = vmatpush2.bf16.msra.mxu1 %v13852_v62  ;;  %9542 = vmatprep.subr.bf16.mxu0 %v13857_v54  ;;  %v23763_v62 = vld [vmem:[#allocation42_spill] sm:$0xff]  ;;  %v13896_v54 = vld [vmem:[%s22834_s4 + $0xd2c] ss:$20 sps:$4 sm:$0xff]  }
 0x64f   : > { %9595 = vmatprep.subr.bf16.mxu1 %v13860_v43  ;;  %v23764_v43 = vld [vmem:[#allocation167_spill] sm:$0xff] }
 0x651   : > { %9543 = vmatpush2.bf16.msra.mxu0 %v13855_v45  ;;  %v23765_v45 = vld [vmem:[#allocation119_spill] sm:$0xff] }
 0x652   : > { %9596 = vmatpush2.bf16.msra.mxu1 %v13858_v59  ;;  %9544 = vmatprep.subr.bf16.mxu0 %v13863_v7  ;;  %v23766_v59 = vld [vmem:[#allocation116_spill] sm:$0xff] }
 0x653   : > { %9597 = vmatprep.subr.bf16.mxu1 %v13866_v4  ;;  %v13891_v7 = vld [vmem:[%s22834_s4 + $0xaa8] ss:$20 sps:$4 sm:$0xff]  }
 0x654   : > { %v13894_v4 = vld [vmem:[%s22834_s4 + $0xd28] ss:$20 sps:$4 sm:$0xff]  }
 0x655   : > { %9545 = vmatpush2.bf16.msra.mxu0 %v13861_v61  ;;  %v13899_v61 = vld [vmem:[%s22834_s4 + $0xa84] ss:$20 sps:$4 sm:$0xff]  }
 0x656   : > { %9598 = vmatpush2.bf16.msra.mxu1 %v13864_v38  ;;  %9546 = vmatprep.subr.bf16.mxu0 %v13869_v12  ;;  %v13902_v38 = vld [vmem:[%s22834_s4 + $0xd04] ss:$20 sps:$4 sm:$0xff]   ;;  %v13897_v12 = vld [vmem:[%s22834_s4 + $0xa80] ss:$20 sps:$4 sm:$0xff]  }
 0x657   : > { %9599 = vmatprep.subr.bf16.mxu1 %v13872_v57  ;;  %v13900_v57 = vld [vmem:[%s22834_s4 + $0xd00] ss:$20 sps:$4 sm:$0xff]  }
 0x659   : > { %9547 = vmatpush2.bf16.msra.mxu0 %v13867_v44  ;;  %v13905_v44 = vld [vmem:[%s22834_s4 + $0xa5c] ss:$20 sps:$4 sm:$0xff]  }
 0x65a   : > { %9600 = vmatpush2.bf16.msra.mxu1 %v13870_v24  ;;  %9622 = vmatprep.subr.bf16.mxu0 %v13875_v28  ;;  %v13908_v24 = vld [vmem:[%s22834_s4 + $0xcdc] ss:$20 sps:$4 sm:$0xff]   ;;  %v13903_v28 = vld [vmem:[%s22834_s4 + $0xa58] ss:$20 sps:$4 sm:$0xff]  }
 0x65b   : > { %9675 = vmatprep.subr.bf16.mxu1 %v13878_v15  ;;  %v13906_v15 = vld [vmem:[%s22834_s4 + $0xcd8] ss:$20 sps:$4 sm:$0xff]  }
 0x65c   : > { %9549 = vmatmul.mubr.bf16.vlgmr.msra.gmra.mxu0 %v23733_v8 }
 0x65d   : > { %9602 = vmatmul.mubr.bf16.vlgmr.msra.gmra.mxu1 %v23736_v63  ;;  %9558 = vmatprep.mubr.bf16.mxu0 %v20446_v11 }
 0x65e   : > { %9611 = vmatprep.mubr.bf16.mxu1 %v23762_v17  ;;  %9623 = vmatpush1.bf16.msra.mxu0 %v13873_v35  ;;  %v13911_v35 = vld [vmem:[%s22834_s4 + $0xa34] ss:$20 sps:$4 sm:$0xff]  }
 0x65f   : > { %9676 = vmatpush1.bf16.msra.mxu1 %v13876_v33  ;;  %9624 = vmatprep.subr.bf16.mxu0 %v13881_v56  ;;  %v13914_v33 = vld [vmem:[%s22834_s4 + $0xcb4] ss:$20 sps:$4 sm:$0xff]   ;;  %v13909_v56 = vld [vmem:[%s22834_s4 + $0xa30] ss:$20 sps:$4 sm:$0xff]  }
 0x660   : > { %9677 = vmatprep.subr.bf16.mxu1 %v13884_v10  ;;  %v13912_v10 = vld [vmem:[%s22834_s4 + $0xcb0] ss:$20 sps:$4 sm:$0xff]  }
 0x662   : > { %9625 = vmatpush1.bf16.msra.mxu0 %v13879_v42  ;;  %v13917_v42 = vld [vmem:[%s22834_s4 + $0xa0c] ss:$20 sps:$4 sm:$0xff]  }
 0x663   : > { %9678 = vmatpush1.bf16.msra.mxu1 %v13882_v50  ;;  %9626 = vmatprep.subr.bf16.mxu0 %v13887_v19  ;;  %v13920_v50 = vld [vmem:[%s22834_s4 + $0xc8c] ss:$20 sps:$4 sm:$0xff]   ;;  %v13915_v19 = vld [vmem:[%s22834_s4 + $0xa08] ss:$20 sps:$4 sm:$0xff]  }
 0x664   : > { %9559 = vmatmul.mubr.bf16.gmra.mxu0 %v23763_v62  ;;  %9679 = vmatprep.subr.bf16.mxu1 %v13890_v26  ;;  %v13918_v26 = vld [vmem:[%s22834_s4 + $0xc88] ss:$20 sps:$4 sm:$0xff]  }
 0x665   : > { %9612 = vmatmul.mubr.bf16.gmra.mxu1 %v23764_v43  ;;  %9654 = vmatprep.mubr.bf16.mxu0 %v23765_v45 }
 0x666   : > { %9627 = vmatpush1.bf16.msra.mxu0 %v13885_v27  ;;  %9707 = vmatprep.mubr.bf16.mxu1 %v23766_v59  ;;  %v13923_v27 = vld [vmem:[%s22834_s4 + $0xc64] ss:$20 sps:$4 sm:$0xff]  }
 0x667   : > { %9680 = vmatpush1.bf16.msra.mxu1 %v13888_v31  ;;  %9628 = vmatprep.subr.bf16.mxu0 %v13893_v46  ;;  %v13926_v31 = vld [vmem:[%s22834_s4 + $0xee4] ss:$20 sps:$4 sm:$0xff]   ;;  %v13921_v46 = vld [vmem:[%s22834_s4 + $0xc60] ss:$20 sps:$4 sm:$0xff]  }
 0x668   : > { %9681 = vmatprep.subr.bf16.mxu1 %v13896_v54  ;;  %v13924_v54 = vld [vmem:[%s22834_s4 + $0xee0] ss:$20 sps:$4 sm:$0xff]  }
 0x66a   : > { %9629 = vmatpush1.bf16.msra.mxu0 %v13891_v7  ;;  %v13929_v7 = vld [vmem:[%s22834_s4 + $0xc3c] ss:$20 sps:$4 sm:$0xff]  }
 0x66b   : > { %9682 = vmatpush1.bf16.msra.mxu1 %v13894_v4  ;;  %9630 = vmatprep.subr.bf16.mxu0 %v13899_v61  ;;  %v13932_v4 = vld [vmem:[%s22834_s4 + $0xebc] ss:$20 sps:$4 sm:$0xff]   ;;  %v13927_v61 = vld [vmem:[%s22834_s4 + $0xc38] ss:$20 sps:$4 sm:$0xff]  }
 0x66c   : > { %9683 = vmatprep.subr.bf16.mxu1 %v13902_v38  ;;  %v13930_v38 = vld [vmem:[%s22834_s4 + $0xeb8] ss:$20 sps:$4 sm:$0xff]  }
 0x66e   : > { %9631 = vmatpush1.bf16.msra.mxu0 %v13897_v12  ;;  %v13935_v12 = vld [vmem:[%s22834_s4 + $0xc14] ss:$20 sps:$4 sm:$0xff]  }
 0x66f   : > { %9684 = vmatpush1.bf16.msra.mxu1 %v13900_v57  ;;  %9632 = vmatprep.subr.bf16.mxu0 %v13905_v44  ;;  %v13938_v57 = vld [vmem:[%s22834_s4 + $0xe94] ss:$20 sps:$4 sm:$0xff]   ;;  %v13933_v44 = vld [vmem:[%s22834_s4 + $0xc10] ss:$20 sps:$4 sm:$0xff]  }
 0x670   : > { %9685 = vmatprep.subr.bf16.mxu1 %v13908_v24  ;;  %v13936_v24 = vld [vmem:[%s22834_s4 + $0xe90] ss:$20 sps:$4 sm:$0xff]  }
 0x672   : > { %9633 = vmatpush1.bf16.msra.mxu0 %v13903_v28  ;;  %v13941_v28 = vld [vmem:[%s22834_s4 + $0xbec] ss:$20 sps:$4 sm:$0xff]  }
 0x673   : > { %9686 = vmatpush1.bf16.msra.mxu1 %v13906_v15  ;;  %9634 = vmatprep.subr.bf16.mxu0 %v13911_v35  ;;  %v13944_v15 = vld [vmem:[%s22834_s4 + $0xe6c] ss:$20 sps:$4 sm:$0xff]   ;;  %v13939_v35 = vld [vmem:[%s22834_s4 + $0xbe8] ss:$20 sps:$4 sm:$0xff]  }
 0x674   : > { %9687 = vmatprep.subr.bf16.mxu1 %v13914_v33  ;;  %v13942_v33 = vld [vmem:[%s22834_s4 + $0xe68] ss:$20 sps:$4 sm:$0xff]  }
 0x676   : > { %9635 = vmatpush1.bf16.msra.mxu0 %v13909_v56  ;;  %v13947_v56 = vld [vmem:[%s22834_s4 + $0xbc4] ss:$20 sps:$4 sm:$0xff]  }
 0x677   : > { %9688 = vmatpush1.bf16.msra.mxu1 %v13912_v10  ;;  %9636 = vmatprep.subr.bf16.mxu0 %v13917_v42  ;;  %v13950_v10 = vld [vmem:[%s22834_s4 + $0xe44] ss:$20 sps:$4 sm:$0xff]   ;;  %v13945_v42 = vld [vmem:[%s22834_s4 + $0xbc0] ss:$20 sps:$4 sm:$0xff]  }
 0x678   : > { %9689 = vmatprep.subr.bf16.mxu1 %v13920_v50  ;;  %v13948_v50 = vld [vmem:[%s22834_s4 + $0xe40] ss:$20 sps:$4 sm:$0xff]  }
 0x67a   : > { %9637 = vmatpush1.bf16.msra.mxu0 %v13915_v19  ;;  %v13953_v19 = vld [vmem:[%s22834_s4 + $0xb9c] ss:$20 sps:$4 sm:$0xff]  }
 0x67b   : > { %9690 = vmatpush1.bf16.msra.mxu1 %v13918_v26  ;;  %9638 = vmatprep.subr.bf16.mxu0 %v13923_v27  ;;  %v13956_v26 = vld [vmem:[%s22834_s4 + $0xe1c] ss:$20 sps:$4 sm:$0xff]   ;;  %v13951_v27 = vld [vmem:[%s22834_s4 + $0xb98] ss:$20 sps:$4 sm:$0xff]  }
 0x67c   : > { %9691 = vmatprep.subr.bf16.mxu1 %v13926_v31  ;;  %v13954_v31 = vld [vmem:[%s22834_s4 + $0xe18] ss:$20 sps:$4 sm:$0xff]  }
 0x67e   : > { %9639 = vmatpush2.bf16.msra.mxu0 %v13921_v46  ;;  %v13959_v46 = vld [vmem:[%s22834_s4 + $0xb74] ss:$20 sps:$4 sm:$0xff]  }
 0x67f   : > { %9692 = vmatpush2.bf16.msra.mxu1 %v13924_v54  ;;  %9640 = vmatprep.subr.bf16.mxu0 %v13929_v7  ;;  %v13962_v54 = vld [vmem:[%s22834_s4 + $0xdf4] ss:$20 sps:$4 sm:$0xff]   ;;  %v13957_v7 = vld [vmem:[%s22834_s4 + $0xb70] ss:$20 sps:$4 sm:$0xff]  }
 0x680   : > { %9693 = vmatprep.subr.bf16.mxu1 %v13932_v4  ;;  %v13960_v4 = vld [vmem:[%s22834_s4 + $0xdf0] ss:$20 sps:$4 sm:$0xff]  }
 0x682   : > { %9641 = vmatpush2.bf16.msra.mxu0 %v13927_v61  ;;  %v13965_v61 = vld [vmem:[%s22834_s4 + $0xb4c] ss:$20 sps:$4 sm:$0xff]  }
 0x683   : > { %9694 = vmatpush2.bf16.msra.mxu1 %v13930_v38  ;;  %9642 = vmatprep.subr.bf16.mxu0 %v13935_v12  ;;  %v13968_v38 = vld [vmem:[%s22834_s4 + $0xdcc] ss:$20 sps:$4 sm:$0xff]   ;;  %v13963_v12 = vld [vmem:[%s22834_s4 + $0xb48] ss:$20 sps:$4 sm:$0xff]  }
 0x684   : > { %9695 = vmatprep.subr.bf16.mxu1 %v13938_v57  ;;  %v13966_v57 = vld [vmem:[%s22834_s4 + $0xdc8] ss:$20 sps:$4 sm:$0xff]  }
 0x686   : > { %9643 = vmatpush2.bf16.msra.mxu0 %v13933_v44  ;;  %v13971_v44 = vld [vmem:[%s22834_s4 + $0x1024] ss:$20 sps:$4 sm:$0xff]  }
 0x687   : > { %9696 = vmatpush2.bf16.msra.mxu1 %v13936_v24  ;;  %9644 = vmatprep.subr.bf16.mxu0 %v13941_v28  ;;  %v13974_v24 = vld [vmem:[%s22834_s4 + $0x12a4] ss:$20 sps:$4 sm:$0xff]   ;;  %v13969_v28 = vld [vmem:[%s22834_s4 + $0x1020] ss:$20 sps:$4 sm:$0xff]  }
 0x688   : > { %9697 = vmatprep.subr.bf16.mxu1 %v13944_v15  ;;  %v13972_v15 = vld [vmem:[%s22834_s4 + $0x12a0] ss:$20 sps:$4 sm:$0xff]  }
 0x68a   : > { %9645 = vmatpush2.bf16.msra.mxu0 %v13939_v35  ;;  %v13977_v35 = vld [vmem:[%s22834_s4 + $0xffc] ss:$20 sps:$4 sm:$0xff]  }
 0x68b   : > { %9698 = vmatpush2.bf16.msra.mxu1 %v13942_v33  ;;  %9646 = vmatprep.subr.bf16.mxu0 %v13947_v56  ;;  %v13980_v33 = vld [vmem:[%s22834_s4 + $0x127c] ss:$20 sps:$4 sm:$0xff]   ;;  %v13975_v56 = vld [vmem:[%s22834_s4 + $0xff8] ss:$20 sps:$4 sm:$0xff]  }
 0x68c   : > { %9699 = vmatprep.subr.bf16.mxu1 %v13950_v10  ;;  %v13978_v10 = vld [vmem:[%s22834_s4 + $0x1278] ss:$20 sps:$4 sm:$0xff]  }
 0x68e   : > { %9647 = vmatpush2.bf16.msra.mxu0 %v13945_v42  ;;  %v13983_v42 = vld [vmem:[%s22834_s4 + $0xfd4] ss:$20 sps:$4 sm:$0xff]  }
 0x68f   : > { %9700 = vmatpush2.bf16.msra.mxu1 %v13948_v50  ;;  %9648 = vmatprep.subr.bf16.mxu0 %v13953_v19  ;;  %v13986_v50 = vld [vmem:[%s22834_s4 + $0x1254] ss:$20 sps:$4 sm:$0xff]   ;;  %v13981_v19 = vld [vmem:[%s22834_s4 + $0xfd0] ss:$20 sps:$4 sm:$0xff]  }
 0x690   : > { %9701 = vmatprep.subr.bf16.mxu1 %v13956_v26  ;;  %v13984_v26 = vld [vmem:[%s22834_s4 + $0x1250] ss:$20 sps:$4 sm:$0xff]  }
 0x692   : > { %9649 = vmatpush2.bf16.msra.mxu0 %v13951_v27  ;;  %v13989_v27 = vld [vmem:[%s22834_s4 + $0xfac] ss:$20 sps:$4 sm:$0xff]  }
 0x693   : > { %9702 = vmatpush2.bf16.msra.mxu1 %v13954_v31  ;;  %9650 = vmatprep.subr.bf16.mxu0 %v13959_v46  ;;  %v13992_v31 = vld [vmem:[%s22834_s4 + $0x122c] ss:$20 sps:$4 sm:$0xff]   ;;  %v13987_v46 = vld [vmem:[%s22834_s4 + $0xfa8] ss:$20 sps:$4 sm:$0xff]  }
 0x694   : > { %9703 = vmatprep.subr.bf16.mxu1 %v13962_v54  ;;  %v13990_v54 = vld [vmem:[%s22834_s4 + $0x1228] ss:$20 sps:$4 sm:$0xff]  }
 0x696   : > { %9651 = vmatpush2.bf16.msra.mxu0 %v13957_v7  ;;  %v13995_v7 = vld [vmem:[%s22834_s4 + $0xf84] ss:$20 sps:$4 sm:$0xff]  }
 0x697   : > { %9704 = vmatpush2.bf16.msra.mxu1 %v13960_v4  ;;  %9652 = vmatprep.subr.bf16.mxu0 %v13965_v61  ;;  %v13998_v4 = vld [vmem:[%s22834_s4 + $0x1204] ss:$20 sps:$4 sm:$0xff]   ;;  %v13993_v61 = vld [vmem:[%s22834_s4 + $0xf80] ss:$20 sps:$4 sm:$0xff]  }
 0x698   : > { %9705 = vmatprep.subr.bf16.mxu1 %v13968_v38  ;;  %v13996_v38 = vld [vmem:[%s22834_s4 + $0x1200] ss:$20 sps:$4 sm:$0xff]  }
 0x69a   : > { %9653 = vmatpush2.bf16.msra.mxu0 %v13963_v12  ;;  %v14001_v12 = vld [vmem:[%s22834_s4 + $0xf5c] ss:$20 sps:$4 sm:$0xff]  }
 0x69b   : > { %9706 = vmatpush2.bf16.msra.mxu1 %v13966_v57  ;;  %9728 = vmatprep.subr.bf16.mxu0 %v13971_v44  ;;  %v14004_v57 = vld [vmem:[%s22834_s4 + $0x11dc] ss:$20 sps:$4 sm:$0xff]   ;;  %v13999_v44 = vld [vmem:[%s22834_s4 + $0xf58] ss:$20 sps:$4 sm:$0xff]  }
 0x69c   : > { %9781 = vmatprep.subr.bf16.mxu1 %v13974_v24  ;;  %v14002_v24 = vld [vmem:[%s22834_s4 + $0x11d8] ss:$20 sps:$4 sm:$0xff]  }
 0x69d   : > { %9655 = vmatmul.mubr.bf16.vlgmr.msra.gmra.mxu0 %v23752_v21 }
 0x69e   : > { %9708 = vmatmul.mubr.bf16.vlgmr.msra.gmra.mxu1 %v19676_v36  ;;  %9664 = vmatprep.mubr.bf16.mxu0 %v20737_v48 }
 0x69f   : > { %9717 = vmatprep.mubr.bf16.mxu1 %v20744_v22  ;;  %9729 = vmatpush1.bf16.msra.mxu0 %v13969_v28  ;;  %v14007_v28 = vld [vmem:[%s22834_s4 + $0xf34] ss:$20 sps:$4 sm:$0xff]  }
 0x6a0   : > { %9782 = vmatpush1.bf16.msra.mxu1 %v13972_v15  ;;  %9730 = vmatprep.subr.bf16.mxu0 %v13977_v35  ;;  %v14010_v15 = vld [vmem:[%s22834_s4 + $0x11b4] ss:$20 sps:$4 sm:$0xff]   ;;  %v14005_v35 = vld [vmem:[%s22834_s4 + $0xf30] ss:$20 sps:$4 sm:$0xff]  }
 0x6a1   : > { %9783 = vmatprep.subr.bf16.mxu1 %v13980_v33  ;;  %v14008_v33 = vld [vmem:[%s22834_s4 + $0x11b0] ss:$20 sps:$4 sm:$0xff]  }
 0x6a3   : > { %9731 = vmatpush1.bf16.msra.mxu0 %v13975_v56  ;;  %v14013_v56 = vld [vmem:[%s22834_s4 + $0xf0c] ss:$20 sps:$4 sm:$0xff]  }
 0x6a4   : > { %9784 = vmatpush1.bf16.msra.mxu1 %v13978_v10  ;;  %9732 = vmatprep.subr.bf16.mxu0 %v13983_v42  ;;  %v14016_v10 = vld [vmem:[%s22834_s4 + $0x118c] ss:$20 sps:$4 sm:$0xff]   ;;  %v14011_v42 = vld [vmem:[%s22834_s4 + $0xf08] ss:$20 sps:$4 sm:$0xff]  }
 0x6a5   : > { %9665 = vmatmul.mubr.bf16.gmra.mxu0 %v23753_v23  ;;  %9785 = vmatprep.subr.bf16.mxu1 %v13986_v50  ;;  %v14014_v50 = vld [vmem:[%s22834_s4 + $0x1188] ss:$20 sps:$4 sm:$0xff]  }
 0x6a6   : > { %9718 = vmatmul.mubr.bf16.gmra.mxu1 %v19711_v47  ;;  %9760 = vmatprep.mubr.bf16.mxu0 %v20772_v52 }
 0x6a7   : > { %9733 = vmatpush1.bf16.msra.mxu0 %v13981_v19  ;;  %9813 = vmatprep.mubr.bf16.mxu1 %v20809_v40  ;;  %v14019_v19 = vld [vmem:[%s22834_s4 + $0x1164] ss:$20 sps:$4 sm:$0xff]  }
 0x6a8   : > { %9786 = vmatpush1.bf16.msra.mxu1 %v13984_v26  ;;  %9734 = vmatprep.subr.bf16.mxu0 %v13989_v27  ;;  %v14022_v26 = vld [vmem:[%s22834_s4 + $0x13e4] ss:$20 sps:$4 sm:$0xff]   ;;  %v14017_v27 = vld [vmem:[%s22834_s4 + $0x1160] ss:$20 sps:$4 sm:$0xff]  }
 0x6a9   : > { %9787 = vmatprep.subr.bf16.mxu1 %v13992_v31  ;;  %v14020_v31 = vld [vmem:[%s22834_s4 + $0x13e0] ss:$20 sps:$4 sm:$0xff]  }
 0x6ab   : > { %9735 = vmatpush1.bf16.msra.mxu0 %v13987_v46  ;;  %v14025_v46 = vld [vmem:[%s22834_s4 + $0x113c] ss:$20 sps:$4 sm:$0xff]  }
 0x6ac   : > { %9788 = vmatpush1.bf16.msra.mxu1 %v13990_v54  ;;  %9736 = vmatprep.subr.bf16.mxu0 %v13995_v7  ;;  %v14028_v54 = vld [vmem:[%s22834_s4 + $0x13bc] ss:$20 sps:$4 sm:$0xff]   ;;  %v14023_v7 = vld [vmem:[%s22834_s4 + $0x1138] ss:$20 sps:$4 sm:$0xff]  }
 0x6ad   : > { %9789 = vmatprep.subr.bf16.mxu1 %v13998_v4  ;;  %v14026_v4 = vld [vmem:[%s22834_s4 + $0x13b8] ss:$20 sps:$4 sm:$0xff]  }
 0x6af   : > { %9737 = vmatpush1.bf16.msra.mxu0 %v13993_v61  ;;  %v14031_v61 = vld [vmem:[%s22834_s4 + $0x1114] ss:$20 sps:$4 sm:$0xff]  }
 0x6b0   : > { %9790 = vmatpush1.bf16.msra.mxu1 %v13996_v38  ;;  %9738 = vmatprep.subr.bf16.mxu0 %v14001_v12  ;;  %v14034_v38 = vld [vmem:[%s22834_s4 + $0x1394] ss:$20 sps:$4 sm:$0xff]   ;;  %v14029_v12 = vld [vmem:[%s22834_s4 + $0x1110] ss:$20 sps:$4 sm:$0xff]  }
 0x6b1   : > { %9791 = vmatprep.subr.bf16.mxu1 %v14004_v57  ;;  %v14032_v57 = vld [vmem:[%s22834_s4 + $0x1390] ss:$20 sps:$4 sm:$0xff]  }
 0x6b3   : > { %9739 = vmatpush1.bf16.msra.mxu0 %v13999_v44  ;;  %v14037_v44 = vld [vmem:[%s22834_s4 + $0x10ec] ss:$20 sps:$4 sm:$0xff]  }
 0x6b4   : > { %9792 = vmatpush1.bf16.msra.mxu1 %v14002_v24  ;;  %9740 = vmatprep.subr.bf16.mxu0 %v14007_v28  ;;  %v14040_v24 = vld [vmem:[%s22834_s4 + $0x136c] ss:$20 sps:$4 sm:$0xff]   ;;  %v14035_v28 = vld [vmem:[%s22834_s4 + $0x10e8] ss:$20 sps:$4 sm:$0xff]  }
 0x6b5   : > { %9793 = vmatprep.subr.bf16.mxu1 %v14010_v15  ;;  %v14038_v15 = vld [vmem:[%s22834_s4 + $0x1368] ss:$20 sps:$4 sm:$0xff]  }
 0x6b7   : > { %9741 = vmatpush1.bf16.msra.mxu0 %v14005_v35  ;;  %v14043_v35 = vld [vmem:[%s22834_s4 + $0x10c4] ss:$20 sps:$4 sm:$0xff]  }
 0x6b8   : > { %9794 = vmatpush1.bf16.msra.mxu1 %v14008_v33  ;;  %9742 = vmatprep.subr.bf16.mxu0 %v14013_v56  ;;  %v14046_v33 = vld [vmem:[%s22834_s4 + $0x1344] ss:$20 sps:$4 sm:$0xff]   ;;  %v14041_v56 = vld [vmem:[%s22834_s4 + $0x10c0] ss:$20 sps:$4 sm:$0xff]  }
 0x6b9   : > { %9795 = vmatprep.subr.bf16.mxu1 %v14016_v10  ;;  %v14044_v10 = vld [vmem:[%s22834_s4 + $0x1340] ss:$20 sps:$4 sm:$0xff]  }
 0x6bb   : > { %9743 = vmatpush1.bf16.msra.mxu0 %v14011_v42  ;;  %v14049_v42 = vld [vmem:[%s22834_s4 + $0x109c] ss:$20 sps:$4 sm:$0xff]  }
 0x6bc   : > { %9796 = vmatpush1.bf16.msra.mxu1 %v14014_v50  ;;  %9744 = vmatprep.subr.bf16.mxu0 %v14019_v19  ;;  %v14052_v50 = vld [vmem:[%s22834_s4 + $0x131c] ss:$20 sps:$4 sm:$0xff]   ;;  %v14047_v19 = vld [vmem:[%s22834_s4 + $0x1098] ss:$20 sps:$4 sm:$0xff]  }
 0x6bd   : > { %9797 = vmatprep.subr.bf16.mxu1 %v14022_v26  ;;  %v14050_v26 = vld [vmem:[%s22834_s4 + $0x1318] ss:$20 sps:$4 sm:$0xff]  }
 0x6bf   : > { %9745 = vmatpush2.bf16.msra.mxu0 %v14017_v27  ;;  %v14055_v27 = vld [vmem:[%s22834_s4 + $0x1074] ss:$20 sps:$4 sm:$0xff]  }
 0x6c0   : > { %9798 = vmatpush2.bf16.msra.mxu1 %v14020_v31  ;;  %9746 = vmatprep.subr.bf16.mxu0 %v14025_v46  ;;  %v14058_v31 = vld [vmem:[%s22834_s4 + $0x12f4] ss:$20 sps:$4 sm:$0xff]   ;;  %v14053_v46 = vld [vmem:[%s22834_s4 + $0x1070] ss:$20 sps:$4 sm:$0xff]  }
 0x6c1   : > { %9799 = vmatprep.subr.bf16.mxu1 %v14028_v54  ;;  %v14056_v54 = vld [vmem:[%s22834_s4 + $0x12f0] ss:$20 sps:$4 sm:$0xff]  }
 0x6c3   : > { %9747 = vmatpush2.bf16.msra.mxu0 %v14023_v7  ;;  %v14061_v7 = vld [vmem:[%s22834_s4 + $0x104c] ss:$20 sps:$4 sm:$0xff]  }
 0x6c4   : > { %9800 = vmatpush2.bf16.msra.mxu1 %v14026_v4  ;;  %9748 = vmatprep.subr.bf16.mxu0 %v14031_v61  ;;  %v14064_v4 = vld [vmem:[%s22834_s4 + $0x12cc] ss:$20 sps:$4 sm:$0xff]   ;;  %v14059_v61 = vld [vmem:[%s22834_s4 + $0x1048] ss:$20 sps:$4 sm:$0xff]  }
 0x6c5   : > { %9801 = vmatprep.subr.bf16.mxu1 %v14034_v38  ;;  %v14062_v38 = vld [vmem:[%s22834_s4 + $0x12c8] ss:$20 sps:$4 sm:$0xff]  }
 0x6c7   : > { %9749 = vmatpush2.bf16.msra.mxu0 %v14029_v12  ;;  %v14065_v12 = vld [vmem:[%s22834_s4 + $0x268] ss:$20 sps:$4 sm:$0xff]  }
 0x6c8   : > { %9802 = vmatpush2.bf16.msra.mxu1 %v14032_v57  ;;  %9750 = vmatprep.subr.bf16.mxu0 %v14037_v44  ;;  %v14066_v57 = vld [vmem:[%s22834_s4 + $0x4e8] ss:$20 sps:$4 sm:$0xff]  }
 0x6c9   : > { %9803 = vmatprep.subr.bf16.mxu1 %v14040_v24  ;;  %v14067_v44 = vld [vmem:[%s22834_s4 + $0x128] ss:$20 sps:$4 sm:$0xff]  }
 0x6ca   : > { %v14068_v24 = vld [vmem:[%s22834_s4 + $0x3a8] ss:$20 sps:$4 sm:$0xff]  }
 0x6cb   : > { %9751 = vmatpush2.bf16.msra.mxu0 %v14035_v28  ;;  %v14069_v28 = vld [vmem:[%s22834_s4 + $0x240] ss:$20 sps:$4 sm:$0xff]  }
 0x6cc   : > { %9804 = vmatpush2.bf16.msra.mxu1 %v14038_v15  ;;  %9752 = vmatprep.subr.bf16.mxu0 %v14043_v35  ;;  %v14070_v15 = vld [vmem:[%s22834_s4 + $0x4c0] ss:$20 sps:$4 sm:$0xff]   ;;  %v21822_v35 = vpop.f32.mrf.mxu0 }
 0x6cd   : > { %9805 = vmatprep.subr.bf16.mxu1 %v14046_v33  ;;  %v14071_v33 = vld [vmem:[%s22834_s4 + $0x100] ss:$20 sps:$4 sm:$0xff]  }
 0x6cf   : > { %9753 = vmatpush2.bf16.msra.mxu0 %v14041_v56  ;;  %v21828_v56 = vpop.f32.mrf.mxu1 }
 0x6d0   : > { %9806 = vmatpush2.bf16.msra.mxu1 %v14044_v10  ;;  %9754 = vmatprep.subr.bf16.mxu0 %v14049_v42  ;;  %v14072_v10 = vld [vmem:[%s22834_s4 + $0x380] ss:$20 sps:$4 sm:$0xff]   ;;  %v14073_v42 = vld [vmem:[%s22834_s4 + $0x218] ss:$20 sps:$4 sm:$0xff]  }
 0x6d1   : > { %9807 = vmatprep.subr.bf16.mxu1 %v14052_v50  ;;  %v14074_v50 = vld [vmem:[%s22834_s4 + $0x498] ss:$20 sps:$4 sm:$0xff]  }
 0x6d3   : > { %9755 = vmatpush2.bf16.msra.mxu0 %v14047_v19  ;;  %v21839_v19 = vpop.f32.mrf.mxu0 }
 0x6d4   : > { %9808 = vmatpush2.bf16.msra.mxu1 %v14050_v26  ;;  %9756 = vmatprep.subr.bf16.mxu0 %v14055_v27  ;;  %v14075_v26 = vld [vmem:[%s22834_s4 + $0xd8] ss:$20 sps:$4 sm:$0xff]   ;;  %v21844_v27 = vpop.f32.mrf.mxu1 }
 0x6d5   : > { %9809 = vmatprep.subr.bf16.mxu1 %v14058_v31  ;;  %v14076_v31 = vld [vmem:[%s22834_s4 + $0x358] ss:$20 sps:$4 sm:$0xff]  }
 0x6d7   : > { %9757 = vmatpush2.bf16.msra.mxu0 %v14053_v46  ;;  %v14077_v46 = vld [vmem:[%s22834_s4 + $0x1f0] ss:$20 sps:$4 sm:$0xff]  }
 0x6d8   : > { %9810 = vmatpush2.bf16.msra.mxu1 %v14056_v54  ;;  %9758 = vmatprep.subr.bf16.mxu0 %v14061_v7  ;;  %v14078_v54 = vld [vmem:[%s22834_s4 + $0x470] ss:$20 sps:$4 sm:$0xff]   ;;  %v21858_v7 = vpop.f32.mrf.mxu0 }
 0x6d9   : > { %9811 = vmatprep.subr.bf16.mxu1 %v14064_v4  ;;  %v14079_v4 = vld [vmem:[%s22834_s4 + $0xb0] ss:$20 sps:$4 sm:$0xff]  }
 0x6db   : > { %9759 = vmatpush2.bf16.msra.mxu0 %v14059_v61  ;;  %v21864_v61 = vpop.f32.mrf.mxu1 }
 0x6dc   : > { %9812 = vmatpush2.bf16.msra.mxu1 %v14062_v38  ;;  %12573 = vmatprep.subr.bf16.mxu0 %v14065_v12  ;;  %v14080_v38 = vld [vmem:[%s22834_s4 + $0x330] ss:$20 sps:$4 sm:$0xff]   ;;  %v21872_v12 = vpop.f32.mrf.mxu0 }
 0x6dd   : > { %12601 = vmatprep.subr.bf16.mxu1 %v14066_v57  ;;  %v21877_v57 = vpop.f32.mrf.mxu1 }
 0x6de   : > { %9761 = vmatmul.mubr.bf16.vlgmr.msra.gmra.mxu0 %v20156_v32 }
 0x6df   : > { %9814 = vmatmul.mubr.bf16.vlgmr.msra.gmra.mxu1 %v20796_v34  ;;  %9770 = vmatprep.mubr.bf16.mxu0 %v20992_v30 }
 0x6e0   : > { %9823 = vmatprep.mubr.bf16.mxu1 %v21002_v18  ;;  %12574 = vmatpush3.bf16.msra.mxu0 %v14067_v44  ;;  %v14083_v44 = vld [vmem:[%s22834_s4 + $0x88] ss:$20 sps:$4 sm:$0xff]  }
 0x6e1   : > { %12602 = vmatpush3.bf16.msra.mxu1 %v14068_v24  ;;  %12575 = vmatprep.subr.bf16.mxu0 %v14069_v28  ;;  %v14084_v24 = vld [vmem:[%s22834_s4 + $0x308] ss:$20 sps:$4 sm:$0xff]   ;;  %v14085_v28 = vld [vmem:[%s22834_s4 + $0x1a0] ss:$20 sps:$4 sm:$0xff]  }
 0x6e2   : > { %12603 = vmatprep.subr.bf16.mxu1 %v14070_v15  ;;  %v21888_v15 = vpop.f32.mrf.mxu0 }
 0x6e4   : > { %12576 = vmatpush3.bf16.msra.mxu0 %v14071_v33  ;;  %v14086_v33 = vld [vmem:[%s22834_s4 + $0x420] ss:$20 sps:$4 sm:$0xff]  }
 0x6e5   : > { %12604 = vmatpush3.bf16.msra.mxu1 %v14072_v10  ;;  %12577 = vmatprep.subr.bf16.mxu0 %v14073_v42  ;;  %v21893_v10 = vpop.f32.mrf.mxu1  ;;  %v14087_v42 = vld [vmem:[%s22834_s4 + $0x60] ss:$20 sps:$4 sm:$0xff]  }
 0x6e6   : > { %9771 = vmatmul.mubr.bf16.gmra.mxu0 %v20201_v16  ;;  %12605 = vmatprep.subr.bf16.mxu1 %v14074_v50  ;;  %v14088_v50 = vld [vmem:[%s22834_s4 + $0x2e0] ss:$20 sps:$4 sm:$0xff]  }
 0x6e7   : > { %9824 = vmatmul.mubr.bf16.gmra.mxu1 %v20828_v60  ;;  %9866 = vmatprep.mubr.bf16.mxu0 %v19917_v41  ;;  %v14081_v41 = vld [vmem:[%s22834_s4 + $0x1c8] ss:$20 sps:$4 sm:$0xff]  }
 0x6e8   : > { %12578 = vmatpush3.bf16.msra.mxu0 %v14075_v26  ;;  %9915 = vmatprep.mubr.bf16.mxu1 %v19928_v37  ;;  %v14082_v37 = vld [vmem:[%s22834_s4 + $0x448] ss:$20 sps:$4 sm:$0xff]   ;;  %v14089_v26 = vld [vmem:[%s22834_s4 + $0x178] ss:$20 sps:$4 sm:$0xff]  }
 0x6e9   : > { %12606 = vmatpush3.bf16.msra.mxu1 %v14076_v31  ;;  %12579 = vmatprep.subr.bf16.mxu0 %v14077_v46  ;;  %v21904_v31 = vpop.f32.mrf.mxu0  ;;  %v14090_v46 = vld [vmem:[%s22834_s4 + $0x3f8] ss:$20 sps:$4 sm:$0xff]  }
 0x6ea   : > { %12607 = vmatprep.subr.bf16.mxu1 %v14078_v54  ;;  %v21909_v54 = vpop.f32.mrf.mxu1 }
 0x6ec   : > { %12580 = vmatpush3.bf16.msra.mxu0 %v14079_v4  ;;  %v14091_v4 = vld [vmem:[%s22834_s4 + $0x38] ss:$20 sps:$4 sm:$0xff]  }
 0x6ed   : > { %12608 = vmatpush3.bf16.msra.mxu1 %v14080_v38  ;;  %12581 = vmatprep.subr.bf16.mxu0 %v14081_v41  ;;  %v14092_v38 = vld [vmem:[%s22834_s4 + $0x2b8] ss:$20 sps:$4 sm:$0xff]   ;;  %v14093_v41 = vld [vmem:[%s22834_s4 + $0x150] ss:$20 sps:$4 sm:$0xff]  }
 0x6ee   : > { %12609 = vmatprep.subr.bf16.mxu1 %v14082_v37  ;;  %v21920_v37 = vpop.f32.mrf.mxu0 }
 0x6f0   : > { %12582 = vmatpush3.bf16.msra.mxu0 %v14083_v44  ;;  %v14094_v44 = vld [vmem:[%s22834_s4 + $0x3d0] ss:$20 sps:$4 sm:$0xff]  }
 0x6f1   : > { %12610 = vmatpush3.bf16.msra.mxu1 %v14084_v24  ;;  %12583 = vmatprep.subr.bf16.mxu0 %v14085_v28  ;;  %v21925_v24 = vpop.f32.mrf.mxu1  ;;  %v14095_v28 = vld [vmem:[%s22834_s4 + $0x10] ss:$20 sps:$4 sm:$0xff]  }
 0x6f2   : > { %12611 = vmatprep.subr.bf16.mxu1 %v14086_v33  ;;  %v14096_v33 = vld [vmem:[%s22834_s4 + $0x290] ss:$20 sps:$4 sm:$0xff]  }
 0x6f4   : > { %12584 = vmatpush3.bf16.msra.mxu0 %v14087_v42  ;;  %v14097_v42 = vld [vmem:[%s22834_s4 + $0x768] ss:$20 sps:$4 sm:$0xff]  }
 0x6f5   : > { %12612 = vmatpush3.bf16.msra.mxu1 %v14088_v50  ;;  %12585 = vmatprep.subr.bf16.mxu0 %v14089_v26  ;;  %v21936_v50 = vpop.f32.mrf.mxu0  ;;  %v14098_v26 = vld [vmem:[%s22834_s4 + $0x9e8] ss:$20 sps:$4 sm:$0xff]  }
 0x6f6   : > { %12613 = vmatprep.subr.bf16.mxu1 %v14090_v46  ;;  %23767 = vst [vmem:[#allocation131_spill] sm:$0xff] %v21936_v50  ;;  %v21941_v46 = vpop.f32.mrf.mxu1  ;;  %v14126_v50 = vld [vmem:[%s22834_s4 + $0x8d0] ss:$20 sps:$4 sm:$0xff]  }
 0x6f7   : > { %23768 = vst [vmem:[#allocation132_spill] sm:$0xff] %v21941_v46 }
 0x6f8   : > { %12586 = vmatpush3.bf16.msra.mxu0 %v14091_v4  ;;  %v14099_v4 = vld [vmem:[%s22834_s4 + $0x628] ss:$20 sps:$4 sm:$0xff]   ;;  %v21954_v13 = vpop.f32.mrf.mxu1 }
 0x6f9   : > { %12614 = vmatpush3.bf16.msra.mxu1 %v14092_v38  ;;  %12587 = vmatprep.subr.bf16.mxu0 %v14093_v41  ;;  %v21946_v38 = vpop.f32.mrf.mxu0  ;;  %v14100_v41 = vld [vmem:[%s22834_s4 + $0x8a8] ss:$20 sps:$4 sm:$0xff]  }
 0x6fa   : > { %12615 = vmatprep.subr.bf16.mxu1 %v14094_v44  ;;  %v14101_v44 = vld [vmem:[%s22834_s4 + $0x740] ss:$20 sps:$4 sm:$0xff]  }
 0x6fc   : > { %12588 = vmatpush3.bf16.msra.mxu0 %v14095_v28  ;;  %v14102_v28 = vld [vmem:[%s22834_s4 + $0x9c0] ss:$20 sps:$4 sm:$0xff]  }
 0x6fd   : > { %12616 = vmatpush3.bf16.msra.mxu1 %v14096_v33  ;;  %12629 = vmatprep.subr.bf16.mxu0 %v14097_v42  ;;  %v14103_v33 = vld [vmem:[%s22834_s4 + $0x600] ss:$20 sps:$4 sm:$0xff]   ;;  %v21966_v42 = vpop.f32.mrf.mxu0 }
 0x6fe   : > { %12657 = vmatprep.subr.bf16.mxu1 %v14098_v26  ;;  %v14107_v26 = vld [vmem:[%s22834_s4 + $0x5d8] ss:$20 sps:$4 sm:$0xff]  }
 0x6ff   : > { %9867 = vmatmul.mubr.bf16.vlgmr.msra.gmra.mxu0 %v23693_v1  ;;  %v14104_v1 = vld [vmem:[%s22834_s4 + $0x880] ss:$20 sps:$4 sm:$0xff]  }
 0x700   : > { %9916 = vmatmul.mubr.bf16.vlgmr.msra.gmra.mxu1 %v23696_v2  ;;  %9874 = vmatprep.mubr.bf16.mxu0 %v23756_v3  ;;  %v14105_v2 = vld [vmem:[%s22834_s4 + $0x718] ss:$20 sps:$4 sm:$0xff]   ;;  %v21974_v3 = vpop.f32.mrf.mxu1 }
 0x701   : > { %9923 = vmatprep.mubr.bf16.mxu1 %v23757_v49  ;;  %12630 = vmatpush3.bf16.msra.mxu0 %v14099_v4  ;;  %23769 = vst [vmem:[#allocation133_spill] sm:$0xff] %v21974_v3  ;;  %v14106_v49 = vld [vmem:[%s22834_s4 + $0x998] ss:$20 sps:$4 sm:$0xff]   ;;  %v21982_v4 = vpop.f32.mrf.mxu0 }
 0x702   : > { %12658 = vmatpush3.bf16.msra.mxu1 %v14100_v41  ;;  %12631 = vmatprep.subr.bf16.mxu0 %v14101_v44  ;;  %v14108_v41 = vld [vmem:[%s22834_s4 + $0x858] ss:$20 sps:$4 sm:$0xff]   ;;  %v14109_v44 = vld [vmem:[%s22834_s4 + $0x6f0] ss:$20 sps:$4 sm:$0xff]  }
 0x703   : > { %12659 = vmatprep.subr.bf16.mxu1 %v14102_v28  ;;  %v21990_v28 = vpop.f32.mrf.mxu1  ;;  %v21996_v46 = vpop.f32.mrf.mxu0  ;;  %v14122_v3 = vld [vmem:[%s22834_s4 + $0x8f8] ss:$20 sps:$4 sm:$0xff]  }
 0x704   : > { %23770 = vst [vmem:[#allocation134_spill] sm:$0xff] %v21996_v46 }
 0x705   : > { %12632 = vmatpush3.bf16.msra.mxu0 %v14103_v33  ;;  %v14110_v33 = vld [vmem:[%s22834_s4 + $0x970] ss:$20 sps:$4 sm:$0xff]  }
 0x706   : > { %12660 = vmatpush3.bf16.msra.mxu1 %v14104_v1  ;;  %12633 = vmatprep.subr.bf16.mxu0 %v14105_v2  ;;  %v22000_v1 = vpop.f32.mrf.mxu1  ;;  %v14112_v2 = vld [vmem:[%s22834_s4 + $0x830] ss:$20 sps:$4 sm:$0xff]  }
 0x707   : > { %9875 = vmatmul.mubr.bf16.gmra.mxu0 %v23758_v55  ;;  %12661 = vmatprep.subr.bf16.mxu1 %v14106_v49  ;;  %23771 = vst [vmem:[#allocation135_spill] sm:$0xff] %v22000_v1  ;;  %v14111_v55 = vld [vmem:[%s22834_s4 + $0x5b0] ss:$20 sps:$4 sm:$0xff]  }
 0x708   : > { %9924 = vmatmul.mubr.bf16.gmra.mxu1 %v23759_v39  ;;  %9964 = vmatprep.mubr.bf16.mxu0 %v23760_v25  ;;  %v14113_v39 = vld [vmem:[%s22834_s4 + $0x6c8] ss:$20 sps:$4 sm:$0xff]   ;;  %v22017_v49 = vpop.f32.mrf.mxu1 }
 0x709   : > { %12634 = vmatpush3.bf16.msra.mxu0 %v14107_v26  ;;  %10013 = vmatprep.mubr.bf16.mxu1 %v23761_v51  ;;  %v14114_v25 = vld [vmem:[%s22834_s4 + $0x948] ss:$20 sps:$4 sm:$0xff]   ;;  %v22015_v51 = vpop.f32.mrf.mxu0 }
 0x70a   : > { %12662 = vmatpush3.bf16.msra.mxu1 %v14108_v41  ;;  %12635 = vmatprep.subr.bf16.mxu0 %v14109_v44  ;;  %v14115_v26 = vld [vmem:[%s22834_s4 + $0x588] ss:$20 sps:$4 sm:$0xff]   ;;  %v14117_v44 = vld [vmem:[%s22834_s4 + $0x6a0] ss:$20 sps:$4 sm:$0xff]   ;;  %v22033_v1 = vpop.f32.mrf.mxu1 }
 0x70b   : > { %12663 = vmatprep.subr.bf16.mxu1 %v14110_v33  ;;  %v14116_v41 = vld [vmem:[%s22834_s4 + $0x808] ss:$20 sps:$4 sm:$0xff]   ;;  %v14118_v33 = vld [vmem:[%s22834_s4 + $0x920] ss:$20 sps:$4 sm:$0xff]   ;;  %23772 = vst [vmem:[#allocation136_spill] sm:$0xff] %v22033_v1 }
 0x70c   : > { %v22049_v1 = vpop.f32.mrf.mxu1 }
 0x70d   : > { %12636 = vmatpush3.bf16.msra.mxu0 %v14111_v55  ;;  %v22031_v55 = vpop.f32.mrf.mxu0 }
 0x70e   : > { %12664 = vmatpush3.bf16.msra.mxu1 %v14112_v2  ;;  %12637 = vmatprep.subr.bf16.mxu0 %v14113_v39  ;;  %v14119_v2 = vld [vmem:[%s22834_s4 + $0x560] ss:$20 sps:$4 sm:$0xff]   ;;  %v22065_v29 = vpop.f32.mrf.mxu1 }
 0x70f   : > { %12665 = vmatprep.subr.bf16.mxu1 %v14114_v25  ;;  %v14120_v39 = vld [vmem:[%s22834_s4 + $0x7e0] ss:$20 sps:$4 sm:$0xff]   ;;  %v14121_v25 = vld [vmem:[%s22834_s4 + $0x678] ss:$20 sps:$4 sm:$0xff]   ;;  %23774 = vst [vmem:[#allocation138_spill] sm:$0xff] %v22065_v29 }
 0x710   : > { %v14130_v29 = vld [vmem:[%s22834_s4 + $0xee8] ss:$20 sps:$4 sm:$0xff]  }
 0x711   : > { %12638 = vmatpush3.bf16.msra.mxu0 %v14115_v26  ;;  %v22047_v26 = vpop.f32.mrf.mxu0 }
 0x712   : > { %12666 = vmatpush3.bf16.msra.mxu1 %v14116_v41  ;;  %12639 = vmatprep.subr.bf16.mxu0 %v14117_v44  ;;  %v14123_v41 = vld [vmem:[%s22834_s4 + $0x538] ss:$20 sps:$4 sm:$0xff]  }
 0x713   : > { %12667 = vmatprep.subr.bf16.mxu1 %v14118_v33  ;;  %v14124_v44 = vld [vmem:[%s22834_s4 + $0x7b8] ss:$20 sps:$4 sm:$0xff]   ;;  %v14125_v33 = vld [vmem:[%s22834_s4 + $0x650] ss:$20 sps:$4 sm:$0xff]  }
 0x715   : > { %12640 = vmatpush3.bf16.msra.mxu0 %v14119_v2  ;;  %v22063_v2 = vpop.f32.mrf.mxu0 }
 0x716   : > { %12668 = vmatpush3.bf16.msra.mxu1 %v14120_v39  ;;  %12641 = vmatprep.subr.bf16.mxu0 %v14121_v25  ;;  %23773 = vst [vmem:[#allocation137_spill] sm:$0xff] %v22063_v2  ;;  %v14127_v39 = vld [vmem:[%s22834_s4 + $0x510] ss:$20 sps:$4 sm:$0xff]   ;;  %v22081_v2 = vpop.f32.mrf.mxu1 }
 0x717   : > { %12669 = vmatprep.subr.bf16.mxu1 %v14122_v3  ;;  %v14128_v25 = vld [vmem:[%s22834_s4 + $0x790] ss:$20 sps:$4 sm:$0xff]   ;;  %v14129_v3 = vld [vmem:[%s22834_s4 + $0xc68] ss:$20 sps:$4 sm:$0xff]   ;;  %23775 = vst [vmem:[#allocation141_spill] sm:$0xff] %v22081_v2 }
 0x719   : > { %12642 = vmatpush3.bf16.msra.mxu0 %v14123_v41  ;;  %v22079_v41 = vpop.f32.mrf.mxu0 }
 0x71a   : > { %12670 = vmatpush3.bf16.msra.mxu1 %v14124_v44  ;;  %12643 = vmatprep.subr.bf16.mxu0 %v14125_v33  ;;  %v14131_v44 = vld [vmem:[%s22834_s4 + $0xb28] ss:$20 sps:$4 sm:$0xff]   ;;  %v14133_v33 = vld [vmem:[%s22834_s4 + $0xc40] ss:$20 sps:$4 sm:$0xff]  }
 0x71b   : > { %12671 = vmatprep.subr.bf16.mxu1 %v14126_v50  ;;  %v14132_v50 = vld [vmem:[%s22834_s4 + $0xda8] ss:$20 sps:$4 sm:$0xff]   ;;  %v22092_v46 = vpop.f32.mrf.mxu0 }
 0x71c   : > { %23776 = vst [vmem:[#allocation142_spill] sm:$0xff] %v22092_v46  ;;  %v14156_v46 = vld [vmem:[%s22834_s4 + $0xcb8] ss:$20 sps:$4 sm:$0xff]  }
 0x71d   : > { %12644 = vmatpush3.bf16.msra.mxu0 %v14127_v39  ;;  %v14134_v39 = vld [vmem:[%s22834_s4 + $0xec0] ss:$20 sps:$4 sm:$0xff]  }
 0x71e   : > { %12672 = vmatpush3.bf16.msra.mxu1 %v14128_v25  ;;  %12685 = vmatprep.subr.bf16.mxu0 %v14129_v3  ;;  %v22098_v25 = vpop.f32.mrf.mxu1  ;;  %v14137_v3 = vld [vmem:[%s22834_s4 + $0xc18] ss:$20 sps:$4 sm:$0xff]  }
 0x71f   : > { %12713 = vmatprep.subr.bf16.mxu1 %v14130_v29  ;;  %23777 = vst [vmem:[#allocation143_spill] sm:$0xff] %v22098_v25  ;;  %v14135_v29 = vld [vmem:[%s22834_s4 + $0xb00] ss:$20 sps:$4 sm:$0xff]   ;;  %v14141_v25 = vld [vmem:[%s22834_s4 + $0xbf0] ss:$20 sps:$4 sm:$0xff]  }
 0x720   : > { %9965 = vmatmul.mubr.bf16.vlgmr.msra.gmra.mxu0 %v23733_v8  ;;  %v14136_v8 = vld [vmem:[%s22834_s4 + $0xd80] ss:$20 sps:$4 sm:$0xff]  }
 0x721   : > { %10014 = vmatmul.mubr.bf16.vlgmr.msra.gmra.mxu1 %v23736_v63  ;;  %9972 = vmatprep.mubr.bf16.mxu0 %v20446_v11  ;;  %v22112_v63 = vpop.f32.mrf.mxu0  ;;  %v14138_v11 = vld [vmem:[%s22834_s4 + $0xe98] ss:$20 sps:$4 sm:$0xff]  }
 0x722   : > { %10021 = vmatprep.mubr.bf16.mxu1 %v23762_v17  ;;  %12686 = vmatpush3.bf16.msra.mxu0 %v14131_v44  ;;  %v22117_v17 = vpop.f32.mrf.mxu1 }
 0x723   : > { %12714 = vmatpush3.bf16.msra.mxu1 %v14132_v50  ;;  %12687 = vmatprep.subr.bf16.mxu0 %v14133_v33  ;;  %v22119_v44 = vpop.f32.mrf.mxu0  ;;  %v14139_v50 = vld [vmem:[%s22834_s4 + $0xad8] ss:$20 sps:$4 sm:$0xff]  }
 0x724   : > { %12715 = vmatprep.subr.bf16.mxu1 %v14134_v39  ;;  %23778 = vst [vmem:[#allocation144_spill] sm:$0xff] %v22119_v44  ;;  %v22124_v33 = vpop.f32.mrf.mxu1  ;;  %v14140_v39 = vld [vmem:[%s22834_s4 + $0xd58] ss:$20 sps:$4 sm:$0xff]  }
 0x725   : > { %23779 = vst [vmem:[#allocation147_spill] sm:$0xff] %v22124_v33 }
 0x726   : > { %12688 = vmatpush3.bf16.msra.mxu0 %v14135_v29  ;;  %v14142_v29 = vld [vmem:[%s22834_s4 + $0xe70] ss:$20 sps:$4 sm:$0xff]   ;;  %v22144_v33 = vpop.f32.mrf.mxu1 }
 0x727   : > { %12716 = vmatpush3.bf16.msra.mxu1 %v14136_v8  ;;  %12689 = vmatprep.subr.bf16.mxu0 %v14137_v3  ;;  %v22138_v8 = vpop.f32.mrf.mxu0  ;;  %v14143_v3 = vld [vmem:[%s22834_s4 + $0xab0] ss:$20 sps:$4 sm:$0xff]  }
 0x728   : > { %9973 = vmatmul.mubr.bf16.gmra.mxu0 %v23763_v62  ;;  %12717 = vmatprep.subr.bf16.mxu1 %v14138_v11  ;;  %v14144_v62 = vld [vmem:[%s22834_s4 + $0xd30] ss:$20 sps:$4 sm:$0xff]   ;;  %v22160_v11 = vpop.f32.mrf.mxu1 }
 0x729   : > { %10022 = vmatmul.mubr.bf16.gmra.mxu1 %v23764_v43  ;;  %10062 = vmatprep.mubr.bf16.mxu0 %v23765_v45  ;;  %v14145_v43 = vld [vmem:[%s22834_s4 + $0xbc8] ss:$20 sps:$4 sm:$0xff]   ;;  %23780 = vst [vmem:[#allocation148_spill] sm:$0xff] %v22160_v11  ;;  %v14152_v11 = vld [vmem:[%s22834_s4 + $0xce0] ss:$20 sps:$4 sm:$0xff]  }
 0x72a   : > { %12690 = vmatpush3.bf16.msra.mxu0 %v14139_v50  ;;  %10111 = vmatprep.mubr.bf16.mxu1 %v23766_v59  ;;  %v14146_v45 = vld [vmem:[%s22834_s4 + $0xe48] ss:$20 sps:$4 sm:$0xff]   ;;  %v22155_v59 = vpop.f32.mrf.mxu0 }
 0x72b   : > { %12718 = vmatpush3.bf16.msra.mxu1 %v14140_v39  ;;  %12691 = vmatprep.subr.bf16.mxu0 %v14141_v25  ;;  %v14147_v25 = vld [vmem:[%s22834_s4 + $0xa88] ss:$20 sps:$4 sm:$0xff]   ;;  %v14149_v39 = vld [vmem:[%s22834_s4 + $0xba0] ss:$20 sps:$4 sm:$0xff]  }
 0x72c   : > { %12719 = vmatprep.subr.bf16.mxu1 %v14142_v29  ;;  %v14148_v50 = vld [vmem:[%s22834_s4 + $0xd08] ss:$20 sps:$4 sm:$0xff]   ;;  %v14150_v29 = vld [vmem:[%s22834_s4 + $0xe20] ss:$20 sps:$4 sm:$0xff]  }
 0x72e   : > { %12692 = vmatpush3.bf16.msra.mxu0 %v14143_v3  ;;  %v22171_v3 = vpop.f32.mrf.mxu0 }
 0x72f   : > { %12720 = vmatpush3.bf16.msra.mxu1 %v14144_v62  ;;  %12693 = vmatprep.subr.bf16.mxu0 %v14145_v43  ;;  %v14151_v62 = vld [vmem:[%s22834_s4 + $0xa60] ss:$20 sps:$4 sm:$0xff]   ;;  %v22176_v43 = vpop.f32.mrf.mxu1 }
 0x730   : > { %12721 = vmatprep.subr.bf16.mxu1 %v14146_v45  ;;  %v14153_v45 = vld [vmem:[%s22834_s4 + $0xb78] ss:$20 sps:$4 sm:$0xff]   ;;  %v22187_v44 = vpop.f32.mrf.mxu0 }
 0x731   : > { %23781 = vst [vmem:[#allocation149_spill] sm:$0xff] %v22187_v44 }
 0x732   : > { %12694 = vmatpush3.bf16.msra.mxu0 %v14147_v25  ;;  %v14154_v25 = vld [vmem:[%s22834_s4 + $0xdf8] ss:$20 sps:$4 sm:$0xff]   ;;  %v22203_v44 = vpop.f32.mrf.mxu0 }
 0x733   : > { %12722 = vmatpush3.bf16.msra.mxu1 %v14148_v50  ;;  %12695 = vmatprep.subr.bf16.mxu0 %v14149_v39  ;;  %v14155_v50 = vld [vmem:[%s22834_s4 + $0xa38] ss:$20 sps:$4 sm:$0xff]   ;;  %v22192_v39 = vpop.f32.mrf.mxu1  ;;  %23783 = vst [vmem:[#allocation153_spill] sm:$0xff] %v22203_v44 }
 0x734   : > { %12723 = vmatprep.subr.bf16.mxu1 %v14150_v29  ;;  %23782 = vst [vmem:[#allocation150_spill] sm:$0xff] %v22192_v39  ;;  %v14157_v29 = vld [vmem:[%s22834_s4 + $0xb50] ss:$20 sps:$4 sm:$0xff]   ;;  %v22219_v44 = vpop.f32.mrf.mxu0 }
 0x735   : > { %v14160_v39 = vld [vmem:[%s22834_s4 + $0xc90] ss:$20 sps:$4 sm:$0xff]  }
 0x736   : > { %12696 = vmatpush3.bf16.msra.mxu0 %v14151_v62  ;;  %v14158_v62 = vld [vmem:[%s22834_s4 + $0xdd0] ss:$20 sps:$4 sm:$0xff]  }
 0x737   : > { %12724 = vmatpush3.bf16.msra.mxu1 %v14152_v11  ;;  %12697 = vmatprep.subr.bf16.mxu0 %v14153_v45  ;;  %v14159_v11 = vld [vmem:[%s22834_s4 + $0xa10] ss:$20 sps:$4 sm:$0xff]   ;;  %v22208_v45 = vpop.f32.mrf.mxu1 }
 0x738   : > { %12725 = vmatprep.subr.bf16.mxu1 %v14154_v25  ;;  %v14161_v25 = vld [vmem:[%s22834_s4 + $0x1168] ss:$20 sps:$4 sm:$0xff]  }
 0x739   : > { %v22221_v2 = vpop.f32.mrf.mxu1 }
 0x73a   : > { %12698 = vmatpush3.bf16.msra.mxu0 %v14155_v50  ;;  %v14162_v50 = vld [vmem:[%s22834_s4 + $0x13e8] ss:$20 sps:$4 sm:$0xff]   ;;  %23784 = vst [vmem:[#allocation154_spill] sm:$0xff] %v22221_v2  ;;  %v14168_v2 = vld [vmem:[%s22834_s4 + $0x1280] ss:$20 sps:$4 sm:$0xff]  }
 0x73b   : > { %12726 = vmatpush3.bf16.msra.mxu1 %v14156_v46  ;;  %12699 = vmatprep.subr.bf16.mxu0 %v14157_v29  ;;  %v14163_v46 = vld [vmem:[%s22834_s4 + $0x1028] ss:$20 sps:$4 sm:$0xff]  }
 0x73c   : > { %12727 = vmatprep.subr.bf16.mxu1 %v14158_v62  ;;  %v14164_v29 = vld [vmem:[%s22834_s4 + $0x12a8] ss:$20 sps:$4 sm:$0xff]   ;;  %v14165_v62 = vld [vmem:[%s22834_s4 + $0x1140] ss:$20 sps:$4 sm:$0xff]  }
 0x73e   : > { %12700 = vmatpush3.bf16.msra.mxu0 %v14159_v11  ;;  %v22236_v11 = vpop.f32.mrf.mxu0 }
 0x73f   : > { %12728 = vmatpush3.bf16.msra.mxu1 %v14160_v39  ;;  %12741 = vmatprep.subr.bf16.mxu0 %v14161_v25  ;;  %v14166_v39 = vld [vmem:[%s22834_s4 + $0x13c0] ss:$20 sps:$4 sm:$0xff]   ;;  %v22240_v25 = vpop.f32.mrf.mxu1 }
 0x740   : > { %12769 = vmatprep.subr.bf16.mxu1 %v14162_v50  ;;  %v14167_v50 = vld [vmem:[%s22834_s4 + $0x1000] ss:$20 sps:$4 sm:$0xff]  }
 0x741   : > { %10063 = vmatmul.mubr.bf16.vlgmr.msra.gmra.mxu0 %v23752_v21  ;;  %v22246_v21 = vpop.f32.mrf.mxu0 }
 0x742   : > { %10112 = vmatmul.mubr.bf16.vlgmr.msra.gmra.mxu1 %v19676_v36  ;;  %10070 = vmatprep.mubr.bf16.mxu0 %v20737_v48  ;;  %23785 = vst [vmem:[#allocation155_spill] sm:$0xff] %v22246_v21  ;;  %v14169_v36 = vld [vmem:[%s22834_s4 + $0x1118] ss:$20 sps:$4 sm:$0xff]   ;;  %v22254_v48 = vpop.f32.mrf.mxu1 }
 0x743   : > { %10119 = vmatprep.mubr.bf16.mxu1 %v20744_v22  ;;  %12742 = vmatpush3.bf16.msra.mxu0 %v14163_v46  ;;  %23786 = vst [vmem:[#allocation156_spill] sm:$0xff] %v22254_v48  ;;  %v14170_v22 = vld [vmem:[%s22834_s4 + $0x1398] ss:$20 sps:$4 sm:$0xff]  }
 0x744   : > { %12770 = vmatpush3.bf16.msra.mxu1 %v14164_v29  ;;  %12743 = vmatprep.subr.bf16.mxu0 %v14165_v62  ;;  %v14171_v46 = vld [vmem:[%s22834_s4 + $0xfd8] ss:$20 sps:$4 sm:$0xff]   ;;  %v22262_v29 = vpop.f32.mrf.mxu0 }
 0x745   : > { %12771 = vmatprep.subr.bf16.mxu1 %v14166_v39  ;;  %23787 = vst [vmem:[#allocation157_spill] sm:$0xff] %v22262_v29  ;;  %v14172_v62 = vld [vmem:[%s22834_s4 + $0x1258] ss:$20 sps:$4 sm:$0xff]   ;;  %v14173_v39 = vld [vmem:[%s22834_s4 + $0x10f0] ss:$20 sps:$4 sm:$0xff]   ;;  %v22279_v29 = vpop.f32.mrf.mxu1 }
 0x746   : > { %v23788_v48 = vld [vmem:[#allocation114_spill] sm:$0xff] }
 0x747   : > { %12744 = vmatpush3.bf16.msra.mxu0 %v14167_v50  ;;  %v22273_v50 = vld [vmem:[%s22835_s5] sm:$0x1f] }
 0x748   : > { %12772 = vmatpush3.bf16.msra.mxu1 %v14168_v2  ;;  %12745 = vmatprep.subr.bf16.mxu0 %v14169_v36  ;;  %v22277_v21 = vrot.slane %v22273_v50, %v23788_v48  ;;  %v14174_v2 = vld [vmem:[%s22834_s4 + $0x1370] ss:$20 sps:$4 sm:$0xff]  }
 0x749   : > { %10071 = vmatmul.mubr.bf16.gmra.mxu0 %v23753_v23  ;;  %12773 = vmatprep.subr.bf16.mxu1 %v14170_v22  ;;  %v14175_v48 = vld [vmem:[%s22834_s4 + $0xfb0] ss:$20 sps:$4 sm:$0xff]   ;;  %v22293_v23 = vpop.f32.mrf.mxu0  ;;  %v14178_v22 = vld [vmem:[%s22834_s4 + $0x1348] ss:$20 sps:$4 sm:$0xff]  }
 0x74a   : > { %10120 = vmatmul.mubr.bf16.gmra.mxu1 %v19711_v47  ;;  %10160 = vmatprep.mubr.bf16.mxu0 %v20772_v52  ;;  %v9027_v36 = vadd.f32 %v21022_v53, %v22277_v21  ;;  %v14176_v47 = vld [vmem:[%s22834_s4 + $0x1230] ss:$20 sps:$4 sm:$0xff]   ;;  %v14177_v52 = vld [vmem:[%s22834_s4 + $0x10c8] ss:$20 sps:$4 sm:$0xff]   ;;  %v9023_v53 = vadd.f32 %v20994_v58, %v22277_v21 }
 0x74b   : > { %12746 = vmatpush3.bf16.msra.mxu0 %v14171_v46  ;;  %10209 = vmatprep.mubr.bf16.mxu1 %v20809_v40  ;;  %v22303_v40 = vpop.f32.mrf.mxu1  ;;  %v14180_v58 = vld [vmem:[%s22834_s4 + $0x1208] ss:$20 sps:$4 sm:$0xff]  }
 0x74c   : > { %12774 = vmatpush3.bf16.msra.mxu1 %v14172_v62  ;;  %12747 = vmatprep.subr.bf16.mxu0 %v14173_v39  ;;  %23789 = vst [vmem:[#allocation158_spill] sm:$0xff] %v22303_v40  ;;  %v9080_v46 = vadd.f32 %v21027_v5, %v9027_v36  ;;  %v14179_v62 = vld [vmem:[%s22834_s4 + $0xf88] ss:$20 sps:$4 sm:$0xff]   ;;  %v22312_v39 = vpop.f32.mrf.mxu0  ;;  %v9076_v40 = vadd.f32 %v21004_v14, %v9023_v53  ;;  %v14182_v36 = vld [vmem:[%s22834_s4 + $0x1320] ss:$20 sps:$4 sm:$0xff]  }
 0x74d   : > { %12775 = vmatprep.subr.bf16.mxu1 %v14174_v2  ;;  %23790 = vst [vmem:[#allocation168_spill] sm:$0xff] %v22312_v39  ;;  %v14181_v2 = vld [vmem:[%s22834_s4 + $0x10a0] ss:$20 sps:$4 sm:$0xff]  }
 0x74e   : > { %v9133_v5 = vadd.f32 %v21920_v37, %v9080_v46  ;;  %v22331_v39 = vpop.f32.mrf.mxu0  ;;  %v14184_v14 = vld [vmem:[%s22834_s4 + $0x11e0] ss:$20 sps:$4 sm:$0xff]   ;;  %v14185_v37 = vld [vmem:[%s22834_s4 + $0x1078] ss:$20 sps:$4 sm:$0xff]  }
 0x74f   : > { %12748 = vmatpush3.bf16.msra.mxu0 %v14175_v48  ;;  %v22322_v48 = vpop.f32.mrf.mxu1 }
 0x750   : > { %12776 = vmatpush3.bf16.msra.mxu1 %v14176_v47  ;;  %12749 = vmatprep.subr.bf16.mxu0 %v14177_v52  ;;  %v9129_v47 = vadd.f32 %v21888_v15, %v9076_v40  ;;  %v14183_v52 = vld [vmem:[%s22834_s4 + $0xf60] ss:$20 sps:$4 sm:$0xff]   ;;  %v9186_v53 = vadd.f32 %v21925_v24, %v9133_v5  ;;  %v14186_v40 = vld [vmem:[%s22834_s4 + $0x12f8] ss:$20 sps:$4 sm:$0xff]   ;;  %v14190_v5 = vld [vmem:[%s22834_s4 + $0x12d0] ss:$20 sps:$4 sm:$0xff]  }
 0x751   : > { %12777 = vmatprep.subr.bf16.mxu1 %v14178_v22  ;;  %v22340_v15 = vpop.f32.mrf.mxu1  ;;  %v14188_v24 = vld [vmem:[%s22834_s4 + $0x11b8] ss:$20 sps:$4 sm:$0xff]  }
 0x752   : > { %v9182_v22 = vadd.f32 %v21893_v10, %v9129_v47  ;;  %v9239_v46 = vadd.f32 %v22047_v26, %v9186_v53  ;;  %v14191_v47 = vld [vmem:[%s22834_s4 + $0xf10] ss:$20 sps:$4 sm:$0xff]  }
 0x753   : > { %12750 = vmatpush3.bf16.msra.mxu0 %v14179_v62  ;;  %v14187_v62 = vld [vmem:[%s22834_s4 + $0xf38] ss:$20 sps:$4 sm:$0xff]   ;;  %v22359_v26 = vpop.f32.mrf.mxu1 }
 0x754   : > { %12778 = vmatpush3.bf16.msra.mxu1 %v14180_v58  ;;  %12751 = vmatprep.subr.bf16.mxu0 %v14181_v2  ;;  %v22350_v58 = vpop.f32.mrf.mxu0  ;;  %v14189_v2 = vld [vmem:[%s22834_s4 + $0x1050] ss:$20 sps:$4 sm:$0xff]   ;;  %v9235_v10 = vadd.f32 %v22015_v51, %v9182_v22 }
 0x755   : > { %12779 = vmatprep.subr.bf16.mxu1 %v14182_v36  ;;  %v9292_v36 = vadd.f32 %v22049_v1, %v9239_v46  ;;  %v14192_v51 = vld [vmem:[%s22834_s4 + $0x1190] ss:$20 sps:$4 sm:$0xff]   ;;  %v22378_v53 = vpop.f32.mrf.mxu1 }
 0x757   : > { %12752 = vmatpush3.bf16.msra.mxu0 %v14183_v52  ;;  %v22368_v52 = vpop.f32.mrf.mxu0  ;;  %v9345_v1 = vadd.f32 %v22171_v3, %v9292_v36 }
 0x758   : > { %12780 = vmatpush3.bf16.msra.mxu1 %v14184_v14  ;;  %12753 = vmatprep.subr.bf16.mxu0 %v14185_v37  ;;  %v14193_v14 = vld [vmem:[%s22836_s6 + $0x78] sm:$0xff]   ;;  %v9288_v37 = vadd.f32 %v22017_v49, %v9235_v10  ;;  %v14211_v10 = vld [vmem:[%s22836_s6 + $0xf0] sm:$0xff]  }
 0x759   : > { %12781 = vmatprep.subr.bf16.mxu1 %v14186_v40  ;;  %v14209_v40 = vld [vmem:[%s22836_s6 + $0xf8] sm:$0xff]   ;;  %v22384_v46 = vpop.f32.mrf.mxu0  ;;  %v9398_v3 = vadd.f32 %v22176_v43, %v9345_v1  ;;  %v9025_v43 = vadd.f32 %v21011_v6, %v20977_v0  ;;  %v14197_v6 = vld [vmem:[%s22836_s6 + $0x68] sm:$0xff]  }
 0x75a   : > { %v9341_v22 = vadd.f32 %v22138_v8, %v9288_v37  ;;  %v14194_v49 = vld [vmem:[%s22836_s6 + $0x38] sm:$0xff]  }
 0x75b   : > { %12754 = vmatpush3.bf16.msra.mxu0 %v14187_v62  ;;  %v22390_v62 = vpop.f32.mrf.mxu1  ;;  %v14210_v8 = vld [vmem:[%s22836_s6 + $0xb8] sm:$0xff]  }
 0x75c   : > { %12782 = vmatpush3.bf16.msra.mxu1 %v14188_v24  ;;  %12755 = vmatprep.subr.bf16.mxu0 %v14189_v2  ;;  %v14195_v24 = vld [vmem:[%s22836_s6 + $0x70] sm:$0xff]   ;;  %v22398_v2 = vpop.f32.mrf.mxu0 }
 0x75d   : > { %12783 = vmatprep.subr.bf16.mxu1 %v14190_v5  ;;  %v9394_v5 = vadd.f32 %v22144_v33, %v9341_v22  ;;  %v22407_v36 = vpop.f32.mrf.mxu1  ;;  %v9078_v33 = vadd.f32 %v21014_v20, %v9025_v43  ;;  %v14199_v22 = vld [vmem:[%s22836_s6 + $0x60] sm:$0xff]   ;;  %v14214_v20 = vld [vmem:[%s22836_s6 + $0xa8] sm:$0xff]  }
 0x75f   : > { %12756 = vmatpush3.bf16.msra.mxu0 %v14191_v47  ;;  %v9037_v47 = vadd.f32 %v21858_v7, %v22277_v21  ;;  %v14213_v7 = vld [vmem:[%s22836_s6 + $0xe8] sm:$0xff]   ;;  %v22431_v37 = vpop.f32.mrf.mxu1 }
 0x760   : > { %12784 = vmatpush3.bf16.msra.mxu1 %v14192_v51  ;;  %12797 = vmatprep.subr.bf16.mxu0 %v14193_v14  ;;  %v10232_v51 = vmax.f32 %v9398_v3, 0.0  ;;  %v10227_v14 = vmax.f32 %v9394_v5, 0.0 }
 0x761   : > { %12825 = vmatprep.subr.bf16.mxu1 %v14209_v40  ;;  %v9090_v1 = vadd.f32 %v21864_v61, %v9037_v47  ;;  %v14198_v40 = vld [vmem:[%s22836_s6 + $0x28] sm:$0xff]  }
 0x762   : > { %10161 = vmatmul.mubr.bf16.vlgmr.msra.gmra.mxu0 %v20156_v32  ;;  %v14196_v32 = vld [vmem:[%s22836_s6 + $0x30] sm:$0xff]  }
 0x763   : > { %10210 = vmatmul.mubr.bf16.vlgmr.msra.gmra.mxu1 %v20796_v34  ;;  %10168 = vmatprep.mubr.bf16.mxu0 %v20992_v30  ;;  %v14212_v34 = vld [vmem:[%s22836_s6 + $0xb0] sm:$0xff]   ;;  %v9033_v30 = vadd.f32 %v21822_v35, %v22277_v21  ;;  %v9131_v35 = vadd.f32 %v21904_v31, %v9078_v33  ;;  %v10247_v21 = vpack.c.bf16 %v10232_v51, %v10227_v14  ;;  %v14215_v31 = vld [vmem:[%s22836_s6 + $0xe0] sm:$0xff]   ;;  %v23794_v33 = vld [vmem:[#allocation136_spill] sm:$0xff] }
 0x764   : > { %10217 = vmatprep.mubr.bf16.mxu1 %v21002_v18  ;;  %12798 = vmatpush3.bf16.msra.mxu0 %v14194_v49  ;;  %v22425_v18 = vpop.f32.mrf.mxu0  ;;  %v9143_v49 = vadd.f32 %v21982_v4, %v9090_v1 }
 0x765   : > { %12799 = vmatprep.subr.bf16.mxu0 %v14195_v24  ;;  %12826 = vmatpush3.bf16.msra.mxu1 %v14210_v8  ;;  %v9086_v61 = vadd.f32 %v21828_v56, %v9033_v30  ;;  %v9035_v24 = vadd.f32 %v21839_v19, %v20977_v0  ;;  %v9127_v8 = vadd.f32 %v21872_v12, %v20999_v9  ;;  %v14201_v0 = vld [vmem:[%s22836_s6 + $0x58] sm:$0xff]   ;;  %v23793_v30 = vld [vmem:[#allocation131_spill] sm:$0xff] }
 0x766   : > { %12827 = vmatprep.subr.bf16.mxu1 %v14211_v10  ;;  %v22446_v3 = vpop.f32.mrf.mxu0  ;;  %v22456_v10 = vpop.f32.mrf.mxu1  ;;  %v9184_v4 = vadd.f32 %v21909_v54, %v9131_v35  ;;  %v9196_v9 = vadd.f32 %v21990_v28, %v9143_v49  ;;  %v14217_v12 = vld [vmem:[%s22836_s6 + $0xd8] sm:$0xff]   ;;  %v23795_v35 = vld [vmem:[#allocation133_spill] sm:$0xff]  ;;  %v14205_v49 = vld [vmem:[%s22836_s6 + $0x48] sm:$0xff]  }
 0x767   : > { %v9139_v56 = vadd.f32 %v21946_v38, %v9086_v61  ;;  %v9088_v54 = vadd.f32 %v21844_v27, %v9035_v24  ;;  %v9180_v38 = vadd.f32 %v21877_v57, %v9127_v8  ;;  %v14202_v28 = vld [vmem:[%s22836_s6 + $0x18] sm:$0xff]   ;;  %v14203_v27 = vld [vmem:[%s22836_s6 + $0x50] sm:$0xff]  }
 0x768   : > { %12800 = vmatpush3.bf16.msra.mxu0 %v14196_v32  ;;  %v22471_v19 = vpop.f32.mrf.mxu0  ;;  %v9237_v43 = vadd.f32 %v22031_v55, %v9184_v4  ;;  %v22479_v5 = vpop.f32.mrf.mxu1  ;;  %v9249_v32 = vadd.f32 %v22112_v63, %v9196_v9  ;;  %v23792_v63 = vld [vmem:[#allocation120_spill] sm:$0xff] }
 0x769   : > { %12801 = vmatprep.subr.bf16.mxu0 %v14197_v6  ;;  %12828 = vmatpush3.bf16.msra.mxu1 %v14212_v34  ;;  %v9192_v47 = vadd.f32 %v21954_v13, %v9139_v56  ;;  %v9141_v51 = vadd.f32 %v21966_v42, %v9088_v54  ;;  %v23791_v6 = vld [vmem:[#allocation134_spill] sm:$0xff]  ;;  %v14219_v42 = vld [vmem:[%s22836_s6 + $0xd0] sm:$0xff]   ;;  %v23800_v9 = vld [vmem:[#allocation144_spill] sm:$0xff] }
 0x76a   : > { %10169 = vmatmul.mubr.bf16.gmra.mxu0 %v20201_v16  ;;  %12829 = vmatprep.subr.bf16.mxu1 %v14213_v7  ;;  %v14200_v16 = vld [vmem:[%s22836_s6 + $0x20] sm:$0xff]   ;;  %v9233_v34 = vadd.f32 %v23791_v6, %v9180_v38  ;;  %v14218_v13 = vld [vmem:[%s22836_s6 + $0x98] sm:$0xff]   ;;  %v22495_v55 = vpop.f32.mrf.mxu0  ;;  %v9137_v7 = vadd.f32 %v23793_v30, %v23792_v63  ;;  %v9290_v14 = vadd.f32 %v23794_v33, %v9237_v43  ;;  %v22503_v1 = vpop.f32.mrf.mxu1  ;;  %v23801_v38 = vld [vmem:[#allocation153_spill] sm:$0xff] }
 0x76b   : > { %10218 = vmatmul.mubr.bf16.gmra.mxu1 %v20828_v60  ;;  %10589 = vmatprep.mubr.bf16.mxu0 %v10247_v21  ;;  %v14216_v60 = vld [vmem:[%s22836_s6 + $0xa0] sm:$0xff]   ;;  %v9245_v57 = vadd.f32 %v22079_v41, %v9192_v47  ;;  %v14204_v41 = vld [vmem:[%s22836_s6 + $0x10] sm:$0xff]   ;;  %v9194_v21 = vadd.f32 %v23795_v35, %v9141_v51 }
 0x76c   : > { %12802 = vmatpush3.bf16.msra.mxu0 %v14198_v40  ;;  %v9302_v40 = vadd.f32 %v22117_v17, %v9249_v32  ;;  %v9343_v61 = vadd.f32 %v22155_v59, %v9290_v14  ;;  %v14220_v17 = vld [vmem:[%s22836_s6 + $0x90] sm:$0xff]   ;;  %v22520_v56 = vpop.f32.mrf.mxu0  ;;  %v14221_v59 = vld [vmem:[%s22836_s6 + $0xc8] sm:$0xff]   ;;  %v22528_v54 = vpop.f32.mrf.mxu1  ;;  %v14207_v6 = vld [vmem:[%s22836_s6 + $0x40] sm:$0xff]  }
 0x76d   : > { %12803 = vmatprep.subr.bf16.mxu0 %v14199_v22  ;;  %12830 = vmatpush3.bf16.msra.mxu1 %v14214_v20  ;;  %v23796_v22 = vld [vmem:[#allocation135_spill] sm:$0xff]  ;;  %v23802_v47 = vld [vmem:[#allocation137_spill] sm:$0xff] }
 0x76e   : > { %12831 = vmatprep.subr.bf16.mxu1 %v14215_v31  ;;  %v9286_v20 = vadd.f32 %v23796_v22, %v9233_v34  ;;  %v23797_v31 = vld [vmem:[#allocation141_spill] sm:$0xff]  ;;  %v9355_v8 = vadd.f32 %v22236_v11, %v9302_v40  ;;  %v14206_v11 = vld [vmem:[%s22836_s6 + $0x8] sm:$0xff]   ;;  %v23805_v30 = vld [vmem:[#allocation147_spill] sm:$0xff]  ;;  %v22550_v33 = vpop.f32.mrf.mxu1 }
 0x76f   : > { %v9298_v24 = vadd.f32 %v23797_v31, %v9245_v57  ;;  %v14222_v34 = vld [vmem:[%s22836_s6 + $0x88] sm:$0xff]   ;;  %v14223_v57 = vld [vmem:[%s22836_s6 + $0xc0] sm:$0xff]   ;;  %v23806_v40 = vld [vmem:[#allocation138_spill] sm:$0xff] }
 0x770   : > { %12804 = vmatpush3.bf16.msra.mxu0 %v14200_v16  ;;  %v23798_v16 = vld [vmem:[#allocation132_spill] sm:$0xff]  ;;  %v14224_v22 = vld [vmem:[%s22836_s6 + $0x80] sm:$0xff]   ;;  %v22564_v31 = vpop.f32.mrf.mxu1 }
 0x771   : > { %12805 = vmatprep.subr.bf16.mxu0 %v14201_v0  ;;  %12832 = vmatpush3.bf16.msra.mxu1 %v14216_v60  ;;  %v9190_v4 = vadd.f32 %v23798_v16, %v9137_v7  ;;  %v23799_v0 = vld [vmem:[#allocation142_spill] sm:$0xff]  ;;  %v9351_v43 = vadd.f32 %v23801_v38, %v9298_v24 }
 0x772   : > { %12833 = vmatprep.subr.bf16.mxu1 %v14217_v12  ;;  %v9247_v60 = vadd.f32 %v23799_v0, %v9194_v21  ;;  %v9339_v12 = vadd.f32 %v23800_v9, %v9286_v20 }
 0x773   : > { %v9243_v32 = vadd.f32 %v23802_v47, %v9190_v4  ;;  %v9404_v14 = vadd.f32 %v22208_v45, %v9351_v43  ;;  %v22567_v4 = vpop.f32.mrf.mxu1  ;;  %v23810_v47 = vld [vmem:[#allocation7_spill] sm:$0xff] }
 0x774   : > { %12806 = vmatpush3.bf16.msra.mxu0 %v14202_v28  ;;  %v23803_v28 = vld [vmem:[#allocation148_spill] sm:$0xff]  ;;  %v9392_v7 = vadd.f32 %v23805_v30, %v9339_v12  ;;  %v23811_v30 = vld [vmem:[#allocation157_spill] sm:$0xff] }
 0x775   : > { %12807 = vmatprep.subr.bf16.mxu0 %v14203_v27  ;;  %12834 = vmatpush3.bf16.msra.mxu1 %v14218_v13  ;;  %v9396_v51 = vadd.f32 %v23803_v28, %v9343_v61  ;;  %v9408_v27 = vadd.f32 %v22240_v25, %v9355_v8  ;;  %v22543_v13 = vpop.f32.mrf.mxu0  ;;  %v14208_v25 = vld [vmem:[%s22836_s6] sm:$0xff]   ;;  %v10237_v24 = vmax.f32 %v9404_v14, 0.0  ;;  %v9711_v43 = vpop.f32.mrf.mxu1  ;;  %v23099_v28 = vsub.s32 2, %v23810_v47 }
 0x776   : > { %12835 = vmatprep.subr.bf16.mxu1 %v14219_v42  ;;  %v23804_v42 = vld [vmem:[#allocation143_spill] sm:$0xff]  ;;  %v10226_v45 = vmax.f32 %v9392_v7, 0.0 }
 0x777   : > { %v9300_v63 = vadd.f32 %v23804_v42, %v9247_v60  ;;  %v10231_v35 = vmax.f32 %v9396_v51, 0.0  ;;  %v10242_v20 = vmax.f32 %v9408_v27, 0.0  ;;  %v22561_v61 = vpop.f32.mrf.mxu0  ;;  %v23809_v60 = vld [vmem:[#allocation150_spill] sm:$0xff]  ;;  %v23812_v14 = vld [vmem:[#allocation155_spill] sm:$0xff] }
 0x778   : > { %12808 = vmatpush3.bf16.msra.mxu0 %v14204_v41  ;;  %v9296_v41 = vadd.f32 %v23806_v40, %v9243_v32  ;;  %v5647_v32 = vsub.s32 3, %v23810_v47 }
 0x779   : > { %12809 = vmatprep.subr.bf16.mxu0 %v14205_v49  ;;  %12836 = vmatpush3.bf16.msra.mxu1 %v14220_v17  ;;  %v9353_v21 = vadd.f32 %v22219_v44, %v9300_v63  ;;  %v23807_v49 = vld [vmem:[#allocation149_spill] sm:$0xff]  ;;  %v9656_v8 = vpop.f32.mrf.mxu0  ;;  %v23808_v44 = vld [vmem:[#allocation154_spill] sm:$0xff]  ;;  %v10252_v0 = vpack.c.bf16 %v10242_v20, %v10237_v24 }
 0x77a   : > { %12837 = vmatprep.subr.bf16.mxu1 %v14221_v59  ;;  %v9349_v17 = vadd.f32 %v23807_v49, %v9296_v41  ;;  %v10246_v59 = vpack.c.bf16 %v10231_v35, %v10226_v45  ;;  %v5648_v27 = vrot.slane %v22273_v50, %v5647_v32  ;;  %v23814_v45 = vld [vmem:[#allocation156_spill] sm:$0xff]  ;;  %v23815_v24 = vld [vmem:[#allocation158_spill] sm:$0xff] }
 0x77b   : > { %v9406_v16 = vadd.f32 %v23808_v44, %v9353_v21  ;;  %v9658_v12 = vpop.f32.mrf.mxu0 }
 0x77c   : > { %12810 = vmatpush3.bf16.msra.mxu0 %v14206_v11  ;;  %v9402_v9 = vadd.f32 %v23809_v60, %v9349_v17  ;;  %v9447_v7 = vadd.f32 %v23811_v30, %v5648_v27 }
 0x77d   : > { %12811 = vmatprep.subr.bf16.mxu0 %v14207_v6  ;;  %12838 = vmatpush3.bf16.msra.mxu1 %v14222_v34  ;;  %v10241_v38 = vmax.f32 %v9406_v16, 0.0  ;;  %v9660_v51 = vpop.f32.mrf.mxu0  ;;  %v9713_v34 = vpop.f32.mrf.mxu1 }
 0x77e   : > { %12839 = vmatprep.subr.bf16.mxu1 %v14223_v57  ;;  %v10236_v11 = vmax.f32 %v9402_v9, 0.0  ;;  %v5644_v57 = vrot.slane %v22273_v50, %v23099_v28  ;;  %v9500_v21 = vadd.f32 %v22279_v29, %v9447_v7 }
 0x77f   : > { %v9662_v42 = vpop.f32.mrf.mxu0  ;;  %v9715_v63 = vpop.f32.mrf.mxu1 }
 0x780   : > { %12812 = vmatpush3.bf16.msra.mxu0 %v14208_v25  ;;  %v10251_v6 = vpack.c.bf16 %v10241_v38, %v10236_v11  ;;  %v9445_v25 = vadd.f32 %v23812_v14, %v5644_v57  ;;  %v9449_v41 = vadd.f32 %v22293_v23, %v5644_v57  ;;  %v9553_v44 = vadd.f32 %v22425_v18, %v9500_v21 }
 0x781   : > { %12840 = vmatpush3.bf16.msra.mxu1 %v14224_v22  ;;  %v9666_v40 = vpop.f32.mrf.mxu0  ;;  %v22581_v35 = vpop.f32.mrf.mxu1  ;;  %v23813_v22 = vld [vmem:[#allocation168_spill] sm:$0xff]  ;;  %v9457_v23 = vadd.f32 %v22350_v58, %v5648_v27  ;;  %v9455_v29 = vadd.f32 %v22331_v39, %v5644_v57  ;;  %v9459_v11 = vadd.f32 %v22368_v52, %v5644_v57  ;;  %v9461_v18 = vadd.f32 %v22384_v46, %v5648_v27 }
 0x782   : > { %v9451_v20 = vadd.f32 %v23813_v22, %v5648_v27  ;;  %v9498_v49 = vadd.f32 %v23814_v45, %v9445_v25 }
 0x783   : > { %10590 = vmatmul.mubr.bf16.vlgmr.msra.gmra.mxu0 %v10246_v59  ;;  %v9668_v17 = vpop.f32.mrf.mxu0  ;;  %v9502_v59 = vadd.f32 %v23815_v24, %v9449_v41  ;;  %v9721_v16 = vpop.f32.mrf.mxu1  ;;  %v9512_v52 = vadd.f32 %v22378_v53, %v9459_v11  ;;  %v9514_v46 = vadd.f32 %v22390_v62, %v9461_v18 }
 0x784   : > { %10597 = vmatprep.mubr.bf16.mxu0 %v10252_v0  ;;  %v9551_v0 = vadd.f32 %v22398_v2, %v9498_v49  ;;  %v9504_v60 = vadd.f32 %v22322_v48, %v9451_v20  ;;  %v9510_v48 = vadd.f32 %v22359_v26, %v9457_v23 }
 0x785   : > { %v9555_v9 = vadd.f32 %v22446_v3, %v9502_v59  ;;  %v9670_v38 = vpop.f32.mrf.mxu0  ;;  %v9723_v7 = vpop.f32.mrf.mxu1  ;;  %v9508_v3 = vadd.f32 %v22340_v15, %v9455_v29 }
 0x786   : > { %v9557_v30 = vadd.f32 %v22471_v19, %v9504_v60  ;;  %v9604_v2 = vadd.f32 %v22407_v36, %v9551_v0  ;;  %v9563_v19 = vadd.f32 %v22520_v56, %v9510_v48 }
 0x787   : > { %v9608_v58 = vadd.f32 %v22456_v10, %v9555_v9  ;;  %v9672_v25 = vpop.f32.mrf.mxu0  ;;  %v9725_v41 = vpop.f32.mrf.mxu1  ;;  %v9561_v36 = vadd.f32 %v22495_v55, %v9508_v3  ;;  %v9565_v10 = vadd.f32 %v22543_v13, %v9512_v52 }
 0x788   : > { %v9657_v39 = vadd.f32 %v9656_v8, %v9604_v2  ;;  %v9567_v8 = vadd.f32 %v22561_v61, %v9514_v46  ;;  %v14226_v46 = vld [vmem:[%s22836_s6 + $0x110] sm:$0xff]  }
 0x789   : > { %v9661_v57 = vadd.f32 %v9660_v51, %v9608_v58  ;;  %v9614_v62 = vadd.f32 %v22503_v1, %v9561_v36  ;;  %v9618_v45 = vadd.f32 %v22550_v33, %v9565_v10  ;;  %v14225_v58 = vld [vmem:[%s22836_s6 + $0x118] sm:$0xff]  }
 0x78a   : > { %v9710_v53 = vadd.f32 %v22567_v4, %v9657_v39  ;;  %v9620_v61 = vadd.f32 %v22564_v31, %v9567_v8  ;;  %12915 = vmatprep.subr.bf16.mxu0 %v14225_v58 }
 0x78b   : > { %10598 = vmatmul.mubr.bf16.gmra.mxu0 %v10251_v6  ;;  %v9606_v6 = vadd.f32 %v22431_v37, %v9553_v44  ;;  %v9610_v37 = vadd.f32 %v22479_v5, %v9557_v30  ;;  %v9616_v5 = vadd.f32 %v22528_v54, %v9563_v19  ;;  %v9714_v56 = vadd.f32 %v9713_v34, %v9661_v57 }
 0x78c   : > { %v9667_v24 = vadd.f32 %v9666_v40, %v9614_v62  ;;  %v9671_v59 = vadd.f32 %v9670_v38, %v9618_v45  ;;  %v9673_v9 = vadd.f32 %v9672_v25, %v9620_v61  ;;  %12916 = vmatpush3.bf16.msra.mxu0 %v14225_v58 }
 0x78d   : > { %v9659_v14 = vadd.f32 %v9658_v12, %v9606_v6  ;;  %v9663_v27 = vadd.f32 %v9662_v42, %v9610_v37  ;;  %12917 = vmatprep.subr.bf16.mxu0 %v14226_v46 }
 0x78e   : > { %v9720_v33 = vadd.f32 %v22581_v35, %v9667_v24  ;;  %v9724_v6 = vadd.f32 %v9723_v7, %v9671_v59 }
 0x78f   : > { %v9712_v12 = vadd.f32 %v9711_v43, %v9659_v14  ;;  %v9716_v13 = vadd.f32 %v9715_v63, %v9663_v27  ;;  %v9669_v43 = vadd.f32 %v9668_v17, %v9616_v5  ;;  %v14227_v27 = vld [vmem:[%s22836_s6 + $0x108] sm:$0xff]  }
 0x790   : > { %12918 = vmatpush3.bf16.msra.mxu0 %v14226_v46 }
 0x791   : > { %v9722_v1 = vadd.f32 %v9721_v16, %v9669_v43  ;;  %v9726_v16 = vadd.f32 %v9725_v41, %v9673_v9  ;;  %12919 = vmatprep.subr.bf16.mxu0 %v14227_v27 }
 0x794   : > { %12920 = vmatpush3.bf16.msra.mxu0 %v14227_v27 }
 0x79e   : > { %v9762_v26 = vpop.f32.mrf.mxu0 }
 0x79f   : > { %v9815_v15 = vpop.f32.mrf.mxu1  ;;  %v9763_v20 = vadd.f32 %v9762_v26, %v9710_v53  ;;  %v14228_v53 = vld [vmem:[%s22836_s6 + $0x100] sm:$0xff]  }
 0x7a0   : > { %v9764_v21 = vpop.f32.mrf.mxu0  ;;  %12921 = vmatprep.subr.bf16.mxu0 %v14228_v53 }
 0x7a1   : > { %v9765_v51 = vadd.f32 %v9764_v21, %v9712_v12  ;;  %v9817_v22 = vpop.f32.mrf.mxu1  ;;  %v9816_v60 = vadd.f32 %v9815_v15, %v9763_v20  ;;  %v23816_v21 = vmov 0   ;;  %12922 = vmatpush3.bf16.msra.mxu0 %v14228_v53 }
 0x7a2   : > { %v9766_v55 = vpop.f32.mrf.mxu0 }
 0x7a3   : > { %v9767_v42 = vadd.f32 %v9766_v55, %v9714_v56  ;;  %v9819_v49 = vpop.f32.mrf.mxu1  ;;  %v9818_v44 = vadd.f32 %v9817_v22, %v9765_v51  ;;  %v10228_v38 = vmax.f32 %v9816_v60, 0.0 }
 0x7a4   : > { %v9768_v4 = vpop.f32.mrf.mxu0 }
 0x7a5   : > { %v9820_v54 = vadd.f32 %v9819_v49, %v9767_v42  ;;  %v9769_v34 = vadd.f32 %v9768_v4, %v9716_v13  ;;  %v9821_v0 = vpop.f32.mrf.mxu1  ;;  %v10229_v30 = vmax.f32 %v9818_v44, 0.0 }
 0x7a6   : > { %v9772_v23 = vpop.f32.mrf.mxu0 }
 0x7a7   : > { %v9822_v29 = vadd.f32 %v9821_v0, %v9769_v34  ;;  %v9825_v11 = vpop.f32.mrf.mxu1  ;;  %v10233_v63 = vmax.f32 %v9820_v54, 0.0  ;;  %v9773_v2 = vadd.f32 %v9772_v23, %v9720_v33 }
 0x7a8   : > { %v9774_v17 = vpop.f32.mrf.mxu0 }
 0x7a9   : > { %v10234_v31 = vmax.f32 %v9822_v29, 0.0  ;;  %v9775_v40 = vadd.f32 %v9774_v17, %v9722_v1  ;;  %v9827_v18 = vpop.f32.mrf.mxu1  ;;  %v10248_v25 = vpack.c.bf16 %v10233_v63, %v10228_v38  ;;  %v9826_v19 = vadd.f32 %v9825_v11, %v9773_v2  ;;  %v14229_v17 = vld [vmem:[%s22838_s8 + $0x60] ss:$16 sps:$4 sm:$0xff]  }
 0x7aa   : > { %v9776_v48 = vpop.f32.mrf.mxu0 }
 0x7ab   : > { %v10249_v14 = vpack.c.bf16 %v10234_v31, %v10229_v30  ;;  %v9777_v3 = vadd.f32 %v9776_v48, %v9724_v6  ;;  %v9829_v39 = vpop.f32.mrf.mxu1  ;;  %v9828_v52 = vadd.f32 %v9827_v18, %v9775_v40  ;;  %v10238_v12 = vmax.f32 %v9826_v19, 0.0  ;;  %v14231_v6 = vld [vmem:[%s22838_s8 + $0x64] ss:$16 sps:$4 sm:$0xff]   ;;  %v14234_v31 = vld [vmem:[%s22838_s8 + $0x6c] ss:$16 sps:$4 sm:$0xff]  }
 0x7ac   : > { %v9778_v35 = vpop.f32.mrf.mxu0  ;;  %10842 = vmatprep.subr.bf16.mxu1 %v14231_v6  ;;  %10895 = vmatprep.subr.bf16.mxu0 %v14234_v31 }
 0x7ad   : > { %v9830_v7 = vadd.f32 %v9829_v39, %v9777_v3  ;;  %v9779_v37 = vadd.f32 %v9778_v35, %v9726_v16  ;;  %10638 = vmatprep.mubr.bf16.mxu1 %v10249_v14  ;;  %v9831_v57 = vpop.f32.mrf.mxu1  ;;  %v10239_v26 = vmax.f32 %v9828_v52, 0.0  ;;  %v5651_v3 = vsub.s32 4, %v23810_v47 }
 0x7ae   : > { %10639 = vmatmul.mubr.bf16.vlgmr.msra.gmra.mxu1 %v10248_v25 }
 0x7af   : > { %v9832_v36 = vadd.f32 %v9831_v57, %v9779_v37  ;;  %v10243_v41 = vmax.f32 %v9830_v7, 0.0  ;;  %10843 = vmatpush1.bf16.msra.mxu1 %v14229_v17  ;;  %v5652_v35 = vrot.slane %v22273_v50, %v5651_v3 }
 0x7b1   : > { %v10244_v10 = vmax.f32 %v9832_v36, 0.0  ;;  %v10253_v8 = vpack.c.bf16 %v10243_v41, %v10238_v12 }
 0x7b3   : > { %v10254_v15 = vpack.c.bf16 %v10244_v10, %v10239_v26 }
 0x7b5   : > { %10646 = vmatprep.mubr.bf16.mxu1 %v10254_v15 }
 0x7b6   : > { %10647 = vmatmul.mubr.bf16.gmra.mxu1 %v10253_v8 }
 0x7b7   : > { %10866 = vmatprep.mubr.bf16.mxu1 %v23816_v21 }
 0x7bf   : > { %v12589_v5 = vpop.f32.mrf.mxu0 }
 0x7c0   : > { %v12617_v56 = vpop.f32.mrf.mxu1 }
 0x7c1   : > { %v12590_v51 = vpop.f32.mrf.mxu0 }
 0x7c2   : > { %v12618_v22 = vpop.f32.mrf.mxu1  ;;  %v12591_v52 = vadd.f32 %v12590_v51, %v12589_v5 }
 0x7c3   : > { %v12592_v62 = vpop.f32.mrf.mxu0  ;;  %v12619_v36 = vadd.f32 %v12618_v22, %v12617_v56 }
 0x7c4   : > { %v12620_v20 = vpop.f32.mrf.mxu1  ;;  %v9869_v57 = vadd.f32 %v12591_v52, %v5652_v35 }
 0x7c5   : > { %v12593_v55 = vpop.f32.mrf.mxu0 }
 0x7c6   : > { %v12621_v45 = vpop.f32.mrf.mxu1  ;;  %v12594_v37 = vadd.f32 %v12593_v55, %v12592_v62  ;;  %v9918_v12 = vadd.f32 %v12619_v36, %v9869_v57 }
 0x7c7   : > { %v12595_v13 = vpop.f32.mrf.mxu0  ;;  %v12622_v8 = vadd.f32 %v12621_v45, %v12620_v20 }
 0x7c8   : > { %v12623_v43 = vpop.f32.mrf.mxu1  ;;  %v9872_v26 = vadd.f32 %v12594_v37, %v5652_v35 }
 0x7c9   : > { %v12596_v42 = vpop.f32.mrf.mxu0 }
 0x7ca   : > { %v12624_v49 = vpop.f32.mrf.mxu1  ;;  %v12597_v27 = vadd.f32 %v12596_v42, %v12595_v13  ;;  %v9921_v6 = vadd.f32 %v12622_v8, %v9872_v26 }
 0x7cb   : > { %v12598_v61 = vpop.f32.mrf.mxu0  ;;  %v12625_v3 = vadd.f32 %v12624_v49, %v12623_v43 }
 0x7cc   : > { %v22627_v24 = vpop.f32.mrf.mxu1  ;;  %v9877_v50 = vadd.f32 %v12597_v27, %v5652_v35 }
 0x7cd   : > { %v12599_v4 = vpop.f32.mrf.mxu0 }
 0x7ce   : > { %v22629_v59 = vpop.f32.mrf.mxu1  ;;  %v12600_v31 = vadd.f32 %v12599_v4, %v12598_v61  ;;  %v9926_v13 = vadd.f32 %v12625_v3, %v9877_v50 }
 0x7cf   : > { %v12628_v45 = vadd.f32 %v22629_v59, %v22627_v24 }
 0x7d0   : > { %v9880_v22 = vadd.f32 %v12600_v31, %v5652_v35 }
 0x7e0   : > { %v12645_v44 = vpop.f32.mrf.mxu0 }
 0x7e1   : > { %v12673_v54 = vpop.f32.mrf.mxu1 }
 0x7e2   : > { %v12646_v34 = vpop.f32.mrf.mxu0 }
 0x7e3   : > { %v12674_v0 = vpop.f32.mrf.mxu1  ;;  %v12647_v41 = vadd.f32 %v12646_v34, %v12645_v44 }
 0x7e4   : > { %v12648_v60 = vpop.f32.mrf.mxu0  ;;  %v12675_v5 = vadd.f32 %v12674_v0, %v12673_v54 }
 0x7e5   : > { %v12676_v23 = vpop.f32.mrf.mxu1  ;;  %v9967_v17 = vadd.f32 %v12647_v41, %v9918_v12 }
 0x7e6   : > { %v12649_v1 = vpop.f32.mrf.mxu0 }
 0x7e7   : > { %v12677_v9 = vpop.f32.mrf.mxu1  ;;  %v12650_v53 = vadd.f32 %v12649_v1, %v12648_v60  ;;  %v10016_v52 = vadd.f32 %v12675_v5, %v9967_v17 }
 0x7e8   : > { %v12651_v29 = vpop.f32.mrf.mxu0  ;;  %v12678_v44 = vadd.f32 %v12677_v9, %v12676_v23 }
 0x7e9   : > { %v22631_v11 = vpop.f32.mrf.mxu1  ;;  %v9970_v55 = vadd.f32 %v12650_v53, %v9921_v6 }
 0x7ea   : > { %v12652_v33 = vpop.f32.mrf.mxu0 }
 0x7eb   : > { %v22633_v63 = vpop.f32.mrf.mxu1  ;;  %v12653_v56 = vadd.f32 %v12652_v33, %v12651_v29  ;;  %v10019_v61 = vadd.f32 %v12678_v44, %v9970_v55 }
 0x7ec   : > { %v12654_v30 = vpop.f32.mrf.mxu0  ;;  %v12681_v23 = vadd.f32 %v22633_v63, %v22631_v11 }
 0x7ed   : > { %v22644_v40 = vpop.f32.mrf.mxu1  ;;  %v9975_v54 = vadd.f32 %v12653_v56, %v9926_v13 }
 0x7ee   : > { %v12655_v18 = vpop.f32.mrf.mxu0 }
 0x7ef   : > { %v22646_v38 = vpop.f32.mrf.mxu1  ;;  %v12656_v4 = vadd.f32 %v12655_v18, %v12654_v30  ;;  %v10024_v24 = vadd.f32 %v12681_v23, %v9975_v54  ;;  %v14238_v54 = vld [vmem:[%s22838_s8 + $0x48] ss:$16 sps:$4 sm:$0xff]   ;;  %v14252_v23 = vld [vmem:[%s22838_s8 + $0xc] ss:$16 sps:$4 sm:$0xff]  }
 0x7f0   : > { %v12684_v18 = vadd.f32 %v22646_v38, %v22644_v40 }
 0x801   : > { %v12701_v2 = vpop.f32.mrf.mxu0 }
 0x802   : > { %v12729_v48 = vpop.f32.mrf.mxu1 }
 0x803   : > { %v12702_v58 = vpop.f32.mrf.mxu0 }
 0x804   : > { %v12730_v16 = vpop.f32.mrf.mxu1  ;;  %v12703_v51 = vadd.f32 %v12702_v58, %v12701_v2  ;;  %v9929_v2 = vadd.f32 %v12628_v45, %v9880_v22 }
 0x805   : > { %v12704_v14 = vpop.f32.mrf.mxu0  ;;  %v12731_v0 = vadd.f32 %v12730_v16, %v12729_v48 }
 0x806   : > { %v12732_v39 = vpop.f32.mrf.mxu1  ;;  %v10065_v42 = vadd.f32 %v12703_v51, %v10016_v52 }
 0x807   : > { %v12705_v25 = vpop.f32.mrf.mxu0 }
 0x808   : > { %v12733_v7 = vpop.f32.mrf.mxu1  ;;  %v12706_v34 = vadd.f32 %v12705_v25, %v12704_v14  ;;  %v10114_v9 = vadd.f32 %v12731_v0, %v10065_v42  ;;  %v9978_v14 = vadd.f32 %v12656_v4, %v9929_v2  ;;  %v14240_v4 = vld [vmem:[%s22838_s8 + $0x4c] ss:$16 sps:$4 sm:$0xff]   ;;  %v14243_v0 = vld [vmem:[%s22838_s8 + $0x24] ss:$16 sps:$4 sm:$0xff]   ;;  %v14241_v2 = vld [vmem:[%s22838_s8 + $0x20] ss:$16 sps:$4 sm:$0xff]  }
 0x809   : > { %v12707_v19 = vpop.f32.mrf.mxu0  ;;  %v12734_v25 = vadd.f32 %v12733_v7, %v12732_v39 }
 0x80a   : > { %v12735_v46 = vpop.f32.mrf.mxu1  ;;  %v10068_v43 = vadd.f32 %v12706_v34, %v10019_v61  ;;  %v10027_v63 = vadd.f32 %v12684_v18, %v9978_v14  ;;  %v14237_v61 = vld [vmem:[%s22838_s8 + $0x44] ss:$16 sps:$4 sm:$0xff]  }
 0x80b   : > { %v12708_v10 = vpop.f32.mrf.mxu0  ;;  %10844 = vmatprep.subr.bf16.mxu1 %v14237_v61 }
 0x80c   : > { %v12736_v15 = vpop.f32.mrf.mxu1  ;;  %v12709_v29 = vadd.f32 %v12708_v10, %v12707_v19  ;;  %v10117_v48 = vadd.f32 %v12734_v25, %v10068_v43  ;;  %v14244_v43 = vld [vmem:[%s22838_s8 + $0x28] ss:$16 sps:$4 sm:$0xff]  }
 0x80d   : > { %v12710_v28 = vpop.f32.mrf.mxu0  ;;  %v12737_v10 = vadd.f32 %v12736_v15, %v12735_v46 }
 0x80e   : > { %v12738_v62 = vpop.f32.mrf.mxu1  ;;  %v10073_v57 = vadd.f32 %v12709_v29, %v10024_v24  ;;  %v14250_v29 = vld [vmem:[%s22838_s8 + $0x8] ss:$16 sps:$4 sm:$0xff]  }
 0x80f   : > { %v12711_v37 = vpop.f32.mrf.mxu0 }
 0x810   : > { %v12739_v20 = vpop.f32.mrf.mxu1  ;;  %v12712_v36 = vadd.f32 %v12711_v37, %v12710_v28  ;;  %v10122_v53 = vadd.f32 %v12737_v10, %v10073_v57 }
 0x811   : > { %v12740_v50 = vadd.f32 %v12739_v20, %v12738_v62  ;;  %v14232_v62 = vld [vmem:[%s22838_s8 + $0x68] ss:$16 sps:$4 sm:$0xff]  }
 0x812   : > { %v10076_v17 = vadd.f32 %v12712_v36, %v10027_v63  ;;  %v12479_v63 = vld [vmem:[%s22837_s7] ss:$0 sm:$0xff] }
 0x814   : > { %v10125_v52 = vadd.f32 %v12740_v50, %v10076_v17 }
 0x822   : > { %v12757_v60 = vpop.f32.mrf.mxu0 }
 0x823   : > { %v12785_v1 = vpop.f32.mrf.mxu1 }
 0x824   : > { %v12758_v49 = vpop.f32.mrf.mxu0 }
 0x825   : > { %v12759_v33 = vadd.f32 %v12758_v49, %v12757_v60  ;;  %v12786_v58 = vpop.f32.mrf.mxu1  ;;  %v14235_v60 = vld [vmem:[%s22838_s8 + $0x40] ss:$16 sps:$4 sm:$0xff]   ;;  %v14249_v49 = vld [vmem:[%s22838_s8 + $0x4] ss:$16 sps:$4 sm:$0xff]  }
 0x826   : > { %v12760_v35 = vpop.f32.mrf.mxu0  ;;  %v12787_v41 = vadd.f32 %v12786_v58, %v12785_v1  ;;  %10845 = vmatpush1.bf16.msra.mxu1 %v14235_v60  ;;  %v14246_v1 = vld [vmem:[%s22838_s8 + $0x2c] ss:$16 sps:$4 sm:$0xff]   ;;  %v14259_v60 = vld [vmem:[%s22840_s10 + $0x30] sm:$0xff]  }
 0x827   : > { %v10163_v59 = vadd.f32 %v12759_v33, %v10114_v9  ;;  %v12788_v30 = vpop.f32.mrf.mxu1  ;;  %10846 = vmatprep.subr.bf16.mxu1 %v14243_v0  ;;  %v14247_v9 = vld [vmem:[%s22838_s8] ss:$16 sps:$4 sm:$0xff]   ;;  %v14253_v33 = vld [vmem:[%s22840_s10 + $0x78] sm:$0xff]   ;;  %v14261_v0 = vld [vmem:[%s22840_s10 + $0x68] sm:$0xff]  }
 0x828   : > { %v12761_v16 = vpop.f32.mrf.mxu0  ;;  %v14254_v58 = vld [vmem:[%s22840_s10 + $0xf8] sm:$0xff]  }
 0x829   : > { %v12762_v26 = vadd.f32 %v12761_v16, %v12760_v35  ;;  %v12789_v11 = vpop.f32.mrf.mxu1  ;;  %v10212_v12 = vadd.f32 %v12787_v41, %v10163_v59 }
 0x82a   : > { %v12763_v19 = vpop.f32.mrf.mxu0  ;;  %v12790_v39 = vadd.f32 %v12789_v11, %v12788_v30  ;;  %10847 = vmatpush1.bf16.msra.mxu1 %v14241_v2 }
 0x82b   : > { %v10166_v27 = vadd.f32 %v12762_v26, %v10117_v48  ;;  %v12791_v7 = vpop.f32.mrf.mxu1  ;;  %v10230_v5 = vmax.f32 %v10212_v12, 0.0  ;;  %10848 = vmatprep.subr.bf16.mxu1 %v14249_v49  ;;  %v14264_v49 = vld [vmem:[%s22840_s10 + $0xa8] sm:$0xff]  }
 0x82c   : > { %v12764_v8 = vpop.f32.mrf.mxu0 }
 0x82d   : > { %v10215_v6 = vadd.f32 %v12790_v39, %v10166_v27  ;;  %v12765_v31 = vadd.f32 %v12764_v8, %v12763_v19  ;;  %v12792_v40 = vpop.f32.mrf.mxu1 }
 0x82e   : > { %v12766_v38 = vpop.f32.mrf.mxu0  ;;  %v12793_v46 = vadd.f32 %v12792_v40, %v12791_v7  ;;  %10849 = vmatpush1.bf16.msra.mxu1 %v14247_v9  ;;  %v14266_v9 = vld [vmem:[%s22840_s10 + $0xe0] sm:$0xff]  }
 0x82f   : > { %v10235_v28 = vmax.f32 %v10215_v6, 0.0  ;;  %v10171_v51 = vadd.f32 %v12765_v31, %v10122_v53  ;;  %v12794_v55 = vpop.f32.mrf.mxu1  ;;  %12859 = vmatprep.subr.bf16.mxu1 %v14253_v33  ;;  %v14268_v33 = vld [vmem:[%s22840_s10 + $0xa0] sm:$0xff]  }
 0x830   : > { %v12767_v3 = vpop.f32.mrf.mxu0 }
 0x831   : > { %v10250_v56 = vpack.c.bf16 %v10235_v28, %v10230_v5  ;;  %v12768_v15 = vadd.f32 %v12767_v3, %v12766_v38  ;;  %v12795_v22 = vpop.f32.mrf.mxu1  ;;  %v10220_v44 = vadd.f32 %v12793_v46, %v10171_v51 }
 0x832   : > { %v12796_v37 = vadd.f32 %v12795_v22, %v12794_v55 }
 0x833   : > { %v10174_v34 = vadd.f32 %v12768_v15, %v10125_v52  ;;  %12923 = vmatprep.mubr.msk.bf16.mxu0 %vm1242_vm0, %v10250_v56  ;;  %v10240_v42 = vmax.f32 %v10220_v44, 0.0 }
 0x835   : > { %v10223_v13 = vadd.f32 %v12796_v37, %v10174_v34 }
 0x837   : > { %v10245_v45 = vmax.f32 %v10223_v13, 0.0 }
 0x839   : > { %v10255_v20 = vpack.c.bf16 %v10245_v45, %v10240_v42  ;;  %v14255_v42 = vld [vmem:[%s22840_s10 + $0x38] sm:$0xff]  }
 0x83a   : > { %v14256_v45 = vld [vmem:[%s22840_s10 + $0xb8] sm:$0xff]  }
 0x83b   : > { %12924 = vmatmul.mubr.msk.bf16.vlgmr.msra.gmra.mxu0 %vm1242_vm0, %v10255_v20  ;;  %v14258_v20 = vld [vmem:[%s22840_s10 + $0xf0] sm:$0xff]  }
 0x83c   : > { %10896 = vmatpush1.bf16.msra.mxu0 %v14232_v62  ;;  %10919 = vmatprep.mubr.bf16.mxu0 %v23816_v21  ;;  %v14257_v62 = vld [vmem:[%s22840_s10 + $0x70] sm:$0xff]  }
 0x83d   : > { %10897 = vmatprep.subr.bf16.mxu0 %v14240_v4 }
 0x840   : > { %10898 = vmatpush1.bf16.msra.mxu0 %v14238_v54  ;;  %v14260_v54 = vld [vmem:[%s22840_s10 + $0xb0] sm:$0xff]  }
 0x841   : > { %10899 = vmatprep.subr.bf16.mxu0 %v14246_v1 }
 0x843   : > { %v12813_v14 = vpop.f32.mrf.mxu0 }
 0x844   : > { %10900 = vmatpush1.bf16.msra.mxu0 %v14244_v43  ;;  %v14263_v43 = vld [vmem:[%s22840_s10 + $0x28] sm:$0xff]  }
 0x845   : > { %10901 = vmatprep.subr.bf16.mxu0 %v14252_v23  ;;  %v12814_v25 = vpop.f32.mrf.mxu0  ;;  %v14265_v23 = vld [vmem:[%s22840_s10 + $0x60] sm:$0xff]  }
 0x846   : > { %v12815_v11 = vadd.f32 %v12814_v25, %v12813_v14  ;;  %v14270_v14 = vld [vmem:[%s22840_s10 + $0xd8] sm:$0xff]  }
 0x847   : > { %v12816_v24 = vpop.f32.mrf.mxu0  ;;  %v14271_v25 = vld [vmem:[%s22840_s10 + $0x18] sm:$0xff]  }
 0x848   : > { %10902 = vmatpush1.bf16.msra.mxu0 %v14250_v29  ;;  %v10592_v7 = vadd.f32 %v12815_v11, %v12479_v63  ;;  %v14267_v29 = vld [vmem:[%s22840_s10 + $0x20] sm:$0xff]  }
 0x849   : > { %12887 = vmatprep.subr.bf16.mxu0 %v14254_v58  ;;  %v12817_v30 = vpop.f32.mrf.mxu0  ;;  %v14269_v58 = vld [vmem:[%s22840_s10 + $0x58] sm:$0xff]   ;;  %v14283_v11 = vld [vmem:[%s22840_s10] sm:$0xff]  }
 0x84a   : > { %v12818_v12 = vadd.f32 %v12817_v30, %v12816_v24  ;;  %v14273_v24 = vld [vmem:[%s22840_s10 + $0x50] sm:$0xff]  }
 0x84b   : > { %v12819_v48 = vpop.f32.mrf.mxu0  ;;  %v14275_v30 = vld [vmem:[%s22840_s10 + $0x10] sm:$0xff]  }
 0x84c   : > { %v10595_v6 = vadd.f32 %v12818_v12, %v12479_v63 }
 0x84d   : > { %v12820_v57 = vpop.f32.mrf.mxu0 }
 0x84e   : > { %v12821_v50 = vadd.f32 %v12820_v57, %v12819_v48  ;;  %v14277_v48 = vld [vmem:[%s22840_s10 + $0x48] sm:$0xff]  }
 0x84f   : > { %v12822_v41 = vpop.f32.mrf.mxu0  ;;  %v14279_v57 = vld [vmem:[%s22840_s10 + $0x8] sm:$0xff]  }
 0x850   : > { %v10600_v46 = vadd.f32 %v12821_v50, %v12479_v63 }
 0x851   : > { %v12823_v19 = vpop.f32.mrf.mxu0 }
 0x852   : > { %v12824_v31 = vadd.f32 %v12823_v19, %v12822_v41  ;;  %v14281_v41 = vld [vmem:[%s22840_s10 + $0x40] sm:$0xff]  }
 0x853   : > { %v10726_v19 = vld [vmem:[%s22839_s9] sm:$0xf] }
 0x854   : > { %v10603_v3 = vadd.f32 %v12824_v31, %v12479_v63  ;;  %v14284_v63 = vld [vmem:[%s22840_s10 + $0x80] sm:$0xff]  }
 0x86e   : > { %v12841_v35 = vpop.f32.mrf.mxu1 }
 0x870   : > { %v12842_v59 = vpop.f32.mrf.mxu1 }
 0x871   : > { %v12843_v27 = vadd.f32 %v12842_v59, %v12841_v35  ;;  %v14272_v35 = vld [vmem:[%s22840_s10 + $0x98] sm:$0xff]   ;;  %v14274_v59 = vld [vmem:[%s22840_s10 + $0xd0] sm:$0xff]  }
 0x872   : > { %v12844_v18 = vpop.f32.mrf.mxu1 }
 0x873   : > { %v10641_v40 = vadd.f32 %v12843_v27, %v10592_v7  ;;  %v23817_v27 = vld [vmem:[#allocation114_spill] sm:$0xff]  ;;  %v10743_v7 = vrot.slane %v10726_v19, %v5647_v32 }
 0x874   : > { %v12845_v16 = vpop.f32.mrf.mxu1 }
 0x875   : > { %v12846_v8 = vadd.f32 %v12845_v16, %v12844_v18  ;;  %v14276_v18 = vld [vmem:[%s22840_s10 + $0x90] sm:$0xff]   ;;  %v14278_v16 = vld [vmem:[%s22840_s10 + $0xc8] sm:$0xff]  }
 0x876   : > { %v12847_v36 = vpop.f32.mrf.mxu1 }
 0x877   : > { %v10644_v51 = vadd.f32 %v12846_v8, %v10595_v6  ;;  %v23818_v8 = vld [vmem:[#allocation8_spill] sm:$0xff] }
 0x878   : > { %v12848_v26 = vpop.f32.mrf.mxu1 }
 0x879   : > { %v12849_v52 = vadd.f32 %v12848_v26, %v12847_v36  ;;  %v14280_v36 = vld [vmem:[%s22840_s10 + $0x88] sm:$0xff]   ;;  %v14282_v26 = vld [vmem:[%s22840_s10 + $0xc0] sm:$0xff]  }
 0x87a   : > { %v12850_v10 = vpop.f32.mrf.mxu1 }
 0x87b   : > { %v10649_v34 = vadd.f32 %v12849_v52, %v10600_v46 }
 0x87c   : > { %v12851_v53 = vpop.f32.mrf.mxu1 }
 0x87d   : > { %v12852_v5 = vadd.f32 %v12851_v53, %v12850_v10  ;;  %v10731_v53 = vrot.slane %v10726_v19, %v23818_v8 }
 0x87f   : > { %v10652_v22 = vadd.f32 %v12852_v5, %v10603_v3 }
 0x8fb   : > { %v12925_v39 = vpop.f32.mrf.mxu0 }
 0x8fc   : > { %v10698_v61 = vadd.f32 %v12925_v39, %v10649_v34  ;;  %v10735_v39 = vrot.slane %v10726_v19, %v23817_v27 }
 0x8fd   : > { %v10689_v17 = vpop.f32.mrf.mxu0 }
 0x8fe   : > { %v10690_v28 = vadd.f32 %v10689_v17, %v10641_v40  ;;  %v10706_v1 = vmax.f32 %v10698_v61, 0.0  ;;  %v23819_v17 = vsub.s32 2, %v23810_v47 }
 0x8ff   : > { %v12926_v38 = vpop.f32.mrf.mxu0 }
 0x900   : > { %v10704_v15 = vmax.f32 %v10690_v28, 0.0  ;;  %v10701_v37 = vadd.f32 %v12926_v38, %v10652_v22  ;;  %v10739_v6 = vrot.slane %v10726_v19, %v23819_v17 }
 0x901   : > { %v10692_v55 = vpop.f32.mrf.mxu0 }
 0x902   : > { %v10693_v56 = vadd.f32 %v10692_v55, %v10644_v51  ;;  %v10707_v4 = vmax.f32 %v10701_v37, 0.0 }
 0x904   : > { %v10705_v44 = vmax.f32 %v10693_v56, 0.0  ;;  %v10709_v2 = vpack.c.bf16 %v10707_v4, %v10706_v1 }
 0x906   : > { %v10708_v13 = vpack.c.bf16 %v10705_v44, %v10704_v15 }
 0x908   : > { %12534 = vmatmul.mubr.msk.bf16.vlgmr.msra.gmra.mxu1 %vm1242_vm0, %v10708_v13  ;;  %12536 = vmatmul.mubr.msk.bf16.vlgmr.msra.gmra.mxu0 %vm1242_vm0, %v10708_v13 }
 0x909   : > { %10876 = vmatprep.mubr.bf16.mxu1 %v23816_v21  ;;  %10929 = vmatprep.mubr.bf16.mxu0 %v23816_v21  ;;  %v14262_v21 = vld [vmem:[%s22840_s10 + $0xe8] sm:$0xff]  }
 0x90a   : > { %12860 = vmatpush3.bf16.msra.mxu1 %v14255_v42  ;;  %12888 = vmatpush3.bf16.msra.mxu0 %v14256_v45 }
 0x90b   : > { %12861 = vmatprep.subr.bf16.mxu1 %v14257_v62  ;;  %12889 = vmatprep.subr.bf16.mxu0 %v14258_v20 }
 0x90e   : > { %12862 = vmatpush3.bf16.msra.mxu1 %v14259_v60  ;;  %12890 = vmatpush3.bf16.msra.mxu0 %v14260_v54 }
 0x90f   : > { %12863 = vmatprep.subr.bf16.mxu1 %v14261_v0  ;;  %12891 = vmatprep.subr.bf16.mxu0 %v14262_v21 }
 0x910   : > { %12535 = vmatmul.mubr.msk.bf16.gmra.mxu1 %vm1242_vm0, %v10709_v2  ;;  %12537 = vmatmul.mubr.msk.bf16.gmra.mxu0 %vm1242_vm0, %v10709_v2 }
 0x912   : > { %12864 = vmatpush3.bf16.msra.mxu1 %v14263_v43  ;;  %12892 = vmatpush3.bf16.msra.mxu0 %v14264_v49 }
 0x913   : > { %12865 = vmatprep.subr.bf16.mxu1 %v14265_v23  ;;  %12893 = vmatprep.subr.bf16.mxu0 %v14266_v9 }
 0x916   : > { %12866 = vmatpush3.bf16.msra.mxu1 %v14267_v29  ;;  %12894 = vmatpush3.bf16.msra.mxu0 %v14268_v33 }
 0x917   : > { %12867 = vmatprep.subr.bf16.mxu1 %v14269_v58  ;;  %12895 = vmatprep.subr.bf16.mxu0 %v14270_v14 }
 0x91a   : > { %12868 = vmatpush3.bf16.msra.mxu1 %v14271_v25  ;;  %12896 = vmatpush3.bf16.msra.mxu0 %v14272_v35 }
 0x91b   : > { %12869 = vmatprep.subr.bf16.mxu1 %v14273_v24  ;;  %12897 = vmatprep.subr.bf16.mxu0 %v14274_v59 }
 0x91e   : > { %12870 = vmatpush3.bf16.msra.mxu1 %v14275_v30  ;;  %12898 = vmatpush3.bf16.msra.mxu0 %v14276_v18 }
 0x91f   : > { %12871 = vmatprep.subr.bf16.mxu1 %v14277_v48  ;;  %12899 = vmatprep.subr.bf16.mxu0 %v14278_v16 }
 0x922   : > { %12872 = vmatpush3.bf16.msra.mxu1 %v14279_v57  ;;  %12900 = vmatpush3.bf16.msra.mxu0 %v14280_v36 }
 0x923   : > { %12873 = vmatprep.subr.bf16.mxu1 %v14281_v41  ;;  %12901 = vmatprep.subr.bf16.mxu0 %v14282_v26 }
 0x926   : > { %12874 = vmatpush3.bf16.msra.mxu1 %v14283_v11  ;;  %12902 = vmatpush3.bf16.msra.mxu0 %v14284_v63 }
 0x9c8   : > { %v10868_v10 = vpop.f32.mrf.mxu1  ;;  %v10921_v12 = vpop.f32.mrf.mxu0 }
 0x9c9   : > { %v10869_v3 = vadd.f32 %v10868_v10, %v10731_v53  ;;  %v10922_v52 = vadd.f32 %v10921_v12, %v10739_v6  ;;  %v12538_v12 = vld [vmem:[%s22841_s11] ss:$0 sm:$0xff] }
 0x9ca   : > { %v10870_v31 = vpop.f32.mrf.mxu1  ;;  %v10923_v40 = vpop.f32.mrf.mxu0 }
 0x9cb   : > { %v10871_v5 = vadd.f32 %v10870_v31, %v10735_v39  ;;  %v10924_v28 = vadd.f32 %v10923_v40, %v10743_v7  ;;  %v10940_v62 = vmax.f32 %v10869_v3, 0.0  ;;  %v10942_v20 = vmax.f32 %v10922_v52, 0.0 }
 0x9cc   : > { %v10872_v38 = vpop.f32.mrf.mxu1  ;;  %v10925_v50 = vpop.f32.mrf.mxu0 }
 0x9cd   : > { %v10873_v51 = vadd.f32 %v10872_v38, %v10731_v53  ;;  %v10926_v55 = vadd.f32 %v10925_v50, %v10739_v6  ;;  %v10941_v47 = vmax.f32 %v10871_v5, 0.0  ;;  %v10943_v13 = vmax.f32 %v10924_v28, 0.0 }
 0x9ce   : > { %v10874_v56 = vpop.f32.mrf.mxu1  ;;  %v10927_v46 = vpop.f32.mrf.mxu0 }
 0x9cf   : > { %v10875_v15 = vadd.f32 %v10874_v56, %v10735_v39  ;;  %v10928_v22 = vadd.f32 %v10927_v46, %v10743_v7  ;;  %v10944_v32 = vmax.f32 %v10873_v51, 0.0  ;;  %v10946_v44 = vmax.f32 %v10926_v55, 0.0 }
 0x9d0   : > { %v10878_v34 = vpop.f32.mrf.mxu1  ;;  %v10931_v37 = vpop.f32.mrf.mxu0 }
 0x9d1   : > { %v10945_v42 = vmax.f32 %v10875_v15, 0.0  ;;  %v10947_v45 = vmax.f32 %v10928_v22, 0.0  ;;  %v10956_v0 = vpack.c.bf16 %v10944_v32, %v10940_v62  ;;  %v10958_v21 = vpack.c.bf16 %v10946_v44, %v10942_v20 }
 0x9d2   : > { %v10880_v61 = vpop.f32.mrf.mxu1  ;;  %v10933_v4 = vpop.f32.mrf.mxu0  ;;  %v10879_v29 = vadd.f32 %v10878_v34, %v10731_v53  ;;  %v10932_v33 = vadd.f32 %v10931_v37, %v10739_v6 }
 0x9d3   : > { %v10957_v60 = vpack.c.bf16 %v10945_v42, %v10941_v47  ;;  %v10959_v54 = vpack.c.bf16 %v10947_v45, %v10943_v13  ;;  %v10881_v1 = vadd.f32 %v10880_v61, %v10735_v39  ;;  %v10934_v49 = vadd.f32 %v10933_v4, %v10743_v7 }
 0x9d4   : > { %v10882_v2 = vpop.f32.mrf.mxu1  ;;  %v10935_v43 = vpop.f32.mrf.mxu0  ;;  %v10948_v57 = vmax.f32 %v10879_v29, 0.0  ;;  %v10950_v36 = vmax.f32 %v10932_v33, 0.0 }
 0x9d5   : > { %v10883_v23 = vadd.f32 %v10882_v2, %v10731_v53  ;;  %v10936_v9 = vadd.f32 %v10935_v43, %v10739_v6  ;;  %11259 = vmatprep.mubr.bf16.mxu1 %v10957_v60  ;;  %11308 = vmatprep.mubr.bf16.mxu0 %v10959_v54  ;;  %v10949_v30 = vmax.f32 %v10881_v1, 0.0  ;;  %v10951_v18 = vmax.f32 %v10934_v49, 0.0 }
 0x9d6   : > { %v10884_v58 = vpop.f32.mrf.mxu1  ;;  %v10937_v14 = vpop.f32.mrf.mxu0  ;;  %11260 = vmatmul.mubr.bf16.vlgmr.msra.gmra.mxu1 %v10956_v0  ;;  %11309 = vmatmul.mubr.bf16.vlgmr.msra.gmra.mxu0 %v10958_v21 }
 0x9d7   : > { %v10885_v25 = vadd.f32 %v10884_v58, %v10735_v39  ;;  %v10938_v35 = vadd.f32 %v10937_v14, %v10743_v7  ;;  %v10952_v24 = vmax.f32 %v10883_v23, 0.0  ;;  %v10954_v59 = vmax.f32 %v10936_v9, 0.0 }
 0x9d9   : > { %v10953_v48 = vmax.f32 %v10885_v25, 0.0  ;;  %v10955_v16 = vmax.f32 %v10938_v35, 0.0  ;;  %v10960_v11 = vpack.c.bf16 %v10952_v24, %v10948_v57  ;;  %v10962_v63 = vpack.c.bf16 %v10954_v59, %v10950_v36 }
 0x9db   : > { %v10961_v41 = vpack.c.bf16 %v10953_v48, %v10949_v30  ;;  %v10963_v26 = vpack.c.bf16 %v10955_v16, %v10951_v18 }
 0x9dd   : > { %11267 = vmatprep.mubr.bf16.mxu1 %v10961_v41  ;;  %11316 = vmatprep.mubr.bf16.mxu0 %v10963_v26 }
 0x9de   : > { %11268 = vmatmul.mubr.bf16.gmra.mxu1 %v10960_v11  ;;  %11317 = vmatmul.mubr.bf16.gmra.mxu0 %v10962_v63 }
 0xa96   : > { %v12875_v19 = vpop.f32.mrf.mxu1  ;;  %v12903_v10 = vpop.f32.mrf.mxu0 }
 0xa98   : > { %v12876_v27 = vpop.f32.mrf.mxu1  ;;  %v12904_v39 = vpop.f32.mrf.mxu0 }
 0xa99   : > { %v12877_v7 = vadd.f32 %v12876_v27, %v12875_v19  ;;  %v12905_v6 = vadd.f32 %v12904_v39, %v12903_v10 }
 0xa9a   : > { %v12878_v8 = vpop.f32.mrf.mxu1  ;;  %v12906_v53 = vpop.f32.mrf.mxu0 }
 0xa9b   : > { %v11262_v17 = vadd.f32 %v12877_v7, %v12538_v12 }
 0xa9c   : > { %v12879_v31 = vpop.f32.mrf.mxu1  ;;  %v12907_v40 = vpop.f32.mrf.mxu0 }
 0xa9d   : > { %v11311_v38 = vadd.f32 %v12905_v6, %v11262_v17  ;;  %v12880_v50 = vadd.f32 %v12879_v31, %v12878_v8  ;;  %v12908_v55 = vadd.f32 %v12907_v40, %v12906_v53 }
 0xa9e   : > { %v12881_v5 = vpop.f32.mrf.mxu1  ;;  %v12909_v28 = vpop.f32.mrf.mxu0 }
 0xa9f   : > { %11325 = vst [vmem:[%s659_s23] sm:$0xff] %v11311_v38  ;;  %v11265_v51 = vadd.f32 %v12880_v50, %v12538_v12 }
 0xaa0   : > { %v12882_v3 = vpop.f32.mrf.mxu1  ;;  %v12910_v52 = vpop.f32.mrf.mxu0 }
 0xaa1   : > { %v11314_v56 = vadd.f32 %v12908_v55, %v11265_v51  ;;  %v12883_v46 = vadd.f32 %v12882_v3, %v12881_v5  ;;  %v12911_v44 = vadd.f32 %v12910_v52, %v12909_v28 }
 0xaa2   : > { %v12884_v15 = vpop.f32.mrf.mxu1  ;;  %v12912_v22 = vpop.f32.mrf.mxu0 }
 0xaa3   : > { %11326 = vst [vmem:[%s659_s23 + $0x8] sm:$0xff] %v11314_v56  ;;  %v11270_v32 = vadd.f32 %v12883_v46, %v12538_v12 }
 0xaa4   : > { %v12885_v34 = vpop.f32.mrf.mxu1  ;;  %v12913_v37 = vpop.f32.mrf.mxu0 }
 0xaa5   : > { %v11319_v47 = vadd.f32 %v12911_v44, %v11270_v32  ;;  %v12886_v13 = vadd.f32 %v12885_v34, %v12884_v15  ;;  %v12914_v45 = vadd.f32 %v12913_v37, %v12912_v22 }
 0xaa7   : > { %11327 = vst [vmem:[%s659_s23 + $0x10] sm:$0xff] %v11319_v47  ;;  %v11273_v42 = vadd.f32 %v12886_v13, %v12538_v12 }
 0xaa9   : > { %v11322_v62 = vadd.f32 %v12914_v45, %v11273_v42 }
 0xaab   : > { %11328 = vst [vmem:[%s659_s23 + $0x18] sm:$0xff] %v11322_v62 }
 0xaac PF: > { %p19_p9 = scmp.ge.s32.totalorder %s15082_s25, 4   ;;  %s23820_s21 = smov %s14993_s22 }
 0xaad   : > { %s23821_s22 = smov %s15091_s28  ;;  %s23822_s23 = smov %s15082_s25 }
 0xaae   :  { %21 = sbr.rel (!%p19_p9) target bundleno = 2 (0x2), region = 143 }

</bundles_post_ra>
